<compile_context>
chip_gen: v7x
topology: tpu7x:2x2x1
jax: 0.10.0
libtpu: 0.0.40
codegen_flags: <defaults>
</compile_context>

<pallas_src>
import functools
import math

import jax
import jax.numpy as jnp
from jax.experimental import pallas as pl
from jax.experimental.pallas import tpu as pltpu


_PARAM_KEYS = ("wq", "bq", "wk", "bk", "wv", "bv", "wo", "bo",
               "ln1_g", "ln1_b", "w1", "b1", "w2", "b2", "ln2_g", "ln2_b")

_LAYER_UNROLL_MAX = 4          # unrolled Python layer loop up to this depth
_MIN_VMEM_LIMIT = 32 * 1024 * 1024
_SQRT_2_OVER_PI = 0.7978845608028654


# --------------------------------------------------------------------------
# in-kernel math helpers (element-wise math f32; matmuls use compute_dtype)
# --------------------------------------------------------------------------
def _gelu(x):
    # tanh-approximate GELU: transcendental lands on the EUP instead of a long
    # VALU polynomial.  |tanh-gelu - erf-gelu| <= ~1e-3 absolute.
    return 0.5 * x * (1.0 + jnp.tanh(_SQRT_2_OVER_PI * (x + 0.044715 * (x * x * x))))


def _layer_norm(x, gamma, beta, eps=1e-5):
    mean = jnp.mean(x, axis=-1, keepdims=True)
    var = jnp.mean(jnp.square(x - mean), axis=-1, keepdims=True)
    return (x - mean) * jax.lax.rsqrt(var + eps) * gamma + beta


def _qkt(a, b):
    """a (S,d) . b (T,d)^T -> (S,T), f32 accumulation, no explicit transpose."""
    return jax.lax.dot_general(a, b, (((1,), (1,)), ((), ())),
                               preferred_element_type=jnp.float32)


def _one_layer(x, wq, bq, wk, bk, wv, bv, wo, bo, g1, be1,
               w1, b1, w2, b2, g2, be2, *,
               num_heads, compute_dtype, kv_chunk, ffn_chunk, merge):
    """One post-LN transformer layer on a (S, E) fp32 activation."""
    S, E = x.shape
    hd = E // num_heads
    cd = compute_dtype
    x_cd = x.astype(cd)

    # ---- full-width projections: (S,E)@(E,E), K=E fills the MXU.  The
    # 1/sqrt(head_dim) scaling is already folded into wq/bq wrapper-side. ----
    q = jnp.dot(x_cd, wq, preferred_element_type=jnp.float32) + bq
    k = jnp.dot(x_cd, wk, preferred_element_type=jnp.float32) + bk
    v = jnp.dot(x_cd, wv, preferred_element_type=jnp.float32) + bv
    q_cd, k_cd, v_cd = q.astype(cd), k.astype(cd), v.astype(cd)

    # ---- heads split only for the score / PV contractions -------------------
    # TODO(synk): self_padding_mask / attn_mask would be applied to the scores
    # here; the module under test is exercised with neither (both None).
    ctx_parts = []
    for h in range(num_heads):
        lo = h * hd
        qh = q_cd[:, lo:lo + hd]
        kh = k_cd[:, lo:lo + hd]
        vh = v_cd[:, lo:lo + hd]
        if S <= kv_chunk:
            s = _qkt(qh, kh)                                       # (S,S) f32
            s = s - jnp.max(s, axis=-1, keepdims=True)
            p = jnp.exp(s)
            p = p * pl.reciprocal(jnp.sum(p, axis=-1, keepdims=True), approx=True)
            ch = jnp.dot(p.astype(cd), vh, preferred_element_type=jnp.float32)
        else:
            # Online softmax over kv chunks: live score bounded to (S, kv_chunk).
            def body(j, carry):
                m, l, acc = carry
                kc = jax.lax.dynamic_slice_in_dim(kh, j * kv_chunk, kv_chunk, axis=0)
                vc = jax.lax.dynamic_slice_in_dim(vh, j * kv_chunk, kv_chunk, axis=0)
                s = _qkt(qh, kc)                                   # (S,C) f32
                m_new = jnp.maximum(m, jnp.max(s, axis=-1, keepdims=True))
                a = jnp.exp(m - m_new)
                p = jnp.exp(s - m_new)
                l = a * l + jnp.sum(p, axis=-1, keepdims=True)
                acc = a * acc + jnp.dot(p.astype(cd), vc,
                                        preferred_element_type=jnp.float32)
                return m_new, l, acc

            carry0 = (jnp.full((S, 1), -jnp.inf, jnp.float32),
                      jnp.zeros((S, 1), jnp.float32),
                      jnp.zeros((S, hd), jnp.float32))
            _, l, acc = jax.lax.fori_loop(0, S // kv_chunk, body, carry0)
            ch = acc * pl.reciprocal(l, approx=True)
        ctx_parts.append(ch)                                       # (S,hd) f32

    if merge == "concat":
        # Merge heads, then ONE full-width (S,E)@(E,E) output projection (K=E).
        ctx = jnp.concatenate(ctx_parts, axis=-1).astype(cd)       # (S,E)
        attn = jnp.dot(ctx, wo, preferred_element_type=jnp.float32)
    else:
        # Fallback if the backend rejects lane-dim concatenate: per-head K=hd
        # matmuls accumulated into a single (S,E) buffer (no H partials kept).
        attn = jnp.dot(ctx_parts[0].astype(cd), wo[0:hd, :],
                       preferred_element_type=jnp.float32)
        for h in range(1, num_heads):
            attn = attn + jnp.dot(ctx_parts[h].astype(cd),
                                  wo[h * hd:(h + 1) * hd, :],
                                  preferred_element_type=jnp.float32)
    attn = attn + bo

    h1 = _layer_norm(x + attn, g1, be1)
    h1_cd = h1.astype(cd)

    # ---- feed forward, row-tiled so the (rows,F) GELU intermediate is bounded
    if S <= ffn_chunk:
        f = _gelu(jnp.dot(h1_cd, w1, preferred_element_type=jnp.float32) + b1)
        ffn = jnp.dot(f.astype(cd), w2, preferred_element_type=jnp.float32) + b2
    else:
        def fbody(i, out):
            rows = jax.lax.dynamic_slice_in_dim(h1_cd, i * ffn_chunk, ffn_chunk, axis=0)
            f = _gelu(jnp.dot(rows, w1, preferred_element_type=jnp.float32) + b1)
            o = jnp.dot(f.astype(cd), w2, preferred_element_type=jnp.float32) + b2
            return jax.lax.dynamic_update_slice_in_dim(out, o, i * ffn_chunk, axis=0)

        ffn = jax.lax.fori_loop(0, S // ffn_chunk, fbody,
                                jnp.zeros((S, E), jnp.float32))

    return _layer_norm(h1 + ffn, g2, be2)


def _encoder_kernel(x_ref,
                    wq_ref, bq_ref, wk_ref, bk_ref, wv_ref, bv_ref,
                    wo_ref, bo_ref, g1_ref, be1_ref,
                    w1_ref, b1_ref, w2_ref, b2_ref, g2_ref, be2_ref,
                    o_ref, *, num_heads, num_layers, compute_dtype,
                    kv_chunk, ffn_chunk, merge, unroll_layers):
    def layer(l, h):
        return _one_layer(
            h,
            wq_ref[l], bq_ref[l], wk_ref[l], bk_ref[l], wv_ref[l], bv_ref[l],
            wo_ref[l], bo_ref[l], g1_ref[l], be1_ref[l],
            w1_ref[l], b1_ref[l], w2_ref[l], b2_ref[l], g2_ref[l], be2_ref[l],
            num_heads=num_heads, compute_dtype=compute_dtype,
            kv_chunk=kv_chunk, ffn_chunk=ffn_chunk, merge=merge)

    h = x_ref[0].astype(jnp.float32)                               # (S,E)
    if unroll_layers:
        for l in range(num_layers):      # fused layers stay VMEM-resident
            h = layer(l, h)
    else:
        # Deep fusion groups: fori_loop bounds vreg live ranges / code size and
        # indexes the stacked weight refs dynamically along their first axis.
        h = jax.lax.fori_loop(0, num_layers, layer, h)
    o_ref[0] = h.astype(o_ref.dtype)


# --------------------------------------------------------------------------
# wrapper-side parameter layout (pure XLA, no kernel cost)
# --------------------------------------------------------------------------
def prepare_params(layer_params, num_heads, compute_dtype=jnp.bfloat16):
    """Stack per-layer params into [L, ...] arrays; weights stay (in, out)."""
    E = layer_params[0]["wq"].shape[0]
    hd = E // num_heads
    scale = 1.0 / math.sqrt(hd)

    def stack(key, dtype, scale_val=None):
        a = jnp.stack([p[key] for p in layer_params])
        if scale_val is not None:
            a = a * scale_val
        return a.astype(dtype)

    return {
        "wq": stack("wq", compute_dtype, scale),   # 1/sqrt(hd) folded in
        "bq": stack("bq", jnp.float32, scale),
        "wk": stack("wk", compute_dtype),
        "bk": stack("bk", jnp.float32),
        "wv": stack("wv", compute_dtype),
        "bv": stack("bv", jnp.float32),
        "wo": stack("wo", compute_dtype),
        "bo": stack("bo", jnp.float32),
        "ln1_g": stack("ln1_g", jnp.float32),
        "ln1_b": stack("ln1_b", jnp.float32),
        "w1": stack("w1", compute_dtype),
        "b1": stack("b1", jnp.float32),
        "w2": stack("w2", compute_dtype),
        "b2": stack("b2", jnp.float32),
        "ln2_g": stack("ln2_g", jnp.float32),
        "ln2_b": stack("ln2_b", jnp.float32),
    }


# --------------------------------------------------------------------------
# per-generation VMEM budgeting (fusion depth, kv / ffn tiles, vmem limit)
# --------------------------------------------------------------------------
def _vmem_capacity_bytes():
    try:
        info = pltpu.get_tpu_info()
        cap = getattr(info, "vmem_capacity_bytes", None)
        if cap:
            return int(cap)
    except Exception:
        pass
    return 64 * 1024 * 1024    # conservative fallback (v7x per-TensorCore)


def _per_layer_weight_bytes(E, F, compute_dtype):
    wb = jnp.dtype(compute_dtype).itemsize
    return (4 * E * E + 2 * E * F) * wb + (9 * E + F) * 4


def _activation_bytes(S, E, F, H, kv_chunk, ffn_chunk, compute_dtype):
    cb = jnp.dtype(compute_dtype).itemsize
    qkv = 3 * S * E * (4 + cb)
    scores = 4 * S * min(S, kv_chunk) * 4          # ~2 heads of score/prob in flight
    ctx = S * E * (4 + cb)
    ffn = 2 * min(S, ffn_chunk) * F * (4 + cb)
    resid = 5 * S * E * 4
    return qkv + scores + ctx + ffn + resid


def _pick_chunk(total, target):
    """Largest divisor of `total` <= target, preferring multiples of 128."""
    if total <= target:
        return total
    for c in range(int(target), 0, -1):
        if total % c == 0 and c % 128 == 0:
            return c
    for c in range(int(target), 1, -1):
        if total % c == 0:
            return c
    return total


def _plan(S, E, F, H, L, x_dtype, compute_dtype, kv_override, ffn_override):
    cap = int(0.75 * _vmem_capacity_bytes())   # per-core budget, 25% headroom
    cb = jnp.dtype(compute_dtype).itemsize

    if kv_override is not None:
        kvc = int(kv_override)
    else:
        target = max(128, (cap // 6) // max(2 * S * 4, 1))
        kvc = _pick_chunk(S, target)
    if ffn_override is not None:
        ffc = int(ffn_override)
    else:
        target = max(128, (cap // 6) // max(2 * F * (4 + cb), 1))
        ffc = _pick_chunk(S, target)

    act = _activation_bytes(S, E, F, H, kvc, ffc, compute_dtype)
    io = 4 * S * E * jnp.dtype(x_dtype).itemsize     # double-buffered in/out blocks
    per_w = _per_layer_weight_bytes(E, F, compute_dtype)   # single-buffered weights
    avail = cap - act - io
    lpc = int(max(1, min(L, avail // per_w))) if avail > per_w else 1
    return lpc, kvc, ffc, cap


# --------------------------------------------------------------------------
# pallas_call wrapper
# --------------------------------------------------------------------------
def _const_weight_spec(shape, single_buffer):
    idx = lambda b, _n=len(shape): (0,) * _n
    if single_buffer:
        # Block index never changes across the batch grid -> one buffer suffices.
        return pl.BlockSpec(shape, idx, pipeline_mode=pl.Buffered(1))
    return pl.BlockSpec(shape, idx)


def _encode_group(x, stacked, num_heads, compute_dtype, kv_chunk, ffn_chunk, cap):
    B, S, E = x.shape
    L = stacked["wq"].shape[0]
    F = stacked["w1"].shape[-1]
    weights = [stacked[k] for k in _PARAM_KEYS]

    per_w = _per_layer_weight_bytes(E, F, compute_dtype)
    act = _activation_bytes(S, E, F, num_heads, kv_chunk, ffn_chunk, compute_dtype)
    io = 4 * S * E * x.dtype.itemsize
    est = L * per_w + act + io
    # Always set the limit (v5e's default scoped limit is only 16 MiB).
    # TODO(synk): if 1.4*est ever exceeds `cap` (extreme S/E), shrink the group /
    # tiles instead of clamping; _plan() keeps us inside cap for sane configs.
    vmem_limit = int(min(cap, max(1.4 * est, _MIN_VMEM_LIMIT)))

    # TODO(synk): for B == 1 on v7x (2 TensorCores), one core idles with this
    # batch-only grid; a sequence-parallel q-block axis would require group=1
    # (layers can't be fused across a sequence-partitioned grid).
    def build(single_buffer, merge):
        kernel = functools.partial(
            _encoder_kernel, num_heads=num_heads, num_layers=L,
            compute_dtype=compute_dtype, kv_chunk=kv_chunk, ffn_chunk=ffn_chunk,
            merge=merge, unroll_layers=(L <= _LAYER_UNROLL_MAX))
        in_specs = [pl.BlockSpec((1, S, E), lambda b: (b, 0, 0))]
        in_specs += [_const_weight_spec(w.shape, single_buffer) for w in weights]
        return pl.pallas_call(
            kernel,
            out_shape=jax.ShapeDtypeStruct((B, S, E), x.dtype),
            grid_spec=pltpu.PrefetchScalarGridSpec(
                num_scalar_prefetch=0,
                grid=(B,),
                in_specs=in_specs,
                out_specs=pl.BlockSpec((1, S, E), lambda b: (b, 0, 0)),
            ),
            compiler_params=pltpu.CompilerParams(
                dimension_semantics=("parallel",),
                vmem_limit_bytes=vmem_limit,
            ),
        )

    # Capability ladder: prefer single-buffered weights + merged-head output
    # projection; fall back gracefully if this jax/libtpu rejects either.
    last_err = None
    for merge in ("concat", "split"):
        for single_buffer in (True, False):
            try:
                return build(single_buffer, merge)(x, *weights)
            except Exception as e:          # lowering / capability fallback
                last_err = e
    raise last_err


def transformer_encoder(x, layer_params, num_heads,
                        output_all_encoded_layers=False,
                        compute_dtype=jnp.bfloat16,
                        kv_chunk=None, ffn_chunk=None):
    """x: [B, S, E] -> [B, S, E] (last encoder layer), matching module semantics."""
    B, S, E = x.shape
    F = layer_params[0]["w1"].shape[-1]
    L = len(layer_params)
    lpc, kvc, ffc, cap = _plan(S, E, F, num_heads, L, x.dtype, compute_dtype,
                               kv_chunk, ffn_chunk)
    group = 1 if output_all_encoded_layers else lpc
    outs = []
    for i in range(0, L, group):
        stacked = prepare_params(layer_params[i:i + group], num_heads, compute_dtype)
        x = _encode_group(x, stacked, num_heads, compute_dtype, kvc, ffc, cap)
        outs.append(x)
    return outs if output_all_encoded_layers else x
    # TODO(synk): kv (cross-attention cache) path of the module is not implemented.


# ---------------- deterministic parameter init (synthetic, nn.Linear-like) ----------------
def _linear_init(key, fan_in, fan_out):
    bound = 1.0 / math.sqrt(fan_in)
    kw, kb = jax.random.split(key)
    w = jax.random.uniform(kw, (fan_in, fan_out), jnp.float32, -bound, bound)
    b = jax.random.uniform(kb, (1, fan_out), jnp.float32, -bound, bound)
    return w, b


def init_params(key, embedding_size, ffn_size, num_layers):
    params = []
    for _ in range(num_layers):
        key, kq, kk, kv, ko, k1, k2 = jax.random.split(key, 7)
        wq, bq = _linear_init(kq, embedding_size, embedding_size)
        wk, bk = _linear_init(kk, embedding_size, embedding_size)
        wv, bv = _linear_init(kv, embedding_size, embedding_size)
        wo, bo = _linear_init(ko, embedding_size, embedding_size)
        w1, b1 = _linear_init(k1, embedding_size, ffn_size)
        w2, b2 = _linear_init(k2, ffn_size, embedding_size)
        params.append(dict(
            wq=wq, bq=bq, wk=wk, bk=bk, wv=wv, bv=bv, wo=wo, bo=bo,
            ln1_g=jnp.ones((1, embedding_size), jnp.float32),
            ln1_b=jnp.zeros((1, embedding_size), jnp.float32),
            w1=w1, b1=b1, w2=w2, b2=b2,
            ln2_g=jnp.ones((1, embedding_size), jnp.float32),
            ln2_b=jnp.zeros((1, embedding_size), jnp.float32),
        ))
    return params


# ---------------- pure-JAX f32 reference (exact erf-GELU) for correctness ----------------
def _reference_layer(x, p, num_heads):
    B, S, E = x.shape
    hd = E // num_heads
    q = (x @ p["wq"] + p["bq"]) / math.sqrt(hd)
    k = x @ p["wk"] + p["bk"]
    v = x @ p["wv"] + p["bv"]
    q = q.reshape(B, S, num_heads, hd).transpose(0, 2, 1, 3)
    k = k.reshape(B, S, num_heads, hd).transpose(0, 2, 1, 3)
    v = v.reshape(B, S, num_heads, hd).transpose(0, 2, 1, 3)
    s = jnp.einsum("bhqd,bhkd->bhqk", q, k)
    a = jnp.einsum("bhqk,bhkd->bhqd", jax.nn.softmax(s, axis=-1), v)
    a = a.transpose(0, 2, 1, 3).reshape(B, S, E)
    a = a @ p["wo"] + p["bo"]
    h1 = _layer_norm(x + a, p["ln1_g"], p["ln1_b"])
    f = jax.nn.gelu(h1 @ p["w1"] + p["b1"], approximate=False) @ p["w2"] + p["b2"]
    return _layer_norm(h1 + f, p["ln2_g"], p["ln2_b"])


def reference_encoder(x, params, num_heads):
    for p in params:
        x = _reference_layer(x, p, num_heads)
    return x


if __name__ == "__main__":
    # ---- test 1: module-consistent small shapes, both compute dtypes -------
    B, S, E, F, H, L = 2, 8, 32, 64, 4, 2
    key = jax.random.PRNGKey(0)
    kx, kp = jax.random.split(key)
    x = jax.random.normal(kx, (B, S, E), jnp.float32)
    params = init_params(kp, E, F, L)
    ref = reference_encoder(x, params, H)

    out_f32 = jax.block_until_ready(
        transformer_encoder(x, params, H, compute_dtype=jnp.float32))
    assert out_f32.shape == (B, S, E)
    err_f32 = float(jnp.max(jnp.abs(out_f32 - ref)))
    assert jnp.allclose(out_f32, ref, atol=1e-2, rtol=1e-2), err_f32

    out_bf16 = jax.block_until_ready(transformer_encoder(x, params, H))
    assert out_bf16.shape == (B, S, E)
    err_bf16 = float(jnp.max(jnp.abs(out_bf16 - ref)))
    assert jnp.allclose(out_bf16, ref, atol=6e-2, rtol=6e-2), err_bf16

    # ---- test 2: exercise kv-chunked online-softmax attention, row-tiled FFN
    # and the fori_loop layer path (fusion depth > unroll threshold) ----------
    B2, S2, E2, F2, H2, L2 = 1, 256, 64, 128, 4, 5
    kx2, kp2 = jax.random.split(jax.random.PRNGKey(1))
    x2 = jax.random.normal(kx2, (B2, S2, E2), jnp.float32)
    params2 = init_params(kp2, E2, F2, L2)
    ref2 = reference_encoder(x2, params2, H2)
    out2 = jax.block_until_ready(
        transformer_encoder(x2, params2, H2, compute_dtype=jnp.float32,
                            kv_chunk=128, ffn_chunk=128))
    err2 = float(jnp.max(jnp.abs(out2 - ref2)))
    assert jnp.allclose(out2, ref2, atol=5e-2, rtol=5e-2), err2

    print("KERNEL_OK")
</pallas_src>

<mosaic_0001>
module attributes {stable_mosaic.version = 11 : i64} {
  func.func @_encoder_kernel(%arg0: i32, %arg1: memref<1x8x32xf32, #tpu.memory_space<vmem>>, %arg2: memref<2x32x32xf32, #tpu.memory_space<vmem>>, %arg3: memref<2x1x32xf32, #tpu.memory_space<vmem>>, %arg4: memref<2x32x32xf32, #tpu.memory_space<vmem>>, %arg5: memref<2x1x32xf32, #tpu.memory_space<vmem>>, %arg6: memref<2x32x32xf32, #tpu.memory_space<vmem>>, %arg7: memref<2x1x32xf32, #tpu.memory_space<vmem>>, %arg8: memref<2x32x32xf32, #tpu.memory_space<vmem>>, %arg9: memref<2x1x32xf32, #tpu.memory_space<vmem>>, %arg10: memref<2x1x32xf32, #tpu.memory_space<vmem>>, %arg11: memref<2x1x32xf32, #tpu.memory_space<vmem>>, %arg12: memref<2x32x64xf32, #tpu.memory_space<vmem>>, %arg13: memref<2x1x64xf32, #tpu.memory_space<vmem>>, %arg14: memref<2x64x32xf32, #tpu.memory_space<vmem>>, %arg15: memref<2x1x32xf32, #tpu.memory_space<vmem>>, %arg16: memref<2x1x32xf32, #tpu.memory_space<vmem>>, %arg17: memref<2x1x32xf32, #tpu.memory_space<vmem>>, %arg18: memref<1x8x32xf32, #tpu.memory_space<vmem>>) attributes {dimension_semantics = [#tpu.dimension_semantics<parallel>], iteration_bounds = array<i64: 2>, scalar_prefetch = 0 : i64, scratch_operands = 0 : i64, tpu.core_type = #tpu.core_type<tc>, window_params = [{transform_indices = @transform_0, window_bounds = array<i64: 1, 8, 32>}, {pipeline_mode = #tpu.pipeline_mode<synchronous>, transform_indices = @transform_1, window_bounds = array<i64: 2, 32, 32>}, {pipeline_mode = #tpu.pipeline_mode<synchronous>, transform_indices = @transform_2, window_bounds = array<i64: 2, 1, 32>}, {pipeline_mode = #tpu.pipeline_mode<synchronous>, transform_indices = @transform_3, window_bounds = array<i64: 2, 32, 32>}, {pipeline_mode = #tpu.pipeline_mode<synchronous>, transform_indices = @transform_4, window_bounds = array<i64: 2, 1, 32>}, {pipeline_mode = #tpu.pipeline_mode<synchronous>, transform_indices = @transform_5, window_bounds = array<i64: 2, 32, 32>}, {pipeline_mode = #tpu.pipeline_mode<synchronous>, transform_indices = @transform_6, window_bounds = array<i64: 2, 1, 32>}, {pipeline_mode = #tpu.pipeline_mode<synchronous>, transform_indices = @transform_7, window_bounds = array<i64: 2, 32, 32>}, {pipeline_mode = #tpu.pipeline_mode<synchronous>, transform_indices = @transform_8, window_bounds = array<i64: 2, 1, 32>}, {pipeline_mode = #tpu.pipeline_mode<synchronous>, transform_indices = @transform_9, window_bounds = array<i64: 2, 1, 32>}, {pipeline_mode = #tpu.pipeline_mode<synchronous>, transform_indices = @transform_10, window_bounds = array<i64: 2, 1, 32>}, {pipeline_mode = #tpu.pipeline_mode<synchronous>, transform_indices = @transform_11, window_bounds = array<i64: 2, 32, 64>}, {pipeline_mode = #tpu.pipeline_mode<synchronous>, transform_indices = @transform_12, window_bounds = array<i64: 2, 1, 64>}, {pipeline_mode = #tpu.pipeline_mode<synchronous>, transform_indices = @transform_13, window_bounds = array<i64: 2, 64, 32>}, {pipeline_mode = #tpu.pipeline_mode<synchronous>, transform_indices = @transform_14, window_bounds = array<i64: 2, 1, 32>}, {pipeline_mode = #tpu.pipeline_mode<synchronous>, transform_indices = @transform_15, window_bounds = array<i64: 2, 1, 32>}, {pipeline_mode = #tpu.pipeline_mode<synchronous>, transform_indices = @transform_16, window_bounds = array<i64: 2, 1, 32>}, {transform_indices = @transform_17, window_bounds = array<i64: 1, 8, 32>}]} {
    %c0 = arith.constant 0 : index
    %c0_0 = arith.constant 0 : index
    %c0_1 = arith.constant 0 : index
    %0 = vector.load %arg1[%c0, %c0_0, %c0_1] : memref<1x8x32xf32, #tpu.memory_space<vmem>>, vector<1x8x32xf32>
    %1 = vector.shape_cast %0 : vector<1x8x32xf32> to vector<8x32xf32>
    %c0_2 = arith.constant 0 : index
    %c0_3 = arith.constant 0 : index
    %c0_4 = arith.constant 0 : index
    %2 = vector.load %arg2[%c0_2, %c0_3, %c0_4] : memref<2x32x32xf32, #tpu.memory_space<vmem>>, vector<1x32x32xf32>
    %3 = vector.shape_cast %2 : vector<1x32x32xf32> to vector<32x32xf32>
    %c0_5 = arith.constant 0 : index
    %c0_6 = arith.constant 0 : index
    %c0_7 = arith.constant 0 : index
    %4 = vector.load %arg3[%c0_5, %c0_6, %c0_7] : memref<2x1x32xf32, #tpu.memory_space<vmem>>, vector<1x1x32xf32>
    %5 = vector.shape_cast %4 : vector<1x1x32xf32> to vector<1x32xf32>
    %c0_8 = arith.constant 0 : index
    %c0_9 = arith.constant 0 : index
    %c0_10 = arith.constant 0 : index
    %6 = vector.load %arg4[%c0_8, %c0_9, %c0_10] : memref<2x32x32xf32, #tpu.memory_space<vmem>>, vector<1x32x32xf32>
    %7 = vector.shape_cast %6 : vector<1x32x32xf32> to vector<32x32xf32>
    %c0_11 = arith.constant 0 : index
    %c0_12 = arith.constant 0 : index
    %c0_13 = arith.constant 0 : index
    %8 = vector.load %arg5[%c0_11, %c0_12, %c0_13] : memref<2x1x32xf32, #tpu.memory_space<vmem>>, vector<1x1x32xf32>
    %9 = vector.shape_cast %8 : vector<1x1x32xf32> to vector<1x32xf32>
    %c0_14 = arith.constant 0 : index
    %c0_15 = arith.constant 0 : index
    %c0_16 = arith.constant 0 : index
    %10 = vector.load %arg6[%c0_14, %c0_15, %c0_16] : memref<2x32x32xf32, #tpu.memory_space<vmem>>, vector<1x32x32xf32>
    %11 = vector.shape_cast %10 : vector<1x32x32xf32> to vector<32x32xf32>
    %c0_17 = arith.constant 0 : index
    %c0_18 = arith.constant 0 : index
    %c0_19 = arith.constant 0 : index
    %12 = vector.load %arg7[%c0_17, %c0_18, %c0_19] : memref<2x1x32xf32, #tpu.memory_space<vmem>>, vector<1x1x32xf32>
    %13 = vector.shape_cast %12 : vector<1x1x32xf32> to vector<1x32xf32>
    %c0_20 = arith.constant 0 : index
    %c0_21 = arith.constant 0 : index
    %c0_22 = arith.constant 0 : index
    %14 = vector.load %arg8[%c0_20, %c0_21, %c0_22] : memref<2x32x32xf32, #tpu.memory_space<vmem>>, vector<1x32x32xf32>
    %15 = vector.shape_cast %14 : vector<1x32x32xf32> to vector<32x32xf32>
    %c0_23 = arith.constant 0 : index
    %c0_24 = arith.constant 0 : index
    %c0_25 = arith.constant 0 : index
    %16 = vector.load %arg9[%c0_23, %c0_24, %c0_25] : memref<2x1x32xf32, #tpu.memory_space<vmem>>, vector<1x1x32xf32>
    %17 = vector.shape_cast %16 : vector<1x1x32xf32> to vector<1x32xf32>
    %c0_26 = arith.constant 0 : index
    %c0_27 = arith.constant 0 : index
    %c0_28 = arith.constant 0 : index
    %18 = vector.load %arg10[%c0_26, %c0_27, %c0_28] : memref<2x1x32xf32, #tpu.memory_space<vmem>>, vector<1x1x32xf32>
    %19 = vector.shape_cast %18 : vector<1x1x32xf32> to vector<1x32xf32>
    %c0_29 = arith.constant 0 : index
    %c0_30 = arith.constant 0 : index
    %c0_31 = arith.constant 0 : index
    %20 = vector.load %arg11[%c0_29, %c0_30, %c0_31] : memref<2x1x32xf32, #tpu.memory_space<vmem>>, vector<1x1x32xf32>
    %21 = vector.shape_cast %20 : vector<1x1x32xf32> to vector<1x32xf32>
    %c0_32 = arith.constant 0 : index
    %c0_33 = arith.constant 0 : index
    %c0_34 = arith.constant 0 : index
    %22 = vector.load %arg12[%c0_32, %c0_33, %c0_34] : memref<2x32x64xf32, #tpu.memory_space<vmem>>, vector<1x32x64xf32>
    %23 = vector.shape_cast %22 : vector<1x32x64xf32> to vector<32x64xf32>
    %c0_35 = arith.constant 0 : index
    %c0_36 = arith.constant 0 : index
    %c0_37 = arith.constant 0 : index
    %24 = vector.load %arg13[%c0_35, %c0_36, %c0_37] : memref<2x1x64xf32, #tpu.memory_space<vmem>>, vector<1x1x64xf32>
    %25 = vector.shape_cast %24 : vector<1x1x64xf32> to vector<1x64xf32>
    %c0_38 = arith.constant 0 : index
    %c0_39 = arith.constant 0 : index
    %c0_40 = arith.constant 0 : index
    %26 = vector.load %arg14[%c0_38, %c0_39, %c0_40] : memref<2x64x32xf32, #tpu.memory_space<vmem>>, vector<1x64x32xf32>
    %27 = vector.shape_cast %26 : vector<1x64x32xf32> to vector<64x32xf32>
    %c0_41 = arith.constant 0 : index
    %c0_42 = arith.constant 0 : index
    %c0_43 = arith.constant 0 : index
    %28 = vector.load %arg15[%c0_41, %c0_42, %c0_43] : memref<2x1x32xf32, #tpu.memory_space<vmem>>, vector<1x1x32xf32>
    %29 = vector.shape_cast %28 : vector<1x1x32xf32> to vector<1x32xf32>
    %c0_44 = arith.constant 0 : index
    %c0_45 = arith.constant 0 : index
    %c0_46 = arith.constant 0 : index
    %30 = vector.load %arg16[%c0_44, %c0_45, %c0_46] : memref<2x1x32xf32, #tpu.memory_space<vmem>>, vector<1x1x32xf32>
    %31 = vector.shape_cast %30 : vector<1x1x32xf32> to vector<1x32xf32>
    %c0_47 = arith.constant 0 : index
    %c0_48 = arith.constant 0 : index
    %c0_49 = arith.constant 0 : index
    %32 = vector.load %arg17[%c0_47, %c0_48, %c0_49] : memref<2x1x32xf32, #tpu.memory_space<vmem>>, vector<1x1x32xf32>
    %33 = vector.shape_cast %32 : vector<1x1x32xf32> to vector<1x32xf32>
    %cst = arith.constant dense<0.000000e+00> : vector<8x32xf32>
    %34 = tpu.matmul %1, %3, %cst {dimension_numbers = #tpu.dot_dimension_numbers<[1], [0], [0], [1], [0, 0, 1, 1], [], []>} : vector<8x32xf32>, vector<32x32xf32>, vector<8x32xf32> -> vector<8x32xf32>
    %35 = vector.broadcast %5 : vector<1x32xf32> to vector<8x32xf32>
    %36 = arith.addf %34, %35 : vector<8x32xf32>
    %cst_50 = arith.constant dense<0.000000e+00> : vector<8x32xf32>
    %37 = tpu.matmul %1, %7, %cst_50 {dimension_numbers = #tpu.dot_dimension_numbers<[1], [0], [0], [1], [0, 0, 1, 1], [], []>} : vector<8x32xf32>, vector<32x32xf32>, vector<8x32xf32> -> vector<8x32xf32>
    %38 = vector.broadcast %9 : vector<1x32xf32> to vector<8x32xf32>
    %39 = arith.addf %37, %38 : vector<8x32xf32>
    %cst_51 = arith.constant dense<0.000000e+00> : vector<8x32xf32>
    %40 = tpu.matmul %1, %11, %cst_51 {dimension_numbers = #tpu.dot_dimension_numbers<[1], [0], [0], [1], [0, 0, 1, 1], [], []>} : vector<8x32xf32>, vector<32x32xf32>, vector<8x32xf32> -> vector<8x32xf32>
    %41 = vector.broadcast %13 : vector<1x32xf32> to vector<8x32xf32>
    %42 = arith.addf %40, %41 : vector<8x32xf32>
    %43 = vector.extract_strided_slice %36 {offsets = [0, 0], sizes = [8, 8], strides = [1, 1]} : vector<8x32xf32> to vector<8x8xf32>
    %44 = vector.extract_strided_slice %39 {offsets = [0, 0], sizes = [8, 8], strides = [1, 1]} : vector<8x32xf32> to vector<8x8xf32>
    %45 = vector.extract_strided_slice %42 {offsets = [0, 0], sizes = [8, 8], strides = [1, 1]} : vector<8x32xf32> to vector<8x8xf32>
    %cst_52 = arith.constant dense<0.000000e+00> : vector<8x8xf32>
    %46 = tpu.matmul %43, %44, %cst_52 {dimension_numbers = #tpu.dot_dimension_numbers<[1], [1], [0], [0], [0, 0, 1, 0], [], []>} : vector<8x8xf32>, vector<8x8xf32>, vector<8x8xf32> -> vector<8x8xf32>
    %cst_53 = arith.constant dense<0xFF800000> : vector<8xf32>
    %47 = vector.multi_reduction <maximumf>, %46, %cst_53 [1] : vector<8x8xf32> to vector<8xf32>
    %48 = vector.shape_cast %47 : vector<8xf32> to vector<8x1xf32>
    %49 = vector.broadcast %48 : vector<8x1xf32> to vector<8x8xf32>
    %50 = arith.subf %46, %49 : vector<8x8xf32>
    %51 = math.exp %50 : vector<8x8xf32>
    %cst_54 = arith.constant dense<0.000000e+00> : vector<8xf32>
    %52 = vector.multi_reduction <add>, %51, %cst_54 [1] : vector<8x8xf32> to vector<8xf32>
    %53 = vector.shape_cast %52 : vector<8xf32> to vector<8x1xf32>
    %54 = tpu.reciprocal %53 {approx = true} : vector<8x1xf32> -> vector<8x1xf32>
    %55 = vector.broadcast %54 : vector<8x1xf32> to vector<8x8xf32>
    %56 = arith.mulf %51, %55 : vector<8x8xf32>
    %cst_55 = arith.constant dense<0.000000e+00> : vector<8x8xf32>
    %57 = tpu.matmul %56, %45, %cst_55 {dimension_numbers = #tpu.dot_dimension_numbers<[1], [0], [0], [1], [0, 0, 1, 1], [], []>} : vector<8x8xf32>, vector<8x8xf32>, vector<8x8xf32> -> vector<8x8xf32>
    %58 = vector.extract_strided_slice %36 {offsets = [0, 8], sizes = [8, 8], strides = [1, 1]} : vector<8x32xf32> to vector<8x8xf32>
    %59 = vector.extract_strided_slice %39 {offsets = [0, 8], sizes = [8, 8], strides = [1, 1]} : vector<8x32xf32> to vector<8x8xf32>
    %60 = vector.extract_strided_slice %42 {offsets = [0, 8], sizes = [8, 8], strides = [1, 1]} : vector<8x32xf32> to vector<8x8xf32>
    %cst_56 = arith.constant dense<0.000000e+00> : vector<8x8xf32>
    %61 = tpu.matmul %58, %59, %cst_56 {dimension_numbers = #tpu.dot_dimension_numbers<[1], [1], [0], [0], [0, 0, 1, 0], [], []>} : vector<8x8xf32>, vector<8x8xf32>, vector<8x8xf32> -> vector<8x8xf32>
    %cst_57 = arith.constant dense<0xFF800000> : vector<8xf32>
    %62 = vector.multi_reduction <maximumf>, %61, %cst_57 [1] : vector<8x8xf32> to vector<8xf32>
    %63 = vector.shape_cast %62 : vector<8xf32> to vector<8x1xf32>
    %64 = vector.broadcast %63 : vector<8x1xf32> to vector<8x8xf32>
    %65 = arith.subf %61, %64 : vector<8x8xf32>
    %66 = math.exp %65 : vector<8x8xf32>
    %cst_58 = arith.constant dense<0.000000e+00> : vector<8xf32>
    %67 = vector.multi_reduction <add>, %66, %cst_58 [1] : vector<8x8xf32> to vector<8xf32>
    %68 = vector.shape_cast %67 : vector<8xf32> to vector<8x1xf32>
    %69 = tpu.reciprocal %68 {approx = true} : vector<8x1xf32> -> vector<8x1xf32>
    %70 = vector.broadcast %69 : vector<8x1xf32> to vector<8x8xf32>
    %71 = arith.mulf %66, %70 : vector<8x8xf32>
    %cst_59 = arith.constant dense<0.000000e+00> : vector<8x8xf32>
    %72 = tpu.matmul %71, %60, %cst_59 {dimension_numbers = #tpu.dot_dimension_numbers<[1], [0], [0], [1], [0, 0, 1, 1], [], []>} : vector<8x8xf32>, vector<8x8xf32>, vector<8x8xf32> -> vector<8x8xf32>
    %73 = vector.extract_strided_slice %36 {offsets = [0, 16], sizes = [8, 8], strides = [1, 1]} : vector<8x32xf32> to vector<8x8xf32>
    %74 = vector.extract_strided_slice %39 {offsets = [0, 16], sizes = [8, 8], strides = [1, 1]} : vector<8x32xf32> to vector<8x8xf32>
    %75 = vector.extract_strided_slice %42 {offsets = [0, 16], sizes = [8, 8], strides = [1, 1]} : vector<8x32xf32> to vector<8x8xf32>
    %cst_60 = arith.constant dense<0.000000e+00> : vector<8x8xf32>
    %76 = tpu.matmul %73, %74, %cst_60 {dimension_numbers = #tpu.dot_dimension_numbers<[1], [1], [0], [0], [0, 0, 1, 0], [], []>} : vector<8x8xf32>, vector<8x8xf32>, vector<8x8xf32> -> vector<8x8xf32>
    %cst_61 = arith.constant dense<0xFF800000> : vector<8xf32>
    %77 = vector.multi_reduction <maximumf>, %76, %cst_61 [1] : vector<8x8xf32> to vector<8xf32>
    %78 = vector.shape_cast %77 : vector<8xf32> to vector<8x1xf32>
    %79 = vector.broadcast %78 : vector<8x1xf32> to vector<8x8xf32>
    %80 = arith.subf %76, %79 : vector<8x8xf32>
    %81 = math.exp %80 : vector<8x8xf32>
    %cst_62 = arith.constant dense<0.000000e+00> : vector<8xf32>
    %82 = vector.multi_reduction <add>, %81, %cst_62 [1] : vector<8x8xf32> to vector<8xf32>
    %83 = vector.shape_cast %82 : vector<8xf32> to vector<8x1xf32>
    %84 = tpu.reciprocal %83 {approx = true} : vector<8x1xf32> -> vector<8x1xf32>
    %85 = vector.broadcast %84 : vector<8x1xf32> to vector<8x8xf32>
    %86 = arith.mulf %81, %85 : vector<8x8xf32>
    %cst_63 = arith.constant dense<0.000000e+00> : vector<8x8xf32>
    %87 = tpu.matmul %86, %75, %cst_63 {dimension_numbers = #tpu.dot_dimension_numbers<[1], [0], [0], [1], [0, 0, 1, 1], [], []>} : vector<8x8xf32>, vector<8x8xf32>, vector<8x8xf32> -> vector<8x8xf32>
    %88 = vector.extract_strided_slice %36 {offsets = [0, 24], sizes = [8, 8], strides = [1, 1]} : vector<8x32xf32> to vector<8x8xf32>
    %89 = vector.extract_strided_slice %39 {offsets = [0, 24], sizes = [8, 8], strides = [1, 1]} : vector<8x32xf32> to vector<8x8xf32>
    %90 = vector.extract_strided_slice %42 {offsets = [0, 24], sizes = [8, 8], strides = [1, 1]} : vector<8x32xf32> to vector<8x8xf32>
    %cst_64 = arith.constant dense<0.000000e+00> : vector<8x8xf32>
    %91 = tpu.matmul %88, %89, %cst_64 {dimension_numbers = #tpu.dot_dimension_numbers<[1], [1], [0], [0], [0, 0, 1, 0], [], []>} : vector<8x8xf32>, vector<8x8xf32>, vector<8x8xf32> -> vector<8x8xf32>
    %cst_65 = arith.constant dense<0xFF800000> : vector<8xf32>
    %92 = vector.multi_reduction <maximumf>, %91, %cst_65 [1] : vector<8x8xf32> to vector<8xf32>
    %93 = vector.shape_cast %92 : vector<8xf32> to vector<8x1xf32>
    %94 = vector.broadcast %93 : vector<8x1xf32> to vector<8x8xf32>
    %95 = arith.subf %91, %94 : vector<8x8xf32>
    %96 = math.exp %95 : vector<8x8xf32>
    %cst_66 = arith.constant dense<0.000000e+00> : vector<8xf32>
    %97 = vector.multi_reduction <add>, %96, %cst_66 [1] : vector<8x8xf32> to vector<8xf32>
    %98 = vector.shape_cast %97 : vector<8xf32> to vector<8x1xf32>
    %99 = tpu.reciprocal %98 {approx = true} : vector<8x1xf32> -> vector<8x1xf32>
    %100 = vector.broadcast %99 : vector<8x1xf32> to vector<8x8xf32>
    %101 = arith.mulf %96, %100 : vector<8x8xf32>
    %cst_67 = arith.constant dense<0.000000e+00> : vector<8x8xf32>
    %102 = tpu.matmul %101, %90, %cst_67 {dimension_numbers = #tpu.dot_dimension_numbers<[1], [0], [0], [1], [0, 0, 1, 1], [], []>} : vector<8x8xf32>, vector<8x8xf32>, vector<8x8xf32> -> vector<8x8xf32>
    %103 = tpu.concatenate %57, %72, %87, %102 in 1 : vector<8x8xf32>, vector<8x8xf32>, vector<8x8xf32>, vector<8x8xf32> -> vector<8x32xf32>
    %cst_68 = arith.constant dense<0.000000e+00> : vector<8x32xf32>
    %104 = tpu.matmul %103, %15, %cst_68 {dimension_numbers = #tpu.dot_dimension_numbers<[1], [0], [0], [1], [0, 0, 1, 1], [], []>} : vector<8x32xf32>, vector<32x32xf32>, vector<8x32xf32> -> vector<8x32xf32>
    %105 = vector.broadcast %17 : vector<1x32xf32> to vector<8x32xf32>
    %106 = arith.addf %104, %105 : vector<8x32xf32>
    %107 = arith.addf %1, %106 : vector<8x32xf32>
    %cst_69 = arith.constant dense<0.000000e+00> : vector<8xf32>
    %108 = vector.multi_reduction <add>, %107, %cst_69 [1] : vector<8x32xf32> to vector<8xf32>
    %109 = vector.shape_cast %108 : vector<8xf32> to vector<8x1xf32>
    %cst_70 = arith.constant 3.200000e+01 : f32
    %110 = vector.broadcast %cst_70 : f32 to vector<8x1xf32>
    %111 = arith.divf %109, %110 : vector<8x1xf32>
    %112 = vector.broadcast %111 : vector<8x1xf32> to vector<8x32xf32>
    %113 = arith.subf %107, %112 : vector<8x32xf32>
    %114 = arith.mulf %113, %113 : vector<8x32xf32>
    %cst_71 = arith.constant dense<0.000000e+00> : vector<8xf32>
    %115 = vector.multi_reduction <add>, %114, %cst_71 [1] : vector<8x32xf32> to vector<8xf32>
    %116 = vector.shape_cast %115 : vector<8xf32> to vector<8x1xf32>
    %cst_72 = arith.constant 3.200000e+01 : f32
    %117 = vector.broadcast %cst_72 : f32 to vector<8x1xf32>
    %118 = arith.divf %116, %117 : vector<8x1xf32>
    %119 = vector.broadcast %111 : vector<8x1xf32> to vector<8x32xf32>
    %120 = arith.subf %107, %119 : vector<8x32xf32>
    %cst_73 = arith.constant 9.99999974E-6 : f32
    %121 = vector.broadcast %cst_73 : f32 to vector<8x1xf32>
    %122 = arith.addf %118, %121 : vector<8x1xf32>
    %123 = math.rsqrt %122 : vector<8x1xf32>
    %124 = vector.broadcast %123 : vector<8x1xf32> to vector<8x32xf32>
    %125 = arith.mulf %120, %124 : vector<8x32xf32>
    %126 = vector.broadcast %19 : vector<1x32xf32> to vector<8x32xf32>
    %127 = arith.mulf %125, %126 : vector<8x32xf32>
    %128 = vector.broadcast %21 : vector<1x32xf32> to vector<8x32xf32>
    %129 = arith.addf %127, %128 : vector<8x32xf32>
    %cst_74 = arith.constant dense<0.000000e+00> : vector<8x64xf32>
    %130 = tpu.matmul %129, %23, %cst_74 {dimension_numbers = #tpu.dot_dimension_numbers<[1], [0], [0], [1], [0, 0, 1, 1], [], []>} : vector<8x32xf32>, vector<32x64xf32>, vector<8x64xf32> -> vector<8x64xf32>
    %131 = vector.broadcast %25 : vector<1x64xf32> to vector<8x64xf32>
    %132 = arith.addf %130, %131 : vector<8x64xf32>
    %cst_75 = arith.constant 5.000000e-01 : f32
    %133 = vector.broadcast %cst_75 : f32 to vector<8x64xf32>
    %134 = arith.mulf %133, %132 : vector<8x64xf32>
    %135 = arith.mulf %132, %132 : vector<8x64xf32>
    %136 = arith.mulf %135, %132 : vector<8x64xf32>
    %cst_76 = arith.constant 4.471500e-02 : f32
    %137 = vector.broadcast %cst_76 : f32 to vector<8x64xf32>
    %138 = arith.mulf %137, %136 : vector<8x64xf32>
    %139 = arith.addf %132, %138 : vector<8x64xf32>
    %cst_77 = arith.constant 0.797884583 : f32
    %140 = vector.broadcast %cst_77 : f32 to vector<8x64xf32>
    %141 = arith.mulf %140, %139 : vector<8x64xf32>
    %142 = math.tanh %141 : vector<8x64xf32>
    %cst_78 = arith.constant 1.000000e+00 : f32
    %143 = vector.broadcast %cst_78 : f32 to vector<8x64xf32>
    %144 = arith.addf %143, %142 : vector<8x64xf32>
    %145 = arith.mulf %134, %144 : vector<8x64xf32>
    %cst_79 = arith.constant dense<0.000000e+00> : vector<8x32xf32>
    %146 = tpu.matmul %145, %27, %cst_79 {dimension_numbers = #tpu.dot_dimension_numbers<[1], [0], [0], [1], [0, 0, 1, 1], [], []>} : vector<8x64xf32>, vector<64x32xf32>, vector<8x32xf32> -> vector<8x32xf32>
    %147 = vector.broadcast %29 : vector<1x32xf32> to vector<8x32xf32>
    %148 = arith.addf %146, %147 : vector<8x32xf32>
    %149 = arith.addf %129, %148 : vector<8x32xf32>
    %cst_80 = arith.constant dense<0.000000e+00> : vector<8xf32>
    %150 = vector.multi_reduction <add>, %149, %cst_80 [1] : vector<8x32xf32> to vector<8xf32>
    %151 = vector.shape_cast %150 : vector<8xf32> to vector<8x1xf32>
    %cst_81 = arith.constant 3.200000e+01 : f32
    %152 = vector.broadcast %cst_81 : f32 to vector<8x1xf32>
    %153 = arith.divf %151, %152 : vector<8x1xf32>
    %154 = vector.broadcast %153 : vector<8x1xf32> to vector<8x32xf32>
    %155 = arith.subf %149, %154 : vector<8x32xf32>
    %156 = arith.mulf %155, %155 : vector<8x32xf32>
    %cst_82 = arith.constant dense<0.000000e+00> : vector<8xf32>
    %157 = vector.multi_reduction <add>, %156, %cst_82 [1] : vector<8x32xf32> to vector<8xf32>
    %158 = vector.shape_cast %157 : vector<8xf32> to vector<8x1xf32>
    %cst_83 = arith.constant 3.200000e+01 : f32
    %159 = vector.broadcast %cst_83 : f32 to vector<8x1xf32>
    %160 = arith.divf %158, %159 : vector<8x1xf32>
    %161 = vector.broadcast %153 : vector<8x1xf32> to vector<8x32xf32>
    %162 = arith.subf %149, %161 : vector<8x32xf32>
    %cst_84 = arith.constant 9.99999974E-6 : f32
    %163 = vector.broadcast %cst_84 : f32 to vector<8x1xf32>
    %164 = arith.addf %160, %163 : vector<8x1xf32>
    %165 = math.rsqrt %164 : vector<8x1xf32>
    %166 = vector.broadcast %165 : vector<8x1xf32> to vector<8x32xf32>
    %167 = arith.mulf %162, %166 : vector<8x32xf32>
    %168 = vector.broadcast %31 : vector<1x32xf32> to vector<8x32xf32>
    %169 = arith.mulf %167, %168 : vector<8x32xf32>
    %170 = vector.broadcast %33 : vector<1x32xf32> to vector<8x32xf32>
    %171 = arith.addf %169, %170 : vector<8x32xf32>
    %c1 = arith.constant 1 : index
    %c0_85 = arith.constant 0 : index
    %c0_86 = arith.constant 0 : index
    %172 = vector.load %arg2[%c1, %c0_85, %c0_86] : memref<2x32x32xf32, #tpu.memory_space<vmem>>, vector<1x32x32xf32>
    %173 = vector.shape_cast %172 : vector<1x32x32xf32> to vector<32x32xf32>
    %c1_87 = arith.constant 1 : index
    %c0_88 = arith.constant 0 : index
    %c0_89 = arith.constant 0 : index
    %174 = vector.load %arg3[%c1_87, %c0_88, %c0_89] : memref<2x1x32xf32, #tpu.memory_space<vmem>>, vector<1x1x32xf32>
    %175 = vector.shape_cast %174 : vector<1x1x32xf32> to vector<1x32xf32>
    %c1_90 = arith.constant 1 : index
    %c0_91 = arith.constant 0 : index
    %c0_92 = arith.constant 0 : index
    %176 = vector.load %arg4[%c1_90, %c0_91, %c0_92] : memref<2x32x32xf32, #tpu.memory_space<vmem>>, vector<1x32x32xf32>
    %177 = vector.shape_cast %176 : vector<1x32x32xf32> to vector<32x32xf32>
    %c1_93 = arith.constant 1 : index
    %c0_94 = arith.constant 0 : index
    %c0_95 = arith.constant 0 : index
    %178 = vector.load %arg5[%c1_93, %c0_94, %c0_95] : memref<2x1x32xf32, #tpu.memory_space<vmem>>, vector<1x1x32xf32>
    %179 = vector.shape_cast %178 : vector<1x1x32xf32> to vector<1x32xf32>
    %c1_96 = arith.constant 1 : index
    %c0_97 = arith.constant 0 : index
    %c0_98 = arith.constant 0 : index
    %180 = vector.load %arg6[%c1_96, %c0_97, %c0_98] : memref<2x32x32xf32, #tpu.memory_space<vmem>>, vector<1x32x32xf32>
    %181 = vector.shape_cast %180 : vector<1x32x32xf32> to vector<32x32xf32>
    %c1_99 = arith.constant 1 : index
    %c0_100 = arith.constant 0 : index
    %c0_101 = arith.constant 0 : index
    %182 = vector.load %arg7[%c1_99, %c0_100, %c0_101] : memref<2x1x32xf32, #tpu.memory_space<vmem>>, vector<1x1x32xf32>
    %183 = vector.shape_cast %182 : vector<1x1x32xf32> to vector<1x32xf32>
    %c1_102 = arith.constant 1 : index
    %c0_103 = arith.constant 0 : index
    %c0_104 = arith.constant 0 : index
    %184 = vector.load %arg8[%c1_102, %c0_103, %c0_104] : memref<2x32x32xf32, #tpu.memory_space<vmem>>, vector<1x32x32xf32>
    %185 = vector.shape_cast %184 : vector<1x32x32xf32> to vector<32x32xf32>
    %c1_105 = arith.constant 1 : index
    %c0_106 = arith.constant 0 : index
    %c0_107 = arith.constant 0 : index
    %186 = vector.load %arg9[%c1_105, %c0_106, %c0_107] : memref<2x1x32xf32, #tpu.memory_space<vmem>>, vector<1x1x32xf32>
    %187 = vector.shape_cast %186 : vector<1x1x32xf32> to vector<1x32xf32>
    %c1_108 = arith.constant 1 : index
    %c0_109 = arith.constant 0 : index
    %c0_110 = arith.constant 0 : index
    %188 = vector.load %arg10[%c1_108, %c0_109, %c0_110] : memref<2x1x32xf32, #tpu.memory_space<vmem>>, vector<1x1x32xf32>
    %189 = vector.shape_cast %188 : vector<1x1x32xf32> to vector<1x32xf32>
    %c1_111 = arith.constant 1 : index
    %c0_112 = arith.constant 0 : index
    %c0_113 = arith.constant 0 : index
    %190 = vector.load %arg11[%c1_111, %c0_112, %c0_113] : memref<2x1x32xf32, #tpu.memory_space<vmem>>, vector<1x1x32xf32>
    %191 = vector.shape_cast %190 : vector<1x1x32xf32> to vector<1x32xf32>
    %c1_114 = arith.constant 1 : index
    %c0_115 = arith.constant 0 : index
    %c0_116 = arith.constant 0 : index
    %192 = vector.load %arg12[%c1_114, %c0_115, %c0_116] : memref<2x32x64xf32, #tpu.memory_space<vmem>>, vector<1x32x64xf32>
    %193 = vector.shape_cast %192 : vector<1x32x64xf32> to vector<32x64xf32>
    %c1_117 = arith.constant 1 : index
    %c0_118 = arith.constant 0 : index
    %c0_119 = arith.constant 0 : index
    %194 = vector.load %arg13[%c1_117, %c0_118, %c0_119] : memref<2x1x64xf32, #tpu.memory_space<vmem>>, vector<1x1x64xf32>
    %195 = vector.shape_cast %194 : vector<1x1x64xf32> to vector<1x64xf32>
    %c1_120 = arith.constant 1 : index
    %c0_121 = arith.constant 0 : index
    %c0_122 = arith.constant 0 : index
    %196 = vector.load %arg14[%c1_120, %c0_121, %c0_122] : memref<2x64x32xf32, #tpu.memory_space<vmem>>, vector<1x64x32xf32>
    %197 = vector.shape_cast %196 : vector<1x64x32xf32> to vector<64x32xf32>
    %c1_123 = arith.constant 1 : index
    %c0_124 = arith.constant 0 : index
    %c0_125 = arith.constant 0 : index
    %198 = vector.load %arg15[%c1_123, %c0_124, %c0_125] : memref<2x1x32xf32, #tpu.memory_space<vmem>>, vector<1x1x32xf32>
    %199 = vector.shape_cast %198 : vector<1x1x32xf32> to vector<1x32xf32>
    %c1_126 = arith.constant 1 : index
    %c0_127 = arith.constant 0 : index
    %c0_128 = arith.constant 0 : index
    %200 = vector.load %arg16[%c1_126, %c0_127, %c0_128] : memref<2x1x32xf32, #tpu.memory_space<vmem>>, vector<1x1x32xf32>
    %201 = vector.shape_cast %200 : vector<1x1x32xf32> to vector<1x32xf32>
    %c1_129 = arith.constant 1 : index
    %c0_130 = arith.constant 0 : index
    %c0_131 = arith.constant 0 : index
    %202 = vector.load %arg17[%c1_129, %c0_130, %c0_131] : memref<2x1x32xf32, #tpu.memory_space<vmem>>, vector<1x1x32xf32>
    %203 = vector.shape_cast %202 : vector<1x1x32xf32> to vector<1x32xf32>
    %cst_132 = arith.constant dense<0.000000e+00> : vector<8x32xf32>
    %204 = tpu.matmul %171, %173, %cst_132 {dimension_numbers = #tpu.dot_dimension_numbers<[1], [0], [0], [1], [0, 0, 1, 1], [], []>} : vector<8x32xf32>, vector<32x32xf32>, vector<8x32xf32> -> vector<8x32xf32>
    %205 = vector.broadcast %175 : vector<1x32xf32> to vector<8x32xf32>
    %206 = arith.addf %204, %205 : vector<8x32xf32>
    %cst_133 = arith.constant dense<0.000000e+00> : vector<8x32xf32>
    %207 = tpu.matmul %171, %177, %cst_133 {dimension_numbers = #tpu.dot_dimension_numbers<[1], [0], [0], [1], [0, 0, 1, 1], [], []>} : vector<8x32xf32>, vector<32x32xf32>, vector<8x32xf32> -> vector<8x32xf32>
    %208 = vector.broadcast %179 : vector<1x32xf32> to vector<8x32xf32>
    %209 = arith.addf %207, %208 : vector<8x32xf32>
    %cst_134 = arith.constant dense<0.000000e+00> : vector<8x32xf32>
    %210 = tpu.matmul %171, %181, %cst_134 {dimension_numbers = #tpu.dot_dimension_numbers<[1], [0], [0], [1], [0, 0, 1, 1], [], []>} : vector<8x32xf32>, vector<32x32xf32>, vector<8x32xf32> -> vector<8x32xf32>
    %211 = vector.broadcast %183 : vector<1x32xf32> to vector<8x32xf32>
    %212 = arith.addf %210, %211 : vector<8x32xf32>
    %213 = vector.extract_strided_slice %206 {offsets = [0, 0], sizes = [8, 8], strides = [1, 1]} : vector<8x32xf32> to vector<8x8xf32>
    %214 = vector.extract_strided_slice %209 {offsets = [0, 0], sizes = [8, 8], strides = [1, 1]} : vector<8x32xf32> to vector<8x8xf32>
    %215 = vector.extract_strided_slice %212 {offsets = [0, 0], sizes = [8, 8], strides = [1, 1]} : vector<8x32xf32> to vector<8x8xf32>
    %cst_135 = arith.constant dense<0.000000e+00> : vector<8x8xf32>
    %216 = tpu.matmul %213, %214, %cst_135 {dimension_numbers = #tpu.dot_dimension_numbers<[1], [1], [0], [0], [0, 0, 1, 0], [], []>} : vector<8x8xf32>, vector<8x8xf32>, vector<8x8xf32> -> vector<8x8xf32>
    %cst_136 = arith.constant dense<0xFF800000> : vector<8xf32>
    %217 = vector.multi_reduction <maximumf>, %216, %cst_136 [1] : vector<8x8xf32> to vector<8xf32>
    %218 = vector.shape_cast %217 : vector<8xf32> to vector<8x1xf32>
    %219 = vector.broadcast %218 : vector<8x1xf32> to vector<8x8xf32>
    %220 = arith.subf %216, %219 : vector<8x8xf32>
    %221 = math.exp %220 : vector<8x8xf32>
    %cst_137 = arith.constant dense<0.000000e+00> : vector<8xf32>
    %222 = vector.multi_reduction <add>, %221, %cst_137 [1] : vector<8x8xf32> to vector<8xf32>
    %223 = vector.shape_cast %222 : vector<8xf32> to vector<8x1xf32>
    %224 = tpu.reciprocal %223 {approx = true} : vector<8x1xf32> -> vector<8x1xf32>
    %225 = vector.broadcast %224 : vector<8x1xf32> to vector<8x8xf32>
    %226 = arith.mulf %221, %225 : vector<8x8xf32>
    %cst_138 = arith.constant dense<0.000000e+00> : vector<8x8xf32>
    %227 = tpu.matmul %226, %215, %cst_138 {dimension_numbers = #tpu.dot_dimension_numbers<[1], [0], [0], [1], [0, 0, 1, 1], [], []>} : vector<8x8xf32>, vector<8x8xf32>, vector<8x8xf32> -> vector<8x8xf32>
    %228 = vector.extract_strided_slice %206 {offsets = [0, 8], sizes = [8, 8], strides = [1, 1]} : vector<8x32xf32> to vector<8x8xf32>
    %229 = vector.extract_strided_slice %209 {offsets = [0, 8], sizes = [8, 8], strides = [1, 1]} : vector<8x32xf32> to vector<8x8xf32>
    %230 = vector.extract_strided_slice %212 {offsets = [0, 8], sizes = [8, 8], strides = [1, 1]} : vector<8x32xf32> to vector<8x8xf32>
    %cst_139 = arith.constant dense<0.000000e+00> : vector<8x8xf32>
    %231 = tpu.matmul %228, %229, %cst_139 {dimension_numbers = #tpu.dot_dimension_numbers<[1], [1], [0], [0], [0, 0, 1, 0], [], []>} : vector<8x8xf32>, vector<8x8xf32>, vector<8x8xf32> -> vector<8x8xf32>
    %cst_140 = arith.constant dense<0xFF800000> : vector<8xf32>
    %232 = vector.multi_reduction <maximumf>, %231, %cst_140 [1] : vector<8x8xf32> to vector<8xf32>
    %233 = vector.shape_cast %232 : vector<8xf32> to vector<8x1xf32>
    %234 = vector.broadcast %233 : vector<8x1xf32> to vector<8x8xf32>
    %235 = arith.subf %231, %234 : vector<8x8xf32>
    %236 = math.exp %235 : vector<8x8xf32>
    %cst_141 = arith.constant dense<0.000000e+00> : vector<8xf32>
    %237 = vector.multi_reduction <add>, %236, %cst_141 [1] : vector<8x8xf32> to vector<8xf32>
    %238 = vector.shape_cast %237 : vector<8xf32> to vector<8x1xf32>
    %239 = tpu.reciprocal %238 {approx = true} : vector<8x1xf32> -> vector<8x1xf32>
    %240 = vector.broadcast %239 : vector<8x1xf32> to vector<8x8xf32>
    %241 = arith.mulf %236, %240 : vector<8x8xf32>
    %cst_142 = arith.constant dense<0.000000e+00> : vector<8x8xf32>
    %242 = tpu.matmul %241, %230, %cst_142 {dimension_numbers = #tpu.dot_dimension_numbers<[1], [0], [0], [1], [0, 0, 1, 1], [], []>} : vector<8x8xf32>, vector<8x8xf32>, vector<8x8xf32> -> vector<8x8xf32>
    %243 = vector.extract_strided_slice %206 {offsets = [0, 16], sizes = [8, 8], strides = [1, 1]} : vector<8x32xf32> to vector<8x8xf32>
    %244 = vector.extract_strided_slice %209 {offsets = [0, 16], sizes = [8, 8], strides = [1, 1]} : vector<8x32xf32> to vector<8x8xf32>
    %245 = vector.extract_strided_slice %212 {offsets = [0, 16], sizes = [8, 8], strides = [1, 1]} : vector<8x32xf32> to vector<8x8xf32>
    %cst_143 = arith.constant dense<0.000000e+00> : vector<8x8xf32>
    %246 = tpu.matmul %243, %244, %cst_143 {dimension_numbers = #tpu.dot_dimension_numbers<[1], [1], [0], [0], [0, 0, 1, 0], [], []>} : vector<8x8xf32>, vector<8x8xf32>, vector<8x8xf32> -> vector<8x8xf32>
    %cst_144 = arith.constant dense<0xFF800000> : vector<8xf32>
    %247 = vector.multi_reduction <maximumf>, %246, %cst_144 [1] : vector<8x8xf32> to vector<8xf32>
    %248 = vector.shape_cast %247 : vector<8xf32> to vector<8x1xf32>
    %249 = vector.broadcast %248 : vector<8x1xf32> to vector<8x8xf32>
    %250 = arith.subf %246, %249 : vector<8x8xf32>
    %251 = math.exp %250 : vector<8x8xf32>
    %cst_145 = arith.constant dense<0.000000e+00> : vector<8xf32>
    %252 = vector.multi_reduction <add>, %251, %cst_145 [1] : vector<8x8xf32> to vector<8xf32>
    %253 = vector.shape_cast %252 : vector<8xf32> to vector<8x1xf32>
    %254 = tpu.reciprocal %253 {approx = true} : vector<8x1xf32> -> vector<8x1xf32>
    %255 = vector.broadcast %254 : vector<8x1xf32> to vector<8x8xf32>
    %256 = arith.mulf %251, %255 : vector<8x8xf32>
    %cst_146 = arith.constant dense<0.000000e+00> : vector<8x8xf32>
    %257 = tpu.matmul %256, %245, %cst_146 {dimension_numbers = #tpu.dot_dimension_numbers<[1], [0], [0], [1], [0, 0, 1, 1], [], []>} : vector<8x8xf32>, vector<8x8xf32>, vector<8x8xf32> -> vector<8x8xf32>
    %258 = vector.extract_strided_slice %206 {offsets = [0, 24], sizes = [8, 8], strides = [1, 1]} : vector<8x32xf32> to vector<8x8xf32>
    %259 = vector.extract_strided_slice %209 {offsets = [0, 24], sizes = [8, 8], strides = [1, 1]} : vector<8x32xf32> to vector<8x8xf32>
    %260 = vector.extract_strided_slice %212 {offsets = [0, 24], sizes = [8, 8], strides = [1, 1]} : vector<8x32xf32> to vector<8x8xf32>
    %cst_147 = arith.constant dense<0.000000e+00> : vector<8x8xf32>
    %261 = tpu.matmul %258, %259, %cst_147 {dimension_numbers = #tpu.dot_dimension_numbers<[1], [1], [0], [0], [0, 0, 1, 0], [], []>} : vector<8x8xf32>, vector<8x8xf32>, vector<8x8xf32> -> vector<8x8xf32>
    %cst_148 = arith.constant dense<0xFF800000> : vector<8xf32>
    %262 = vector.multi_reduction <maximumf>, %261, %cst_148 [1] : vector<8x8xf32> to vector<8xf32>
    %263 = vector.shape_cast %262 : vector<8xf32> to vector<8x1xf32>
    %264 = vector.broadcast %263 : vector<8x1xf32> to vector<8x8xf32>
    %265 = arith.subf %261, %264 : vector<8x8xf32>
    %266 = math.exp %265 : vector<8x8xf32>
    %cst_149 = arith.constant dense<0.000000e+00> : vector<8xf32>
    %267 = vector.multi_reduction <add>, %266, %cst_149 [1] : vector<8x8xf32> to vector<8xf32>
    %268 = vector.shape_cast %267 : vector<8xf32> to vector<8x1xf32>
    %269 = tpu.reciprocal %268 {approx = true} : vector<8x1xf32> -> vector<8x1xf32>
    %270 = vector.broadcast %269 : vector<8x1xf32> to vector<8x8xf32>
    %271 = arith.mulf %266, %270 : vector<8x8xf32>
    %cst_150 = arith.constant dense<0.000000e+00> : vector<8x8xf32>
    %272 = tpu.matmul %271, %260, %cst_150 {dimension_numbers = #tpu.dot_dimension_numbers<[1], [0], [0], [1], [0, 0, 1, 1], [], []>} : vector<8x8xf32>, vector<8x8xf32>, vector<8x8xf32> -> vector<8x8xf32>
    %273 = tpu.concatenate %227, %242, %257, %272 in 1 : vector<8x8xf32>, vector<8x8xf32>, vector<8x8xf32>, vector<8x8xf32> -> vector<8x32xf32>
    %cst_151 = arith.constant dense<0.000000e+00> : vector<8x32xf32>
    %274 = tpu.matmul %273, %185, %cst_151 {dimension_numbers = #tpu.dot_dimension_numbers<[1], [0], [0], [1], [0, 0, 1, 1], [], []>} : vector<8x32xf32>, vector<32x32xf32>, vector<8x32xf32> -> vector<8x32xf32>
    %275 = vector.broadcast %187 : vector<1x32xf32> to vector<8x32xf32>
    %276 = arith.addf %274, %275 : vector<8x32xf32>
    %277 = arith.addf %171, %276 : vector<8x32xf32>
    %cst_152 = arith.constant dense<0.000000e+00> : vector<8xf32>
    %278 = vector.multi_reduction <add>, %277, %cst_152 [1] : vector<8x32xf32> to vector<8xf32>
    %279 = vector.shape_cast %278 : vector<8xf32> to vector<8x1xf32>
    %cst_153 = arith.constant 3.200000e+01 : f32
    %280 = vector.broadcast %cst_153 : f32 to vector<8x1xf32>
    %281 = arith.divf %279, %280 : vector<8x1xf32>
    %282 = vector.broadcast %281 : vector<8x1xf32> to vector<8x32xf32>
    %283 = arith.subf %277, %282 : vector<8x32xf32>
    %284 = arith.mulf %283, %283 : vector<8x32xf32>
    %cst_154 = arith.constant dense<0.000000e+00> : vector<8xf32>
    %285 = vector.multi_reduction <add>, %284, %cst_154 [1] : vector<8x32xf32> to vector<8xf32>
    %286 = vector.shape_cast %285 : vector<8xf32> to vector<8x1xf32>
    %cst_155 = arith.constant 3.200000e+01 : f32
    %287 = vector.broadcast %cst_155 : f32 to vector<8x1xf32>
    %288 = arith.divf %286, %287 : vector<8x1xf32>
    %289 = vector.broadcast %281 : vector<8x1xf32> to vector<8x32xf32>
    %290 = arith.subf %277, %289 : vector<8x32xf32>
    %cst_156 = arith.constant 9.99999974E-6 : f32
    %291 = vector.broadcast %cst_156 : f32 to vector<8x1xf32>
    %292 = arith.addf %288, %291 : vector<8x1xf32>
    %293 = math.rsqrt %292 : vector<8x1xf32>
    %294 = vector.broadcast %293 : vector<8x1xf32> to vector<8x32xf32>
    %295 = arith.mulf %290, %294 : vector<8x32xf32>
    %296 = vector.broadcast %189 : vector<1x32xf32> to vector<8x32xf32>
    %297 = arith.mulf %295, %296 : vector<8x32xf32>
    %298 = vector.broadcast %191 : vector<1x32xf32> to vector<8x32xf32>
    %299 = arith.addf %297, %298 : vector<8x32xf32>
    %cst_157 = arith.constant dense<0.000000e+00> : vector<8x64xf32>
    %300 = tpu.matmul %299, %193, %cst_157 {dimension_numbers = #tpu.dot_dimension_numbers<[1], [0], [0], [1], [0, 0, 1, 1], [], []>} : vector<8x32xf32>, vector<32x64xf32>, vector<8x64xf32> -> vector<8x64xf32>
    %301 = vector.broadcast %195 : vector<1x64xf32> to vector<8x64xf32>
    %302 = arith.addf %300, %301 : vector<8x64xf32>
    %cst_158 = arith.constant 5.000000e-01 : f32
    %303 = vector.broadcast %cst_158 : f32 to vector<8x64xf32>
    %304 = arith.mulf %303, %302 : vector<8x64xf32>
    %305 = arith.mulf %302, %302 : vector<8x64xf32>
    %306 = arith.mulf %305, %302 : vector<8x64xf32>
    %cst_159 = arith.constant 4.471500e-02 : f32
    %307 = vector.broadcast %cst_159 : f32 to vector<8x64xf32>
    %308 = arith.mulf %307, %306 : vector<8x64xf32>
    %309 = arith.addf %302, %308 : vector<8x64xf32>
    %cst_160 = arith.constant 0.797884583 : f32
    %310 = vector.broadcast %cst_160 : f32 to vector<8x64xf32>
    %311 = arith.mulf %310, %309 : vector<8x64xf32>
    %312 = math.tanh %311 : vector<8x64xf32>
    %cst_161 = arith.constant 1.000000e+00 : f32
    %313 = vector.broadcast %cst_161 : f32 to vector<8x64xf32>
    %314 = arith.addf %313, %312 : vector<8x64xf32>
    %315 = arith.mulf %304, %314 : vector<8x64xf32>
    %cst_162 = arith.constant dense<0.000000e+00> : vector<8x32xf32>
    %316 = tpu.matmul %315, %197, %cst_162 {dimension_numbers = #tpu.dot_dimension_numbers<[1], [0], [0], [1], [0, 0, 1, 1], [], []>} : vector<8x64xf32>, vector<64x32xf32>, vector<8x32xf32> -> vector<8x32xf32>
    %317 = vector.broadcast %199 : vector<1x32xf32> to vector<8x32xf32>
    %318 = arith.addf %316, %317 : vector<8x32xf32>
    %319 = arith.addf %299, %318 : vector<8x32xf32>
    %cst_163 = arith.constant dense<0.000000e+00> : vector<8xf32>
    %320 = vector.multi_reduction <add>, %319, %cst_163 [1] : vector<8x32xf32> to vector<8xf32>
    %321 = vector.shape_cast %320 : vector<8xf32> to vector<8x1xf32>
    %cst_164 = arith.constant 3.200000e+01 : f32
    %322 = vector.broadcast %cst_164 : f32 to vector<8x1xf32>
    %323 = arith.divf %321, %322 : vector<8x1xf32>
    %324 = vector.broadcast %323 : vector<8x1xf32> to vector<8x32xf32>
    %325 = arith.subf %319, %324 : vector<8x32xf32>
    %326 = arith.mulf %325, %325 : vector<8x32xf32>
    %cst_165 = arith.constant dense<0.000000e+00> : vector<8xf32>
    %327 = vector.multi_reduction <add>, %326, %cst_165 [1] : vector<8x32xf32> to vector<8xf32>
    %328 = vector.shape_cast %327 : vector<8xf32> to vector<8x1xf32>
    %cst_166 = arith.constant 3.200000e+01 : f32
    %329 = vector.broadcast %cst_166 : f32 to vector<8x1xf32>
    %330 = arith.divf %328, %329 : vector<8x1xf32>
    %331 = vector.broadcast %323 : vector<8x1xf32> to vector<8x32xf32>
    %332 = arith.subf %319, %331 : vector<8x32xf32>
    %cst_167 = arith.constant 9.99999974E-6 : f32
    %333 = vector.broadcast %cst_167 : f32 to vector<8x1xf32>
    %334 = arith.addf %330, %333 : vector<8x1xf32>
    %335 = math.rsqrt %334 : vector<8x1xf32>
    %336 = vector.broadcast %335 : vector<8x1xf32> to vector<8x32xf32>
    %337 = arith.mulf %332, %336 : vector<8x32xf32>
    %338 = vector.broadcast %201 : vector<1x32xf32> to vector<8x32xf32>
    %339 = arith.mulf %337, %338 : vector<8x32xf32>
    %340 = vector.broadcast %203 : vector<1x32xf32> to vector<8x32xf32>
    %341 = arith.addf %339, %340 : vector<8x32xf32>
    %c0_168 = arith.constant 0 : index
    %c0_169 = arith.constant 0 : index
    %c0_170 = arith.constant 0 : index
    %342 = vector.load %arg18[%c0_168, %c0_169, %c0_170] : memref<1x8x32xf32, #tpu.memory_space<vmem>>, vector<1x8x32xf32>
    %343 = vector.shape_cast %342 : vector<1x8x32xf32> to vector<8x32xf32>
    %344 = vector.shape_cast %341 : vector<8x32xf32> to vector<1x8x32xf32>
    tpu.vector_store %arg18[%c0_168, %c0_169, %c0_170], %344 {strides = array<i32>} : memref<1x8x32xf32, #tpu.memory_space<vmem>>, vector<1x8x32xf32>,
    return
  }
  func.func @transform_0(%arg0: i32) -> (i32, i32, i32) {
    %c0_i32 = arith.constant 0 : i32
    %c0_i32_0 = arith.constant 0 : i32
    %c0_i32_1 = arith.constant 0 : i32
    return %arg0, %c0_i32, %c0_i32_0 : i32, i32, i32
  }
  func.func @transform_1(%arg0: i32) -> (i32, i32, i32) {
    %c0_i32 = arith.constant 0 : i32
    %c0_i32_0 = arith.constant 0 : i32
    %c0_i32_1 = arith.constant 0 : i32
    %c0_i32_2 = arith.constant 0 : i32
    return %c0_i32, %c0_i32_0, %c0_i32_1 : i32, i32, i32
  }
  func.func @transform_2(%arg0: i32) -> (i32, i32, i32) {
    %c0_i32 = arith.constant 0 : i32
    %c0_i32_0 = arith.constant 0 : i32
    %c0_i32_1 = arith.constant 0 : i32
    %c0_i32_2 = arith.constant 0 : i32
    return %c0_i32, %c0_i32_0, %c0_i32_1 : i32, i32, i32
  }
  func.func @transform_3(%arg0: i32) -> (i32, i32, i32) {
    %c0_i32 = arith.constant 0 : i32
    %c0_i32_0 = arith.constant 0 : i32
    %c0_i32_1 = arith.constant 0 : i32
    %c0_i32_2 = arith.constant 0 : i32
    return %c0_i32, %c0_i32_0, %c0_i32_1 : i32, i32, i32
  }
  func.func @transform_4(%arg0: i32) -> (i32, i32, i32) {
    %c0_i32 = arith.constant 0 : i32
    %c0_i32_0 = arith.constant 0 : i32
    %c0_i32_1 = arith.constant 0 : i32
    %c0_i32_2 = arith.constant 0 : i32
    return %c0_i32, %c0_i32_0, %c0_i32_1 : i32, i32, i32
  }
  func.func @transform_5(%arg0: i32) -> (i32, i32, i32) {
    %c0_i32 = arith.constant 0 : i32
    %c0_i32_0 = arith.constant 0 : i32
    %c0_i32_1 = arith.constant 0 : i32
    %c0_i32_2 = arith.constant 0 : i32
    return %c0_i32, %c0_i32_0, %c0_i32_1 : i32, i32, i32
  }
  func.func @transform_6(%arg0: i32) -> (i32, i32, i32) {
    %c0_i32 = arith.constant 0 : i32
    %c0_i32_0 = arith.constant 0 : i32
    %c0_i32_1 = arith.constant 0 : i32
    %c0_i32_2 = arith.constant 0 : i32
    return %c0_i32, %c0_i32_0, %c0_i32_1 : i32, i32, i32
  }
  func.func @transform_7(%arg0: i32) -> (i32, i32, i32) {
    %c0_i32 = arith.constant 0 : i32
    %c0_i32_0 = arith.constant 0 : i32
    %c0_i32_1 = arith.constant 0 : i32
    %c0_i32_2 = arith.constant 0 : i32
    return %c0_i32, %c0_i32_0, %c0_i32_1 : i32, i32, i32
  }
  func.func @transform_8(%arg0: i32) -> (i32, i32, i32) {
    %c0_i32 = arith.constant 0 : i32
    %c0_i32_0 = arith.constant 0 : i32
    %c0_i32_1 = arith.constant 0 : i32
    %c0_i32_2 = arith.constant 0 : i32
    return %c0_i32, %c0_i32_0, %c0_i32_1 : i32, i32, i32
  }
  func.func @transform_9(%arg0: i32) -> (i32, i32, i32) {
    %c0_i32 = arith.constant 0 : i32
    %c0_i32_0 = arith.constant 0 : i32
    %c0_i32_1 = arith.constant 0 : i32
    %c0_i32_2 = arith.constant 0 : i32
    return %c0_i32, %c0_i32_0, %c0_i32_1 : i32, i32, i32
  }
  func.func @transform_10(%arg0: i32) -> (i32, i32, i32) {
    %c0_i32 = arith.constant 0 : i32
    %c0_i32_0 = arith.constant 0 : i32
    %c0_i32_1 = arith.constant 0 : i32
    %c0_i32_2 = arith.constant 0 : i32
    return %c0_i32, %c0_i32_0, %c0_i32_1 : i32, i32, i32
  }
  func.func @transform_11(%arg0: i32) -> (i32, i32, i32) {
    %c0_i32 = arith.constant 0 : i32
    %c0_i32_0 = arith.constant 0 : i32
    %c0_i32_1 = arith.constant 0 : i32
    %c0_i32_2 = arith.constant 0 : i32
    return %c0_i32, %c0_i32_0, %c0_i32_1 : i32, i32, i32
  }
  func.func @transform_12(%arg0: i32) -> (i32, i32, i32) {
    %c0_i32 = arith.constant 0 : i32
    %c0_i32_0 = arith.constant 0 : i32
    %c0_i32_1 = arith.constant 0 : i32
    %c0_i32_2 = arith.constant 0 : i32
    return %c0_i32, %c0_i32_0, %c0_i32_1 : i32, i32, i32
  }
  func.func @transform_13(%arg0: i32) -> (i32, i32, i32) {
    %c0_i32 = arith.constant 0 : i32
    %c0_i32_0 = arith.constant 0 : i32
    %c0_i32_1 = arith.constant 0 : i32
    %c0_i32_2 = arith.constant 0 : i32
    return %c0_i32, %c0_i32_0, %c0_i32_1 : i32, i32, i32
  }
  func.func @transform_14(%arg0: i32) -> (i32, i32, i32) {
    %c0_i32 = arith.constant 0 : i32
    %c0_i32_0 = arith.constant 0 : i32
    %c0_i32_1 = arith.constant 0 : i32
    %c0_i32_2 = arith.constant 0 : i32
    return %c0_i32, %c0_i32_0, %c0_i32_1 : i32, i32, i32
  }
  func.func @transform_15(%arg0: i32) -> (i32, i32, i32) {
    %c0_i32 = arith.constant 0 : i32
    %c0_i32_0 = arith.constant 0 : i32
    %c0_i32_1 = arith.constant 0 : i32
    %c0_i32_2 = arith.constant 0 : i32
    return %c0_i32, %c0_i32_0, %c0_i32_1 : i32, i32, i32
  }
  func.func @transform_16(%arg0: i32) -> (i32, i32, i32) {
    %c0_i32 = arith.constant 0 : i32
    %c0_i32_0 = arith.constant 0 : i32
    %c0_i32_1 = arith.constant 0 : i32
    %c0_i32_2 = arith.constant 0 : i32
    return %c0_i32, %c0_i32_0, %c0_i32_1 : i32, i32, i32
  }
  func.func @transform_17(%arg0: i32) -> (i32, i32, i32) {
    %c0_i32 = arith.constant 0 : i32
    %c0_i32_0 = arith.constant 0 : i32
    %c0_i32_1 = arith.constant 0 : i32
    return %arg0, %c0_i32, %c0_i32_0 : i32, i32, i32
  }
}

module attributes {stable_mosaic.version = 11 : i64} {
  func.func @_encoder_kernel(%arg0: i32, %arg1: memref<1x8x32xf32, #tpu.memory_space<vmem>>, %arg2: memref<2x32x32xf32, #tpu.memory_space<vmem>>, %arg3: memref<2x1x32xf32, #tpu.memory_space<vmem>>, %arg4: memref<2x32x32xf32, #tpu.memory_space<vmem>>, %arg5: memref<2x1x32xf32, #tpu.memory_space<vmem>>, %arg6: memref<2x32x32xf32, #tpu.memory_space<vmem>>, %arg7: memref<2x1x32xf32, #tpu.memory_space<vmem>>, %arg8: memref<2x32x32xf32, #tpu.memory_space<vmem>>, %arg9: memref<2x1x32xf32, #tpu.memory_space<vmem>>, %arg10: memref<2x1x32xf32, #tpu.memory_space<vmem>>, %arg11: memref<2x1x32xf32, #tpu.memory_space<vmem>>, %arg12: memref<2x32x64xf32, #tpu.memory_space<vmem>>, %arg13: memref<2x1x64xf32, #tpu.memory_space<vmem>>, %arg14: memref<2x64x32xf32, #tpu.memory_space<vmem>>, %arg15: memref<2x1x32xf32, #tpu.memory_space<vmem>>, %arg16: memref<2x1x32xf32, #tpu.memory_space<vmem>>, %arg17: memref<2x1x32xf32, #tpu.memory_space<vmem>>, %arg18: memref<1x8x32xf32, #tpu.memory_space<vmem>>) attributes {dimension_semantics = [#tpu.dimension_semantics<parallel>], iteration_bounds = array<i64: 2>, scalar_prefetch = 0 : i64, scratch_operands = 0 : i64, tpu.core_type = #tpu.core_type<tc>, window_params = [{transform_indices = @transform_0, window_bounds = array<i64: 1, 8, 32>}, {pipeline_mode = #tpu.pipeline_mode<synchronous>, transform_indices = @transform_1, window_bounds = array<i64: 2, 32, 32>}, {pipeline_mode = #tpu.pipeline_mode<synchronous>, transform_indices = @transform_2, window_bounds = array<i64: 2, 1, 32>}, {pipeline_mode = #tpu.pipeline_mode<synchronous>, transform_indices = @transform_3, window_bounds = array<i64: 2, 32, 32>}, {pipeline_mode = #tpu.pipeline_mode<synchronous>, transform_indices = @transform_4, window_bounds = array<i64: 2, 1, 32>}, {pipeline_mode = #tpu.pipeline_mode<synchronous>, transform_indices = @transform_5, window_bounds = array<i64: 2, 32, 32>}, {pipeline_mode = #tpu.pipeline_mode<synchronous>, transform_indices = @transform_6, window_bounds = array<i64: 2, 1, 32>}, {pipeline_mode = #tpu.pipeline_mode<synchronous>, transform_indices = @transform_7, window_bounds = array<i64: 2, 32, 32>}, {pipeline_mode = #tpu.pipeline_mode<synchronous>, transform_indices = @transform_8, window_bounds = array<i64: 2, 1, 32>}, {pipeline_mode = #tpu.pipeline_mode<synchronous>, transform_indices = @transform_9, window_bounds = array<i64: 2, 1, 32>}, {pipeline_mode = #tpu.pipeline_mode<synchronous>, transform_indices = @transform_10, window_bounds = array<i64: 2, 1, 32>}, {pipeline_mode = #tpu.pipeline_mode<synchronous>, transform_indices = @transform_11, window_bounds = array<i64: 2, 32, 64>}, {pipeline_mode = #tpu.pipeline_mode<synchronous>, transform_indices = @transform_12, window_bounds = array<i64: 2, 1, 64>}, {pipeline_mode = #tpu.pipeline_mode<synchronous>, transform_indices = @transform_13, window_bounds = array<i64: 2, 64, 32>}, {pipeline_mode = #tpu.pipeline_mode<synchronous>, transform_indices = @transform_14, window_bounds = array<i64: 2, 1, 32>}, {pipeline_mode = #tpu.pipeline_mode<synchronous>, transform_indices = @transform_15, window_bounds = array<i64: 2, 1, 32>}, {pipeline_mode = #tpu.pipeline_mode<synchronous>, transform_indices = @transform_16, window_bounds = array<i64: 2, 1, 32>}, {transform_indices = @transform_17, window_bounds = array<i64: 1, 8, 32>}]} {
    %c0 = arith.constant 0 : index
    %c0_0 = arith.constant 0 : index
    %c0_1 = arith.constant 0 : index
    %0 = vector.load %arg1[%c0, %c0_0, %c0_1] : memref<1x8x32xf32, #tpu.memory_space<vmem>>, vector<1x8x32xf32>
    %1 = vector.shape_cast %0 : vector<1x8x32xf32> to vector<8x32xf32>
    %c0_2 = arith.constant 0 : index
    %c0_3 = arith.constant 0 : index
    %c0_4 = arith.constant 0 : index
    %2 = vector.load %arg2[%c0_2, %c0_3, %c0_4] : memref<2x32x32xf32, #tpu.memory_space<vmem>>, vector<1x32x32xf32>
    %3 = vector.shape_cast %2 : vector<1x32x32xf32> to vector<32x32xf32>
    %c0_5 = arith.constant 0 : index
    %c0_6 = arith.constant 0 : index
    %c0_7 = arith.constant 0 : index
    %4 = vector.load %arg3[%c0_5, %c0_6, %c0_7] : memref<2x1x32xf32, #tpu.memory_space<vmem>>, vector<1x1x32xf32>
    %5 = vector.shape_cast %4 : vector<1x1x32xf32> to vector<1x32xf32>
    %c0_8 = arith.constant 0 : index
    %c0_9 = arith.constant 0 : index
    %c0_10 = arith.constant 0 : index
    %6 = vector.load %arg4[%c0_8, %c0_9, %c0_10] : memref<2x32x32xf32, #tpu.memory_space<vmem>>, vector<1x32x32xf32>
    %7 = vector.shape_cast %6 : vector<1x32x32xf32> to vector<32x32xf32>
    %c0_11 = arith.constant 0 : index
    %c0_12 = arith.constant 0 : index
    %c0_13 = arith.constant 0 : index
    %8 = vector.load %arg5[%c0_11, %c0_12, %c0_13] : memref<2x1x32xf32, #tpu.memory_space<vmem>>, vector<1x1x32xf32>
    %9 = vector.shape_cast %8 : vector<1x1x32xf32> to vector<1x32xf32>
    %c0_14 = arith.constant 0 : index
    %c0_15 = arith.constant 0 : index
    %c0_16 = arith.constant 0 : index
    %10 = vector.load %arg6[%c0_14, %c0_15, %c0_16] : memref<2x32x32xf32, #tpu.memory_space<vmem>>, vector<1x32x32xf32>
    %11 = vector.shape_cast %10 : vector<1x32x32xf32> to vector<32x32xf32>
    %c0_17 = arith.constant 0 : index
    %c0_18 = arith.constant 0 : index
    %c0_19 = arith.constant 0 : index
    %12 = vector.load %arg7[%c0_17, %c0_18, %c0_19] : memref<2x1x32xf32, #tpu.memory_space<vmem>>, vector<1x1x32xf32>
    %13 = vector.shape_cast %12 : vector<1x1x32xf32> to vector<1x32xf32>
    %c0_20 = arith.constant 0 : index
    %c0_21 = arith.constant 0 : index
    %c0_22 = arith.constant 0 : index
    %14 = vector.load %arg8[%c0_20, %c0_21, %c0_22] : memref<2x32x32xf32, #tpu.memory_space<vmem>>, vector<1x32x32xf32>
    %15 = vector.shape_cast %14 : vector<1x32x32xf32> to vector<32x32xf32>
    %c0_23 = arith.constant 0 : index
    %c0_24 = arith.constant 0 : index
    %c0_25 = arith.constant 0 : index
    %16 = vector.load %arg9[%c0_23, %c0_24, %c0_25] : memref<2x1x32xf32, #tpu.memory_space<vmem>>, vector<1x1x32xf32>
    %17 = vector.shape_cast %16 : vector<1x1x32xf32> to vector<1x32xf32>
    %c0_26 = arith.constant 0 : index
    %c0_27 = arith.constant 0 : index
    %c0_28 = arith.constant 0 : index
    %18 = vector.load %arg10[%c0_26, %c0_27, %c0_28] : memref<2x1x32xf32, #tpu.memory_space<vmem>>, vector<1x1x32xf32>
    %19 = vector.shape_cast %18 : vector<1x1x32xf32> to vector<1x32xf32>
    %c0_29 = arith.constant 0 : index
    %c0_30 = arith.constant 0 : index
    %c0_31 = arith.constant 0 : index
    %20 = vector.load %arg11[%c0_29, %c0_30, %c0_31] : memref<2x1x32xf32, #tpu.memory_space<vmem>>, vector<1x1x32xf32>
    %21 = vector.shape_cast %20 : vector<1x1x32xf32> to vector<1x32xf32>
    %c0_32 = arith.constant 0 : index
    %c0_33 = arith.constant 0 : index
    %c0_34 = arith.constant 0 : index
    %22 = vector.load %arg12[%c0_32, %c0_33, %c0_34] : memref<2x32x64xf32, #tpu.memory_space<vmem>>, vector<1x32x64xf32>
    %23 = vector.shape_cast %22 : vector<1x32x64xf32> to vector<32x64xf32>
    %c0_35 = arith.constant 0 : index
    %c0_36 = arith.constant 0 : index
    %c0_37 = arith.constant 0 : index
    %24 = vector.load %arg13[%c0_35, %c0_36, %c0_37] : memref<2x1x64xf32, #tpu.memory_space<vmem>>, vector<1x1x64xf32>
    %25 = vector.shape_cast %24 : vector<1x1x64xf32> to vector<1x64xf32>
    %c0_38 = arith.constant 0 : index
    %c0_39 = arith.constant 0 : index
    %c0_40 = arith.constant 0 : index
    %26 = vector.load %arg14[%c0_38, %c0_39, %c0_40] : memref<2x64x32xf32, #tpu.memory_space<vmem>>, vector<1x64x32xf32>
    %27 = vector.shape_cast %26 : vector<1x64x32xf32> to vector<64x32xf32>
    %c0_41 = arith.constant 0 : index
    %c0_42 = arith.constant 0 : index
    %c0_43 = arith.constant 0 : index
    %28 = vector.load %arg15[%c0_41, %c0_42, %c0_43] : memref<2x1x32xf32, #tpu.memory_space<vmem>>, vector<1x1x32xf32>
    %29 = vector.shape_cast %28 : vector<1x1x32xf32> to vector<1x32xf32>
    %c0_44 = arith.constant 0 : index
    %c0_45 = arith.constant 0 : index
    %c0_46 = arith.constant 0 : index
    %30 = vector.load %arg16[%c0_44, %c0_45, %c0_46] : memref<2x1x32xf32, #tpu.memory_space<vmem>>, vector<1x1x32xf32>
    %31 = vector.shape_cast %30 : vector<1x1x32xf32> to vector<1x32xf32>
    %c0_47 = arith.constant 0 : index
    %c0_48 = arith.constant 0 : index
    %c0_49 = arith.constant 0 : index
    %32 = vector.load %arg17[%c0_47, %c0_48, %c0_49] : memref<2x1x32xf32, #tpu.memory_space<vmem>>, vector<1x1x32xf32>
    %33 = vector.shape_cast %32 : vector<1x1x32xf32> to vector<1x32xf32>
    %cst = arith.constant dense<0.000000e+00> : vector<8x32xf32>
    %34 = tpu.matmul %1, %3, %cst {dimension_numbers = #tpu.dot_dimension_numbers<[1], [0], [0], [1], [0, 0, 1, 1], [], []>} : vector<8x32xf32>, vector<32x32xf32>, vector<8x32xf32> -> vector<8x32xf32>
    %35 = vector.broadcast %5 : vector<1x32xf32> to vector<8x32xf32>
    %36 = arith.addf %34, %35 : vector<8x32xf32>
    %cst_50 = arith.constant dense<0.000000e+00> : vector<8x32xf32>
    %37 = tpu.matmul %1, %7, %cst_50 {dimension_numbers = #tpu.dot_dimension_numbers<[1], [0], [0], [1], [0, 0, 1, 1], [], []>} : vector<8x32xf32>, vector<32x32xf32>, vector<8x32xf32> -> vector<8x32xf32>
    %38 = vector.broadcast %9 : vector<1x32xf32> to vector<8x32xf32>
    %39 = arith.addf %37, %38 : vector<8x32xf32>
    %cst_51 = arith.constant dense<0.000000e+00> : vector<8x32xf32>
    %40 = tpu.matmul %1, %11, %cst_51 {dimension_numbers = #tpu.dot_dimension_numbers<[1], [0], [0], [1], [0, 0, 1, 1], [], []>} : vector<8x32xf32>, vector<32x32xf32>, vector<8x32xf32> -> vector<8x32xf32>
    %41 = vector.broadcast %13 : vector<1x32xf32> to vector<8x32xf32>
    %42 = arith.addf %40, %41 : vector<8x32xf32>
    %43 = vector.extract_strided_slice %36 {offsets = [0, 0], sizes = [8, 8], strides = [1, 1]} : vector<8x32xf32> to vector<8x8xf32>
    %44 = vector.extract_strided_slice %39 {offsets = [0, 0], sizes = [8, 8], strides = [1, 1]} : vector<8x32xf32> to vector<8x8xf32>
    %45 = vector.extract_strided_slice %42 {offsets = [0, 0], sizes = [8, 8], strides = [1, 1]} : vector<8x32xf32> to vector<8x8xf32>
    %cst_52 = arith.constant dense<0.000000e+00> : vector<8x8xf32>
    %46 = tpu.matmul %43, %44, %cst_52 {dimension_numbers = #tpu.dot_dimension_numbers<[1], [1], [0], [0], [0, 0, 1, 0], [], []>} : vector<8x8xf32>, vector<8x8xf32>, vector<8x8xf32> -> vector<8x8xf32>
    %cst_53 = arith.constant dense<0xFF800000> : vector<8xf32>
    %47 = vector.multi_reduction <maximumf>, %46, %cst_53 [1] : vector<8x8xf32> to vector<8xf32>
    %48 = vector.shape_cast %47 : vector<8xf32> to vector<8x1xf32>
    %49 = vector.broadcast %48 : vector<8x1xf32> to vector<8x8xf32>
    %50 = arith.subf %46, %49 : vector<8x8xf32>
    %51 = math.exp %50 : vector<8x8xf32>
    %cst_54 = arith.constant dense<0.000000e+00> : vector<8xf32>
    %52 = vector.multi_reduction <add>, %51, %cst_54 [1] : vector<8x8xf32> to vector<8xf32>
    %53 = vector.shape_cast %52 : vector<8xf32> to vector<8x1xf32>
    %54 = tpu.reciprocal %53 {approx = true} : vector<8x1xf32> -> vector<8x1xf32>
    %55 = vector.broadcast %54 : vector<8x1xf32> to vector<8x8xf32>
    %56 = arith.mulf %51, %55 : vector<8x8xf32>
    %cst_55 = arith.constant dense<0.000000e+00> : vector<8x8xf32>
    %57 = tpu.matmul %56, %45, %cst_55 {dimension_numbers = #tpu.dot_dimension_numbers<[1], [0], [0], [1], [0, 0, 1, 1], [], []>} : vector<8x8xf32>, vector<8x8xf32>, vector<8x8xf32> -> vector<8x8xf32>
    %58 = vector.extract_strided_slice %36 {offsets = [0, 8], sizes = [8, 8], strides = [1, 1]} : vector<8x32xf32> to vector<8x8xf32>
    %59 = vector.extract_strided_slice %39 {offsets = [0, 8], sizes = [8, 8], strides = [1, 1]} : vector<8x32xf32> to vector<8x8xf32>
    %60 = vector.extract_strided_slice %42 {offsets = [0, 8], sizes = [8, 8], strides = [1, 1]} : vector<8x32xf32> to vector<8x8xf32>
    %cst_56 = arith.constant dense<0.000000e+00> : vector<8x8xf32>
    %61 = tpu.matmul %58, %59, %cst_56 {dimension_numbers = #tpu.dot_dimension_numbers<[1], [1], [0], [0], [0, 0, 1, 0], [], []>} : vector<8x8xf32>, vector<8x8xf32>, vector<8x8xf32> -> vector<8x8xf32>
    %cst_57 = arith.constant dense<0xFF800000> : vector<8xf32>
    %62 = vector.multi_reduction <maximumf>, %61, %cst_57 [1] : vector<8x8xf32> to vector<8xf32>
    %63 = vector.shape_cast %62 : vector<8xf32> to vector<8x1xf32>
    %64 = vector.broadcast %63 : vector<8x1xf32> to vector<8x8xf32>
    %65 = arith.subf %61, %64 : vector<8x8xf32>
    %66 = math.exp %65 : vector<8x8xf32>
    %cst_58 = arith.constant dense<0.000000e+00> : vector<8xf32>
    %67 = vector.multi_reduction <add>, %66, %cst_58 [1] : vector<8x8xf32> to vector<8xf32>
    %68 = vector.shape_cast %67 : vector<8xf32> to vector<8x1xf32>
    %69 = tpu.reciprocal %68 {approx = true} : vector<8x1xf32> -> vector<8x1xf32>
    %70 = vector.broadcast %69 : vector<8x1xf32> to vector<8x8xf32>
    %71 = arith.mulf %66, %70 : vector<8x8xf32>
    %cst_59 = arith.constant dense<0.000000e+00> : vector<8x8xf32>
    %72 = tpu.matmul %71, %60, %cst_59 {dimension_numbers = #tpu.dot_dimension_numbers<[1], [0], [0], [1], [0, 0, 1, 1], [], []>} : vector<8x8xf32>, vector<8x8xf32>, vector<8x8xf32> -> vector<8x8xf32>
    %73 = vector.extract_strided_slice %36 {offsets = [0, 16], sizes = [8, 8], strides = [1, 1]} : vector<8x32xf32> to vector<8x8xf32>
    %74 = vector.extract_strided_slice %39 {offsets = [0, 16], sizes = [8, 8], strides = [1, 1]} : vector<8x32xf32> to vector<8x8xf32>
    %75 = vector.extract_strided_slice %42 {offsets = [0, 16], sizes = [8, 8], strides = [1, 1]} : vector<8x32xf32> to vector<8x8xf32>
    %cst_60 = arith.constant dense<0.000000e+00> : vector<8x8xf32>
    %76 = tpu.matmul %73, %74, %cst_60 {dimension_numbers = #tpu.dot_dimension_numbers<[1], [1], [0], [0], [0, 0, 1, 0], [], []>} : vector<8x8xf32>, vector<8x8xf32>, vector<8x8xf32> -> vector<8x8xf32>
    %cst_61 = arith.constant dense<0xFF800000> : vector<8xf32>
    %77 = vector.multi_reduction <maximumf>, %76, %cst_61 [1] : vector<8x8xf32> to vector<8xf32>
    %78 = vector.shape_cast %77 : vector<8xf32> to vector<8x1xf32>
    %79 = vector.broadcast %78 : vector<8x1xf32> to vector<8x8xf32>
    %80 = arith.subf %76, %79 : vector<8x8xf32>
    %81 = math.exp %80 : vector<8x8xf32>
    %cst_62 = arith.constant dense<0.000000e+00> : vector<8xf32>
    %82 = vector.multi_reduction <add>, %81, %cst_62 [1] : vector<8x8xf32> to vector<8xf32>
    %83 = vector.shape_cast %82 : vector<8xf32> to vector<8x1xf32>
    %84 = tpu.reciprocal %83 {approx = true} : vector<8x1xf32> -> vector<8x1xf32>
    %85 = vector.broadcast %84 : vector<8x1xf32> to vector<8x8xf32>
    %86 = arith.mulf %81, %85 : vector<8x8xf32>
    %cst_63 = arith.constant dense<0.000000e+00> : vector<8x8xf32>
    %87 = tpu.matmul %86, %75, %cst_63 {dimension_numbers = #tpu.dot_dimension_numbers<[1], [0], [0], [1], [0, 0, 1, 1], [], []>} : vector<8x8xf32>, vector<8x8xf32>, vector<8x8xf32> -> vector<8x8xf32>
    %88 = vector.extract_strided_slice %36 {offsets = [0, 24], sizes = [8, 8], strides = [1, 1]} : vector<8x32xf32> to vector<8x8xf32>
    %89 = vector.extract_strided_slice %39 {offsets = [0, 24], sizes = [8, 8], strides = [1, 1]} : vector<8x32xf32> to vector<8x8xf32>
    %90 = vector.extract_strided_slice %42 {offsets = [0, 24], sizes = [8, 8], strides = [1, 1]} : vector<8x32xf32> to vector<8x8xf32>
    %cst_64 = arith.constant dense<0.000000e+00> : vector<8x8xf32>
    %91 = tpu.matmul %88, %89, %cst_64 {dimension_numbers = #tpu.dot_dimension_numbers<[1], [1], [0], [0], [0, 0, 1, 0], [], []>} : vector<8x8xf32>, vector<8x8xf32>, vector<8x8xf32> -> vector<8x8xf32>
    %cst_65 = arith.constant dense<0xFF800000> : vector<8xf32>
    %92 = vector.multi_reduction <maximumf>, %91, %cst_65 [1] : vector<8x8xf32> to vector<8xf32>
    %93 = vector.shape_cast %92 : vector<8xf32> to vector<8x1xf32>
    %94 = vector.broadcast %93 : vector<8x1xf32> to vector<8x8xf32>
    %95 = arith.subf %91, %94 : vector<8x8xf32>
    %96 = math.exp %95 : vector<8x8xf32>
    %cst_66 = arith.constant dense<0.000000e+00> : vector<8xf32>
    %97 = vector.multi_reduction <add>, %96, %cst_66 [1] : vector<8x8xf32> to vector<8xf32>
    %98 = vector.shape_cast %97 : vector<8xf32> to vector<8x1xf32>
    %99 = tpu.reciprocal %98 {approx = true} : vector<8x1xf32> -> vector<8x1xf32>
    %100 = vector.broadcast %99 : vector<8x1xf32> to vector<8x8xf32>
    %101 = arith.mulf %96, %100 : vector<8x8xf32>
    %cst_67 = arith.constant dense<0.000000e+00> : vector<8x8xf32>
    %102 = tpu.matmul %101, %90, %cst_67 {dimension_numbers = #tpu.dot_dimension_numbers<[1], [0], [0], [1], [0, 0, 1, 1], [], []>} : vector<8x8xf32>, vector<8x8xf32>, vector<8x8xf32> -> vector<8x8xf32>
    %103 = tpu.concatenate %57, %72, %87, %102 in 1 : vector<8x8xf32>, vector<8x8xf32>, vector<8x8xf32>, vector<8x8xf32> -> vector<8x32xf32>
    %cst_68 = arith.constant dense<0.000000e+00> : vector<8x32xf32>
    %104 = tpu.matmul %103, %15, %cst_68 {dimension_numbers = #tpu.dot_dimension_numbers<[1], [0], [0], [1], [0, 0, 1, 1], [], []>} : vector<8x32xf32>, vector<32x32xf32>, vector<8x32xf32> -> vector<8x32xf32>
    %105 = vector.broadcast %17 : vector<1x32xf32> to vector<8x32xf32>
    %106 = arith.addf %104, %105 : vector<8x32xf32>
    %107 = arith.addf %1, %106 : vector<8x32xf32>
    %cst_69 = arith.constant dense<0.000000e+00> : vector<8xf32>
    %108 = vector.multi_reduction <add>, %107, %cst_69 [1] : vector<8x32xf32> to vector<8xf32>
    %109 = vector.shape_cast %108 : vector<8xf32> to vector<8x1xf32>
    %cst_70 = arith.constant 3.200000e+01 : f32
    %110 = vector.broadcast %cst_70 : f32 to vector<8x1xf32>
    %111 = arith.divf %109, %110 : vector<8x1xf32>
    %112 = vector.broadcast %111 : vector<8x1xf32> to vector<8x32xf32>
    %113 = arith.subf %107, %112 : vector<8x32xf32>
    %114 = arith.mulf %113, %113 : vector<8x32xf32>
    %cst_71 = arith.constant dense<0.000000e+00> : vector<8xf32>
    %115 = vector.multi_reduction <add>, %114, %cst_71 [1] : vector<8x32xf32> to vector<8xf32>
    %116 = vector.shape_cast %115 : vector<8xf32> to vector<8x1xf32>
    %cst_72 = arith.constant 3.200000e+01 : f32
    %117 = vector.broadcast %cst_72 : f32 to vector<8x1xf32>
    %118 = arith.divf %116, %117 : vector<8x1xf32>
    %119 = vector.broadcast %111 : vector<8x1xf32> to vector<8x32xf32>
    %120 = arith.subf %107, %119 : vector<8x32xf32>
    %cst_73 = arith.constant 9.99999974E-6 : f32
    %121 = vector.broadcast %cst_73 : f32 to vector<8x1xf32>
    %122 = arith.addf %118, %121 : vector<8x1xf32>
    %123 = math.rsqrt %122 : vector<8x1xf32>
    %124 = vector.broadcast %123 : vector<8x1xf32> to vector<8x32xf32>
    %125 = arith.mulf %120, %124 : vector<8x32xf32>
    %126 = vector.broadcast %19 : vector<1x32xf32> to vector<8x32xf32>
    %127 = arith.mulf %125, %126 : vector<8x32xf32>
    %128 = vector.broadcast %21 : vector<1x32xf32> to vector<8x32xf32>
    %129 = arith.addf %127, %128 : vector<8x32xf32>
    %cst_74 = arith.constant dense<0.000000e+00> : vector<8x64xf32>
    %130 = tpu.matmul %129, %23, %cst_74 {dimension_numbers = #tpu.dot_dimension_numbers<[1], [0], [0], [1], [0, 0, 1, 1], [], []>} : vector<8x32xf32>, vector<32x64xf32>, vector<8x64xf32> -> vector<8x64xf32>
    %131 = vector.broadcast %25 : vector<1x64xf32> to vector<8x64xf32>
    %132 = arith.addf %130, %131 : vector<8x64xf32>
    %cst_75 = arith.constant 5.000000e-01 : f32
    %133 = vector.broadcast %cst_75 : f32 to vector<8x64xf32>
    %134 = arith.mulf %133, %132 : vector<8x64xf32>
    %135 = arith.mulf %132, %132 : vector<8x64xf32>
    %136 = arith.mulf %135, %132 : vector<8x64xf32>
    %cst_76 = arith.constant 4.471500e-02 : f32
    %137 = vector.broadcast %cst_76 : f32 to vector<8x64xf32>
    %138 = arith.mulf %137, %136 : vector<8x64xf32>
    %139 = arith.addf %132, %138 : vector<8x64xf32>
    %cst_77 = arith.constant 0.797884583 : f32
    %140 = vector.broadcast %cst_77 : f32 to vector<8x64xf32>
    %141 = arith.mulf %140, %139 : vector<8x64xf32>
    %142 = math.tanh %141 : vector<8x64xf32>
    %cst_78 = arith.constant 1.000000e+00 : f32
    %143 = vector.broadcast %cst_78 : f32 to vector<8x64xf32>
    %144 = arith.addf %143, %142 : vector<8x64xf32>
    %145 = arith.mulf %134, %144 : vector<8x64xf32>
    %cst_79 = arith.constant dense<0.000000e+00> : vector<8x32xf32>
    %146 = tpu.matmul %145, %27, %cst_79 {dimension_numbers = #tpu.dot_dimension_numbers<[1], [0], [0], [1], [0, 0, 1, 1], [], []>} : vector<8x64xf32>, vector<64x32xf32>, vector<8x32xf32> -> vector<8x32xf32>
    %147 = vector.broadcast %29 : vector<1x32xf32> to vector<8x32xf32>
    %148 = arith.addf %146, %147 : vector<8x32xf32>
    %149 = arith.addf %129, %148 : vector<8x32xf32>
    %cst_80 = arith.constant dense<0.000000e+00> : vector<8xf32>
    %150 = vector.multi_reduction <add>, %149, %cst_80 [1] : vector<8x32xf32> to vector<8xf32>
    %151 = vector.shape_cast %150 : vector<8xf32> to vector<8x1xf32>
    %cst_81 = arith.constant 3.200000e+01 : f32
    %152 = vector.broadcast %cst_81 : f32 to vector<8x1xf32>
    %153 = arith.divf %151, %152 : vector<8x1xf32>
    %154 = vector.broadcast %153 : vector<8x1xf32> to vector<8x32xf32>
    %155 = arith.subf %149, %154 : vector<8x32xf32>
    %156 = arith.mulf %155, %155 : vector<8x32xf32>
    %cst_82 = arith.constant dense<0.000000e+00> : vector<8xf32>
    %157 = vector.multi_reduction <add>, %156, %cst_82 [1] : vector<8x32xf32> to vector<8xf32>
    %158 = vector.shape_cast %157 : vector<8xf32> to vector<8x1xf32>
    %cst_83 = arith.constant 3.200000e+01 : f32
    %159 = vector.broadcast %cst_83 : f32 to vector<8x1xf32>
    %160 = arith.divf %158, %159 : vector<8x1xf32>
    %161 = vector.broadcast %153 : vector<8x1xf32> to vector<8x32xf32>
    %162 = arith.subf %149, %161 : vector<8x32xf32>
    %cst_84 = arith.constant 9.99999974E-6 : f32
    %163 = vector.broadcast %cst_84 : f32 to vector<8x1xf32>
    %164 = arith.addf %160, %163 : vector<8x1xf32>
    %165 = math.rsqrt %164 : vector<8x1xf32>
    %166 = vector.broadcast %165 : vector<8x1xf32> to vector<8x32xf32>
    %167 = arith.mulf %162, %166 : vector<8x32xf32>
    %168 = vector.broadcast %31 : vector<1x32xf32> to vector<8x32xf32>
    %169 = arith.mulf %167, %168 : vector<8x32xf32>
    %170 = vector.broadcast %33 : vector<1x32xf32> to vector<8x32xf32>
    %171 = arith.addf %169, %170 : vector<8x32xf32>
    %c1 = arith.constant 1 : index
    %c0_85 = arith.constant 0 : index
    %c0_86 = arith.constant 0 : index
    %172 = vector.load %arg2[%c1, %c0_85, %c0_86] : memref<2x32x32xf32, #tpu.memory_space<vmem>>, vector<1x32x32xf32>
    %173 = vector.shape_cast %172 : vector<1x32x32xf32> to vector<32x32xf32>
    %c1_87 = arith.constant 1 : index
    %c0_88 = arith.constant 0 : index
    %c0_89 = arith.constant 0 : index
    %174 = vector.load %arg3[%c1_87, %c0_88, %c0_89] : memref<2x1x32xf32, #tpu.memory_space<vmem>>, vector<1x1x32xf32>
    %175 = vector.shape_cast %174 : vector<1x1x32xf32> to vector<1x32xf32>
    %c1_90 = arith.constant 1 : index
    %c0_91 = arith.constant 0 : index
    %c0_92 = arith.constant 0 : index
    %176 = vector.load %arg4[%c1_90, %c0_91, %c0_92] : memref<2x32x32xf32, #tpu.memory_space<vmem>>, vector<1x32x32xf32>
    %177 = vector.shape_cast %176 : vector<1x32x32xf32> to vector<32x32xf32>
    %c1_93 = arith.constant 1 : index
    %c0_94 = arith.constant 0 : index
    %c0_95 = arith.constant 0 : index
    %178 = vector.load %arg5[%c1_93, %c0_94, %c0_95] : memref<2x1x32xf32, #tpu.memory_space<vmem>>, vector<1x1x32xf32>
    %179 = vector.shape_cast %178 : vector<1x1x32xf32> to vector<1x32xf32>
    %c1_96 = arith.constant 1 : index
    %c0_97 = arith.constant 0 : index
    %c0_98 = arith.constant 0 : index
    %180 = vector.load %arg6[%c1_96, %c0_97, %c0_98] : memref<2x32x32xf32, #tpu.memory_space<vmem>>, vector<1x32x32xf32>
    %181 = vector.shape_cast %180 : vector<1x32x32xf32> to vector<32x32xf32>
    %c1_99 = arith.constant 1 : index
    %c0_100 = arith.constant 0 : index
    %c0_101 = arith.constant 0 : index
    %182 = vector.load %arg7[%c1_99, %c0_100, %c0_101] : memref<2x1x32xf32, #tpu.memory_space<vmem>>, vector<1x1x32xf32>
    %183 = vector.shape_cast %182 : vector<1x1x32xf32> to vector<1x32xf32>
    %c1_102 = arith.constant 1 : index
    %c0_103 = arith.constant 0 : index
    %c0_104 = arith.constant 0 : index
    %184 = vector.load %arg8[%c1_102, %c0_103, %c0_104] : memref<2x32x32xf32, #tpu.memory_space<vmem>>, vector<1x32x32xf32>
    %185 = vector.shape_cast %184 : vector<1x32x32xf32> to vector<32x32xf32>
    %c1_105 = arith.constant 1 : index
    %c0_106 = arith.constant 0 : index
    %c0_107 = arith.constant 0 : index
    %186 = vector.load %arg9[%c1_105, %c0_106, %c0_107] : memref<2x1x32xf32, #tpu.memory_space<vmem>>, vector<1x1x32xf32>
    %187 = vector.shape_cast %186 : vector<1x1x32xf32> to vector<1x32xf32>
    %c1_108 = arith.constant 1 : index
    %c0_109 = arith.constant 0 : index
    %c0_110 = arith.constant 0 : index
    %188 = vector.load %arg10[%c1_108, %c0_109, %c0_110] : memref<2x1x32xf32, #tpu.memory_space<vmem>>, vector<1x1x32xf32>
    %189 = vector.shape_cast %188 : vector<1x1x32xf32> to vector<1x32xf32>
    %c1_111 = arith.constant 1 : index
    %c0_112 = arith.constant 0 : index
    %c0_113 = arith.constant 0 : index
    %190 = vector.load %arg11[%c1_111, %c0_112, %c0_113] : memref<2x1x32xf32, #tpu.memory_space<vmem>>, vector<1x1x32xf32>
    %191 = vector.shape_cast %190 : vector<1x1x32xf32> to vector<1x32xf32>
    %c1_114 = arith.constant 1 : index
    %c0_115 = arith.constant 0 : index
    %c0_116 = arith.constant 0 : index
    %192 = vector.load %arg12[%c1_114, %c0_115, %c0_116] : memref<2x32x64xf32, #tpu.memory_space<vmem>>, vector<1x32x64xf32>
    %193 = vector.shape_cast %192 : vector<1x32x64xf32> to vector<32x64xf32>
    %c1_117 = arith.constant 1 : index
    %c0_118 = arith.constant 0 : index
    %c0_119 = arith.constant 0 : index
    %194 = vector.load %arg13[%c1_117, %c0_118, %c0_119] : memref<2x1x64xf32, #tpu.memory_space<vmem>>, vector<1x1x64xf32>
    %195 = vector.shape_cast %194 : vector<1x1x64xf32> to vector<1x64xf32>
    %c1_120 = arith.constant 1 : index
    %c0_121 = arith.constant 0 : index
    %c0_122 = arith.constant 0 : index
    %196 = vector.load %arg14[%c1_120, %c0_121, %c0_122] : memref<2x64x32xf32, #tpu.memory_space<vmem>>, vector<1x64x32xf32>
    %197 = vector.shape_cast %196 : vector<1x64x32xf32> to vector<64x32xf32>
    %c1_123 = arith.constant 1 : index
    %c0_124 = arith.constant 0 : index
    %c0_125 = arith.constant 0 : index
    %198 = vector.load %arg15[%c1_123, %c0_124, %c0_125] : memref<2x1x32xf32, #tpu.memory_space<vmem>>, vector<1x1x32xf32>
    %199 = vector.shape_cast %198 : vector<1x1x32xf32> to vector<1x32xf32>
    %c1_126 = arith.constant 1 : index
    %c0_127 = arith.constant 0 : index
    %c0_128 = arith.constant 0 : index
    %200 = vector.load %arg16[%c1_126, %c0_127, %c0_128] : memref<2x1x32xf32, #tpu.memory_space<vmem>>, vector<1x1x32xf32>
    %201 = vector.shape_cast %200 : vector<1x1x32xf32> to vector<1x32xf32>
    %c1_129 = arith.constant 1 : index
    %c0_130 = arith.constant 0 : index
    %c0_131 = arith.constant 0 : index
    %202 = vector.load %arg17[%c1_129, %c0_130, %c0_131] : memref<2x1x32xf32, #tpu.memory_space<vmem>>, vector<1x1x32xf32>
    %203 = vector.shape_cast %202 : vector<1x1x32xf32> to vector<1x32xf32>
    %cst_132 = arith.constant dense<0.000000e+00> : vector<8x32xf32>
    %204 = tpu.matmul %171, %173, %cst_132 {dimension_numbers = #tpu.dot_dimension_numbers<[1], [0], [0], [1], [0, 0, 1, 1], [], []>} : vector<8x32xf32>, vector<32x32xf32>, vector<8x32xf32> -> vector<8x32xf32>
    %205 = vector.broadcast %175 : vector<1x32xf32> to vector<8x32xf32>
    %206 = arith.addf %204, %205 : vector<8x32xf32>
    %cst_133 = arith.constant dense<0.000000e+00> : vector<8x32xf32>
    %207 = tpu.matmul %171, %177, %cst_133 {dimension_numbers = #tpu.dot_dimension_numbers<[1], [0], [0], [1], [0, 0, 1, 1], [], []>} : vector<8x32xf32>, vector<32x32xf32>, vector<8x32xf32> -> vector<8x32xf32>
    %208 = vector.broadcast %179 : vector<1x32xf32> to vector<8x32xf32>
    %209 = arith.addf %207, %208 : vector<8x32xf32>
    %cst_134 = arith.constant dense<0.000000e+00> : vector<8x32xf32>
    %210 = tpu.matmul %171, %181, %cst_134 {dimension_numbers = #tpu.dot_dimension_numbers<[1], [0], [0], [1], [0, 0, 1, 1], [], []>} : vector<8x32xf32>, vector<32x32xf32>, vector<8x32xf32> -> vector<8x32xf32>
    %211 = vector.broadcast %183 : vector<1x32xf32> to vector<8x32xf32>
    %212 = arith.addf %210, %211 : vector<8x32xf32>
    %213 = vector.extract_strided_slice %206 {offsets = [0, 0], sizes = [8, 8], strides = [1, 1]} : vector<8x32xf32> to vector<8x8xf32>
    %214 = vector.extract_strided_slice %209 {offsets = [0, 0], sizes = [8, 8], strides = [1, 1]} : vector<8x32xf32> to vector<8x8xf32>
    %215 = vector.extract_strided_slice %212 {offsets = [0, 0], sizes = [8, 8], strides = [1, 1]} : vector<8x32xf32> to vector<8x8xf32>
    %cst_135 = arith.constant dense<0.000000e+00> : vector<8x8xf32>
    %216 = tpu.matmul %213, %214, %cst_135 {dimension_numbers = #tpu.dot_dimension_numbers<[1], [1], [0], [0], [0, 0, 1, 0], [], []>} : vector<8x8xf32>, vector<8x8xf32>, vector<8x8xf32> -> vector<8x8xf32>
    %cst_136 = arith.constant dense<0xFF800000> : vector<8xf32>
    %217 = vector.multi_reduction <maximumf>, %216, %cst_136 [1] : vector<8x8xf32> to vector<8xf32>
    %218 = vector.shape_cast %217 : vector<8xf32> to vector<8x1xf32>
    %219 = vector.broadcast %218 : vector<8x1xf32> to vector<8x8xf32>
    %220 = arith.subf %216, %219 : vector<8x8xf32>
    %221 = math.exp %220 : vector<8x8xf32>
    %cst_137 = arith.constant dense<0.000000e+00> : vector<8xf32>
    %222 = vector.multi_reduction <add>, %221, %cst_137 [1] : vector<8x8xf32> to vector<8xf32>
    %223 = vector.shape_cast %222 : vector<8xf32> to vector<8x1xf32>
    %224 = tpu.reciprocal %223 {approx = true} : vector<8x1xf32> -> vector<8x1xf32>
    %225 = vector.broadcast %224 : vector<8x1xf32> to vector<8x8xf32>
    %226 = arith.mulf %221, %225 : vector<8x8xf32>
    %cst_138 = arith.constant dense<0.000000e+00> : vector<8x8xf32>
    %227 = tpu.matmul %226, %215, %cst_138 {dimension_numbers = #tpu.dot_dimension_numbers<[1], [0], [0], [1], [0, 0, 1, 1], [], []>} : vector<8x8xf32>, vector<8x8xf32>, vector<8x8xf32> -> vector<8x8xf32>
    %228 = vector.extract_strided_slice %206 {offsets = [0, 8], sizes = [8, 8], strides = [1, 1]} : vector<8x32xf32> to vector<8x8xf32>
    %229 = vector.extract_strided_slice %209 {offsets = [0, 8], sizes = [8, 8], strides = [1, 1]} : vector<8x32xf32> to vector<8x8xf32>
    %230 = vector.extract_strided_slice %212 {offsets = [0, 8], sizes = [8, 8], strides = [1, 1]} : vector<8x32xf32> to vector<8x8xf32>
    %cst_139 = arith.constant dense<0.000000e+00> : vector<8x8xf32>
    %231 = tpu.matmul %228, %229, %cst_139 {dimension_numbers = #tpu.dot_dimension_numbers<[1], [1], [0], [0], [0, 0, 1, 0], [], []>} : vector<8x8xf32>, vector<8x8xf32>, vector<8x8xf32> -> vector<8x8xf32>
    %cst_140 = arith.constant dense<0xFF800000> : vector<8xf32>
    %232 = vector.multi_reduction <maximumf>, %231, %cst_140 [1] : vector<8x8xf32> to vector<8xf32>
    %233 = vector.shape_cast %232 : vector<8xf32> to vector<8x1xf32>
    %234 = vector.broadcast %233 : vector<8x1xf32> to vector<8x8xf32>
    %235 = arith.subf %231, %234 : vector<8x8xf32>
    %236 = math.exp %235 : vector<8x8xf32>
    %cst_141 = arith.constant dense<0.000000e+00> : vector<8xf32>
    %237 = vector.multi_reduction <add>, %236, %cst_141 [1] : vector<8x8xf32> to vector<8xf32>
    %238 = vector.shape_cast %237 : vector<8xf32> to vector<8x1xf32>
    %239 = tpu.reciprocal %238 {approx = true} : vector<8x1xf32> -> vector<8x1xf32>
    %240 = vector.broadcast %239 : vector<8x1xf32> to vector<8x8xf32>
    %241 = arith.mulf %236, %240 : vector<8x8xf32>
    %cst_142 = arith.constant dense<0.000000e+00> : vector<8x8xf32>
    %242 = tpu.matmul %241, %230, %cst_142 {dimension_numbers = #tpu.dot_dimension_numbers<[1], [0], [0], [1], [0, 0, 1, 1], [], []>} : vector<8x8xf32>, vector<8x8xf32>, vector<8x8xf32> -> vector<8x8xf32>
    %243 = vector.extract_strided_slice %206 {offsets = [0, 16], sizes = [8, 8], strides = [1, 1]} : vector<8x32xf32> to vector<8x8xf32>
    %244 = vector.extract_strided_slice %209 {offsets = [0, 16], sizes = [8, 8], strides = [1, 1]} : vector<8x32xf32> to vector<8x8xf32>
    %245 = vector.extract_strided_slice %212 {offsets = [0, 16], sizes = [8, 8], strides = [1, 1]} : vector<8x32xf32> to vector<8x8xf32>
    %cst_143 = arith.constant dense<0.000000e+00> : vector<8x8xf32>
    %246 = tpu.matmul %243, %244, %cst_143 {dimension_numbers = #tpu.dot_dimension_numbers<[1], [1], [0], [0], [0, 0, 1, 0], [], []>} : vector<8x8xf32>, vector<8x8xf32>, vector<8x8xf32> -> vector<8x8xf32>
    %cst_144 = arith.constant dense<0xFF800000> : vector<8xf32>
    %247 = vector.multi_reduction <maximumf>, %246, %cst_144 [1] : vector<8x8xf32> to vector<8xf32>
    %248 = vector.shape_cast %247 : vector<8xf32> to vector<8x1xf32>
    %249 = vector.broadcast %248 : vector<8x1xf32> to vector<8x8xf32>
    %250 = arith.subf %246, %249 : vector<8x8xf32>
    %251 = math.exp %250 : vector<8x8xf32>
    %cst_145 = arith.constant dense<0.000000e+00> : vector<8xf32>
    %252 = vector.multi_reduction <add>, %251, %cst_145 [1] : vector<8x8xf32> to vector<8xf32>
    %253 = vector.shape_cast %252 : vector<8xf32> to vector<8x1xf32>
    %254 = tpu.reciprocal %253 {approx = true} : vector<8x1xf32> -> vector<8x1xf32>
    %255 = vector.broadcast %254 : vector<8x1xf32> to vector<8x8xf32>
    %256 = arith.mulf %251, %255 : vector<8x8xf32>
    %cst_146 = arith.constant dense<0.000000e+00> : vector<8x8xf32>
    %257 = tpu.matmul %256, %245, %cst_146 {dimension_numbers = #tpu.dot_dimension_numbers<[1], [0], [0], [1], [0, 0, 1, 1], [], []>} : vector<8x8xf32>, vector<8x8xf32>, vector<8x8xf32> -> vector<8x8xf32>
    %258 = vector.extract_strided_slice %206 {offsets = [0, 24], sizes = [8, 8], strides = [1, 1]} : vector<8x32xf32> to vector<8x8xf32>
    %259 = vector.extract_strided_slice %209 {offsets = [0, 24], sizes = [8, 8], strides = [1, 1]} : vector<8x32xf32> to vector<8x8xf32>
    %260 = vector.extract_strided_slice %212 {offsets = [0, 24], sizes = [8, 8], strides = [1, 1]} : vector<8x32xf32> to vector<8x8xf32>
    %cst_147 = arith.constant dense<0.000000e+00> : vector<8x8xf32>
    %261 = tpu.matmul %258, %259, %cst_147 {dimension_numbers = #tpu.dot_dimension_numbers<[1], [1], [0], [0], [0, 0, 1, 0], [], []>} : vector<8x8xf32>, vector<8x8xf32>, vector<8x8xf32> -> vector<8x8xf32>
    %cst_148 = arith.constant dense<0xFF800000> : vector<8xf32>
    %262 = vector.multi_reduction <maximumf>, %261, %cst_148 [1] : vector<8x8xf32> to vector<8xf32>
    %263 = vector.shape_cast %262 : vector<8xf32> to vector<8x1xf32>
    %264 = vector.broadcast %263 : vector<8x1xf32> to vector<8x8xf32>
    %265 = arith.subf %261, %264 : vector<8x8xf32>
    %266 = math.exp %265 : vector<8x8xf32>
    %cst_149 = arith.constant dense<0.000000e+00> : vector<8xf32>
    %267 = vector.multi_reduction <add>, %266, %cst_149 [1] : vector<8x8xf32> to vector<8xf32>
    %268 = vector.shape_cast %267 : vector<8xf32> to vector<8x1xf32>
    %269 = tpu.reciprocal %268 {approx = true} : vector<8x1xf32> -> vector<8x1xf32>
    %270 = vector.broadcast %269 : vector<8x1xf32> to vector<8x8xf32>
    %271 = arith.mulf %266, %270 : vector<8x8xf32>
    %cst_150 = arith.constant dense<0.000000e+00> : vector<8x8xf32>
    %272 = tpu.matmul %271, %260, %cst_150 {dimension_numbers = #tpu.dot_dimension_numbers<[1], [0], [0], [1], [0, 0, 1, 1], [], []>} : vector<8x8xf32>, vector<8x8xf32>, vector<8x8xf32> -> vector<8x8xf32>
    %273 = tpu.concatenate %227, %242, %257, %272 in 1 : vector<8x8xf32>, vector<8x8xf32>, vector<8x8xf32>, vector<8x8xf32> -> vector<8x32xf32>
    %cst_151 = arith.constant dense<0.000000e+00> : vector<8x32xf32>
    %274 = tpu.matmul %273, %185, %cst_151 {dimension_numbers = #tpu.dot_dimension_numbers<[1], [0], [0], [1], [0, 0, 1, 1], [], []>} : vector<8x32xf32>, vector<32x32xf32>, vector<8x32xf32> -> vector<8x32xf32>
    %275 = vector.broadcast %187 : vector<1x32xf32> to vector<8x32xf32>
    %276 = arith.addf %274, %275 : vector<8x32xf32>
    %277 = arith.addf %171, %276 : vector<8x32xf32>
    %cst_152 = arith.constant dense<0.000000e+00> : vector<8xf32>
    %278 = vector.multi_reduction <add>, %277, %cst_152 [1] : vector<8x32xf32> to vector<8xf32>
    %279 = vector.shape_cast %278 : vector<8xf32> to vector<8x1xf32>
    %cst_153 = arith.constant 3.200000e+01 : f32
    %280 = vector.broadcast %cst_153 : f32 to vector<8x1xf32>
    %281 = arith.divf %279, %280 : vector<8x1xf32>
    %282 = vector.broadcast %281 : vector<8x1xf32> to vector<8x32xf32>
    %283 = arith.subf %277, %282 : vector<8x32xf32>
    %284 = arith.mulf %283, %283 : vector<8x32xf32>
    %cst_154 = arith.constant dense<0.000000e+00> : vector<8xf32>
    %285 = vector.multi_reduction <add>, %284, %cst_154 [1] : vector<8x32xf32> to vector<8xf32>
    %286 = vector.shape_cast %285 : vector<8xf32> to vector<8x1xf32>
    %cst_155 = arith.constant 3.200000e+01 : f32
    %287 = vector.broadcast %cst_155 : f32 to vector<8x1xf32>
    %288 = arith.divf %286, %287 : vector<8x1xf32>
    %289 = vector.broadcast %281 : vector<8x1xf32> to vector<8x32xf32>
    %290 = arith.subf %277, %289 : vector<8x32xf32>
    %cst_156 = arith.constant 9.99999974E-6 : f32
    %291 = vector.broadcast %cst_156 : f32 to vector<8x1xf32>
    %292 = arith.addf %288, %291 : vector<8x1xf32>
    %293 = math.rsqrt %292 : vector<8x1xf32>
    %294 = vector.broadcast %293 : vector<8x1xf32> to vector<8x32xf32>
    %295 = arith.mulf %290, %294 : vector<8x32xf32>
    %296 = vector.broadcast %189 : vector<1x32xf32> to vector<8x32xf32>
    %297 = arith.mulf %295, %296 : vector<8x32xf32>
    %298 = vector.broadcast %191 : vector<1x32xf32> to vector<8x32xf32>
    %299 = arith.addf %297, %298 : vector<8x32xf32>
    %cst_157 = arith.constant dense<0.000000e+00> : vector<8x64xf32>
    %300 = tpu.matmul %299, %193, %cst_157 {dimension_numbers = #tpu.dot_dimension_numbers<[1], [0], [0], [1], [0, 0, 1, 1], [], []>} : vector<8x32xf32>, vector<32x64xf32>, vector<8x64xf32> -> vector<8x64xf32>
    %301 = vector.broadcast %195 : vector<1x64xf32> to vector<8x64xf32>
    %302 = arith.addf %300, %301 : vector<8x64xf32>
    %cst_158 = arith.constant 5.000000e-01 : f32
    %303 = vector.broadcast %cst_158 : f32 to vector<8x64xf32>
    %304 = arith.mulf %303, %302 : vector<8x64xf32>
    %305 = arith.mulf %302, %302 : vector<8x64xf32>
    %306 = arith.mulf %305, %302 : vector<8x64xf32>
    %cst_159 = arith.constant 4.471500e-02 : f32
    %307 = vector.broadcast %cst_159 : f32 to vector<8x64xf32>
    %308 = arith.mulf %307, %306 : vector<8x64xf32>
    %309 = arith.addf %302, %308 : vector<8x64xf32>
    %cst_160 = arith.constant 0.797884583 : f32
    %310 = vector.broadcast %cst_160 : f32 to vector<8x64xf32>
    %311 = arith.mulf %310, %309 : vector<8x64xf32>
    %312 = math.tanh %311 : vector<8x64xf32>
    %cst_161 = arith.constant 1.000000e+00 : f32
    %313 = vector.broadcast %cst_161 : f32 to vector<8x64xf32>
    %314 = arith.addf %313, %312 : vector<8x64xf32>
    %315 = arith.mulf %304, %314 : vector<8x64xf32>
    %cst_162 = arith.constant dense<0.000000e+00> : vector<8x32xf32>
    %316 = tpu.matmul %315, %197, %cst_162 {dimension_numbers = #tpu.dot_dimension_numbers<[1], [0], [0], [1], [0, 0, 1, 1], [], []>} : vector<8x64xf32>, vector<64x32xf32>, vector<8x32xf32> -> vector<8x32xf32>
    %317 = vector.broadcast %199 : vector<1x32xf32> to vector<8x32xf32>
    %318 = arith.addf %316, %317 : vector<8x32xf32>
    %319 = arith.addf %299, %318 : vector<8x32xf32>
    %cst_163 = arith.constant dense<0.000000e+00> : vector<8xf32>
    %320 = vector.multi_reduction <add>, %319, %cst_163 [1] : vector<8x32xf32> to vector<8xf32>
    %321 = vector.shape_cast %320 : vector<8xf32> to vector<8x1xf32>
    %cst_164 = arith.constant 3.200000e+01 : f32
    %322 = vector.broadcast %cst_164 : f32 to vector<8x1xf32>
    %323 = arith.divf %321, %322 : vector<8x1xf32>
    %324 = vector.broadcast %323 : vector<8x1xf32> to vector<8x32xf32>
    %325 = arith.subf %319, %324 : vector<8x32xf32>
    %326 = arith.mulf %325, %325 : vector<8x32xf32>
    %cst_165 = arith.constant dense<0.000000e+00> : vector<8xf32>
    %327 = vector.multi_reduction <add>, %326, %cst_165 [1] : vector<8x32xf32> to vector<8xf32>
    %328 = vector.shape_cast %327 : vector<8xf32> to vector<8x1xf32>
    %cst_166 = arith.constant 3.200000e+01 : f32
    %329 = vector.broadcast %cst_166 : f32 to vector<8x1xf32>
    %330 = arith.divf %328, %329 : vector<8x1xf32>
    %331 = vector.broadcast %323 : vector<8x1xf32> to vector<8x32xf32>
    %332 = arith.subf %319, %331 : vector<8x32xf32>
    %cst_167 = arith.constant 9.99999974E-6 : f32
    %333 = vector.broadcast %cst_167 : f32 to vector<8x1xf32>
    %334 = arith.addf %330, %333 : vector<8x1xf32>
    %335 = math.rsqrt %334 : vector<8x1xf32>
    %336 = vector.broadcast %335 : vector<8x1xf32> to vector<8x32xf32>
    %337 = arith.mulf %332, %336 : vector<8x32xf32>
    %338 = vector.broadcast %201 : vector<1x32xf32> to vector<8x32xf32>
    %339 = arith.mulf %337, %338 : vector<8x32xf32>
    %340 = vector.broadcast %203 : vector<1x32xf32> to vector<8x32xf32>
    %341 = arith.addf %339, %340 : vector<8x32xf32>
    %c0_168 = arith.constant 0 : index
    %c0_169 = arith.constant 0 : index
    %c0_170 = arith.constant 0 : index
    %342 = vector.load %arg18[%c0_168, %c0_169, %c0_170] : memref<1x8x32xf32, #tpu.memory_space<vmem>>, vector<1x8x32xf32>
    %343 = vector.shape_cast %342 : vector<1x8x32xf32> to vector<8x32xf32>
    %344 = vector.shape_cast %341 : vector<8x32xf32> to vector<1x8x32xf32>
    tpu.vector_store %arg18[%c0_168, %c0_169, %c0_170], %344 {strides = array<i32>} : memref<1x8x32xf32, #tpu.memory_space<vmem>>, vector<1x8x32xf32>,
    return
  }
  func.func @transform_0(%arg0: i32) -> (i32, i32, i32) {
    %c0_i32 = arith.constant 0 : i32
    %c0_i32_0 = arith.constant 0 : i32
    %c0_i32_1 = arith.constant 0 : i32
    return %arg0, %c0_i32, %c0_i32_0 : i32, i32, i32
  }
  func.func @transform_1(%arg0: i32) -> (i32, i32, i32) {
    %c0_i32 = arith.constant 0 : i32
    %c0_i32_0 = arith.constant 0 : i32
    %c0_i32_1 = arith.constant 0 : i32
    %c0_i32_2 = arith.constant 0 : i32
    return %c0_i32, %c0_i32_0, %c0_i32_1 : i32, i32, i32
  }
  func.func @transform_2(%arg0: i32) -> (i32, i32, i32) {
    %c0_i32 = arith.constant 0 : i32
    %c0_i32_0 = arith.constant 0 : i32
    %c0_i32_1 = arith.constant 0 : i32
    %c0_i32_2 = arith.constant 0 : i32
    return %c0_i32, %c0_i32_0, %c0_i32_1 : i32, i32, i32
  }
  func.func @transform_3(%arg0: i32) -> (i32, i32, i32) {
    %c0_i32 = arith.constant 0 : i32
    %c0_i32_0 = arith.constant 0 : i32
    %c0_i32_1 = arith.constant 0 : i32
    %c0_i32_2 = arith.constant 0 : i32
    return %c0_i32, %c0_i32_0, %c0_i32_1 : i32, i32, i32
  }
  func.func @transform_4(%arg0: i32) -> (i32, i32, i32) {
    %c0_i32 = arith.constant 0 : i32
    %c0_i32_0 = arith.constant 0 : i32
    %c0_i32_1 = arith.constant 0 : i32
    %c0_i32_2 = arith.constant 0 : i32
    return %c0_i32, %c0_i32_0, %c0_i32_1 : i32, i32, i32
  }
  func.func @transform_5(%arg0: i32) -> (i32, i32, i32) {
    %c0_i32 = arith.constant 0 : i32
    %c0_i32_0 = arith.constant 0 : i32
    %c0_i32_1 = arith.constant 0 : i32
    %c0_i32_2 = arith.constant 0 : i32
    return %c0_i32, %c0_i32_0, %c0_i32_1 : i32, i32, i32
  }
  func.func @transform_6(%arg0: i32) -> (i32, i32, i32) {
    %c0_i32 = arith.constant 0 : i32
    %c0_i32_0 = arith.constant 0 : i32
    %c0_i32_1 = arith.constant 0 : i32
    %c0_i32_2 = arith.constant 0 : i32
    return %c0_i32, %c0_i32_0, %c0_i32_1 : i32, i32, i32
  }
  func.func @transform_7(%arg0: i32) -> (i32, i32, i32) {
    %c0_i32 = arith.constant 0 : i32
    %c0_i32_0 = arith.constant 0 : i32
    %c0_i32_1 = arith.constant 0 : i32
    %c0_i32_2 = arith.constant 0 : i32
    return %c0_i32, %c0_i32_0, %c0_i32_1 : i32, i32, i32
  }
  func.func @transform_8(%arg0: i32) -> (i32, i32, i32) {
    %c0_i32 = arith.constant 0 : i32
    %c0_i32_0 = arith.constant 0 : i32
    %c0_i32_1 = arith.constant 0 : i32
    %c0_i32_2 = arith.constant 0 : i32
    return %c0_i32, %c0_i32_0, %c0_i32_1 : i32, i32, i32
  }
  func.func @transform_9(%arg0: i32) -> (i32, i32, i32) {
    %c0_i32 = arith.constant 0 : i32
    %c0_i32_0 = arith.constant 0 : i32
    %c0_i32_1 = arith.constant 0 : i32
    %c0_i32_2 = arith.constant 0 : i32
    return %c0_i32, %c0_i32_0, %c0_i32_1 : i32, i32, i32
  }
  func.func @transform_10(%arg0: i32) -> (i32, i32, i32) {
    %c0_i32 = arith.constant 0 : i32
    %c0_i32_0 = arith.constant 0 : i32
    %c0_i32_1 = arith.constant 0 : i32
    %c0_i32_2 = arith.constant 0 : i32
    return %c0_i32, %c0_i32_0, %c0_i32_1 : i32, i32, i32
  }
  func.func @transform_11(%arg0: i32) -> (i32, i32, i32) {
    %c0_i32 = arith.constant 0 : i32
    %c0_i32_0 = arith.constant 0 : i32
    %c0_i32_1 = arith.constant 0 : i32
    %c0_i32_2 = arith.constant 0 : i32
    return %c0_i32, %c0_i32_0, %c0_i32_1 : i32, i32, i32
  }
  func.func @transform_12(%arg0: i32) -> (i32, i32, i32) {
    %c0_i32 = arith.constant 0 : i32
    %c0_i32_0 = arith.constant 0 : i32
    %c0_i32_1 = arith.constant 0 : i32
    %c0_i32_2 = arith.constant 0 : i32
    return %c0_i32, %c0_i32_0, %c0_i32_1 : i32, i32, i32
  }
  func.func @transform_13(%arg0: i32) -> (i32, i32, i32) {
    %c0_i32 = arith.constant 0 : i32
    %c0_i32_0 = arith.constant 0 : i32
    %c0_i32_1 = arith.constant 0 : i32
    %c0_i32_2 = arith.constant 0 : i32
    return %c0_i32, %c0_i32_0, %c0_i32_1 : i32, i32, i32
  }
  func.func @transform_14(%arg0: i32) -> (i32, i32, i32) {
    %c0_i32 = arith.constant 0 : i32
    %c0_i32_0 = arith.constant 0 : i32
    %c0_i32_1 = arith.constant 0 : i32
    %c0_i32_2 = arith.constant 0 : i32
    return %c0_i32, %c0_i32_0, %c0_i32_1 : i32, i32, i32
  }
  func.func @transform_15(%arg0: i32) -> (i32, i32, i32) {
    %c0_i32 = arith.constant 0 : i32
    %c0_i32_0 = arith.constant 0 : i32
    %c0_i32_1 = arith.constant 0 : i32
    %c0_i32_2 = arith.constant 0 : i32
    return %c0_i32, %c0_i32_0, %c0_i32_1 : i32, i32, i32
  }
  func.func @transform_16(%arg0: i32) -> (i32, i32, i32) {
    %c0_i32 = arith.constant 0 : i32
    %c0_i32_0 = arith.constant 0 : i32
    %c0_i32_1 = arith.constant 0 : i32
    %c0_i32_2 = arith.constant 0 : i32
    return %c0_i32, %c0_i32_0, %c0_i32_1 : i32, i32, i32
  }
  func.func @transform_17(%arg0: i32) -> (i32, i32, i32) {
    %c0_i32 = arith.constant 0 : i32
    %c0_i32_0 = arith.constant 0 : i32
    %c0_i32_1 = arith.constant 0 : i32
    return %arg0, %c0_i32, %c0_i32_0 : i32, i32, i32
  }
}

module attributes {stable_mosaic.version = 11 : i64} {
  func.func @_encoder_kernel(%arg0: i32, %arg1: memref<1x8x32xf32, #tpu.memory_space<vmem>>, %arg2: memref<2x32x32xf32, #tpu.memory_space<vmem>>, %arg3: memref<2x1x32xf32, #tpu.memory_space<vmem>>, %arg4: memref<2x32x32xf32, #tpu.memory_space<vmem>>, %arg5: memref<2x1x32xf32, #tpu.memory_space<vmem>>, %arg6: memref<2x32x32xf32, #tpu.memory_space<vmem>>, %arg7: memref<2x1x32xf32, #tpu.memory_space<vmem>>, %arg8: memref<2x32x32xf32, #tpu.memory_space<vmem>>, %arg9: memref<2x1x32xf32, #tpu.memory_space<vmem>>, %arg10: memref<2x1x32xf32, #tpu.memory_space<vmem>>, %arg11: memref<2x1x32xf32, #tpu.memory_space<vmem>>, %arg12: memref<2x32x64xf32, #tpu.memory_space<vmem>>, %arg13: memref<2x1x64xf32, #tpu.memory_space<vmem>>, %arg14: memref<2x64x32xf32, #tpu.memory_space<vmem>>, %arg15: memref<2x1x32xf32, #tpu.memory_space<vmem>>, %arg16: memref<2x1x32xf32, #tpu.memory_space<vmem>>, %arg17: memref<2x1x32xf32, #tpu.memory_space<vmem>>, %arg18: memref<1x8x32xf32, #tpu.memory_space<vmem>>) attributes {dimension_semantics = [#tpu.dimension_semantics<parallel>], iteration_bounds = array<i64: 2>, scalar_prefetch = 0 : i64, scratch_operands = 0 : i64, tpu.core_type = #tpu.core_type<tc>, window_params = [{transform_indices = @transform_0, window_bounds = array<i64: 1, 8, 32>}, {pipeline_mode = #tpu.pipeline_mode<synchronous>, transform_indices = @transform_1, window_bounds = array<i64: 2, 32, 32>}, {pipeline_mode = #tpu.pipeline_mode<synchronous>, transform_indices = @transform_2, window_bounds = array<i64: 2, 1, 32>}, {pipeline_mode = #tpu.pipeline_mode<synchronous>, transform_indices = @transform_3, window_bounds = array<i64: 2, 32, 32>}, {pipeline_mode = #tpu.pipeline_mode<synchronous>, transform_indices = @transform_4, window_bounds = array<i64: 2, 1, 32>}, {pipeline_mode = #tpu.pipeline_mode<synchronous>, transform_indices = @transform_5, window_bounds = array<i64: 2, 32, 32>}, {pipeline_mode = #tpu.pipeline_mode<synchronous>, transform_indices = @transform_6, window_bounds = array<i64: 2, 1, 32>}, {pipeline_mode = #tpu.pipeline_mode<synchronous>, transform_indices = @transform_7, window_bounds = array<i64: 2, 32, 32>}, {pipeline_mode = #tpu.pipeline_mode<synchronous>, transform_indices = @transform_8, window_bounds = array<i64: 2, 1, 32>}, {pipeline_mode = #tpu.pipeline_mode<synchronous>, transform_indices = @transform_9, window_bounds = array<i64: 2, 1, 32>}, {pipeline_mode = #tpu.pipeline_mode<synchronous>, transform_indices = @transform_10, window_bounds = array<i64: 2, 1, 32>}, {pipeline_mode = #tpu.pipeline_mode<synchronous>, transform_indices = @transform_11, window_bounds = array<i64: 2, 32, 64>}, {pipeline_mode = #tpu.pipeline_mode<synchronous>, transform_indices = @transform_12, window_bounds = array<i64: 2, 1, 64>}, {pipeline_mode = #tpu.pipeline_mode<synchronous>, transform_indices = @transform_13, window_bounds = array<i64: 2, 64, 32>}, {pipeline_mode = #tpu.pipeline_mode<synchronous>, transform_indices = @transform_14, window_bounds = array<i64: 2, 1, 32>}, {pipeline_mode = #tpu.pipeline_mode<synchronous>, transform_indices = @transform_15, window_bounds = array<i64: 2, 1, 32>}, {pipeline_mode = #tpu.pipeline_mode<synchronous>, transform_indices = @transform_16, window_bounds = array<i64: 2, 1, 32>}, {transform_indices = @transform_17, window_bounds = array<i64: 1, 8, 32>}]} {
    %c0 = arith.constant 0 : index
    %c0_0 = arith.constant 0 : index
    %c0_1 = arith.constant 0 : index
    %0 = vector.load %arg1[%c0, %c0_0, %c0_1] : memref<1x8x32xf32, #tpu.memory_space<vmem>>, vector<1x8x32xf32>
    %1 = vector.shape_cast %0 : vector<1x8x32xf32> to vector<8x32xf32>
    %c0_2 = arith.constant 0 : index
    %c0_3 = arith.constant 0 : index
    %c0_4 = arith.constant 0 : index
    %2 = vector.load %arg2[%c0_2, %c0_3, %c0_4] : memref<2x32x32xf32, #tpu.memory_space<vmem>>, vector<1x32x32xf32>
    %3 = vector.shape_cast %2 : vector<1x32x32xf32> to vector<32x32xf32>
    %c0_5 = arith.constant 0 : index
    %c0_6 = arith.constant 0 : index
    %c0_7 = arith.constant 0 : index
    %4 = vector.load %arg3[%c0_5, %c0_6, %c0_7] : memref<2x1x32xf32, #tpu.memory_space<vmem>>, vector<1x1x32xf32>
    %5 = vector.shape_cast %4 : vector<1x1x32xf32> to vector<1x32xf32>
    %c0_8 = arith.constant 0 : index
    %c0_9 = arith.constant 0 : index
    %c0_10 = arith.constant 0 : index
    %6 = vector.load %arg4[%c0_8, %c0_9, %c0_10] : memref<2x32x32xf32, #tpu.memory_space<vmem>>, vector<1x32x32xf32>
    %7 = vector.shape_cast %6 : vector<1x32x32xf32> to vector<32x32xf32>
    %c0_11 = arith.constant 0 : index
    %c0_12 = arith.constant 0 : index
    %c0_13 = arith.constant 0 : index
    %8 = vector.load %arg5[%c0_11, %c0_12, %c0_13] : memref<2x1x32xf32, #tpu.memory_space<vmem>>, vector<1x1x32xf32>
    %9 = vector.shape_cast %8 : vector<1x1x32xf32> to vector<1x32xf32>
    %c0_14 = arith.constant 0 : index
    %c0_15 = arith.constant 0 : index
    %c0_16 = arith.constant 0 : index
    %10 = vector.load %arg6[%c0_14, %c0_15, %c0_16] : memref<2x32x32xf32, #tpu.memory_space<vmem>>, vector<1x32x32xf32>
    %11 = vector.shape_cast %10 : vector<1x32x32xf32> to vector<32x32xf32>
    %c0_17 = arith.constant 0 : index
    %c0_18 = arith.constant 0 : index
    %c0_19 = arith.constant 0 : index
    %12 = vector.load %arg7[%c0_17, %c0_18, %c0_19] : memref<2x1x32xf32, #tpu.memory_space<vmem>>, vector<1x1x32xf32>
    %13 = vector.shape_cast %12 : vector<1x1x32xf32> to vector<1x32xf32>
    %c0_20 = arith.constant 0 : index
    %c0_21 = arith.constant 0 : index
    %c0_22 = arith.constant 0 : index
    %14 = vector.load %arg8[%c0_20, %c0_21, %c0_22] : memref<2x32x32xf32, #tpu.memory_space<vmem>>, vector<1x32x32xf32>
    %15 = vector.shape_cast %14 : vector<1x32x32xf32> to vector<32x32xf32>
    %c0_23 = arith.constant 0 : index
    %c0_24 = arith.constant 0 : index
    %c0_25 = arith.constant 0 : index
    %16 = vector.load %arg9[%c0_23, %c0_24, %c0_25] : memref<2x1x32xf32, #tpu.memory_space<vmem>>, vector<1x1x32xf32>
    %17 = vector.shape_cast %16 : vector<1x1x32xf32> to vector<1x32xf32>
    %c0_26 = arith.constant 0 : index
    %c0_27 = arith.constant 0 : index
    %c0_28 = arith.constant 0 : index
    %18 = vector.load %arg10[%c0_26, %c0_27, %c0_28] : memref<2x1x32xf32, #tpu.memory_space<vmem>>, vector<1x1x32xf32>
    %19 = vector.shape_cast %18 : vector<1x1x32xf32> to vector<1x32xf32>
    %c0_29 = arith.constant 0 : index
    %c0_30 = arith.constant 0 : index
    %c0_31 = arith.constant 0 : index
    %20 = vector.load %arg11[%c0_29, %c0_30, %c0_31] : memref<2x1x32xf32, #tpu.memory_space<vmem>>, vector<1x1x32xf32>
    %21 = vector.shape_cast %20 : vector<1x1x32xf32> to vector<1x32xf32>
    %c0_32 = arith.constant 0 : index
    %c0_33 = arith.constant 0 : index
    %c0_34 = arith.constant 0 : index
    %22 = vector.load %arg12[%c0_32, %c0_33, %c0_34] : memref<2x32x64xf32, #tpu.memory_space<vmem>>, vector<1x32x64xf32>
    %23 = vector.shape_cast %22 : vector<1x32x64xf32> to vector<32x64xf32>
    %c0_35 = arith.constant 0 : index
    %c0_36 = arith.constant 0 : index
    %c0_37 = arith.constant 0 : index
    %24 = vector.load %arg13[%c0_35, %c0_36, %c0_37] : memref<2x1x64xf32, #tpu.memory_space<vmem>>, vector<1x1x64xf32>
    %25 = vector.shape_cast %24 : vector<1x1x64xf32> to vector<1x64xf32>
    %c0_38 = arith.constant 0 : index
    %c0_39 = arith.constant 0 : index
    %c0_40 = arith.constant 0 : index
    %26 = vector.load %arg14[%c0_38, %c0_39, %c0_40] : memref<2x64x32xf32, #tpu.memory_space<vmem>>, vector<1x64x32xf32>
    %27 = vector.shape_cast %26 : vector<1x64x32xf32> to vector<64x32xf32>
    %c0_41 = arith.constant 0 : index
    %c0_42 = arith.constant 0 : index
    %c0_43 = arith.constant 0 : index
    %28 = vector.load %arg15[%c0_41, %c0_42, %c0_43] : memref<2x1x32xf32, #tpu.memory_space<vmem>>, vector<1x1x32xf32>
    %29 = vector.shape_cast %28 : vector<1x1x32xf32> to vector<1x32xf32>
    %c0_44 = arith.constant 0 : index
    %c0_45 = arith.constant 0 : index
    %c0_46 = arith.constant 0 : index
    %30 = vector.load %arg16[%c0_44, %c0_45, %c0_46] : memref<2x1x32xf32, #tpu.memory_space<vmem>>, vector<1x1x32xf32>
    %31 = vector.shape_cast %30 : vector<1x1x32xf32> to vector<1x32xf32>
    %c0_47 = arith.constant 0 : index
    %c0_48 = arith.constant 0 : index
    %c0_49 = arith.constant 0 : index
    %32 = vector.load %arg17[%c0_47, %c0_48, %c0_49] : memref<2x1x32xf32, #tpu.memory_space<vmem>>, vector<1x1x32xf32>
    %33 = vector.shape_cast %32 : vector<1x1x32xf32> to vector<1x32xf32>
    %cst = arith.constant dense<0.000000e+00> : vector<8x32xf32>
    %34 = tpu.matmul %1, %3, %cst {dimension_numbers = #tpu.dot_dimension_numbers<[1], [0], [0], [1], [0, 0, 1, 1], [], []>} : vector<8x32xf32>, vector<32x32xf32>, vector<8x32xf32> -> vector<8x32xf32>
    %35 = vector.broadcast %5 : vector<1x32xf32> to vector<8x32xf32>
    %36 = arith.addf %34, %35 : vector<8x32xf32>
    %cst_50 = arith.constant dense<0.000000e+00> : vector<8x32xf32>
    %37 = tpu.matmul %1, %7, %cst_50 {dimension_numbers = #tpu.dot_dimension_numbers<[1], [0], [0], [1], [0, 0, 1, 1], [], []>} : vector<8x32xf32>, vector<32x32xf32>, vector<8x32xf32> -> vector<8x32xf32>
    %38 = vector.broadcast %9 : vector<1x32xf32> to vector<8x32xf32>
    %39 = arith.addf %37, %38 : vector<8x32xf32>
    %cst_51 = arith.constant dense<0.000000e+00> : vector<8x32xf32>
    %40 = tpu.matmul %1, %11, %cst_51 {dimension_numbers = #tpu.dot_dimension_numbers<[1], [0], [0], [1], [0, 0, 1, 1], [], []>} : vector<8x32xf32>, vector<32x32xf32>, vector<8x32xf32> -> vector<8x32xf32>
    %41 = vector.broadcast %13 : vector<1x32xf32> to vector<8x32xf32>
    %42 = arith.addf %40, %41 : vector<8x32xf32>
    %43 = vector.extract_strided_slice %36 {offsets = [0, 0], sizes = [8, 8], strides = [1, 1]} : vector<8x32xf32> to vector<8x8xf32>
    %44 = vector.extract_strided_slice %39 {offsets = [0, 0], sizes = [8, 8], strides = [1, 1]} : vector<8x32xf32> to vector<8x8xf32>
    %45 = vector.extract_strided_slice %42 {offsets = [0, 0], sizes = [8, 8], strides = [1, 1]} : vector<8x32xf32> to vector<8x8xf32>
    %cst_52 = arith.constant dense<0.000000e+00> : vector<8x8xf32>
    %46 = tpu.matmul %43, %44, %cst_52 {dimension_numbers = #tpu.dot_dimension_numbers<[1], [1], [0], [0], [0, 0, 1, 0], [], []>} : vector<8x8xf32>, vector<8x8xf32>, vector<8x8xf32> -> vector<8x8xf32>
    %cst_53 = arith.constant dense<0xFF800000> : vector<8xf32>
    %47 = vector.multi_reduction <maximumf>, %46, %cst_53 [1] : vector<8x8xf32> to vector<8xf32>
    %48 = vector.shape_cast %47 : vector<8xf32> to vector<8x1xf32>
    %49 = vector.broadcast %48 : vector<8x1xf32> to vector<8x8xf32>
    %50 = arith.subf %46, %49 : vector<8x8xf32>
    %51 = math.exp %50 : vector<8x8xf32>
    %cst_54 = arith.constant dense<0.000000e+00> : vector<8xf32>
    %52 = vector.multi_reduction <add>, %51, %cst_54 [1] : vector<8x8xf32> to vector<8xf32>
    %53 = vector.shape_cast %52 : vector<8xf32> to vector<8x1xf32>
    %54 = tpu.reciprocal %53 {approx = true} : vector<8x1xf32> -> vector<8x1xf32>
    %55 = vector.broadcast %54 : vector<8x1xf32> to vector<8x8xf32>
    %56 = arith.mulf %51, %55 : vector<8x8xf32>
    %cst_55 = arith.constant dense<0.000000e+00> : vector<8x8xf32>
    %57 = tpu.matmul %56, %45, %cst_55 {dimension_numbers = #tpu.dot_dimension_numbers<[1], [0], [0], [1], [0, 0, 1, 1], [], []>} : vector<8x8xf32>, vector<8x8xf32>, vector<8x8xf32> -> vector<8x8xf32>
    %58 = vector.extract_strided_slice %36 {offsets = [0, 8], sizes = [8, 8], strides = [1, 1]} : vector<8x32xf32> to vector<8x8xf32>
    %59 = vector.extract_strided_slice %39 {offsets = [0, 8], sizes = [8, 8], strides = [1, 1]} : vector<8x32xf32> to vector<8x8xf32>
    %60 = vector.extract_strided_slice %42 {offsets = [0, 8], sizes = [8, 8], strides = [1, 1]} : vector<8x32xf32> to vector<8x8xf32>
    %cst_56 = arith.constant dense<0.000000e+00> : vector<8x8xf32>
    %61 = tpu.matmul %58, %59, %cst_56 {dimension_numbers = #tpu.dot_dimension_numbers<[1], [1], [0], [0], [0, 0, 1, 0], [], []>} : vector<8x8xf32>, vector<8x8xf32>, vector<8x8xf32> -> vector<8x8xf32>
    %cst_57 = arith.constant dense<0xFF800000> : vector<8xf32>
    %62 = vector.multi_reduction <maximumf>, %61, %cst_57 [1] : vector<8x8xf32> to vector<8xf32>
    %63 = vector.shape_cast %62 : vector<8xf32> to vector<8x1xf32>
    %64 = vector.broadcast %63 : vector<8x1xf32> to vector<8x8xf32>
    %65 = arith.subf %61, %64 : vector<8x8xf32>
    %66 = math.exp %65 : vector<8x8xf32>
    %cst_58 = arith.constant dense<0.000000e+00> : vector<8xf32>
    %67 = vector.multi_reduction <add>, %66, %cst_58 [1] : vector<8x8xf32> to vector<8xf32>
    %68 = vector.shape_cast %67 : vector<8xf32> to vector<8x1xf32>
    %69 = tpu.reciprocal %68 {approx = true} : vector<8x1xf32> -> vector<8x1xf32>
    %70 = vector.broadcast %69 : vector<8x1xf32> to vector<8x8xf32>
    %71 = arith.mulf %66, %70 : vector<8x8xf32>
    %cst_59 = arith.constant dense<0.000000e+00> : vector<8x8xf32>
    %72 = tpu.matmul %71, %60, %cst_59 {dimension_numbers = #tpu.dot_dimension_numbers<[1], [0], [0], [1], [0, 0, 1, 1], [], []>} : vector<8x8xf32>, vector<8x8xf32>, vector<8x8xf32> -> vector<8x8xf32>
    %73 = vector.extract_strided_slice %36 {offsets = [0, 16], sizes = [8, 8], strides = [1, 1]} : vector<8x32xf32> to vector<8x8xf32>
    %74 = vector.extract_strided_slice %39 {offsets = [0, 16], sizes = [8, 8], strides = [1, 1]} : vector<8x32xf32> to vector<8x8xf32>
    %75 = vector.extract_strided_slice %42 {offsets = [0, 16], sizes = [8, 8], strides = [1, 1]} : vector<8x32xf32> to vector<8x8xf32>
    %cst_60 = arith.constant dense<0.000000e+00> : vector<8x8xf32>
    %76 = tpu.matmul %73, %74, %cst_60 {dimension_numbers = #tpu.dot_dimension_numbers<[1], [1], [0], [0], [0, 0, 1, 0], [], []>} : vector<8x8xf32>, vector<8x8xf32>, vector<8x8xf32> -> vector<8x8xf32>
    %cst_61 = arith.constant dense<0xFF800000> : vector<8xf32>
    %77 = vector.multi_reduction <maximumf>, %76, %cst_61 [1] : vector<8x8xf32> to vector<8xf32>
    %78 = vector.shape_cast %77 : vector<8xf32> to vector<8x1xf32>
    %79 = vector.broadcast %78 : vector<8x1xf32> to vector<8x8xf32>
    %80 = arith.subf %76, %79 : vector<8x8xf32>
    %81 = math.exp %80 : vector<8x8xf32>
    %cst_62 = arith.constant dense<0.000000e+00> : vector<8xf32>
    %82 = vector.multi_reduction <add>, %81, %cst_62 [1] : vector<8x8xf32> to vector<8xf32>
    %83 = vector.shape_cast %82 : vector<8xf32> to vector<8x1xf32>
    %84 = tpu.reciprocal %83 {approx = true} : vector<8x1xf32> -> vector<8x1xf32>
    %85 = vector.broadcast %84 : vector<8x1xf32> to vector<8x8xf32>
    %86 = arith.mulf %81, %85 : vector<8x8xf32>
    %cst_63 = arith.constant dense<0.000000e+00> : vector<8x8xf32>
    %87 = tpu.matmul %86, %75, %cst_63 {dimension_numbers = #tpu.dot_dimension_numbers<[1], [0], [0], [1], [0, 0, 1, 1], [], []>} : vector<8x8xf32>, vector<8x8xf32>, vector<8x8xf32> -> vector<8x8xf32>
    %88 = vector.extract_strided_slice %36 {offsets = [0, 24], sizes = [8, 8], strides = [1, 1]} : vector<8x32xf32> to vector<8x8xf32>
    %89 = vector.extract_strided_slice %39 {offsets = [0, 24], sizes = [8, 8], strides = [1, 1]} : vector<8x32xf32> to vector<8x8xf32>
    %90 = vector.extract_strided_slice %42 {offsets = [0, 24], sizes = [8, 8], strides = [1, 1]} : vector<8x32xf32> to vector<8x8xf32>
    %cst_64 = arith.constant dense<0.000000e+00> : vector<8x8xf32>
    %91 = tpu.matmul %88, %89, %cst_64 {dimension_numbers = #tpu.dot_dimension_numbers<[1], [1], [0], [0], [0, 0, 1, 0], [], []>} : vector<8x8xf32>, vector<8x8xf32>, vector<8x8xf32> -> vector<8x8xf32>
    %cst_65 = arith.constant dense<0xFF800000> : vector<8xf32>
    %92 = vector.multi_reduction <maximumf>, %91, %cst_65 [1] : vector<8x8xf32> to vector<8xf32>
    %93 = vector.shape_cast %92 : vector<8xf32> to vector<8x1xf32>
    %94 = vector.broadcast %93 : vector<8x1xf32> to vector<8x8xf32>
    %95 = arith.subf %91, %94 : vector<8x8xf32>
    %96 = math.exp %95 : vector<8x8xf32>
    %cst_66 = arith.constant dense<0.000000e+00> : vector<8xf32>
    %97 = vector.multi_reduction <add>, %96, %cst_66 [1] : vector<8x8xf32> to vector<8xf32>
    %98 = vector.shape_cast %97 : vector<8xf32> to vector<8x1xf32>
    %99 = tpu.reciprocal %98 {approx = true} : vector<8x1xf32> -> vector<8x1xf32>
    %100 = vector.broadcast %99 : vector<8x1xf32> to vector<8x8xf32>
    %101 = arith.mulf %96, %100 : vector<8x8xf32>
    %cst_67 = arith.constant dense<0.000000e+00> : vector<8x8xf32>
    %102 = tpu.matmul %101, %90, %cst_67 {dimension_numbers = #tpu.dot_dimension_numbers<[1], [0], [0], [1], [0, 0, 1, 1], [], []>} : vector<8x8xf32>, vector<8x8xf32>, vector<8x8xf32> -> vector<8x8xf32>
    %103 = vector.extract_strided_slice %15 {offsets = [0, 0], sizes = [8, 32], strides = [1, 1]} : vector<32x32xf32> to vector<8x32xf32>
    %cst_68 = arith.constant dense<0.000000e+00> : vector<8x32xf32>
    %104 = tpu.matmul %57, %103, %cst_68 {dimension_numbers = #tpu.dot_dimension_numbers<[1], [0], [0], [1], [0, 0, 1, 1], [], []>} : vector<8x8xf32>, vector<8x32xf32>, vector<8x32xf32> -> vector<8x32xf32>
    %105 = vector.extract_strided_slice %15 {offsets = [8, 0], sizes = [8, 32], strides = [1, 1]} : vector<32x32xf32> to vector<8x32xf32>
    %cst_69 = arith.constant dense<0.000000e+00> : vector<8x32xf32>
    %106 = tpu.matmul %72, %105, %cst_69 {dimension_numbers = #tpu.dot_dimension_numbers<[1], [0], [0], [1], [0, 0, 1, 1], [], []>} : vector<8x8xf32>, vector<8x32xf32>, vector<8x32xf32> -> vector<8x32xf32>
    %107 = arith.addf %104, %106 : vector<8x32xf32>
    %108 = vector.extract_strided_slice %15 {offsets = [16, 0], sizes = [8, 32], strides = [1, 1]} : vector<32x32xf32> to vector<8x32xf32>
    %cst_70 = arith.constant dense<0.000000e+00> : vector<8x32xf32>
    %109 = tpu.matmul %87, %108, %cst_70 {dimension_numbers = #tpu.dot_dimension_numbers<[1], [0], [0], [1], [0, 0, 1, 1], [], []>} : vector<8x8xf32>, vector<8x32xf32>, vector<8x32xf32> -> vector<8x32xf32>
    %110 = arith.addf %107, %109 : vector<8x32xf32>
    %111 = vector.extract_strided_slice %15 {offsets = [24, 0], sizes = [8, 32], strides = [1, 1]} : vector<32x32xf32> to vector<8x32xf32>
    %cst_71 = arith.constant dense<0.000000e+00> : vector<8x32xf32>
    %112 = tpu.matmul %102, %111, %cst_71 {dimension_numbers = #tpu.dot_dimension_numbers<[1], [0], [0], [1], [0, 0, 1, 1], [], []>} : vector<8x8xf32>, vector<8x32xf32>, vector<8x32xf32> -> vector<8x32xf32>
    %113 = arith.addf %110, %112 : vector<8x32xf32>
    %114 = vector.broadcast %17 : vector<1x32xf32> to vector<8x32xf32>
    %115 = arith.addf %113, %114 : vector<8x32xf32>
    %116 = arith.addf %1, %115 : vector<8x32xf32>
    %cst_72 = arith.constant dense<0.000000e+00> : vector<8xf32>
    %117 = vector.multi_reduction <add>, %116, %cst_72 [1] : vector<8x32xf32> to vector<8xf32>
    %118 = vector.shape_cast %117 : vector<8xf32> to vector<8x1xf32>
    %cst_73 = arith.constant 3.200000e+01 : f32
    %119 = vector.broadcast %cst_73 : f32 to vector<8x1xf32>
    %120 = arith.divf %118, %119 : vector<8x1xf32>
    %121 = vector.broadcast %120 : vector<8x1xf32> to vector<8x32xf32>
    %122 = arith.subf %116, %121 : vector<8x32xf32>
    %123 = arith.mulf %122, %122 : vector<8x32xf32>
    %cst_74 = arith.constant dense<0.000000e+00> : vector<8xf32>
    %124 = vector.multi_reduction <add>, %123, %cst_74 [1] : vector<8x32xf32> to vector<8xf32>
    %125 = vector.shape_cast %124 : vector<8xf32> to vector<8x1xf32>
    %cst_75 = arith.constant 3.200000e+01 : f32
    %126 = vector.broadcast %cst_75 : f32 to vector<8x1xf32>
    %127 = arith.divf %125, %126 : vector<8x1xf32>
    %128 = vector.broadcast %120 : vector<8x1xf32> to vector<8x32xf32>
    %129 = arith.subf %116, %128 : vector<8x32xf32>
    %cst_76 = arith.constant 9.99999974E-6 : f32
    %130 = vector.broadcast %cst_76 : f32 to vector<8x1xf32>
    %131 = arith.addf %127, %130 : vector<8x1xf32>
    %132 = math.rsqrt %131 : vector<8x1xf32>
    %133 = vector.broadcast %132 : vector<8x1xf32> to vector<8x32xf32>
    %134 = arith.mulf %129, %133 : vector<8x32xf32>
    %135 = vector.broadcast %19 : vector<1x32xf32> to vector<8x32xf32>
    %136 = arith.mulf %134, %135 : vector<8x32xf32>
    %137 = vector.broadcast %21 : vector<1x32xf32> to vector<8x32xf32>
    %138 = arith.addf %136, %137 : vector<8x32xf32>
    %cst_77 = arith.constant dense<0.000000e+00> : vector<8x64xf32>
    %139 = tpu.matmul %138, %23, %cst_77 {dimension_numbers = #tpu.dot_dimension_numbers<[1], [0], [0], [1], [0, 0, 1, 1], [], []>} : vector<8x32xf32>, vector<32x64xf32>, vector<8x64xf32> -> vector<8x64xf32>
    %140 = vector.broadcast %25 : vector<1x64xf32> to vector<8x64xf32>
    %141 = arith.addf %139, %140 : vector<8x64xf32>
    %cst_78 = arith.constant 5.000000e-01 : f32
    %142 = vector.broadcast %cst_78 : f32 to vector<8x64xf32>
    %143 = arith.mulf %142, %141 : vector<8x64xf32>
    %144 = arith.mulf %141, %141 : vector<8x64xf32>
    %145 = arith.mulf %144, %141 : vector<8x64xf32>
    %cst_79 = arith.constant 4.471500e-02 : f32
    %146 = vector.broadcast %cst_79 : f32 to vector<8x64xf32>
    %147 = arith.mulf %146, %145 : vector<8x64xf32>
    %148 = arith.addf %141, %147 : vector<8x64xf32>
    %cst_80 = arith.constant 0.797884583 : f32
    %149 = vector.broadcast %cst_80 : f32 to vector<8x64xf32>
    %150 = arith.mulf %149, %148 : vector<8x64xf32>
    %151 = math.tanh %150 : vector<8x64xf32>
    %cst_81 = arith.constant 1.000000e+00 : f32
    %152 = vector.broadcast %cst_81 : f32 to vector<8x64xf32>
    %153 = arith.addf %152, %151 : vector<8x64xf32>
    %154 = arith.mulf %143, %153 : vector<8x64xf32>
    %cst_82 = arith.constant dense<0.000000e+00> : vector<8x32xf32>
    %155 = tpu.matmul %154, %27, %cst_82 {dimension_numbers = #tpu.dot_dimension_numbers<[1], [0], [0], [1], [0, 0, 1, 1], [], []>} : vector<8x64xf32>, vector<64x32xf32>, vector<8x32xf32> -> vector<8x32xf32>
    %156 = vector.broadcast %29 : vector<1x32xf32> to vector<8x32xf32>
    %157 = arith.addf %155, %156 : vector<8x32xf32>
    %158 = arith.addf %138, %157 : vector<8x32xf32>
    %cst_83 = arith.constant dense<0.000000e+00> : vector<8xf32>
    %159 = vector.multi_reduction <add>, %158, %cst_83 [1] : vector<8x32xf32> to vector<8xf32>
    %160 = vector.shape_cast %159 : vector<8xf32> to vector<8x1xf32>
    %cst_84 = arith.constant 3.200000e+01 : f32
    %161 = vector.broadcast %cst_84 : f32 to vector<8x1xf32>
    %162 = arith.divf %160, %161 : vector<8x1xf32>
    %163 = vector.broadcast %162 : vector<8x1xf32> to vector<8x32xf32>
    %164 = arith.subf %158, %163 : vector<8x32xf32>
    %165 = arith.mulf %164, %164 : vector<8x32xf32>
    %cst_85 = arith.constant dense<0.000000e+00> : vector<8xf32>
    %166 = vector.multi_reduction <add>, %165, %cst_85 [1] : vector<8x32xf32> to vector<8xf32>
    %167 = vector.shape_cast %166 : vector<8xf32> to vector<8x1xf32>
    %cst_86 = arith.constant 3.200000e+01 : f32
    %168 = vector.broadcast %cst_86 : f32 to vector<8x1xf32>
    %169 = arith.divf %167, %168 : vector<8x1xf32>
    %170 = vector.broadcast %162 : vector<8x1xf32> to vector<8x32xf32>
    %171 = arith.subf %158, %170 : vector<8x32xf32>
    %cst_87 = arith.constant 9.99999974E-6 : f32
    %172 = vector.broadcast %cst_87 : f32 to vector<8x1xf32>
    %173 = arith.addf %169, %172 : vector<8x1xf32>
    %174 = math.rsqrt %173 : vector<8x1xf32>
    %175 = vector.broadcast %174 : vector<8x1xf32> to vector<8x32xf32>
    %176 = arith.mulf %171, %175 : vector<8x32xf32>
    %177 = vector.broadcast %31 : vector<1x32xf32> to vector<8x32xf32>
    %178 = arith.mulf %176, %177 : vector<8x32xf32>
    %179 = vector.broadcast %33 : vector<1x32xf32> to vector<8x32xf32>
    %180 = arith.addf %178, %179 : vector<8x32xf32>
    %c1 = arith.constant 1 : index
    %c0_88 = arith.constant 0 : index
    %c0_89 = arith.constant 0 : index
    %181 = vector.load %arg2[%c1, %c0_88, %c0_89] : memref<2x32x32xf32, #tpu.memory_space<vmem>>, vector<1x32x32xf32>
    %182 = vector.shape_cast %181 : vector<1x32x32xf32> to vector<32x32xf32>
    %c1_90 = arith.constant 1 : index
    %c0_91 = arith.constant 0 : index
    %c0_92 = arith.constant 0 : index
    %183 = vector.load %arg3[%c1_90, %c0_91, %c0_92] : memref<2x1x32xf32, #tpu.memory_space<vmem>>, vector<1x1x32xf32>
    %184 = vector.shape_cast %183 : vector<1x1x32xf32> to vector<1x32xf32>
    %c1_93 = arith.constant 1 : index
    %c0_94 = arith.constant 0 : index
    %c0_95 = arith.constant 0 : index
    %185 = vector.load %arg4[%c1_93, %c0_94, %c0_95] : memref<2x32x32xf32, #tpu.memory_space<vmem>>, vector<1x32x32xf32>
    %186 = vector.shape_cast %185 : vector<1x32x32xf32> to vector<32x32xf32>
    %c1_96 = arith.constant 1 : index
    %c0_97 = arith.constant 0 : index
    %c0_98 = arith.constant 0 : index
    %187 = vector.load %arg5[%c1_96, %c0_97, %c0_98] : memref<2x1x32xf32, #tpu.memory_space<vmem>>, vector<1x1x32xf32>
    %188 = vector.shape_cast %187 : vector<1x1x32xf32> to vector<1x32xf32>
    %c1_99 = arith.constant 1 : index
    %c0_100 = arith.constant 0 : index
    %c0_101 = arith.constant 0 : index
    %189 = vector.load %arg6[%c1_99, %c0_100, %c0_101] : memref<2x32x32xf32, #tpu.memory_space<vmem>>, vector<1x32x32xf32>
    %190 = vector.shape_cast %189 : vector<1x32x32xf32> to vector<32x32xf32>
    %c1_102 = arith.constant 1 : index
    %c0_103 = arith.constant 0 : index
    %c0_104 = arith.constant 0 : index
    %191 = vector.load %arg7[%c1_102, %c0_103, %c0_104] : memref<2x1x32xf32, #tpu.memory_space<vmem>>, vector<1x1x32xf32>
    %192 = vector.shape_cast %191 : vector<1x1x32xf32> to vector<1x32xf32>
    %c1_105 = arith.constant 1 : index
    %c0_106 = arith.constant 0 : index
    %c0_107 = arith.constant 0 : index
    %193 = vector.load %arg8[%c1_105, %c0_106, %c0_107] : memref<2x32x32xf32, #tpu.memory_space<vmem>>, vector<1x32x32xf32>
    %194 = vector.shape_cast %193 : vector<1x32x32xf32> to vector<32x32xf32>
    %c1_108 = arith.constant 1 : index
    %c0_109 = arith.constant 0 : index
    %c0_110 = arith.constant 0 : index
    %195 = vector.load %arg9[%c1_108, %c0_109, %c0_110] : memref<2x1x32xf32, #tpu.memory_space<vmem>>, vector<1x1x32xf32>
    %196 = vector.shape_cast %195 : vector<1x1x32xf32> to vector<1x32xf32>
    %c1_111 = arith.constant 1 : index
    %c0_112 = arith.constant 0 : index
    %c0_113 = arith.constant 0 : index
    %197 = vector.load %arg10[%c1_111, %c0_112, %c0_113] : memref<2x1x32xf32, #tpu.memory_space<vmem>>, vector<1x1x32xf32>
    %198 = vector.shape_cast %197 : vector<1x1x32xf32> to vector<1x32xf32>
    %c1_114 = arith.constant 1 : index
    %c0_115 = arith.constant 0 : index
    %c0_116 = arith.constant 0 : index
    %199 = vector.load %arg11[%c1_114, %c0_115, %c0_116] : memref<2x1x32xf32, #tpu.memory_space<vmem>>, vector<1x1x32xf32>
    %200 = vector.shape_cast %199 : vector<1x1x32xf32> to vector<1x32xf32>
    %c1_117 = arith.constant 1 : index
    %c0_118 = arith.constant 0 : index
    %c0_119 = arith.constant 0 : index
    %201 = vector.load %arg12[%c1_117, %c0_118, %c0_119] : memref<2x32x64xf32, #tpu.memory_space<vmem>>, vector<1x32x64xf32>
    %202 = vector.shape_cast %201 : vector<1x32x64xf32> to vector<32x64xf32>
    %c1_120 = arith.constant 1 : index
    %c0_121 = arith.constant 0 : index
    %c0_122 = arith.constant 0 : index
    %203 = vector.load %arg13[%c1_120, %c0_121, %c0_122] : memref<2x1x64xf32, #tpu.memory_space<vmem>>, vector<1x1x64xf32>
    %204 = vector.shape_cast %203 : vector<1x1x64xf32> to vector<1x64xf32>
    %c1_123 = arith.constant 1 : index
    %c0_124 = arith.constant 0 : index
    %c0_125 = arith.constant 0 : index
    %205 = vector.load %arg14[%c1_123, %c0_124, %c0_125] : memref<2x64x32xf32, #tpu.memory_space<vmem>>, vector<1x64x32xf32>
    %206 = vector.shape_cast %205 : vector<1x64x32xf32> to vector<64x32xf32>
    %c1_126 = arith.constant 1 : index
    %c0_127 = arith.constant 0 : index
    %c0_128 = arith.constant 0 : index
    %207 = vector.load %arg15[%c1_126, %c0_127, %c0_128] : memref<2x1x32xf32, #tpu.memory_space<vmem>>, vector<1x1x32xf32>
    %208 = vector.shape_cast %207 : vector<1x1x32xf32> to vector<1x32xf32>
    %c1_129 = arith.constant 1 : index
    %c0_130 = arith.constant 0 : index
    %c0_131 = arith.constant 0 : index
    %209 = vector.load %arg16[%c1_129, %c0_130, %c0_131] : memref<2x1x32xf32, #tpu.memory_space<vmem>>, vector<1x1x32xf32>
    %210 = vector.shape_cast %209 : vector<1x1x32xf32> to vector<1x32xf32>
    %c1_132 = arith.constant 1 : index
    %c0_133 = arith.constant 0 : index
    %c0_134 = arith.constant 0 : index
    %211 = vector.load %arg17[%c1_132, %c0_133, %c0_134] : memref<2x1x32xf32, #tpu.memory_space<vmem>>, vector<1x1x32xf32>
    %212 = vector.shape_cast %211 : vector<1x1x32xf32> to vector<1x32xf32>
    %cst_135 = arith.constant dense<0.000000e+00> : vector<8x32xf32>
    %213 = tpu.matmul %180, %182, %cst_135 {dimension_numbers = #tpu.dot_dimension_numbers<[1], [0], [0], [1], [0, 0, 1, 1], [], []>} : vector<8x32xf32>, vector<32x32xf32>, vector<8x32xf32> -> vector<8x32xf32>
    %214 = vector.broadcast %184 : vector<1x32xf32> to vector<8x32xf32>
    %215 = arith.addf %213, %214 : vector<8x32xf32>
    %cst_136 = arith.constant dense<0.000000e+00> : vector<8x32xf32>
    %216 = tpu.matmul %180, %186, %cst_136 {dimension_numbers = #tpu.dot_dimension_numbers<[1], [0], [0], [1], [0, 0, 1, 1], [], []>} : vector<8x32xf32>, vector<32x32xf32>, vector<8x32xf32> -> vector<8x32xf32>
    %217 = vector.broadcast %188 : vector<1x32xf32> to vector<8x32xf32>
    %218 = arith.addf %216, %217 : vector<8x32xf32>
    %cst_137 = arith.constant dense<0.000000e+00> : vector<8x32xf32>
    %219 = tpu.matmul %180, %190, %cst_137 {dimension_numbers = #tpu.dot_dimension_numbers<[1], [0], [0], [1], [0, 0, 1, 1], [], []>} : vector<8x32xf32>, vector<32x32xf32>, vector<8x32xf32> -> vector<8x32xf32>
    %220 = vector.broadcast %192 : vector<1x32xf32> to vector<8x32xf32>
    %221 = arith.addf %219, %220 : vector<8x32xf32>
    %222 = vector.extract_strided_slice %215 {offsets = [0, 0], sizes = [8, 8], strides = [1, 1]} : vector<8x32xf32> to vector<8x8xf32>
    %223 = vector.extract_strided_slice %218 {offsets = [0, 0], sizes = [8, 8], strides = [1, 1]} : vector<8x32xf32> to vector<8x8xf32>
    %224 = vector.extract_strided_slice %221 {offsets = [0, 0], sizes = [8, 8], strides = [1, 1]} : vector<8x32xf32> to vector<8x8xf32>
    %cst_138 = arith.constant dense<0.000000e+00> : vector<8x8xf32>
    %225 = tpu.matmul %222, %223, %cst_138 {dimension_numbers = #tpu.dot_dimension_numbers<[1], [1], [0], [0], [0, 0, 1, 0], [], []>} : vector<8x8xf32>, vector<8x8xf32>, vector<8x8xf32> -> vector<8x8xf32>
    %cst_139 = arith.constant dense<0xFF800000> : vector<8xf32>
    %226 = vector.multi_reduction <maximumf>, %225, %cst_139 [1] : vector<8x8xf32> to vector<8xf32>
    %227 = vector.shape_cast %226 : vector<8xf32> to vector<8x1xf32>
    %228 = vector.broadcast %227 : vector<8x1xf32> to vector<8x8xf32>
    %229 = arith.subf %225, %228 : vector<8x8xf32>
    %230 = math.exp %229 : vector<8x8xf32>
    %cst_140 = arith.constant dense<0.000000e+00> : vector<8xf32>
    %231 = vector.multi_reduction <add>, %230, %cst_140 [1] : vector<8x8xf32> to vector<8xf32>
    %232 = vector.shape_cast %231 : vector<8xf32> to vector<8x1xf32>
    %233 = tpu.reciprocal %232 {approx = true} : vector<8x1xf32> -> vector<8x1xf32>
    %234 = vector.broadcast %233 : vector<8x1xf32> to vector<8x8xf32>
    %235 = arith.mulf %230, %234 : vector<8x8xf32>
    %cst_141 = arith.constant dense<0.000000e+00> : vector<8x8xf32>
    %236 = tpu.matmul %235, %224, %cst_141 {dimension_numbers = #tpu.dot_dimension_numbers<[1], [0], [0], [1], [0, 0, 1, 1], [], []>} : vector<8x8xf32>, vector<8x8xf32>, vector<8x8xf32> -> vector<8x8xf32>
    %237 = vector.extract_strided_slice %215 {offsets = [0, 8], sizes = [8, 8], strides = [1, 1]} : vector<8x32xf32> to vector<8x8xf32>
    %238 = vector.extract_strided_slice %218 {offsets = [0, 8], sizes = [8, 8], strides = [1, 1]} : vector<8x32xf32> to vector<8x8xf32>
    %239 = vector.extract_strided_slice %221 {offsets = [0, 8], sizes = [8, 8], strides = [1, 1]} : vector<8x32xf32> to vector<8x8xf32>
    %cst_142 = arith.constant dense<0.000000e+00> : vector<8x8xf32>
    %240 = tpu.matmul %237, %238, %cst_142 {dimension_numbers = #tpu.dot_dimension_numbers<[1], [1], [0], [0], [0, 0, 1, 0], [], []>} : vector<8x8xf32>, vector<8x8xf32>, vector<8x8xf32> -> vector<8x8xf32>
    %cst_143 = arith.constant dense<0xFF800000> : vector<8xf32>
    %241 = vector.multi_reduction <maximumf>, %240, %cst_143 [1] : vector<8x8xf32> to vector<8xf32>
    %242 = vector.shape_cast %241 : vector<8xf32> to vector<8x1xf32>
    %243 = vector.broadcast %242 : vector<8x1xf32> to vector<8x8xf32>
    %244 = arith.subf %240, %243 : vector<8x8xf32>
    %245 = math.exp %244 : vector<8x8xf32>
    %cst_144 = arith.constant dense<0.000000e+00> : vector<8xf32>
    %246 = vector.multi_reduction <add>, %245, %cst_144 [1] : vector<8x8xf32> to vector<8xf32>
    %247 = vector.shape_cast %246 : vector<8xf32> to vector<8x1xf32>
    %248 = tpu.reciprocal %247 {approx = true} : vector<8x1xf32> -> vector<8x1xf32>
    %249 = vector.broadcast %248 : vector<8x1xf32> to vector<8x8xf32>
    %250 = arith.mulf %245, %249 : vector<8x8xf32>
    %cst_145 = arith.constant dense<0.000000e+00> : vector<8x8xf32>
    %251 = tpu.matmul %250, %239, %cst_145 {dimension_numbers = #tpu.dot_dimension_numbers<[1], [0], [0], [1], [0, 0, 1, 1], [], []>} : vector<8x8xf32>, vector<8x8xf32>, vector<8x8xf32> -> vector<8x8xf32>
    %252 = vector.extract_strided_slice %215 {offsets = [0, 16], sizes = [8, 8], strides = [1, 1]} : vector<8x32xf32> to vector<8x8xf32>
    %253 = vector.extract_strided_slice %218 {offsets = [0, 16], sizes = [8, 8], strides = [1, 1]} : vector<8x32xf32> to vector<8x8xf32>
    %254 = vector.extract_strided_slice %221 {offsets = [0, 16], sizes = [8, 8], strides = [1, 1]} : vector<8x32xf32> to vector<8x8xf32>
    %cst_146 = arith.constant dense<0.000000e+00> : vector<8x8xf32>
    %255 = tpu.matmul %252, %253, %cst_146 {dimension_numbers = #tpu.dot_dimension_numbers<[1], [1], [0], [0], [0, 0, 1, 0], [], []>} : vector<8x8xf32>, vector<8x8xf32>, vector<8x8xf32> -> vector<8x8xf32>
    %cst_147 = arith.constant dense<0xFF800000> : vector<8xf32>
    %256 = vector.multi_reduction <maximumf>, %255, %cst_147 [1] : vector<8x8xf32> to vector<8xf32>
    %257 = vector.shape_cast %256 : vector<8xf32> to vector<8x1xf32>
    %258 = vector.broadcast %257 : vector<8x1xf32> to vector<8x8xf32>
    %259 = arith.subf %255, %258 : vector<8x8xf32>
    %260 = math.exp %259 : vector<8x8xf32>
    %cst_148 = arith.constant dense<0.000000e+00> : vector<8xf32>
    %261 = vector.multi_reduction <add>, %260, %cst_148 [1] : vector<8x8xf32> to vector<8xf32>
    %262 = vector.shape_cast %261 : vector<8xf32> to vector<8x1xf32>
    %263 = tpu.reciprocal %262 {approx = true} : vector<8x1xf32> -> vector<8x1xf32>
    %264 = vector.broadcast %263 : vector<8x1xf32> to vector<8x8xf32>
    %265 = arith.mulf %260, %264 : vector<8x8xf32>
    %cst_149 = arith.constant dense<0.000000e+00> : vector<8x8xf32>
    %266 = tpu.matmul %265, %254, %cst_149 {dimension_numbers = #tpu.dot_dimension_numbers<[1], [0], [0], [1], [0, 0, 1, 1], [], []>} : vector<8x8xf32>, vector<8x8xf32>, vector<8x8xf32> -> vector<8x8xf32>
    %267 = vector.extract_strided_slice %215 {offsets = [0, 24], sizes = [8, 8], strides = [1, 1]} : vector<8x32xf32> to vector<8x8xf32>
    %268 = vector.extract_strided_slice %218 {offsets = [0, 24], sizes = [8, 8], strides = [1, 1]} : vector<8x32xf32> to vector<8x8xf32>
    %269 = vector.extract_strided_slice %221 {offsets = [0, 24], sizes = [8, 8], strides = [1, 1]} : vector<8x32xf32> to vector<8x8xf32>
    %cst_150 = arith.constant dense<0.000000e+00> : vector<8x8xf32>
    %270 = tpu.matmul %267, %268, %cst_150 {dimension_numbers = #tpu.dot_dimension_numbers<[1], [1], [0], [0], [0, 0, 1, 0], [], []>} : vector<8x8xf32>, vector<8x8xf32>, vector<8x8xf32> -> vector<8x8xf32>
    %cst_151 = arith.constant dense<0xFF800000> : vector<8xf32>
    %271 = vector.multi_reduction <maximumf>, %270, %cst_151 [1] : vector<8x8xf32> to vector<8xf32>
    %272 = vector.shape_cast %271 : vector<8xf32> to vector<8x1xf32>
    %273 = vector.broadcast %272 : vector<8x1xf32> to vector<8x8xf32>
    %274 = arith.subf %270, %273 : vector<8x8xf32>
    %275 = math.exp %274 : vector<8x8xf32>
    %cst_152 = arith.constant dense<0.000000e+00> : vector<8xf32>
    %276 = vector.multi_reduction <add>, %275, %cst_152 [1] : vector<8x8xf32> to vector<8xf32>
    %277 = vector.shape_cast %276 : vector<8xf32> to vector<8x1xf32>
    %278 = tpu.reciprocal %277 {approx = true} : vector<8x1xf32> -> vector<8x1xf32>
    %279 = vector.broadcast %278 : vector<8x1xf32> to vector<8x8xf32>
    %280 = arith.mulf %275, %279 : vector<8x8xf32>
    %cst_153 = arith.constant dense<0.000000e+00> : vector<8x8xf32>
    %281 = tpu.matmul %280, %269, %cst_153 {dimension_numbers = #tpu.dot_dimension_numbers<[1], [0], [0], [1], [0, 0, 1, 1], [], []>} : vector<8x8xf32>, vector<8x8xf32>, vector<8x8xf32> -> vector<8x8xf32>
    %282 = vector.extract_strided_slice %194 {offsets = [0, 0], sizes = [8, 32], strides = [1, 1]} : vector<32x32xf32> to vector<8x32xf32>
    %cst_154 = arith.constant dense<0.000000e+00> : vector<8x32xf32>
    %283 = tpu.matmul %236, %282, %cst_154 {dimension_numbers = #tpu.dot_dimension_numbers<[1], [0], [0], [1], [0, 0, 1, 1], [], []>} : vector<8x8xf32>, vector<8x32xf32>, vector<8x32xf32> -> vector<8x32xf32>
    %284 = vector.extract_strided_slice %194 {offsets = [8, 0], sizes = [8, 32], strides = [1, 1]} : vector<32x32xf32> to vector<8x32xf32>
    %cst_155 = arith.constant dense<0.000000e+00> : vector<8x32xf32>
    %285 = tpu.matmul %251, %284, %cst_155 {dimension_numbers = #tpu.dot_dimension_numbers<[1], [0], [0], [1], [0, 0, 1, 1], [], []>} : vector<8x8xf32>, vector<8x32xf32>, vector<8x32xf32> -> vector<8x32xf32>
    %286 = arith.addf %283, %285 : vector<8x32xf32>
    %287 = vector.extract_strided_slice %194 {offsets = [16, 0], sizes = [8, 32], strides = [1, 1]} : vector<32x32xf32> to vector<8x32xf32>
    %cst_156 = arith.constant dense<0.000000e+00> : vector<8x32xf32>
    %288 = tpu.matmul %266, %287, %cst_156 {dimension_numbers = #tpu.dot_dimension_numbers<[1], [0], [0], [1], [0, 0, 1, 1], [], []>} : vector<8x8xf32>, vector<8x32xf32>, vector<8x32xf32> -> vector<8x32xf32>
    %289 = arith.addf %286, %288 : vector<8x32xf32>
    %290 = vector.extract_strided_slice %194 {offsets = [24, 0], sizes = [8, 32], strides = [1, 1]} : vector<32x32xf32> to vector<8x32xf32>
    %cst_157 = arith.constant dense<0.000000e+00> : vector<8x32xf32>
    %291 = tpu.matmul %281, %290, %cst_157 {dimension_numbers = #tpu.dot_dimension_numbers<[1], [0], [0], [1], [0, 0, 1, 1], [], []>} : vector<8x8xf32>, vector<8x32xf32>, vector<8x32xf32> -> vector<8x32xf32>
    %292 = arith.addf %289, %291 : vector<8x32xf32>
    %293 = vector.broadcast %196 : vector<1x32xf32> to vector<8x32xf32>
    %294 = arith.addf %292, %293 : vector<8x32xf32>
    %295 = arith.addf %180, %294 : vector<8x32xf32>
    %cst_158 = arith.constant dense<0.000000e+00> : vector<8xf32>
    %296 = vector.multi_reduction <add>, %295, %cst_158 [1] : vector<8x32xf32> to vector<8xf32>
    %297 = vector.shape_cast %296 : vector<8xf32> to vector<8x1xf32>
    %cst_159 = arith.constant 3.200000e+01 : f32
    %298 = vector.broadcast %cst_159 : f32 to vector<8x1xf32>
    %299 = arith.divf %297, %298 : vector<8x1xf32>
    %300 = vector.broadcast %299 : vector<8x1xf32> to vector<8x32xf32>
    %301 = arith.subf %295, %300 : vector<8x32xf32>
    %302 = arith.mulf %301, %301 : vector<8x32xf32>
    %cst_160 = arith.constant dense<0.000000e+00> : vector<8xf32>
    %303 = vector.multi_reduction <add>, %302, %cst_160 [1] : vector<8x32xf32> to vector<8xf32>
    %304 = vector.shape_cast %303 : vector<8xf32> to vector<8x1xf32>
    %cst_161 = arith.constant 3.200000e+01 : f32
    %305 = vector.broadcast %cst_161 : f32 to vector<8x1xf32>
    %306 = arith.divf %304, %305 : vector<8x1xf32>
    %307 = vector.broadcast %299 : vector<8x1xf32> to vector<8x32xf32>
    %308 = arith.subf %295, %307 : vector<8x32xf32>
    %cst_162 = arith.constant 9.99999974E-6 : f32
    %309 = vector.broadcast %cst_162 : f32 to vector<8x1xf32>
    %310 = arith.addf %306, %309 : vector<8x1xf32>
    %311 = math.rsqrt %310 : vector<8x1xf32>
    %312 = vector.broadcast %311 : vector<8x1xf32> to vector<8x32xf32>
    %313 = arith.mulf %308, %312 : vector<8x32xf32>
    %314 = vector.broadcast %198 : vector<1x32xf32> to vector<8x32xf32>
    %315 = arith.mulf %313, %314 : vector<8x32xf32>
    %316 = vector.broadcast %200 : vector<1x32xf32> to vector<8x32xf32>
    %317 = arith.addf %315, %316 : vector<8x32xf32>
    %cst_163 = arith.constant dense<0.000000e+00> : vector<8x64xf32>
    %318 = tpu.matmul %317, %202, %cst_163 {dimension_numbers = #tpu.dot_dimension_numbers<[1], [0], [0], [1], [0, 0, 1, 1], [], []>} : vector<8x32xf32>, vector<32x64xf32>, vector<8x64xf32> -> vector<8x64xf32>
    %319 = vector.broadcast %204 : vector<1x64xf32> to vector<8x64xf32>
    %320 = arith.addf %318, %319 : vector<8x64xf32>
    %cst_164 = arith.constant 5.000000e-01 : f32
    %321 = vector.broadcast %cst_164 : f32 to vector<8x64xf32>
    %322 = arith.mulf %321, %320 : vector<8x64xf32>
    %323 = arith.mulf %320, %320 : vector<8x64xf32>
    %324 = arith.mulf %323, %320 : vector<8x64xf32>
    %cst_165 = arith.constant 4.471500e-02 : f32
    %325 = vector.broadcast %cst_165 : f32 to vector<8x64xf32>
    %326 = arith.mulf %325, %324 : vector<8x64xf32>
    %327 = arith.addf %320, %326 : vector<8x64xf32>
    %cst_166 = arith.constant 0.797884583 : f32
    %328 = vector.broadcast %cst_166 : f32 to vector<8x64xf32>
    %329 = arith.mulf %328, %327 : vector<8x64xf32>
    %330 = math.tanh %329 : vector<8x64xf32>
    %cst_167 = arith.constant 1.000000e+00 : f32
    %331 = vector.broadcast %cst_167 : f32 to vector<8x64xf32>
    %332 = arith.addf %331, %330 : vector<8x64xf32>
    %333 = arith.mulf %322, %332 : vector<8x64xf32>
    %cst_168 = arith.constant dense<0.000000e+00> : vector<8x32xf32>
    %334 = tpu.matmul %333, %206, %cst_168 {dimension_numbers = #tpu.dot_dimension_numbers<[1], [0], [0], [1], [0, 0, 1, 1], [], []>} : vector<8x64xf32>, vector<64x32xf32>, vector<8x32xf32> -> vector<8x32xf32>
    %335 = vector.broadcast %208 : vector<1x32xf32> to vector<8x32xf32>
    %336 = arith.addf %334, %335 : vector<8x32xf32>
    %337 = arith.addf %317, %336 : vector<8x32xf32>
    %cst_169 = arith.constant dense<0.000000e+00> : vector<8xf32>
    %338 = vector.multi_reduction <add>, %337, %cst_169 [1] : vector<8x32xf32> to vector<8xf32>
    %339 = vector.shape_cast %338 : vector<8xf32> to vector<8x1xf32>
    %cst_170 = arith.constant 3.200000e+01 : f32
    %340 = vector.broadcast %cst_170 : f32 to vector<8x1xf32>
    %341 = arith.divf %339, %340 : vector<8x1xf32>
    %342 = vector.broadcast %341 : vector<8x1xf32> to vector<8x32xf32>
    %343 = arith.subf %337, %342 : vector<8x32xf32>
    %344 = arith.mulf %343, %343 : vector<8x32xf32>
    %cst_171 = arith.constant dense<0.000000e+00> : vector<8xf32>
    %345 = vector.multi_reduction <add>, %344, %cst_171 [1] : vector<8x32xf32> to vector<8xf32>
    %346 = vector.shape_cast %345 : vector<8xf32> to vector<8x1xf32>
    %cst_172 = arith.constant 3.200000e+01 : f32
    %347 = vector.broadcast %cst_172 : f32 to vector<8x1xf32>
    %348 = arith.divf %346, %347 : vector<8x1xf32>
    %349 = vector.broadcast %341 : vector<8x1xf32> to vector<8x32xf32>
    %350 = arith.subf %337, %349 : vector<8x32xf32>
    %cst_173 = arith.constant 9.99999974E-6 : f32
    %351 = vector.broadcast %cst_173 : f32 to vector<8x1xf32>
    %352 = arith.addf %348, %351 : vector<8x1xf32>
    %353 = math.rsqrt %352 : vector<8x1xf32>
    %354 = vector.broadcast %353 : vector<8x1xf32> to vector<8x32xf32>
    %355 = arith.mulf %350, %354 : vector<8x32xf32>
    %356 = vector.broadcast %210 : vector<1x32xf32> to vector<8x32xf32>
    %357 = arith.mulf %355, %356 : vector<8x32xf32>
    %358 = vector.broadcast %212 : vector<1x32xf32> to vector<8x32xf32>
    %359 = arith.addf %357, %358 : vector<8x32xf32>
    %c0_174 = arith.constant 0 : index
    %c0_175 = arith.constant 0 : index
    %c0_176 = arith.constant 0 : index
    %360 = vector.load %arg18[%c0_174, %c0_175, %c0_176] : memref<1x8x32xf32, #tpu.memory_space<vmem>>, vector<1x8x32xf32>
    %361 = vector.shape_cast %360 : vector<1x8x32xf32> to vector<8x32xf32>
    %362 = vector.shape_cast %359 : vector<8x32xf32> to vector<1x8x32xf32>
    tpu.vector_store %arg18[%c0_174, %c0_175, %c0_176], %362 {strides = array<i32>} : memref<1x8x32xf32, #tpu.memory_space<vmem>>, vector<1x8x32xf32>,
    return
  }
  func.func @transform_0(%arg0: i32) -> (i32, i32, i32) {
    %c0_i32 = arith.constant 0 : i32
    %c0_i32_0 = arith.constant 0 : i32
    %c0_i32_1 = arith.constant 0 : i32
    return %arg0, %c0_i32, %c0_i32_0 : i32, i32, i32
  }
  func.func @transform_1(%arg0: i32) -> (i32, i32, i32) {
    %c0_i32 = arith.constant 0 : i32
    %c0_i32_0 = arith.constant 0 : i32
    %c0_i32_1 = arith.constant 0 : i32
    %c0_i32_2 = arith.constant 0 : i32
    return %c0_i32, %c0_i32_0, %c0_i32_1 : i32, i32, i32
  }
  func.func @transform_2(%arg0: i32) -> (i32, i32, i32) {
    %c0_i32 = arith.constant 0 : i32
    %c0_i32_0 = arith.constant 0 : i32
    %c0_i32_1 = arith.constant 0 : i32
    %c0_i32_2 = arith.constant 0 : i32
    return %c0_i32, %c0_i32_0, %c0_i32_1 : i32, i32, i32
  }
  func.func @transform_3(%arg0: i32) -> (i32, i32, i32) {
    %c0_i32 = arith.constant 0 : i32
    %c0_i32_0 = arith.constant 0 : i32
    %c0_i32_1 = arith.constant 0 : i32
    %c0_i32_2 = arith.constant 0 : i32
    return %c0_i32, %c0_i32_0, %c0_i32_1 : i32, i32, i32
  }
  func.func @transform_4(%arg0: i32) -> (i32, i32, i32) {
    %c0_i32 = arith.constant 0 : i32
    %c0_i32_0 = arith.constant 0 : i32
    %c0_i32_1 = arith.constant 0 : i32
    %c0_i32_2 = arith.constant 0 : i32
    return %c0_i32, %c0_i32_0, %c0_i32_1 : i32, i32, i32
  }
  func.func @transform_5(%arg0: i32) -> (i32, i32, i32) {
    %c0_i32 = arith.constant 0 : i32
    %c0_i32_0 = arith.constant 0 : i32
    %c0_i32_1 = arith.constant 0 : i32
    %c0_i32_2 = arith.constant 0 : i32
    return %c0_i32, %c0_i32_0, %c0_i32_1 : i32, i32, i32
  }
  func.func @transform_6(%arg0: i32) -> (i32, i32, i32) {
    %c0_i32 = arith.constant 0 : i32
    %c0_i32_0 = arith.constant 0 : i32
    %c0_i32_1 = arith.constant 0 : i32
    %c0_i32_2 = arith.constant 0 : i32
    return %c0_i32, %c0_i32_0, %c0_i32_1 : i32, i32, i32
  }
  func.func @transform_7(%arg0: i32) -> (i32, i32, i32) {
    %c0_i32 = arith.constant 0 : i32
    %c0_i32_0 = arith.constant 0 : i32
    %c0_i32_1 = arith.constant 0 : i32
    %c0_i32_2 = arith.constant 0 : i32
    return %c0_i32, %c0_i32_0, %c0_i32_1 : i32, i32, i32
  }
  func.func @transform_8(%arg0: i32) -> (i32, i32, i32) {
    %c0_i32 = arith.constant 0 : i32
    %c0_i32_0 = arith.constant 0 : i32
    %c0_i32_1 = arith.constant 0 : i32
    %c0_i32_2 = arith.constant 0 : i32
    return %c0_i32, %c0_i32_0, %c0_i32_1 : i32, i32, i32
  }
  func.func @transform_9(%arg0: i32) -> (i32, i32, i32) {
    %c0_i32 = arith.constant 0 : i32
    %c0_i32_0 = arith.constant 0 : i32
    %c0_i32_1 = arith.constant 0 : i32
    %c0_i32_2 = arith.constant 0 : i32
    return %c0_i32, %c0_i32_0, %c0_i32_1 : i32, i32, i32
  }
  func.func @transform_10(%arg0: i32) -> (i32, i32, i32) {
    %c0_i32 = arith.constant 0 : i32
    %c0_i32_0 = arith.constant 0 : i32
    %c0_i32_1 = arith.constant 0 : i32
    %c0_i32_2 = arith.constant 0 : i32
    return %c0_i32, %c0_i32_0, %c0_i32_1 : i32, i32, i32
  }
  func.func @transform_11(%arg0: i32) -> (i32, i32, i32) {
    %c0_i32 = arith.constant 0 : i32
    %c0_i32_0 = arith.constant 0 : i32
    %c0_i32_1 = arith.constant 0 : i32
    %c0_i32_2 = arith.constant 0 : i32
    return %c0_i32, %c0_i32_0, %c0_i32_1 : i32, i32, i32
  }
  func.func @transform_12(%arg0: i32) -> (i32, i32, i32) {
    %c0_i32 = arith.constant 0 : i32
    %c0_i32_0 = arith.constant 0 : i32
    %c0_i32_1 = arith.constant 0 : i32
    %c0_i32_2 = arith.constant 0 : i32
    return %c0_i32, %c0_i32_0, %c0_i32_1 : i32, i32, i32
  }
  func.func @transform_13(%arg0: i32) -> (i32, i32, i32) {
    %c0_i32 = arith.constant 0 : i32
    %c0_i32_0 = arith.constant 0 : i32
    %c0_i32_1 = arith.constant 0 : i32
    %c0_i32_2 = arith.constant 0 : i32
    return %c0_i32, %c0_i32_0, %c0_i32_1 : i32, i32, i32
  }
  func.func @transform_14(%arg0: i32) -> (i32, i32, i32) {
    %c0_i32 = arith.constant 0 : i32
    %c0_i32_0 = arith.constant 0 : i32
    %c0_i32_1 = arith.constant 0 : i32
    %c0_i32_2 = arith.constant 0 : i32
    return %c0_i32, %c0_i32_0, %c0_i32_1 : i32, i32, i32
  }
  func.func @transform_15(%arg0: i32) -> (i32, i32, i32) {
    %c0_i32 = arith.constant 0 : i32
    %c0_i32_0 = arith.constant 0 : i32
    %c0_i32_1 = arith.constant 0 : i32
    %c0_i32_2 = arith.constant 0 : i32
    return %c0_i32, %c0_i32_0, %c0_i32_1 : i32, i32, i32
  }
  func.func @transform_16(%arg0: i32) -> (i32, i32, i32) {
    %c0_i32 = arith.constant 0 : i32
    %c0_i32_0 = arith.constant 0 : i32
    %c0_i32_1 = arith.constant 0 : i32
    %c0_i32_2 = arith.constant 0 : i32
    return %c0_i32, %c0_i32_0, %c0_i32_1 : i32, i32, i32
  }
  func.func @transform_17(%arg0: i32) -> (i32, i32, i32) {
    %c0_i32 = arith.constant 0 : i32
    %c0_i32_0 = arith.constant 0 : i32
    %c0_i32_1 = arith.constant 0 : i32
    return %arg0, %c0_i32, %c0_i32_0 : i32, i32, i32
  }
}

module attributes {stable_mosaic.version = 11 : i64} {
  func.func @_encoder_kernel(%arg0: i32, %arg1: memref<1x8x32xf32, #tpu.memory_space<vmem>>, %arg2: memref<2x32x32xf32, #tpu.memory_space<vmem>>, %arg3: memref<2x1x32xf32, #tpu.memory_space<vmem>>, %arg4: memref<2x32x32xf32, #tpu.memory_space<vmem>>, %arg5: memref<2x1x32xf32, #tpu.memory_space<vmem>>, %arg6: memref<2x32x32xf32, #tpu.memory_space<vmem>>, %arg7: memref<2x1x32xf32, #tpu.memory_space<vmem>>, %arg8: memref<2x32x32xf32, #tpu.memory_space<vmem>>, %arg9: memref<2x1x32xf32, #tpu.memory_space<vmem>>, %arg10: memref<2x1x32xf32, #tpu.memory_space<vmem>>, %arg11: memref<2x1x32xf32, #tpu.memory_space<vmem>>, %arg12: memref<2x32x64xf32, #tpu.memory_space<vmem>>, %arg13: memref<2x1x64xf32, #tpu.memory_space<vmem>>, %arg14: memref<2x64x32xf32, #tpu.memory_space<vmem>>, %arg15: memref<2x1x32xf32, #tpu.memory_space<vmem>>, %arg16: memref<2x1x32xf32, #tpu.memory_space<vmem>>, %arg17: memref<2x1x32xf32, #tpu.memory_space<vmem>>, %arg18: memref<1x8x32xf32, #tpu.memory_space<vmem>>) attributes {dimension_semantics = [#tpu.dimension_semantics<parallel>], iteration_bounds = array<i64: 2>, scalar_prefetch = 0 : i64, scratch_operands = 0 : i64, tpu.core_type = #tpu.core_type<tc>, window_params = [{transform_indices = @transform_0, window_bounds = array<i64: 1, 8, 32>}, {pipeline_mode = #tpu.pipeline_mode<synchronous>, transform_indices = @transform_1, window_bounds = array<i64: 2, 32, 32>}, {pipeline_mode = #tpu.pipeline_mode<synchronous>, transform_indices = @transform_2, window_bounds = array<i64: 2, 1, 32>}, {pipeline_mode = #tpu.pipeline_mode<synchronous>, transform_indices = @transform_3, window_bounds = array<i64: 2, 32, 32>}, {pipeline_mode = #tpu.pipeline_mode<synchronous>, transform_indices = @transform_4, window_bounds = array<i64: 2, 1, 32>}, {pipeline_mode = #tpu.pipeline_mode<synchronous>, transform_indices = @transform_5, window_bounds = array<i64: 2, 32, 32>}, {pipeline_mode = #tpu.pipeline_mode<synchronous>, transform_indices = @transform_6, window_bounds = array<i64: 2, 1, 32>}, {pipeline_mode = #tpu.pipeline_mode<synchronous>, transform_indices = @transform_7, window_bounds = array<i64: 2, 32, 32>}, {pipeline_mode = #tpu.pipeline_mode<synchronous>, transform_indices = @transform_8, window_bounds = array<i64: 2, 1, 32>}, {pipeline_mode = #tpu.pipeline_mode<synchronous>, transform_indices = @transform_9, window_bounds = array<i64: 2, 1, 32>}, {pipeline_mode = #tpu.pipeline_mode<synchronous>, transform_indices = @transform_10, window_bounds = array<i64: 2, 1, 32>}, {pipeline_mode = #tpu.pipeline_mode<synchronous>, transform_indices = @transform_11, window_bounds = array<i64: 2, 32, 64>}, {pipeline_mode = #tpu.pipeline_mode<synchronous>, transform_indices = @transform_12, window_bounds = array<i64: 2, 1, 64>}, {pipeline_mode = #tpu.pipeline_mode<synchronous>, transform_indices = @transform_13, window_bounds = array<i64: 2, 64, 32>}, {pipeline_mode = #tpu.pipeline_mode<synchronous>, transform_indices = @transform_14, window_bounds = array<i64: 2, 1, 32>}, {pipeline_mode = #tpu.pipeline_mode<synchronous>, transform_indices = @transform_15, window_bounds = array<i64: 2, 1, 32>}, {pipeline_mode = #tpu.pipeline_mode<synchronous>, transform_indices = @transform_16, window_bounds = array<i64: 2, 1, 32>}, {transform_indices = @transform_17, window_bounds = array<i64: 1, 8, 32>}]} {
    %c0 = arith.constant 0 : index
    %c0_0 = arith.constant 0 : index
    %c0_1 = arith.constant 0 : index
    %0 = vector.load %arg1[%c0, %c0_0, %c0_1] : memref<1x8x32xf32, #tpu.memory_space<vmem>>, vector<1x8x32xf32>
    %1 = vector.shape_cast %0 : vector<1x8x32xf32> to vector<8x32xf32>
    %c0_2 = arith.constant 0 : index
    %c0_3 = arith.constant 0 : index
    %c0_4 = arith.constant 0 : index
    %2 = vector.load %arg2[%c0_2, %c0_3, %c0_4] : memref<2x32x32xf32, #tpu.memory_space<vmem>>, vector<1x32x32xf32>
    %3 = vector.shape_cast %2 : vector<1x32x32xf32> to vector<32x32xf32>
    %c0_5 = arith.constant 0 : index
    %c0_6 = arith.constant 0 : index
    %c0_7 = arith.constant 0 : index
    %4 = vector.load %arg3[%c0_5, %c0_6, %c0_7] : memref<2x1x32xf32, #tpu.memory_space<vmem>>, vector<1x1x32xf32>
    %5 = vector.shape_cast %4 : vector<1x1x32xf32> to vector<1x32xf32>
    %c0_8 = arith.constant 0 : index
    %c0_9 = arith.constant 0 : index
    %c0_10 = arith.constant 0 : index
    %6 = vector.load %arg4[%c0_8, %c0_9, %c0_10] : memref<2x32x32xf32, #tpu.memory_space<vmem>>, vector<1x32x32xf32>
    %7 = vector.shape_cast %6 : vector<1x32x32xf32> to vector<32x32xf32>
    %c0_11 = arith.constant 0 : index
    %c0_12 = arith.constant 0 : index
    %c0_13 = arith.constant 0 : index
    %8 = vector.load %arg5[%c0_11, %c0_12, %c0_13] : memref<2x1x32xf32, #tpu.memory_space<vmem>>, vector<1x1x32xf32>
    %9 = vector.shape_cast %8 : vector<1x1x32xf32> to vector<1x32xf32>
    %c0_14 = arith.constant 0 : index
    %c0_15 = arith.constant 0 : index
    %c0_16 = arith.constant 0 : index
    %10 = vector.load %arg6[%c0_14, %c0_15, %c0_16] : memref<2x32x32xf32, #tpu.memory_space<vmem>>, vector<1x32x32xf32>
    %11 = vector.shape_cast %10 : vector<1x32x32xf32> to vector<32x32xf32>
    %c0_17 = arith.constant 0 : index
    %c0_18 = arith.constant 0 : index
    %c0_19 = arith.constant 0 : index
    %12 = vector.load %arg7[%c0_17, %c0_18, %c0_19] : memref<2x1x32xf32, #tpu.memory_space<vmem>>, vector<1x1x32xf32>
    %13 = vector.shape_cast %12 : vector<1x1x32xf32> to vector<1x32xf32>
    %c0_20 = arith.constant 0 : index
    %c0_21 = arith.constant 0 : index
    %c0_22 = arith.constant 0 : index
    %14 = vector.load %arg8[%c0_20, %c0_21, %c0_22] : memref<2x32x32xf32, #tpu.memory_space<vmem>>, vector<1x32x32xf32>
    %15 = vector.shape_cast %14 : vector<1x32x32xf32> to vector<32x32xf32>
    %c0_23 = arith.constant 0 : index
    %c0_24 = arith.constant 0 : index
    %c0_25 = arith.constant 0 : index
    %16 = vector.load %arg9[%c0_23, %c0_24, %c0_25] : memref<2x1x32xf32, #tpu.memory_space<vmem>>, vector<1x1x32xf32>
    %17 = vector.shape_cast %16 : vector<1x1x32xf32> to vector<1x32xf32>
    %c0_26 = arith.constant 0 : index
    %c0_27 = arith.constant 0 : index
    %c0_28 = arith.constant 0 : index
    %18 = vector.load %arg10[%c0_26, %c0_27, %c0_28] : memref<2x1x32xf32, #tpu.memory_space<vmem>>, vector<1x1x32xf32>
    %19 = vector.shape_cast %18 : vector<1x1x32xf32> to vector<1x32xf32>
    %c0_29 = arith.constant 0 : index
    %c0_30 = arith.constant 0 : index
    %c0_31 = arith.constant 0 : index
    %20 = vector.load %arg11[%c0_29, %c0_30, %c0_31] : memref<2x1x32xf32, #tpu.memory_space<vmem>>, vector<1x1x32xf32>
    %21 = vector.shape_cast %20 : vector<1x1x32xf32> to vector<1x32xf32>
    %c0_32 = arith.constant 0 : index
    %c0_33 = arith.constant 0 : index
    %c0_34 = arith.constant 0 : index
    %22 = vector.load %arg12[%c0_32, %c0_33, %c0_34] : memref<2x32x64xf32, #tpu.memory_space<vmem>>, vector<1x32x64xf32>
    %23 = vector.shape_cast %22 : vector<1x32x64xf32> to vector<32x64xf32>
    %c0_35 = arith.constant 0 : index
    %c0_36 = arith.constant 0 : index
    %c0_37 = arith.constant 0 : index
    %24 = vector.load %arg13[%c0_35, %c0_36, %c0_37] : memref<2x1x64xf32, #tpu.memory_space<vmem>>, vector<1x1x64xf32>
    %25 = vector.shape_cast %24 : vector<1x1x64xf32> to vector<1x64xf32>
    %c0_38 = arith.constant 0 : index
    %c0_39 = arith.constant 0 : index
    %c0_40 = arith.constant 0 : index
    %26 = vector.load %arg14[%c0_38, %c0_39, %c0_40] : memref<2x64x32xf32, #tpu.memory_space<vmem>>, vector<1x64x32xf32>
    %27 = vector.shape_cast %26 : vector<1x64x32xf32> to vector<64x32xf32>
    %c0_41 = arith.constant 0 : index
    %c0_42 = arith.constant 0 : index
    %c0_43 = arith.constant 0 : index
    %28 = vector.load %arg15[%c0_41, %c0_42, %c0_43] : memref<2x1x32xf32, #tpu.memory_space<vmem>>, vector<1x1x32xf32>
    %29 = vector.shape_cast %28 : vector<1x1x32xf32> to vector<1x32xf32>
    %c0_44 = arith.constant 0 : index
    %c0_45 = arith.constant 0 : index
    %c0_46 = arith.constant 0 : index
    %30 = vector.load %arg16[%c0_44, %c0_45, %c0_46] : memref<2x1x32xf32, #tpu.memory_space<vmem>>, vector<1x1x32xf32>
    %31 = vector.shape_cast %30 : vector<1x1x32xf32> to vector<1x32xf32>
    %c0_47 = arith.constant 0 : index
    %c0_48 = arith.constant 0 : index
    %c0_49 = arith.constant 0 : index
    %32 = vector.load %arg17[%c0_47, %c0_48, %c0_49] : memref<2x1x32xf32, #tpu.memory_space<vmem>>, vector<1x1x32xf32>
    %33 = vector.shape_cast %32 : vector<1x1x32xf32> to vector<1x32xf32>
    %cst = arith.constant dense<0.000000e+00> : vector<8x32xf32>
    %34 = tpu.matmul %1, %3, %cst {dimension_numbers = #tpu.dot_dimension_numbers<[1], [0], [0], [1], [0, 0, 1, 1], [], []>} : vector<8x32xf32>, vector<32x32xf32>, vector<8x32xf32> -> vector<8x32xf32>
    %35 = vector.broadcast %5 : vector<1x32xf32> to vector<8x32xf32>
    %36 = arith.addf %34, %35 : vector<8x32xf32>
    %cst_50 = arith.constant dense<0.000000e+00> : vector<8x32xf32>
    %37 = tpu.matmul %1, %7, %cst_50 {dimension_numbers = #tpu.dot_dimension_numbers<[1], [0], [0], [1], [0, 0, 1, 1], [], []>} : vector<8x32xf32>, vector<32x32xf32>, vector<8x32xf32> -> vector<8x32xf32>
    %38 = vector.broadcast %9 : vector<1x32xf32> to vector<8x32xf32>
    %39 = arith.addf %37, %38 : vector<8x32xf32>
    %cst_51 = arith.constant dense<0.000000e+00> : vector<8x32xf32>
    %40 = tpu.matmul %1, %11, %cst_51 {dimension_numbers = #tpu.dot_dimension_numbers<[1], [0], [0], [1], [0, 0, 1, 1], [], []>} : vector<8x32xf32>, vector<32x32xf32>, vector<8x32xf32> -> vector<8x32xf32>
    %41 = vector.broadcast %13 : vector<1x32xf32> to vector<8x32xf32>
    %42 = arith.addf %40, %41 : vector<8x32xf32>
    %43 = vector.extract_strided_slice %36 {offsets = [0, 0], sizes = [8, 8], strides = [1, 1]} : vector<8x32xf32> to vector<8x8xf32>
    %44 = vector.extract_strided_slice %39 {offsets = [0, 0], sizes = [8, 8], strides = [1, 1]} : vector<8x32xf32> to vector<8x8xf32>
    %45 = vector.extract_strided_slice %42 {offsets = [0, 0], sizes = [8, 8], strides = [1, 1]} : vector<8x32xf32> to vector<8x8xf32>
    %cst_52 = arith.constant dense<0.000000e+00> : vector<8x8xf32>
    %46 = tpu.matmul %43, %44, %cst_52 {dimension_numbers = #tpu.dot_dimension_numbers<[1], [1], [0], [0], [0, 0, 1, 0], [], []>} : vector<8x8xf32>, vector<8x8xf32>, vector<8x8xf32> -> vector<8x8xf32>
    %cst_53 = arith.constant dense<0xFF800000> : vector<8xf32>
    %47 = vector.multi_reduction <maximumf>, %46, %cst_53 [1] : vector<8x8xf32> to vector<8xf32>
    %48 = vector.shape_cast %47 : vector<8xf32> to vector<8x1xf32>
    %49 = vector.broadcast %48 : vector<8x1xf32> to vector<8x8xf32>
    %50 = arith.subf %46, %49 : vector<8x8xf32>
    %51 = math.exp %50 : vector<8x8xf32>
    %cst_54 = arith.constant dense<0.000000e+00> : vector<8xf32>
    %52 = vector.multi_reduction <add>, %51, %cst_54 [1] : vector<8x8xf32> to vector<8xf32>
    %53 = vector.shape_cast %52 : vector<8xf32> to vector<8x1xf32>
    %54 = tpu.reciprocal %53 {approx = true} : vector<8x1xf32> -> vector<8x1xf32>
    %55 = vector.broadcast %54 : vector<8x1xf32> to vector<8x8xf32>
    %56 = arith.mulf %51, %55 : vector<8x8xf32>
    %cst_55 = arith.constant dense<0.000000e+00> : vector<8x8xf32>
    %57 = tpu.matmul %56, %45, %cst_55 {dimension_numbers = #tpu.dot_dimension_numbers<[1], [0], [0], [1], [0, 0, 1, 1], [], []>} : vector<8x8xf32>, vector<8x8xf32>, vector<8x8xf32> -> vector<8x8xf32>
    %58 = vector.extract_strided_slice %36 {offsets = [0, 8], sizes = [8, 8], strides = [1, 1]} : vector<8x32xf32> to vector<8x8xf32>
    %59 = vector.extract_strided_slice %39 {offsets = [0, 8], sizes = [8, 8], strides = [1, 1]} : vector<8x32xf32> to vector<8x8xf32>
    %60 = vector.extract_strided_slice %42 {offsets = [0, 8], sizes = [8, 8], strides = [1, 1]} : vector<8x32xf32> to vector<8x8xf32>
    %cst_56 = arith.constant dense<0.000000e+00> : vector<8x8xf32>
    %61 = tpu.matmul %58, %59, %cst_56 {dimension_numbers = #tpu.dot_dimension_numbers<[1], [1], [0], [0], [0, 0, 1, 0], [], []>} : vector<8x8xf32>, vector<8x8xf32>, vector<8x8xf32> -> vector<8x8xf32>
    %cst_57 = arith.constant dense<0xFF800000> : vector<8xf32>
    %62 = vector.multi_reduction <maximumf>, %61, %cst_57 [1] : vector<8x8xf32> to vector<8xf32>
    %63 = vector.shape_cast %62 : vector<8xf32> to vector<8x1xf32>
    %64 = vector.broadcast %63 : vector<8x1xf32> to vector<8x8xf32>
    %65 = arith.subf %61, %64 : vector<8x8xf32>
    %66 = math.exp %65 : vector<8x8xf32>
    %cst_58 = arith.constant dense<0.000000e+00> : vector<8xf32>
    %67 = vector.multi_reduction <add>, %66, %cst_58 [1] : vector<8x8xf32> to vector<8xf32>
    %68 = vector.shape_cast %67 : vector<8xf32> to vector<8x1xf32>
    %69 = tpu.reciprocal %68 {approx = true} : vector<8x1xf32> -> vector<8x1xf32>
    %70 = vector.broadcast %69 : vector<8x1xf32> to vector<8x8xf32>
    %71 = arith.mulf %66, %70 : vector<8x8xf32>
    %cst_59 = arith.constant dense<0.000000e+00> : vector<8x8xf32>
    %72 = tpu.matmul %71, %60, %cst_59 {dimension_numbers = #tpu.dot_dimension_numbers<[1], [0], [0], [1], [0, 0, 1, 1], [], []>} : vector<8x8xf32>, vector<8x8xf32>, vector<8x8xf32> -> vector<8x8xf32>
    %73 = vector.extract_strided_slice %36 {offsets = [0, 16], sizes = [8, 8], strides = [1, 1]} : vector<8x32xf32> to vector<8x8xf32>
    %74 = vector.extract_strided_slice %39 {offsets = [0, 16], sizes = [8, 8], strides = [1, 1]} : vector<8x32xf32> to vector<8x8xf32>
    %75 = vector.extract_strided_slice %42 {offsets = [0, 16], sizes = [8, 8], strides = [1, 1]} : vector<8x32xf32> to vector<8x8xf32>
    %cst_60 = arith.constant dense<0.000000e+00> : vector<8x8xf32>
    %76 = tpu.matmul %73, %74, %cst_60 {dimension_numbers = #tpu.dot_dimension_numbers<[1], [1], [0], [0], [0, 0, 1, 0], [], []>} : vector<8x8xf32>, vector<8x8xf32>, vector<8x8xf32> -> vector<8x8xf32>
    %cst_61 = arith.constant dense<0xFF800000> : vector<8xf32>
    %77 = vector.multi_reduction <maximumf>, %76, %cst_61 [1] : vector<8x8xf32> to vector<8xf32>
    %78 = vector.shape_cast %77 : vector<8xf32> to vector<8x1xf32>
    %79 = vector.broadcast %78 : vector<8x1xf32> to vector<8x8xf32>
    %80 = arith.subf %76, %79 : vector<8x8xf32>
    %81 = math.exp %80 : vector<8x8xf32>
    %cst_62 = arith.constant dense<0.000000e+00> : vector<8xf32>
    %82 = vector.multi_reduction <add>, %81, %cst_62 [1] : vector<8x8xf32> to vector<8xf32>
    %83 = vector.shape_cast %82 : vector<8xf32> to vector<8x1xf32>
    %84 = tpu.reciprocal %83 {approx = true} : vector<8x1xf32> -> vector<8x1xf32>
    %85 = vector.broadcast %84 : vector<8x1xf32> to vector<8x8xf32>
    %86 = arith.mulf %81, %85 : vector<8x8xf32>
    %cst_63 = arith.constant dense<0.000000e+00> : vector<8x8xf32>
    %87 = tpu.matmul %86, %75, %cst_63 {dimension_numbers = #tpu.dot_dimension_numbers<[1], [0], [0], [1], [0, 0, 1, 1], [], []>} : vector<8x8xf32>, vector<8x8xf32>, vector<8x8xf32> -> vector<8x8xf32>
    %88 = vector.extract_strided_slice %36 {offsets = [0, 24], sizes = [8, 8], strides = [1, 1]} : vector<8x32xf32> to vector<8x8xf32>
    %89 = vector.extract_strided_slice %39 {offsets = [0, 24], sizes = [8, 8], strides = [1, 1]} : vector<8x32xf32> to vector<8x8xf32>
    %90 = vector.extract_strided_slice %42 {offsets = [0, 24], sizes = [8, 8], strides = [1, 1]} : vector<8x32xf32> to vector<8x8xf32>
    %cst_64 = arith.constant dense<0.000000e+00> : vector<8x8xf32>
    %91 = tpu.matmul %88, %89, %cst_64 {dimension_numbers = #tpu.dot_dimension_numbers<[1], [1], [0], [0], [0, 0, 1, 0], [], []>} : vector<8x8xf32>, vector<8x8xf32>, vector<8x8xf32> -> vector<8x8xf32>
    %cst_65 = arith.constant dense<0xFF800000> : vector<8xf32>
    %92 = vector.multi_reduction <maximumf>, %91, %cst_65 [1] : vector<8x8xf32> to vector<8xf32>
    %93 = vector.shape_cast %92 : vector<8xf32> to vector<8x1xf32>
    %94 = vector.broadcast %93 : vector<8x1xf32> to vector<8x8xf32>
    %95 = arith.subf %91, %94 : vector<8x8xf32>
    %96 = math.exp %95 : vector<8x8xf32>
    %cst_66 = arith.constant dense<0.000000e+00> : vector<8xf32>
    %97 = vector.multi_reduction <add>, %96, %cst_66 [1] : vector<8x8xf32> to vector<8xf32>
    %98 = vector.shape_cast %97 : vector<8xf32> to vector<8x1xf32>
    %99 = tpu.reciprocal %98 {approx = true} : vector<8x1xf32> -> vector<8x1xf32>
    %100 = vector.broadcast %99 : vector<8x1xf32> to vector<8x8xf32>
    %101 = arith.mulf %96, %100 : vector<8x8xf32>
    %cst_67 = arith.constant dense<0.000000e+00> : vector<8x8xf32>
    %102 = tpu.matmul %101, %90, %cst_67 {dimension_numbers = #tpu.dot_dimension_numbers<[1], [0], [0], [1], [0, 0, 1, 1], [], []>} : vector<8x8xf32>, vector<8x8xf32>, vector<8x8xf32> -> vector<8x8xf32>
    %103 = vector.extract_strided_slice %15 {offsets = [0, 0], sizes = [8, 32], strides = [1, 1]} : vector<32x32xf32> to vector<8x32xf32>
    %cst_68 = arith.constant dense<0.000000e+00> : vector<8x32xf32>
    %104 = tpu.matmul %57, %103, %cst_68 {dimension_numbers = #tpu.dot_dimension_numbers<[1], [0], [0], [1], [0, 0, 1, 1], [], []>} : vector<8x8xf32>, vector<8x32xf32>, vector<8x32xf32> -> vector<8x32xf32>
    %105 = vector.extract_strided_slice %15 {offsets = [8, 0], sizes = [8, 32], strides = [1, 1]} : vector<32x32xf32> to vector<8x32xf32>
    %cst_69 = arith.constant dense<0.000000e+00> : vector<8x32xf32>
    %106 = tpu.matmul %72, %105, %cst_69 {dimension_numbers = #tpu.dot_dimension_numbers<[1], [0], [0], [1], [0, 0, 1, 1], [], []>} : vector<8x8xf32>, vector<8x32xf32>, vector<8x32xf32> -> vector<8x32xf32>
    %107 = arith.addf %104, %106 : vector<8x32xf32>
    %108 = vector.extract_strided_slice %15 {offsets = [16, 0], sizes = [8, 32], strides = [1, 1]} : vector<32x32xf32> to vector<8x32xf32>
    %cst_70 = arith.constant dense<0.000000e+00> : vector<8x32xf32>
    %109 = tpu.matmul %87, %108, %cst_70 {dimension_numbers = #tpu.dot_dimension_numbers<[1], [0], [0], [1], [0, 0, 1, 1], [], []>} : vector<8x8xf32>, vector<8x32xf32>, vector<8x32xf32> -> vector<8x32xf32>
    %110 = arith.addf %107, %109 : vector<8x32xf32>
    %111 = vector.extract_strided_slice %15 {offsets = [24, 0], sizes = [8, 32], strides = [1, 1]} : vector<32x32xf32> to vector<8x32xf32>
    %cst_71 = arith.constant dense<0.000000e+00> : vector<8x32xf32>
    %112 = tpu.matmul %102, %111, %cst_71 {dimension_numbers = #tpu.dot_dimension_numbers<[1], [0], [0], [1], [0, 0, 1, 1], [], []>} : vector<8x8xf32>, vector<8x32xf32>, vector<8x32xf32> -> vector<8x32xf32>
    %113 = arith.addf %110, %112 : vector<8x32xf32>
    %114 = vector.broadcast %17 : vector<1x32xf32> to vector<8x32xf32>
    %115 = arith.addf %113, %114 : vector<8x32xf32>
    %116 = arith.addf %1, %115 : vector<8x32xf32>
    %cst_72 = arith.constant dense<0.000000e+00> : vector<8xf32>
    %117 = vector.multi_reduction <add>, %116, %cst_72 [1] : vector<8x32xf32> to vector<8xf32>
    %118 = vector.shape_cast %117 : vector<8xf32> to vector<8x1xf32>
    %cst_73 = arith.constant 3.200000e+01 : f32
    %119 = vector.broadcast %cst_73 : f32 to vector<8x1xf32>
    %120 = arith.divf %118, %119 : vector<8x1xf32>
    %121 = vector.broadcast %120 : vector<8x1xf32> to vector<8x32xf32>
    %122 = arith.subf %116, %121 : vector<8x32xf32>
    %123 = arith.mulf %122, %122 : vector<8x32xf32>
    %cst_74 = arith.constant dense<0.000000e+00> : vector<8xf32>
    %124 = vector.multi_reduction <add>, %123, %cst_74 [1] : vector<8x32xf32> to vector<8xf32>
    %125 = vector.shape_cast %124 : vector<8xf32> to vector<8x1xf32>
    %cst_75 = arith.constant 3.200000e+01 : f32
    %126 = vector.broadcast %cst_75 : f32 to vector<8x1xf32>
    %127 = arith.divf %125, %126 : vector<8x1xf32>
    %128 = vector.broadcast %120 : vector<8x1xf32> to vector<8x32xf32>
    %129 = arith.subf %116, %128 : vector<8x32xf32>
    %cst_76 = arith.constant 9.99999974E-6 : f32
    %130 = vector.broadcast %cst_76 : f32 to vector<8x1xf32>
    %131 = arith.addf %127, %130 : vector<8x1xf32>
    %132 = math.rsqrt %131 : vector<8x1xf32>
    %133 = vector.broadcast %132 : vector<8x1xf32> to vector<8x32xf32>
    %134 = arith.mulf %129, %133 : vector<8x32xf32>
    %135 = vector.broadcast %19 : vector<1x32xf32> to vector<8x32xf32>
    %136 = arith.mulf %134, %135 : vector<8x32xf32>
    %137 = vector.broadcast %21 : vector<1x32xf32> to vector<8x32xf32>
    %138 = arith.addf %136, %137 : vector<8x32xf32>
    %cst_77 = arith.constant dense<0.000000e+00> : vector<8x64xf32>
    %139 = tpu.matmul %138, %23, %cst_77 {dimension_numbers = #tpu.dot_dimension_numbers<[1], [0], [0], [1], [0, 0, 1, 1], [], []>} : vector<8x32xf32>, vector<32x64xf32>, vector<8x64xf32> -> vector<8x64xf32>
    %140 = vector.broadcast %25 : vector<1x64xf32> to vector<8x64xf32>
    %141 = arith.addf %139, %140 : vector<8x64xf32>
    %cst_78 = arith.constant 5.000000e-01 : f32
    %142 = vector.broadcast %cst_78 : f32 to vector<8x64xf32>
    %143 = arith.mulf %142, %141 : vector<8x64xf32>
    %144 = arith.mulf %141, %141 : vector<8x64xf32>
    %145 = arith.mulf %144, %141 : vector<8x64xf32>
    %cst_79 = arith.constant 4.471500e-02 : f32
    %146 = vector.broadcast %cst_79 : f32 to vector<8x64xf32>
    %147 = arith.mulf %146, %145 : vector<8x64xf32>
    %148 = arith.addf %141, %147 : vector<8x64xf32>
    %cst_80 = arith.constant 0.797884583 : f32
    %149 = vector.broadcast %cst_80 : f32 to vector<8x64xf32>
    %150 = arith.mulf %149, %148 : vector<8x64xf32>
    %151 = math.tanh %150 : vector<8x64xf32>
    %cst_81 = arith.constant 1.000000e+00 : f32
    %152 = vector.broadcast %cst_81 : f32 to vector<8x64xf32>
    %153 = arith.addf %152, %151 : vector<8x64xf32>
    %154 = arith.mulf %143, %153 : vector<8x64xf32>
    %cst_82 = arith.constant dense<0.000000e+00> : vector<8x32xf32>
    %155 = tpu.matmul %154, %27, %cst_82 {dimension_numbers = #tpu.dot_dimension_numbers<[1], [0], [0], [1], [0, 0, 1, 1], [], []>} : vector<8x64xf32>, vector<64x32xf32>, vector<8x32xf32> -> vector<8x32xf32>
    %156 = vector.broadcast %29 : vector<1x32xf32> to vector<8x32xf32>
    %157 = arith.addf %155, %156 : vector<8x32xf32>
    %158 = arith.addf %138, %157 : vector<8x32xf32>
    %cst_83 = arith.constant dense<0.000000e+00> : vector<8xf32>
    %159 = vector.multi_reduction <add>, %158, %cst_83 [1] : vector<8x32xf32> to vector<8xf32>
    %160 = vector.shape_cast %159 : vector<8xf32> to vector<8x1xf32>
    %cst_84 = arith.constant 3.200000e+01 : f32
    %161 = vector.broadcast %cst_84 : f32 to vector<8x1xf32>
    %162 = arith.divf %160, %161 : vector<8x1xf32>
    %163 = vector.broadcast %162 : vector<8x1xf32> to vector<8x32xf32>
    %164 = arith.subf %158, %163 : vector<8x32xf32>
    %165 = arith.mulf %164, %164 : vector<8x32xf32>
    %cst_85 = arith.constant dense<0.000000e+00> : vector<8xf32>
    %166 = vector.multi_reduction <add>, %165, %cst_85 [1] : vector<8x32xf32> to vector<8xf32>
    %167 = vector.shape_cast %166 : vector<8xf32> to vector<8x1xf32>
    %cst_86 = arith.constant 3.200000e+01 : f32
    %168 = vector.broadcast %cst_86 : f32 to vector<8x1xf32>
    %169 = arith.divf %167, %168 : vector<8x1xf32>
    %170 = vector.broadcast %162 : vector<8x1xf32> to vector<8x32xf32>
    %171 = arith.subf %158, %170 : vector<8x32xf32>
    %cst_87 = arith.constant 9.99999974E-6 : f32
    %172 = vector.broadcast %cst_87 : f32 to vector<8x1xf32>
    %173 = arith.addf %169, %172 : vector<8x1xf32>
    %174 = math.rsqrt %173 : vector<8x1xf32>
    %175 = vector.broadcast %174 : vector<8x1xf32> to vector<8x32xf32>
    %176 = arith.mulf %171, %175 : vector<8x32xf32>
    %177 = vector.broadcast %31 : vector<1x32xf32> to vector<8x32xf32>
    %178 = arith.mulf %176, %177 : vector<8x32xf32>
    %179 = vector.broadcast %33 : vector<1x32xf32> to vector<8x32xf32>
    %180 = arith.addf %178, %179 : vector<8x32xf32>
    %c1 = arith.constant 1 : index
    %c0_88 = arith.constant 0 : index
    %c0_89 = arith.constant 0 : index
    %181 = vector.load %arg2[%c1, %c0_88, %c0_89] : memref<2x32x32xf32, #tpu.memory_space<vmem>>, vector<1x32x32xf32>
    %182 = vector.shape_cast %181 : vector<1x32x32xf32> to vector<32x32xf32>
    %c1_90 = arith.constant 1 : index
    %c0_91 = arith.constant 0 : index
    %c0_92 = arith.constant 0 : index
    %183 = vector.load %arg3[%c1_90, %c0_91, %c0_92] : memref<2x1x32xf32, #tpu.memory_space<vmem>>, vector<1x1x32xf32>
    %184 = vector.shape_cast %183 : vector<1x1x32xf32> to vector<1x32xf32>
    %c1_93 = arith.constant 1 : index
    %c0_94 = arith.constant 0 : index
    %c0_95 = arith.constant 0 : index
    %185 = vector.load %arg4[%c1_93, %c0_94, %c0_95] : memref<2x32x32xf32, #tpu.memory_space<vmem>>, vector<1x32x32xf32>
    %186 = vector.shape_cast %185 : vector<1x32x32xf32> to vector<32x32xf32>
    %c1_96 = arith.constant 1 : index
    %c0_97 = arith.constant 0 : index
    %c0_98 = arith.constant 0 : index
    %187 = vector.load %arg5[%c1_96, %c0_97, %c0_98] : memref<2x1x32xf32, #tpu.memory_space<vmem>>, vector<1x1x32xf32>
    %188 = vector.shape_cast %187 : vector<1x1x32xf32> to vector<1x32xf32>
    %c1_99 = arith.constant 1 : index
    %c0_100 = arith.constant 0 : index
    %c0_101 = arith.constant 0 : index
    %189 = vector.load %arg6[%c1_99, %c0_100, %c0_101] : memref<2x32x32xf32, #tpu.memory_space<vmem>>, vector<1x32x32xf32>
    %190 = vector.shape_cast %189 : vector<1x32x32xf32> to vector<32x32xf32>
    %c1_102 = arith.constant 1 : index
    %c0_103 = arith.constant 0 : index
    %c0_104 = arith.constant 0 : index
    %191 = vector.load %arg7[%c1_102, %c0_103, %c0_104] : memref<2x1x32xf32, #tpu.memory_space<vmem>>, vector<1x1x32xf32>
    %192 = vector.shape_cast %191 : vector<1x1x32xf32> to vector<1x32xf32>
    %c1_105 = arith.constant 1 : index
    %c0_106 = arith.constant 0 : index
    %c0_107 = arith.constant 0 : index
    %193 = vector.load %arg8[%c1_105, %c0_106, %c0_107] : memref<2x32x32xf32, #tpu.memory_space<vmem>>, vector<1x32x32xf32>
    %194 = vector.shape_cast %193 : vector<1x32x32xf32> to vector<32x32xf32>
    %c1_108 = arith.constant 1 : index
    %c0_109 = arith.constant 0 : index
    %c0_110 = arith.constant 0 : index
    %195 = vector.load %arg9[%c1_108, %c0_109, %c0_110] : memref<2x1x32xf32, #tpu.memory_space<vmem>>, vector<1x1x32xf32>
    %196 = vector.shape_cast %195 : vector<1x1x32xf32> to vector<1x32xf32>
    %c1_111 = arith.constant 1 : index
    %c0_112 = arith.constant 0 : index
    %c0_113 = arith.constant 0 : index
    %197 = vector.load %arg10[%c1_111, %c0_112, %c0_113] : memref<2x1x32xf32, #tpu.memory_space<vmem>>, vector<1x1x32xf32>
    %198 = vector.shape_cast %197 : vector<1x1x32xf32> to vector<1x32xf32>
    %c1_114 = arith.constant 1 : index
    %c0_115 = arith.constant 0 : index
    %c0_116 = arith.constant 0 : index
    %199 = vector.load %arg11[%c1_114, %c0_115, %c0_116] : memref<2x1x32xf32, #tpu.memory_space<vmem>>, vector<1x1x32xf32>
    %200 = vector.shape_cast %199 : vector<1x1x32xf32> to vector<1x32xf32>
    %c1_117 = arith.constant 1 : index
    %c0_118 = arith.constant 0 : index
    %c0_119 = arith.constant 0 : index
    %201 = vector.load %arg12[%c1_117, %c0_118, %c0_119] : memref<2x32x64xf32, #tpu.memory_space<vmem>>, vector<1x32x64xf32>
    %202 = vector.shape_cast %201 : vector<1x32x64xf32> to vector<32x64xf32>
    %c1_120 = arith.constant 1 : index
    %c0_121 = arith.constant 0 : index
    %c0_122 = arith.constant 0 : index
    %203 = vector.load %arg13[%c1_120, %c0_121, %c0_122] : memref<2x1x64xf32, #tpu.memory_space<vmem>>, vector<1x1x64xf32>
    %204 = vector.shape_cast %203 : vector<1x1x64xf32> to vector<1x64xf32>
    %c1_123 = arith.constant 1 : index
    %c0_124 = arith.constant 0 : index
    %c0_125 = arith.constant 0 : index
    %205 = vector.load %arg14[%c1_123, %c0_124, %c0_125] : memref<2x64x32xf32, #tpu.memory_space<vmem>>, vector<1x64x32xf32>
    %206 = vector.shape_cast %205 : vector<1x64x32xf32> to vector<64x32xf32>
    %c1_126 = arith.constant 1 : index
    %c0_127 = arith.constant 0 : index
    %c0_128 = arith.constant 0 : index
    %207 = vector.load %arg15[%c1_126, %c0_127, %c0_128] : memref<2x1x32xf32, #tpu.memory_space<vmem>>, vector<1x1x32xf32>
    %208 = vector.shape_cast %207 : vector<1x1x32xf32> to vector<1x32xf32>
    %c1_129 = arith.constant 1 : index
    %c0_130 = arith.constant 0 : index
    %c0_131 = arith.constant 0 : index
    %209 = vector.load %arg16[%c1_129, %c0_130, %c0_131] : memref<2x1x32xf32, #tpu.memory_space<vmem>>, vector<1x1x32xf32>
    %210 = vector.shape_cast %209 : vector<1x1x32xf32> to vector<1x32xf32>
    %c1_132 = arith.constant 1 : index
    %c0_133 = arith.constant 0 : index
    %c0_134 = arith.constant 0 : index
    %211 = vector.load %arg17[%c1_132, %c0_133, %c0_134] : memref<2x1x32xf32, #tpu.memory_space<vmem>>, vector<1x1x32xf32>
    %212 = vector.shape_cast %211 : vector<1x1x32xf32> to vector<1x32xf32>
    %cst_135 = arith.constant dense<0.000000e+00> : vector<8x32xf32>
    %213 = tpu.matmul %180, %182, %cst_135 {dimension_numbers = #tpu.dot_dimension_numbers<[1], [0], [0], [1], [0, 0, 1, 1], [], []>} : vector<8x32xf32>, vector<32x32xf32>, vector<8x32xf32> -> vector<8x32xf32>
    %214 = vector.broadcast %184 : vector<1x32xf32> to vector<8x32xf32>
    %215 = arith.addf %213, %214 : vector<8x32xf32>
    %cst_136 = arith.constant dense<0.000000e+00> : vector<8x32xf32>
    %216 = tpu.matmul %180, %186, %cst_136 {dimension_numbers = #tpu.dot_dimension_numbers<[1], [0], [0], [1], [0, 0, 1, 1], [], []>} : vector<8x32xf32>, vector<32x32xf32>, vector<8x32xf32> -> vector<8x32xf32>
    %217 = vector.broadcast %188 : vector<1x32xf32> to vector<8x32xf32>
    %218 = arith.addf %216, %217 : vector<8x32xf32>
    %cst_137 = arith.constant dense<0.000000e+00> : vector<8x32xf32>
    %219 = tpu.matmul %180, %190, %cst_137 {dimension_numbers = #tpu.dot_dimension_numbers<[1], [0], [0], [1], [0, 0, 1, 1], [], []>} : vector<8x32xf32>, vector<32x32xf32>, vector<8x32xf32> -> vector<8x32xf32>
    %220 = vector.broadcast %192 : vector<1x32xf32> to vector<8x32xf32>
    %221 = arith.addf %219, %220 : vector<8x32xf32>
    %222 = vector.extract_strided_slice %215 {offsets = [0, 0], sizes = [8, 8], strides = [1, 1]} : vector<8x32xf32> to vector<8x8xf32>
    %223 = vector.extract_strided_slice %218 {offsets = [0, 0], sizes = [8, 8], strides = [1, 1]} : vector<8x32xf32> to vector<8x8xf32>
    %224 = vector.extract_strided_slice %221 {offsets = [0, 0], sizes = [8, 8], strides = [1, 1]} : vector<8x32xf32> to vector<8x8xf32>
    %cst_138 = arith.constant dense<0.000000e+00> : vector<8x8xf32>
    %225 = tpu.matmul %222, %223, %cst_138 {dimension_numbers = #tpu.dot_dimension_numbers<[1], [1], [0], [0], [0, 0, 1, 0], [], []>} : vector<8x8xf32>, vector<8x8xf32>, vector<8x8xf32> -> vector<8x8xf32>
    %cst_139 = arith.constant dense<0xFF800000> : vector<8xf32>
    %226 = vector.multi_reduction <maximumf>, %225, %cst_139 [1] : vector<8x8xf32> to vector<8xf32>
    %227 = vector.shape_cast %226 : vector<8xf32> to vector<8x1xf32>
    %228 = vector.broadcast %227 : vector<8x1xf32> to vector<8x8xf32>
    %229 = arith.subf %225, %228 : vector<8x8xf32>
    %230 = math.exp %229 : vector<8x8xf32>
    %cst_140 = arith.constant dense<0.000000e+00> : vector<8xf32>
    %231 = vector.multi_reduction <add>, %230, %cst_140 [1] : vector<8x8xf32> to vector<8xf32>
    %232 = vector.shape_cast %231 : vector<8xf32> to vector<8x1xf32>
    %233 = tpu.reciprocal %232 {approx = true} : vector<8x1xf32> -> vector<8x1xf32>
    %234 = vector.broadcast %233 : vector<8x1xf32> to vector<8x8xf32>
    %235 = arith.mulf %230, %234 : vector<8x8xf32>
    %cst_141 = arith.constant dense<0.000000e+00> : vector<8x8xf32>
    %236 = tpu.matmul %235, %224, %cst_141 {dimension_numbers = #tpu.dot_dimension_numbers<[1], [0], [0], [1], [0, 0, 1, 1], [], []>} : vector<8x8xf32>, vector<8x8xf32>, vector<8x8xf32> -> vector<8x8xf32>
    %237 = vector.extract_strided_slice %215 {offsets = [0, 8], sizes = [8, 8], strides = [1, 1]} : vector<8x32xf32> to vector<8x8xf32>
    %238 = vector.extract_strided_slice %218 {offsets = [0, 8], sizes = [8, 8], strides = [1, 1]} : vector<8x32xf32> to vector<8x8xf32>
    %239 = vector.extract_strided_slice %221 {offsets = [0, 8], sizes = [8, 8], strides = [1, 1]} : vector<8x32xf32> to vector<8x8xf32>
    %cst_142 = arith.constant dense<0.000000e+00> : vector<8x8xf32>
    %240 = tpu.matmul %237, %238, %cst_142 {dimension_numbers = #tpu.dot_dimension_numbers<[1], [1], [0], [0], [0, 0, 1, 0], [], []>} : vector<8x8xf32>, vector<8x8xf32>, vector<8x8xf32> -> vector<8x8xf32>
    %cst_143 = arith.constant dense<0xFF800000> : vector<8xf32>
    %241 = vector.multi_reduction <maximumf>, %240, %cst_143 [1] : vector<8x8xf32> to vector<8xf32>
    %242 = vector.shape_cast %241 : vector<8xf32> to vector<8x1xf32>
    %243 = vector.broadcast %242 : vector<8x1xf32> to vector<8x8xf32>
    %244 = arith.subf %240, %243 : vector<8x8xf32>
    %245 = math.exp %244 : vector<8x8xf32>
    %cst_144 = arith.constant dense<0.000000e+00> : vector<8xf32>
    %246 = vector.multi_reduction <add>, %245, %cst_144 [1] : vector<8x8xf32> to vector<8xf32>
    %247 = vector.shape_cast %246 : vector<8xf32> to vector<8x1xf32>
    %248 = tpu.reciprocal %247 {approx = true} : vector<8x1xf32> -> vector<8x1xf32>
    %249 = vector.broadcast %248 : vector<8x1xf32> to vector<8x8xf32>
    %250 = arith.mulf %245, %249 : vector<8x8xf32>
    %cst_145 = arith.constant dense<0.000000e+00> : vector<8x8xf32>
    %251 = tpu.matmul %250, %239, %cst_145 {dimension_numbers = #tpu.dot_dimension_numbers<[1], [0], [0], [1], [0, 0, 1, 1], [], []>} : vector<8x8xf32>, vector<8x8xf32>, vector<8x8xf32> -> vector<8x8xf32>
    %252 = vector.extract_strided_slice %215 {offsets = [0, 16], sizes = [8, 8], strides = [1, 1]} : vector<8x32xf32> to vector<8x8xf32>
    %253 = vector.extract_strided_slice %218 {offsets = [0, 16], sizes = [8, 8], strides = [1, 1]} : vector<8x32xf32> to vector<8x8xf32>
    %254 = vector.extract_strided_slice %221 {offsets = [0, 16], sizes = [8, 8], strides = [1, 1]} : vector<8x32xf32> to vector<8x8xf32>
    %cst_146 = arith.constant dense<0.000000e+00> : vector<8x8xf32>
    %255 = tpu.matmul %252, %253, %cst_146 {dimension_numbers = #tpu.dot_dimension_numbers<[1], [1], [0], [0], [0, 0, 1, 0], [], []>} : vector<8x8xf32>, vector<8x8xf32>, vector<8x8xf32> -> vector<8x8xf32>
    %cst_147 = arith.constant dense<0xFF800000> : vector<8xf32>
    %256 = vector.multi_reduction <maximumf>, %255, %cst_147 [1] : vector<8x8xf32> to vector<8xf32>
    %257 = vector.shape_cast %256 : vector<8xf32> to vector<8x1xf32>
    %258 = vector.broadcast %257 : vector<8x1xf32> to vector<8x8xf32>
    %259 = arith.subf %255, %258 : vector<8x8xf32>
    %260 = math.exp %259 : vector<8x8xf32>
    %cst_148 = arith.constant dense<0.000000e+00> : vector<8xf32>
    %261 = vector.multi_reduction <add>, %260, %cst_148 [1] : vector<8x8xf32> to vector<8xf32>
    %262 = vector.shape_cast %261 : vector<8xf32> to vector<8x1xf32>
    %263 = tpu.reciprocal %262 {approx = true} : vector<8x1xf32> -> vector<8x1xf32>
    %264 = vector.broadcast %263 : vector<8x1xf32> to vector<8x8xf32>
    %265 = arith.mulf %260, %264 : vector<8x8xf32>
    %cst_149 = arith.constant dense<0.000000e+00> : vector<8x8xf32>
    %266 = tpu.matmul %265, %254, %cst_149 {dimension_numbers = #tpu.dot_dimension_numbers<[1], [0], [0], [1], [0, 0, 1, 1], [], []>} : vector<8x8xf32>, vector<8x8xf32>, vector<8x8xf32> -> vector<8x8xf32>
    %267 = vector.extract_strided_slice %215 {offsets = [0, 24], sizes = [8, 8], strides = [1, 1]} : vector<8x32xf32> to vector<8x8xf32>
    %268 = vector.extract_strided_slice %218 {offsets = [0, 24], sizes = [8, 8], strides = [1, 1]} : vector<8x32xf32> to vector<8x8xf32>
    %269 = vector.extract_strided_slice %221 {offsets = [0, 24], sizes = [8, 8], strides = [1, 1]} : vector<8x32xf32> to vector<8x8xf32>
    %cst_150 = arith.constant dense<0.000000e+00> : vector<8x8xf32>
    %270 = tpu.matmul %267, %268, %cst_150 {dimension_numbers = #tpu.dot_dimension_numbers<[1], [1], [0], [0], [0, 0, 1, 0], [], []>} : vector<8x8xf32>, vector<8x8xf32>, vector<8x8xf32> -> vector<8x8xf32>
    %cst_151 = arith.constant dense<0xFF800000> : vector<8xf32>
    %271 = vector.multi_reduction <maximumf>, %270, %cst_151 [1] : vector<8x8xf32> to vector<8xf32>
    %272 = vector.shape_cast %271 : vector<8xf32> to vector<8x1xf32>
    %273 = vector.broadcast %272 : vector<8x1xf32> to vector<8x8xf32>
    %274 = arith.subf %270, %273 : vector<8x8xf32>
    %275 = math.exp %274 : vector<8x8xf32>
    %cst_152 = arith.constant dense<0.000000e+00> : vector<8xf32>
    %276 = vector.multi_reduction <add>, %275, %cst_152 [1] : vector<8x8xf32> to vector<8xf32>
    %277 = vector.shape_cast %276 : vector<8xf32> to vector<8x1xf32>
    %278 = tpu.reciprocal %277 {approx = true} : vector<8x1xf32> -> vector<8x1xf32>
    %279 = vector.broadcast %278 : vector<8x1xf32> to vector<8x8xf32>
    %280 = arith.mulf %275, %279 : vector<8x8xf32>
    %cst_153 = arith.constant dense<0.000000e+00> : vector<8x8xf32>
    %281 = tpu.matmul %280, %269, %cst_153 {dimension_numbers = #tpu.dot_dimension_numbers<[1], [0], [0], [1], [0, 0, 1, 1], [], []>} : vector<8x8xf32>, vector<8x8xf32>, vector<8x8xf32> -> vector<8x8xf32>
    %282 = vector.extract_strided_slice %194 {offsets = [0, 0], sizes = [8, 32], strides = [1, 1]} : vector<32x32xf32> to vector<8x32xf32>
    %cst_154 = arith.constant dense<0.000000e+00> : vector<8x32xf32>
    %283 = tpu.matmul %236, %282, %cst_154 {dimension_numbers = #tpu.dot_dimension_numbers<[1], [0], [0], [1], [0, 0, 1, 1], [], []>} : vector<8x8xf32>, vector<8x32xf32>, vector<8x32xf32> -> vector<8x32xf32>
    %284 = vector.extract_strided_slice %194 {offsets = [8, 0], sizes = [8, 32], strides = [1, 1]} : vector<32x32xf32> to vector<8x32xf32>
    %cst_155 = arith.constant dense<0.000000e+00> : vector<8x32xf32>
    %285 = tpu.matmul %251, %284, %cst_155 {dimension_numbers = #tpu.dot_dimension_numbers<[1], [0], [0], [1], [0, 0, 1, 1], [], []>} : vector<8x8xf32>, vector<8x32xf32>, vector<8x32xf32> -> vector<8x32xf32>
    %286 = arith.addf %283, %285 : vector<8x32xf32>
    %287 = vector.extract_strided_slice %194 {offsets = [16, 0], sizes = [8, 32], strides = [1, 1]} : vector<32x32xf32> to vector<8x32xf32>
    %cst_156 = arith.constant dense<0.000000e+00> : vector<8x32xf32>
    %288 = tpu.matmul %266, %287, %cst_156 {dimension_numbers = #tpu.dot_dimension_numbers<[1], [0], [0], [1], [0, 0, 1, 1], [], []>} : vector<8x8xf32>, vector<8x32xf32>, vector<8x32xf32> -> vector<8x32xf32>
    %289 = arith.addf %286, %288 : vector<8x32xf32>
    %290 = vector.extract_strided_slice %194 {offsets = [24, 0], sizes = [8, 32], strides = [1, 1]} : vector<32x32xf32> to vector<8x32xf32>
    %cst_157 = arith.constant dense<0.000000e+00> : vector<8x32xf32>
    %291 = tpu.matmul %281, %290, %cst_157 {dimension_numbers = #tpu.dot_dimension_numbers<[1], [0], [0], [1], [0, 0, 1, 1], [], []>} : vector<8x8xf32>, vector<8x32xf32>, vector<8x32xf32> -> vector<8x32xf32>
    %292 = arith.addf %289, %291 : vector<8x32xf32>
    %293 = vector.broadcast %196 : vector<1x32xf32> to vector<8x32xf32>
    %294 = arith.addf %292, %293 : vector<8x32xf32>
    %295 = arith.addf %180, %294 : vector<8x32xf32>
    %cst_158 = arith.constant dense<0.000000e+00> : vector<8xf32>
    %296 = vector.multi_reduction <add>, %295, %cst_158 [1] : vector<8x32xf32> to vector<8xf32>
    %297 = vector.shape_cast %296 : vector<8xf32> to vector<8x1xf32>
    %cst_159 = arith.constant 3.200000e+01 : f32
    %298 = vector.broadcast %cst_159 : f32 to vector<8x1xf32>
    %299 = arith.divf %297, %298 : vector<8x1xf32>
    %300 = vector.broadcast %299 : vector<8x1xf32> to vector<8x32xf32>
    %301 = arith.subf %295, %300 : vector<8x32xf32>
    %302 = arith.mulf %301, %301 : vector<8x32xf32>
    %cst_160 = arith.constant dense<0.000000e+00> : vector<8xf32>
    %303 = vector.multi_reduction <add>, %302, %cst_160 [1] : vector<8x32xf32> to vector<8xf32>
    %304 = vector.shape_cast %303 : vector<8xf32> to vector<8x1xf32>
    %cst_161 = arith.constant 3.200000e+01 : f32
    %305 = vector.broadcast %cst_161 : f32 to vector<8x1xf32>
    %306 = arith.divf %304, %305 : vector<8x1xf32>
    %307 = vector.broadcast %299 : vector<8x1xf32> to vector<8x32xf32>
    %308 = arith.subf %295, %307 : vector<8x32xf32>
    %cst_162 = arith.constant 9.99999974E-6 : f32
    %309 = vector.broadcast %cst_162 : f32 to vector<8x1xf32>
    %310 = arith.addf %306, %309 : vector<8x1xf32>
    %311 = math.rsqrt %310 : vector<8x1xf32>
    %312 = vector.broadcast %311 : vector<8x1xf32> to vector<8x32xf32>
    %313 = arith.mulf %308, %312 : vector<8x32xf32>
    %314 = vector.broadcast %198 : vector<1x32xf32> to vector<8x32xf32>
    %315 = arith.mulf %313, %314 : vector<8x32xf32>
    %316 = vector.broadcast %200 : vector<1x32xf32> to vector<8x32xf32>
    %317 = arith.addf %315, %316 : vector<8x32xf32>
    %cst_163 = arith.constant dense<0.000000e+00> : vector<8x64xf32>
    %318 = tpu.matmul %317, %202, %cst_163 {dimension_numbers = #tpu.dot_dimension_numbers<[1], [0], [0], [1], [0, 0, 1, 1], [], []>} : vector<8x32xf32>, vector<32x64xf32>, vector<8x64xf32> -> vector<8x64xf32>
    %319 = vector.broadcast %204 : vector<1x64xf32> to vector<8x64xf32>
    %320 = arith.addf %318, %319 : vector<8x64xf32>
    %cst_164 = arith.constant 5.000000e-01 : f32
    %321 = vector.broadcast %cst_164 : f32 to vector<8x64xf32>
    %322 = arith.mulf %321, %320 : vector<8x64xf32>
    %323 = arith.mulf %320, %320 : vector<8x64xf32>
    %324 = arith.mulf %323, %320 : vector<8x64xf32>
    %cst_165 = arith.constant 4.471500e-02 : f32
    %325 = vector.broadcast %cst_165 : f32 to vector<8x64xf32>
    %326 = arith.mulf %325, %324 : vector<8x64xf32>
    %327 = arith.addf %320, %326 : vector<8x64xf32>
    %cst_166 = arith.constant 0.797884583 : f32
    %328 = vector.broadcast %cst_166 : f32 to vector<8x64xf32>
    %329 = arith.mulf %328, %327 : vector<8x64xf32>
    %330 = math.tanh %329 : vector<8x64xf32>
    %cst_167 = arith.constant 1.000000e+00 : f32
    %331 = vector.broadcast %cst_167 : f32 to vector<8x64xf32>
    %332 = arith.addf %331, %330 : vector<8x64xf32>
    %333 = arith.mulf %322, %332 : vector<8x64xf32>
    %cst_168 = arith.constant dense<0.000000e+00> : vector<8x32xf32>
    %334 = tpu.matmul %333, %206, %cst_168 {dimension_numbers = #tpu.dot_dimension_numbers<[1], [0], [0], [1], [0, 0, 1, 1], [], []>} : vector<8x64xf32>, vector<64x32xf32>, vector<8x32xf32> -> vector<8x32xf32>
    %335 = vector.broadcast %208 : vector<1x32xf32> to vector<8x32xf32>
    %336 = arith.addf %334, %335 : vector<8x32xf32>
    %337 = arith.addf %317, %336 : vector<8x32xf32>
    %cst_169 = arith.constant dense<0.000000e+00> : vector<8xf32>
    %338 = vector.multi_reduction <add>, %337, %cst_169 [1] : vector<8x32xf32> to vector<8xf32>
    %339 = vector.shape_cast %338 : vector<8xf32> to vector<8x1xf32>
    %cst_170 = arith.constant 3.200000e+01 : f32
    %340 = vector.broadcast %cst_170 : f32 to vector<8x1xf32>
    %341 = arith.divf %339, %340 : vector<8x1xf32>
    %342 = vector.broadcast %341 : vector<8x1xf32> to vector<8x32xf32>
    %343 = arith.subf %337, %342 : vector<8x32xf32>
    %344 = arith.mulf %343, %343 : vector<8x32xf32>
    %cst_171 = arith.constant dense<0.000000e+00> : vector<8xf32>
    %345 = vector.multi_reduction <add>, %344, %cst_171 [1] : vector<8x32xf32> to vector<8xf32>
    %346 = vector.shape_cast %345 : vector<8xf32> to vector<8x1xf32>
    %cst_172 = arith.constant 3.200000e+01 : f32
    %347 = vector.broadcast %cst_172 : f32 to vector<8x1xf32>
    %348 = arith.divf %346, %347 : vector<8x1xf32>
    %349 = vector.broadcast %341 : vector<8x1xf32> to vector<8x32xf32>
    %350 = arith.subf %337, %349 : vector<8x32xf32>
    %cst_173 = arith.constant 9.99999974E-6 : f32
    %351 = vector.broadcast %cst_173 : f32 to vector<8x1xf32>
    %352 = arith.addf %348, %351 : vector<8x1xf32>
    %353 = math.rsqrt %352 : vector<8x1xf32>
    %354 = vector.broadcast %353 : vector<8x1xf32> to vector<8x32xf32>
    %355 = arith.mulf %350, %354 : vector<8x32xf32>
    %356 = vector.broadcast %210 : vector<1x32xf32> to vector<8x32xf32>
    %357 = arith.mulf %355, %356 : vector<8x32xf32>
    %358 = vector.broadcast %212 : vector<1x32xf32> to vector<8x32xf32>
    %359 = arith.addf %357, %358 : vector<8x32xf32>
    %c0_174 = arith.constant 0 : index
    %c0_175 = arith.constant 0 : index
    %c0_176 = arith.constant 0 : index
    %360 = vector.load %arg18[%c0_174, %c0_175, %c0_176] : memref<1x8x32xf32, #tpu.memory_space<vmem>>, vector<1x8x32xf32>
    %361 = vector.shape_cast %360 : vector<1x8x32xf32> to vector<8x32xf32>
    %362 = vector.shape_cast %359 : vector<8x32xf32> to vector<1x8x32xf32>
    tpu.vector_store %arg18[%c0_174, %c0_175, %c0_176], %362 {strides = array<i32>} : memref<1x8x32xf32, #tpu.memory_space<vmem>>, vector<1x8x32xf32>,
    return
  }
  func.func @transform_0(%arg0: i32) -> (i32, i32, i32) {
    %c0_i32 = arith.constant 0 : i32
    %c0_i32_0 = arith.constant 0 : i32
    %c0_i32_1 = arith.constant 0 : i32
    return %arg0, %c0_i32, %c0_i32_0 : i32, i32, i32
  }
  func.func @transform_1(%arg0: i32) -> (i32, i32, i32) {
    %c0_i32 = arith.constant 0 : i32
    %c0_i32_0 = arith.constant 0 : i32
    %c0_i32_1 = arith.constant 0 : i32
    %c0_i32_2 = arith.constant 0 : i32
    return %c0_i32, %c0_i32_0, %c0_i32_1 : i32, i32, i32
  }
  func.func @transform_2(%arg0: i32) -> (i32, i32, i32) {
    %c0_i32 = arith.constant 0 : i32
    %c0_i32_0 = arith.constant 0 : i32
    %c0_i32_1 = arith.constant 0 : i32
    %c0_i32_2 = arith.constant 0 : i32
    return %c0_i32, %c0_i32_0, %c0_i32_1 : i32, i32, i32
  }
  func.func @transform_3(%arg0: i32) -> (i32, i32, i32) {
    %c0_i32 = arith.constant 0 : i32
    %c0_i32_0 = arith.constant 0 : i32
    %c0_i32_1 = arith.constant 0 : i32
    %c0_i32_2 = arith.constant 0 : i32
    return %c0_i32, %c0_i32_0, %c0_i32_1 : i32, i32, i32
  }
  func.func @transform_4(%arg0: i32) -> (i32, i32, i32) {
    %c0_i32 = arith.constant 0 : i32
    %c0_i32_0 = arith.constant 0 : i32
    %c0_i32_1 = arith.constant 0 : i32
    %c0_i32_2 = arith.constant 0 : i32
    return %c0_i32, %c0_i32_0, %c0_i32_1 : i32, i32, i32
  }
  func.func @transform_5(%arg0: i32) -> (i32, i32, i32) {
    %c0_i32 = arith.constant 0 : i32
    %c0_i32_0 = arith.constant 0 : i32
    %c0_i32_1 = arith.constant 0 : i32
    %c0_i32_2 = arith.constant 0 : i32
    return %c0_i32, %c0_i32_0, %c0_i32_1 : i32, i32, i32
  }
  func.func @transform_6(%arg0: i32) -> (i32, i32, i32) {
    %c0_i32 = arith.constant 0 : i32
    %c0_i32_0 = arith.constant 0 : i32
    %c0_i32_1 = arith.constant 0 : i32
    %c0_i32_2 = arith.constant 0 : i32
    return %c0_i32, %c0_i32_0, %c0_i32_1 : i32, i32, i32
  }
  func.func @transform_7(%arg0: i32) -> (i32, i32, i32) {
    %c0_i32 = arith.constant 0 : i32
    %c0_i32_0 = arith.constant 0 : i32
    %c0_i32_1 = arith.constant 0 : i32
    %c0_i32_2 = arith.constant 0 : i32
    return %c0_i32, %c0_i32_0, %c0_i32_1 : i32, i32, i32
  }
  func.func @transform_8(%arg0: i32) -> (i32, i32, i32) {
    %c0_i32 = arith.constant 0 : i32
    %c0_i32_0 = arith.constant 0 : i32
    %c0_i32_1 = arith.constant 0 : i32
    %c0_i32_2 = arith.constant 0 : i32
    return %c0_i32, %c0_i32_0, %c0_i32_1 : i32, i32, i32
  }
  func.func @transform_9(%arg0: i32) -> (i32, i32, i32) {
    %c0_i32 = arith.constant 0 : i32
    %c0_i32_0 = arith.constant 0 : i32
    %c0_i32_1 = arith.constant 0 : i32
    %c0_i32_2 = arith.constant 0 : i32
    return %c0_i32, %c0_i32_0, %c0_i32_1 : i32, i32, i32
  }
  func.func @transform_10(%arg0: i32) -> (i32, i32, i32) {
    %c0_i32 = arith.constant 0 : i32
    %c0_i32_0 = arith.constant 0 : i32
    %c0_i32_1 = arith.constant 0 : i32
    %c0_i32_2 = arith.constant 0 : i32
    return %c0_i32, %c0_i32_0, %c0_i32_1 : i32, i32, i32
  }
  func.func @transform_11(%arg0: i32) -> (i32, i32, i32) {
    %c0_i32 = arith.constant 0 : i32
    %c0_i32_0 = arith.constant 0 : i32
    %c0_i32_1 = arith.constant 0 : i32
    %c0_i32_2 = arith.constant 0 : i32
    return %c0_i32, %c0_i32_0, %c0_i32_1 : i32, i32, i32
  }
  func.func @transform_12(%arg0: i32) -> (i32, i32, i32) {
    %c0_i32 = arith.constant 0 : i32
    %c0_i32_0 = arith.constant 0 : i32
    %c0_i32_1 = arith.constant 0 : i32
    %c0_i32_2 = arith.constant 0 : i32
    return %c0_i32, %c0_i32_0, %c0_i32_1 : i32, i32, i32
  }
  func.func @transform_13(%arg0: i32) -> (i32, i32, i32) {
    %c0_i32 = arith.constant 0 : i32
    %c0_i32_0 = arith.constant 0 : i32
    %c0_i32_1 = arith.constant 0 : i32
    %c0_i32_2 = arith.constant 0 : i32
    return %c0_i32, %c0_i32_0, %c0_i32_1 : i32, i32, i32
  }
  func.func @transform_14(%arg0: i32) -> (i32, i32, i32) {
    %c0_i32 = arith.constant 0 : i32
    %c0_i32_0 = arith.constant 0 : i32
    %c0_i32_1 = arith.constant 0 : i32
    %c0_i32_2 = arith.constant 0 : i32
    return %c0_i32, %c0_i32_0, %c0_i32_1 : i32, i32, i32
  }
  func.func @transform_15(%arg0: i32) -> (i32, i32, i32) {
    %c0_i32 = arith.constant 0 : i32
    %c0_i32_0 = arith.constant 0 : i32
    %c0_i32_1 = arith.constant 0 : i32
    %c0_i32_2 = arith.constant 0 : i32
    return %c0_i32, %c0_i32_0, %c0_i32_1 : i32, i32, i32
  }
  func.func @transform_16(%arg0: i32) -> (i32, i32, i32) {
    %c0_i32 = arith.constant 0 : i32
    %c0_i32_0 = arith.constant 0 : i32
    %c0_i32_1 = arith.constant 0 : i32
    %c0_i32_2 = arith.constant 0 : i32
    return %c0_i32, %c0_i32_0, %c0_i32_1 : i32, i32, i32
  }
  func.func @transform_17(%arg0: i32) -> (i32, i32, i32) {
    %c0_i32 = arith.constant 0 : i32
    %c0_i32_0 = arith.constant 0 : i32
    %c0_i32_1 = arith.constant 0 : i32
    return %arg0, %c0_i32, %c0_i32_0 : i32, i32, i32
  }
}

</mosaic_0001>

<bundles_post_ra>
// kernel: tpu_custom_call.1
= control target key start
LH: loop header
LB: loop body
LE: loop exit
PB: predicated region body
PF: predicated region fallthrough
CT: control target
= control target key end

     0   :  { %s4731_s0 = inlined_call_operand.hbm [shape: f32[2,8,32], index: 0, kind: input, shape index: {}]   ;;  %s4732_s1 = inlined_call_operand.vmem [shape: f32[2,32,32], index: 1, kind: input, shape index: {}]   ;;  %s4733_s2 = inlined_call_operand.vmem [shape: f32[2,1,32], index: 2, kind: input, shape index: {}]   ;;  %s4734_s3 = inlined_call_operand.vmem [shape: f32[2,32,32], index: 3, kind: input, shape index: {}]   ;;  %s4735_s4 = inlined_call_operand.vmem [shape: f32[2,1,32], index: 4, kind: input, shape index: {}]   ;;  %s4736_s5 = inlined_call_operand.vmem [shape: f32[2,32,32], index: 5, kind: input, shape index: {}]   ;;  %s4737_s6 = inlined_call_operand.vmem [shape: f32[2,1,32], index: 6, kind: input, shape index: {}]   ;;  %s4738_s7 = inlined_call_operand.hbm [shape: f32[2,32,32], index: 7, kind: input, shape index: {}]   ;;  %s4739_s8 = inlined_call_operand.vmem [shape: f32[2,1,32], index: 8, kind: input, shape index: {}]   ;;  %s4740_s9 = inlined_call_operand.vmem [shape: f32[2,1,32], index: 9, kind: input, shape index: {}]   ;;  %s4741_s10 = inlined_call_operand.vmem [shape: f32[2,1,32], index: 10, kind: input, shape index: {}]   ;;  %s4742_s11 = inlined_call_operand.hbm [shape: f32[2,32,64], index: 11, kind: input, shape index: {}]   ;;  %s4743_s12 = inlined_call_operand.vmem [shape: f32[2,1,64], index: 12, kind: input, shape index: {}]   ;;  %s4744_s13 = inlined_call_operand.vmem [shape: f32[2,64,32], index: 13, kind: input, shape index: {}]   ;;  %s4745_s14 = inlined_call_operand.vmem [shape: f32[2,1,32], index: 14, kind: input, shape index: {}]   ;;  %s4746_s15 = inlined_call_operand.vmem [shape: f32[2,1,32], index: 15, kind: input, shape index: {}]   ;;  %s4747_s16 = inlined_call_operand.vmem [shape: f32[2,1,32], index: 16, kind: input, shape index: {}]   ;;  %s4748_s17 = inlined_call_operand.hbm [shape: f32[2,8,32], index: 17, kind: output, shape index: {}]  }
   0x1   :  { %4772 = sst [smem:[#allocation14_spill]] %s4731_s0 }
   0x2   :  { %4773 = sst [smem:[#allocation15_spill]] %s4732_s1 }
   0x3   :  { %4774 = sst [smem:[#allocation16_spill]] %s4733_s2 }
   0x4   :  { %4775 = sst [smem:[#allocation17_spill]] %s4734_s3 }
   0x5   :  { %4776 = sst [smem:[#allocation18_spill]] %s4736_s5 }
   0x6   :  { %4777 = sst [smem:[#allocation19_spill]] %s4738_s7 }
   0x7   :  { %4778 = sst [smem:[#allocation20_spill]] %s4742_s11 }
   0x8   :  { %4779 = sst [smem:[#allocation21_spill]] %s4743_s12 }
   0x9   :  { %4780 = sst [smem:[#allocation22_spill]] %s4745_s14 }
   0xa   :  { %4781 = sst [smem:[#allocation23_spill]] %s4746_s15 }
   0xb   :  { %4782 = sst [smem:[#allocation24_spill]] %s4747_s16 }
   0xc   :  { %4783 = sst [smem:[#allocation25_spill]] %s4748_s17 }
   0xd   :  { %22 = vsyncpa [#allocation3], 0 }
   0xe   :  { %24 = vsyncpa [#allocation3 + $0x1], 0 }
   0xf   :  { %25 = vsyncpa [#allocation6], 0 }
  0x10   :  { %26 = vsyncpa [#allocation4], 0 }
  0x11   :  { %28 = vsyncpa [#allocation4 + $0x1], 0  ;;  %s4103_s24 = smov 0   ;;  %s4105_s25 = smov 0  }
  0x12   :  { %s4107_s26 = smov 0   ;;  %s4109_s27 = smov 0  }
  0x13 LB: > { %4784 = sst [smem:[#allocation12_spill]] %s3984_s24  ;;  %s4124_s28 = sadd.s32 4294967295, %s3996_s27   ;;  %s3996_s27 = sphi %s4109_s27, %s4824_s27   ;;  %s3992_s26 = sphi %s4107_s26, %s4823_s26   ;;  %s3988_s25 = sphi %s4105_s25, %s4822_s25   ;;  %s3984_s24 = sphi %s4103_s24, %s4821_s24  }
  0x14   : > { %s3204_s29 = sadd.s32 4294967294, %s3996_s27   ;;  %p54_p0 = scmp.ne.s32.totalorder %s3988_s25, %s3984_s24 }
  0x15   : > { %p4755_p1 = scmp.eq.s32.totalorder %s4124_s28, 0  ;;  %p420_p3 = scmp.eq.s32.totalorder %s3204_s29, 1 }
  0x16   : > { %p3205_p5 = scmp.ge.s32.totalorder %s3996_s27, 1  ;;  %p427_p7 = scmp.lt.s32.totalorder %s3996_s27, 3 }
  0x17   : > { %p4133_p4 = por %p4755_p1, %p54_p0  ;;  %p4138_p6 = por %p420_p3, %p54_p0 }
  0x18   : > { %p4143_p8 = pnand %p3205_p5, %p427_p7  ;;  %s3998_s19 = smov [#allocation5]  }
  0x19   : > { %s4785_s0 = scalar_select %p4133_p4, 1, 0 }
  0x1a   : > { %s4786_s30 = scalar_select %p4138_p6, 1, 0 }
  0x1b   : > { %s457_s1 = sshll.u32 %s3998_s19, 4  ;;  %p3730_p9 = pneg %p4143_p8  ;;  %s4147_s1 = int_to_ptr.vmem [resolvable:$true] %s457_s1 }
  0x1c   : > { %4787 = sst [smem:[#allocation13_spill]] %s4786_s30  ;;  %s3999_s21 = smov [#allocation7]  }
  0x1d   : > { %p4154_p11 = pnand %p3730_p9, %p4755_p1  ;;  %s479_s22 = sshll.u32 %s3999_s21, 4  ;;  %s4158_s22 = int_to_ptr.vmem [resolvable:$true] %s479_s22 }
  0x1e   : > { %s4790_s7 = sld [smem:[#allocation19_spill]] }
  0x1f   : > { %p3842_p13 = pneg %p4154_p11 }
  0x24   : > { %s3840_s19 = scalar_lea.hbm %s4790_s7, 1024 }
  0x25   : > { %p3841_p12 = scmp.ne.s32.totalorder %s4790_s7, %s3840_s19  ;;  %p3847_p5 = scmp.lt.u32.totalorder %s3840_s19, %s4790_s7 }
  0x27   : > { %p3843_p0 = pnand %p3842_p13, %p3841_p12 }
  0x29   : > { %p3844_p3 = pneg %p3843_p0 }
  0x2b   : > { %p3849_p7 = pnand %p3847_p5, %p3844_p3 }
  0x2d   : > { %3852 = shalt.err (!%p3849_p7)
}
  0x2e   : > { %s3853_s21 = scalar_lea.vmem %s4147_s1, 1024  ;;  %p3861_p2 = scmp.lt.s32.totalorder %s4147_s1, %s4147_s1 }
  0x2f   : > { %p3854_p9 = scmp.ne.s32.totalorder %s4147_s1, %s3853_s21  ;;  %p3862_p12 = scmp.lt.s32.totalorder %s3853_s21, %s3853_s21 }
  0x31   : > { %p3856_p10 = pnand %p3854_p9, %p3842_p13  ;;  %p3863_p0 = por %p3862_p12, %p3861_p2 }
  0x33   : > { %p3857_p1 = pneg %p3856_p10 }
  0x35   : > { %p3864_p6 = pnand %p3863_p0, %p3857_p1 }
  0x37   : > { %3867 = shalt.err (!%p3864_p6)
}
  0x38   : > { %s4000_s16 = smov 128   ;;  %s4001_s17 = smov 8  }
  0x39   : > { %3733 = dma.hbm_to_vmem [thread:$0]  (!%p4154_p11), %s4790_s7, 1024, %s4147_s1, [#allocation6], %s4000_s16, %s4000_s16, %s4001_s17  }
  0x3a   : > { %s4791_s11 = sld [smem:[#allocation20_spill]] }
  0x40   : > { %s3868_s19 = scalar_lea.hbm %s4791_s11, 1024 }
  0x41   : > { %p3869_p2 = scmp.ne.s32.totalorder %s4791_s11, %s3868_s19  ;;  %p3875_p10 = scmp.lt.u32.totalorder %s3868_s19, %s4791_s11 }
  0x43   : > { %p3871_p1 = pnand %p3869_p2, %p3842_p13 }
  0x45   : > { %p3872_p6 = pneg %p3871_p1 }
  0x47   : > { %p3877_p3 = pnand %p3875_p10, %p3872_p6 }
  0x49   : > { %3880 = shalt.err (!%p3877_p3)
}
  0x4a   : > { %s3881_s1 = scalar_lea.vmem %s4158_s22, 1024  ;;  %p3889_p12 = scmp.lt.s32.totalorder %s4158_s22, %s4158_s22 }
  0x4b   : > { %p3882_p5 = scmp.ne.s32.totalorder %s4158_s22, %s3881_s1  ;;  %p3890_p0 = scmp.lt.s32.totalorder %s3881_s1, %s3881_s1 }
  0x4d   : > { %p3884_p7 = pnand %p3882_p5, %p3842_p13  ;;  %p3891_p2 = por %p3890_p0, %p3889_p12 }
  0x4f   : > { %p3885_p9 = pneg %p3884_p7 }
  0x51   : > { %p3892_p1 = pnand %p3891_p2, %p3885_p9 }
  0x53   : > { %3895 = shalt.err (!%p3892_p1)
}
  0x54   : > { %3736 = dma.hbm_to_vmem [thread:$0]  (!%p4154_p11), %s4791_s11, 1024, %s4158_s22, [#allocation6], %s4000_s16, %s4000_s16, %s4001_s17  }
  0x55   : > { %s4213_s15 = sadd.s32 1, %s3996_s27   ;;  %s41_s20 = sadd.s32 1, %s3992_s26 }
  0x56   : > { %s38_s24 = ssub.s32 %s3996_s27, %s4213_s15  ;;  %p48_p13 = scmp.ne.s32.totalorder %s3992_s26, %s3988_s25 }
  0x57   : > { %p39_p6 = scmp.eq.s32.totalorder %s38_s24, 0  ;;  %p49_p10 = scmp.eq.s32.totalorder %s3996_s27, 0 }
  0x58   : > { %p4792_p3 = scmp.eq.s32.totalorder %s4124_s28, 1  ;;  %p3747_p7 = scmp.lt.s32.totalorder %s3996_s27, 2 }
  0x59   : > { %s4229_s23 = scalar_select %p39_p6, %s3992_s26, %s41_s20  }
  0x5a   : > { %p4223_p5 = por %p4792_p3, %p48_p13  ;;  %p50_p9 = por %p49_p10, %p48_p13 }
  0x5b   : > { %s508_s29 = sand.u32 1, %s3992_s26   ;;  %s3210_s22 = sshll.u32 %s3996_s27, 7 }
  0x5c   : > { %s4793_s30 = scalar_select %p4223_p5, 1, 0 }
  0x5d   : > { %s3209_s19 = sshll.u32 %s508_s29, 3  ;;  %s4794_s21 = sld [smem:[#allocation14_spill]] }
  0x5e   : > { %s512_s12 = scalar_lea.vmem [#allocation2], %s3209_s19  ;;  %p4240_p11 = pnand %p3747_p7, %p50_p9 }
  0x5f   : > { %s519_s14 = sshll.u32 %s512_s12, 4  ;;  %s509_s24 = scalar_lea.sflag [#allocation3], %s508_s29  ;;  %s4238_s14 = int_to_ptr.vmem [resolvable:$true] %s519_s14 }
  0x60   : > { %p3898_p0 = pneg %p4240_p11 }
  0x63   : > { %s4236_s1 = scalar_lea.hbm %s4794_s21, %s3210_s22  ;;  %s3901_s16 = scalar_lea.hbm %s4794_s21, 256 }
  0x64   : > { %s3896_s7 = scalar_lea.hbm %s4236_s1, 128  ;;  %p3902_p13 = scmp.lt.u32.totalorder %s4236_s1, %s4794_s21 }
  0x65   : > { %p3897_p12 = scmp.ne.s32.totalorder %s4236_s1, %s3896_s7  ;;  %p3903_p6 = scmp.lt.u32.totalorder %s3901_s16, %s3896_s7 }
  0x66   : > { %p3905_p3 = scmp.lt.u32.totalorder %s3896_s7, %s4236_s1 }
  0x67   : > { %p3899_p2 = pnand %p3898_p0, %p3897_p12  ;;  %p3904_p10 = por %p3903_p6, %p3902_p13 }
  0x69   : > { %p3900_p1 = pneg %p3899_p2  ;;  %p3906_p7 = por %p3905_p3, %p3904_p10 }
  0x6b   : > { %p3907_p9 = pnand %p3906_p7, %p3900_p1 }
  0x6d   : > { %3910 = shalt.err (!%p3907_p9)
}
  0x6e   : > { %s3911_s29 = scalar_lea.vmem %s4238_s14, 128  ;;  %s4002_s22 = smov [#allocation2]  }
  0x6f   : > { %p3912_p12 = scmp.ne.s32.totalorder %s4238_s14, %s3911_s29  ;;  %s3916_s19 = sshll.u32 %s4002_s22, 4  ;;  %s3917_s19 = int_to_ptr.vmem [resolvable:$false] %s3916_s19 }
  0x70   : > { %s3918_s17 = scalar_lea.vmem %s3917_s19, 256  ;;  %p3919_p4 = scmp.lt.s32.totalorder %s4238_s14, %s3917_s19 }
  0x71   : > { %p3914_p2 = pnand %p3912_p12, %p3898_p0  ;;  %p3920_p13 = scmp.lt.s32.totalorder %s3918_s17, %s3911_s29 }
  0x73   : > { %p3915_p5 = pneg %p3914_p2  ;;  %p3921_p6 = por %p3920_p13, %p3919_p4 }
  0x75   : > { %p3922_p10 = pnand %p3921_p6, %p3915_p5 }
  0x77   : > { %3925 = shalt.err (!%p3922_p10)
}
  0x78   : > { %3740 = dma.hbm_to_vmem [thread:$0]  (!%p4240_p11), %s4236_s1, 128, %s4238_s14, %s509_s24  }
  0x79   : > { %528 = sbr.rel (%p4143_p8) target bundleno = 5163 (0x142b), region = 88  ;;  %s4272_s7 = sand.u32 (!%p4143_p8), 1, %s3988_s25  }
  0x7a   : > { %s4761_s16 = sshll.u32 (!%p4143_p8), %s4272_s7, 3  ;;  %s531_s12 = scalar_lea.sflag (!%p4143_p8), [#allocation3], %s4272_s7 }
  0x7b   : > { %s534_s29 = scalar_lea.vmem (!%p4143_p8), [#allocation2], %s4761_s16  ;;  %p4796_p4 = scmp.ne.s32.totalorder (!%p4143_p8), %s4785_s0, 0 }
  0x80   : > { %3971 = dma.done.wait (%p4796_p4), %s531_s12, 128  }
  0x81   : > { %3973 = vsyncadd (%p4796_p4), %s531_s12, 4294967168  ;;  %p4797_p5 = scmp.eq.s32.totalorder %s4124_s28, 0 }
  0x83   : > { %3975 = dma.done.wait (%p4797_p5), [#allocation6], 2048   ;;  %p4798_p8 = pmov %p4797_p5 }
  0x84   : > { %v4003_v0 = vmov 0.0|0.0   ;;  %vm4004_vm0 = vmmov 0   ;;  %v4005_v1 = vmov 0.0   ;;  %s4799_s1 = sld [smem:[#allocation15_spill]]  ;;  %s4800_s3 = sld [smem:[#allocation17_spill]]  ;;  %v4311_v10 = vld [vmem:[%s534_s29] sm:$0xff] }
  0x85   : > { %3977 = vsyncadd (%p4798_p8), [#allocation6], 4294965248  ;;  %3634 = vmatprep.subr.bf16.mxu1 %v4003_v0  ;;  %3414 = vmatprep.mubr.msk.f32.mxu1 %vm4004_vm0, %v4005_v1  ;;  %vm638_vm1 = vcmask 261120   ;;  %s4801_s5 = sld [smem:[#allocation18_spill]]  ;;  %v3218_v23 = vld [vmem:[%s4735_s4] ss:$0 sm:$0xff] }
  0x86   : > { %3646 = vmatprep.subr.bf16.mxu0 %v4003_v0  ;;  %3436 = vmatprep.mubr.msk.f32.mxu0 %vm4004_vm0, %v4005_v1  ;;  %vm864_vm2 = vcmask 64512   ;;  %s4802_s2 = sld [smem:[#allocation16_spill]]  ;;  %s4765_s12 = smov 112   ;;  %v3220_v29 = vld [vmem:[%s4737_s6] ss:$0 sm:$0xff]  ;;  %vm1534_vm3 = vcmask 130048  }
  0x87   : > { %s4769_s0 = smov 120   ;;  %s4767_s18 = smov 104   ;;  %vm1536_vm4 = vcmask 195584   ;;  %vm1740_vm5 = vcmask 523264  }
  0x88   : > { %s4764_s24 = smov 8   ;;  %s4763_s22 = smov 16  }
  0x89   : > { %s4762_s19 = smov 24   ;;  %s4805_s29 = sld [smem:[#allocation22_spill]] }
  0x8a   : > { %v594_v2 = vld [vmem:[%s4799_s1] sm:$0xff]  ;;  %v595_v3 = vld [vmem:[%s4799_s1 + $0x8] sm:$0xff]  ;;  %v596_v4 = vld [vmem:[%s4799_s1 + $0x10] sm:$0xff]  ;;  %s4806_s17 = sld [smem:[#allocation23_spill]]  ;;  %s4808_s16 = smov 120  }
  0x8b   : > { %v3635_v5 = vpack.c.bf16 %v595_v3, %v594_v2  ;;  %v597_v6 = vld [vmem:[%s4799_s1 + $0x18] sm:$0xff]  ;;  %v599_v8 = vld [vmem:[%s4800_s3] sm:$0xff]  ;;  %v600_v9 = vld [vmem:[%s4800_s3 + $0x8] sm:$0xff]  ;;  %s4811_s20 = smov 8   ;;  %s4813_s11 = smov 24  }
  0x8c   : > { %v3638_v7 = vpack.c.bf16 %v597_v6, %v596_v4  ;;  %v3641_v11 = vpack.c.bf16 %v600_v9, %v599_v8  ;;  %v601_v12 = vld [vmem:[%s4800_s3 + $0x10] sm:$0xff]  ;;  %v602_v13 = vld [vmem:[%s4800_s3 + $0x18] sm:$0xff]  ;;  %v604_v15 = vld [vmem:[%s4801_s5] sm:$0xff]  ;;  %p4816_p0 = scmp.ne.s32.totalorder %s4793_s30, 0 }
  0x8d   : > { %3636 = vmatpush3.bf16.msra.mxu1 %v3635_v5  ;;  %v3644_v14 = vpack.c.bf16 %v602_v13, %v601_v12  ;;  %v605_v16 = vld [vmem:[%s4801_s5 + $0x8] sm:$0xff]  ;;  %v606_v17 = vld [vmem:[%s4801_s5 + $0x10] sm:$0xff]  ;;  %v607_v19 = vld [vmem:[%s4801_s5 + $0x18] sm:$0xff] }
  0x8e   : > { %3637 = vmatprep.subr.bf16.mxu1 %v4003_v0  ;;  %v3647_v18 = vpack.c.bf16 %v605_v16, %v604_v15  ;;  %v3650_v20 = vpack.c.bf16 %v607_v19, %v606_v17  ;;  %v3216_v27 = vld [vmem:[%s4802_s2] ss:$0 sm:$0xff] }
  0x90   : > { %3648 = vmatpush3.bf16.msra.mxu0 %v3647_v18 }
  0x91   : > { %3639 = vmatpush3.bf16.msra.mxu1 %v3638_v7  ;;  %3649 = vmatprep.subr.bf16.mxu0 %v4003_v0 }
  0x92   : > { %3640 = vmatprep.subr.bf16.mxu1 %v4003_v0 }
  0x94   : > { %3415 = vmatmul.mubr.msk.f32.vlgmr.msra.gmra.mrb[0].mxu1 %vm638_vm1, %v4311_v10  ;;  %3651 = vmatpush3.bf16.msra.mxu0 %v3650_v20 }
  0x95   : > { %3642 = vmatpush3.bf16.msra.mxu1 %v3641_v11  ;;  %3425 = vmatprep.mubr.msk.f32.mxu1 %vm4004_vm0, %v4005_v1 }
  0x96   : > { %3643 = vmatprep.subr.bf16.mxu1 %v4003_v0  ;;  %3449 = vmatprep.subr.mxu0 %v4005_v1 }
  0x97   : > { %3437 = vmatmul.mubr.msk.f32.vlgmr.msra.gmra.mrb[0].mxu0 %vm638_vm1, %v4311_v10 }
  0x98   : > { %3451 = vmatprep.mubr.msk.f32.mxu0 %vm4004_vm0, %v4005_v1 }
  0x99   : > { %3645 = vmatpush3.bf16.msra.mxu1 %v3644_v14 }
  0x9a   : > { %3439 = vmatprep.subr.mxu1 %v4005_v1 }
  0x9c   : > { %3426 = vmatmul.mubr.msk.f32.vlgmr.msra.gmra.mrb[2].mxu1 %vm638_vm1, %v4311_v10 }
  0x9d   : > { %3441 = vmatprep.mubr.msk.f32.mxu1 %vm4004_vm0, %v4005_v1 }
 0x167   : > { %v708_v21 = vpop.f32.mrb[0].mxu1 }
 0x168   : > { %v3416_v22 = vpop.f32.mrb[1].mxu1  ;;  %v709_v28 = vadd.f32 %v3216_v27, %v708_v21  ;;  %v609_v27 = vld [vmem:[#allocation5] sm:$0xff] }
 0x16a   : > { %v860_v30 = vpop.f32.mrb[0].mxu0 }
 0x16b   : > { %v4368_v31 = vadd.f32 %v3220_v29, %v860_v30  ;;  %v3438_v32 = vpop.f32.mrb[1].mxu0  ;;  %v611_v30 = vld [vmem:[#allocation5 + $0x10] sm:$0xff] }
 0x16f   : > { %v784_v24 = vpop.f32.mrb[2].mxu1 }
 0x170   : > { %v785_v25 = vadd.f32 %v3218_v23, %v784_v24  ;;  %v3427_v26 = vpop.f32.mrb[3].mxu1 }
 0x172   : > { %1193 = vrot.lane.b32.xlu1 %v785_v25, %s4765_s12  ;;  %1027 = vrot.lane.b32.xlu0 %v785_v25, %s4769_s0 }
 0x173   : > { %3440 = vmatpush3.xpose.msk.msra.mxu1 %vm864_vm2, %v785_v25 }
 0x174   : > { %3444 = vmatprep.subr.mxu1 %v4005_v1 }
 0x176   : > { %3442 = vmatmul.mubr.msk.f32.vlgmr.msra.gmra.mrb[4].mxu1 %vm864_vm2, %v709_v28  ;;  %1191 = vrot.lane.b32.xlu1 %v709_v28, %s4765_s12 }
 0x177   : > { %1025 = vrot.lane.b32.xlu0 %v709_v28, %s4769_s0  ;;  %3446 = vmatprep.mubr.msk.f32.mxu1 %vm4004_vm0, %v4005_v1 }
 0x178   : > { %3445 = vmatpush3.msra.mxu1 %v4368_v31 }
 0x179   : > { %3454 = vmatprep.subr.mxu1 %v4005_v1 }
 0x17a   : > { %1356 = vrot.lane.b32.xlu1 %v709_v28, %s4767_s18  ;;  %v610_v28 = vld [vmem:[#allocation5 + $0x8] sm:$0xff] }
 0x17b   : > { %1358 = vrot.lane.b32.xlu0 %v785_v25, %s4767_s18  ;;  %v3653_v29 = vpack.c.bf16 %v610_v28, %v609_v27 }
 0x1e4   : > { %v1028_v33 = vpop.permute.xlu0 %1027  ;;  %v1194_v34 = vpop.permute.xlu1 %1193 }
 0x1e5   : > { %3450 = vmatpush3.xpose.msk.msra.mxu0 %vm864_vm2, %v1028_v33 }
 0x1e6   : > { %3459 = vmatprep.subr.mxu0 %v4005_v1 }
 0x1e8   : > { %v1192_v36 = vpop.permute.xlu1 %1191 }
 0x1e9   : > { %v1026_v35 = vpop.permute.xlu0 %1025 }
 0x1ea   : > { %3452 = vmatmul.mubr.msk.f32.vlgmr.msra.gmra.mrb[2].mxu0 %vm864_vm2, %v1026_v35 }
 0x1eb   : > { %3460 = vmatpush3.xpose.msk.msra.mxu0 %vm864_vm2, %v1194_v34  ;;  %3461 = vmatprep.mubr.msk.f32.mxu0 %vm4004_vm0, %v4005_v1 }
 0x1ec   : > { %3469 = vmatprep.subr.mxu0 %v4005_v1  ;;  %v1357_v38 = vpop.permute.xlu1 %1356 }
 0x1ed   : > { %v1359_v37 = vpop.permute.xlu0 %1358 }
 0x1ee   : > { %3462 = vmatmul.mubr.msk.f32.vlgmr.msra.gmra.mrb[4].mxu0 %vm864_vm2, %v1192_v36 }
 0x1ef   : > { %3470 = vmatpush3.xpose.msk.msra.mxu0 %vm864_vm2, %v1359_v37  ;;  %3471 = vmatprep.mubr.msk.f32.mxu0 %vm4004_vm0, %v4005_v1 }
 0x1f0   : > { %3652 = vmatprep.subr.bf16.mxu0 %v4003_v0 }
 0x1f2   : > { %3472 = vmatmul.mubr.msk.f32.vlgmr.msra.gmra.mrb[6].mxu0 %vm864_vm2, %v1357_v38 }
 0x1f3   : > { %3487 = vmatprep.mubr.msk.f32.mxu0 %vm4004_vm0, %v4005_v1  ;;  %3654 = vmatpush3.bf16.msra.mxu0 %v3653_v29 }
 0x1f4   : > { %3655 = vmatprep.subr.bf16.mxu0 %v4003_v0 }
 0x249   : > { %v937_v39 = vpop.f32.mrb[4].mxu1 }
 0x24a   : > { %v3443_v40 = vpop.f32.mrb[5].mxu1  ;;  %v941_v41 = vsel %vm864_vm2, %v937_v39, -inf }
 0x24b   : > { %942 = vmax.xlane.f32.xlu0 %v941_v41 }
 0x2bd   : > { %v1099_v42 = vpop.f32.mrb[2].mxu0 }
 0x2be   : > { %v3453_v43 = vpop.f32.mrb[3].mxu0  ;;  %v1103_v44 = vsel %vm864_vm2, %v1099_v42, -inf }
 0x2bf   : > { %1104 = vmax.xlane.f32.xlu1 %v1103_v44 }
 0x2c1   : > { %v1265_v45 = vpop.f32.mrb[4].mxu0 }
 0x2c2   : > { %v3463_v46 = vpop.f32.mrb[5].mxu0  ;;  %v1269_v47 = vsel %vm864_vm2, %v1265_v45, -inf }
 0x2c3   : > { %1270 = vmax.xlane.f32.xlu0 %v1269_v47 }
 0x2c5   : > { %v1430_v48 = vpop.f32.mrb[6].mxu0 }
 0x2c6   : > { %v3473_v49 = vpop.f32.mrb[7].mxu0  ;;  %v1434_v50 = vsel %vm864_vm2, %v1430_v48, -inf }
 0x2c7   : > { %1435 = vmax.xlane.f32.xlu0 %v1434_v50 }
 0x2d0   : > { %1115 = vrot.lane.b32.xlu1 %v4368_v31, %s4769_s0  ;;  %s4810_s0 = smov 112  }
 0x2d8   : > { %v943_v51 = vpop.xlane.xlu0 %942 }
 0x2d9   : > { %v944_v52 = vsub.f32 %v937_v39, %v943_v51 }
 0x2db   : > { %v945_v53 = vmul.f32 1.442695, %v944_v52 }
 0x2dd   : > { %3796 = vpow2.f32 %v945_v53 }
 0x2e7   : > { %v3797_v54 = vpop.eup %3796 }
 0x2e8   : > { %v947_v55 = vsel %vm864_vm2, %v3797_v54, 0.0 }
 0x2f4   : > { %948 = vadd.xlane.f32.xlu1 %v947_v55 }
 0x34c   : > { %v1105_v56 = vpop.xlane.xlu1 %1104 }
 0x34d   : > { %v1106_v57 = vsub.f32 %v1099_v42, %v1105_v56  ;;  %v616_v56 = vld [vmem:[#allocation7] sm:$0xff] }
 0x34f   : > { %v1107_v58 = vmul.f32 1.442695, %v1106_v57  ;;  %v617_v57 = vld [vmem:[#allocation7 + $0x8] sm:$0xff] }
 0x350   : > { %v1271_v59 = vpop.xlane.xlu0 %1270  ;;  %v1116_v9 = vpop.permute.xlu1 %1115 }
 0x351   : > { %3798 = vpow2.f32 %v1107_v58  ;;  %v1272_v60 = vsub.f32 %v1265_v45, %v1271_v59  ;;  %v3234_v45 = vld [vmem:[%s4739_s8] ss:$0 sm:$0xff]  ;;  %v3659_v58 = vpack.c.bf16 %v617_v57, %v616_v56 }
 0x352   : > { %v618_v59 = vld [vmem:[#allocation7 + $0x10] sm:$0xff] }
 0x353   : > { %v1273_v61 = vmul.f32 1.442695, %v1272_v60  ;;  %v619_v60 = vld [vmem:[#allocation7 + $0x18] sm:$0xff] }
 0x354   : > { %v1436_v62 = vpop.xlane.xlu0 %1435 }
 0x355   : > { %3800 = vpow2.f32 %v1273_v61  ;;  %v1437_v63 = vsub.f32 %v1430_v48, %v1436_v62  ;;  %v3662_v61 = vpack.c.bf16 %v619_v60, %v618_v59 }
 0x357   : > { %v1438_v2 = vmul.f32 1.442695, %v1437_v63 }
 0x359   : > { %3802 = vpow2.f32 %v1438_v2 }
 0x35b   : > { %v3799_v3 = vpop.eup %3798 }
 0x35c   : > { %v1109_v4 = vsel %vm864_vm2, %v3799_v3, 0.0 }
 0x35d   : > { %1110 = vadd.xlane.f32.xlu0 %v1109_v4 }
 0x35f   : > { %v3801_v5 = vpop.eup %3800 }
 0x360   : > { %v1275_v6 = vsel %vm864_vm2, %v3801_v5, 0.0 }
 0x361   : > { %1276 = vadd.xlane.f32.xlu1 %v1275_v6 }
 0x363   : > { %v3803_v7 = vpop.eup %3802 }
 0x364   : > { %v1440_v8 = vsel %vm864_vm2, %v3803_v7, 0.0 }
 0x365   : > { %1441 = vadd.xlane.f32.xlu0 %v1440_v8  ;;  %v621_v8 = vld [vmem:[%s4744_s13] sm:$0xff] }
 0x372   : > { %1445 = vrot.lane.b32.xlu1 %v4368_v31, %s4767_s18  ;;  %s4809_s18 = smov 104  }
 0x37b   : > { %1280 = vrot.lane.b32.xlu0 %v4368_v31, %s4765_s12  ;;  %v612_v31 = vld [vmem:[#allocation5 + $0x18] sm:$0xff] }
 0x37c   : > { %v3656_v32 = vpack.c.bf16 %v612_v31, %v611_v30 }
 0x37e   : > { %3657 = vmatpush3.bf16.msra.mxu0 %v3656_v32 }
 0x37f   : > { %3664 = vmatprep.subr.bf16.mxu0 %v4003_v0 }
 0x381   : > { %v949_v11 = vpop.xlane.xlu1 %948 }
 0x382   : > { %3804 = vrcp.f32 %v949_v11 }
 0x38c   : > { %v3805_v12 = vpop.eup %3804 }
 0x38d   : > { %v951_v13 = vmul.f32 %v3805_v12, %v3797_v54  ;;  %v623_v12 = vld [vmem:[%s4744_s13 + $0x10] sm:$0xff] }
 0x38f   : > { %3447 = vmatmul.mubr.msk.f32.vlgmr.msra.gmra.mrb[6].mxu1 %vm864_vm2, %v951_v13  ;;  %v624_v13 = vld [vmem:[%s4744_s13 + $0x18] sm:$0xff] }
 0x390   : > { %3455 = vmatpush3.msra.mxu1 %v1116_v9  ;;  %3456 = vmatprep.mubr.msk.f32.mxu1 %vm4004_vm0, %v4005_v1  ;;  %v622_v9 = vld [vmem:[%s4744_s13 + $0x8] sm:$0xff] }
 0x391   : > { %3464 = vmatprep.subr.mxu1 %v4005_v1  ;;  %v3665_v11 = vpack.c.bf16 %v622_v9, %v621_v8  ;;  %v3274_v9 = vld [vmem:[%s4802_s2 + $0x1] ss:$0 sm:$0xff]  ;;  %s4815_s2 = sld [smem:[#allocation25_spill]] }
 0x3ea   : > { %v1111_v14 = vpop.xlane.xlu0 %1110 }
 0x3eb   : > { %3806 = vrcp.f32 %v1111_v14  ;;  %v3668_v14 = vpack.c.bf16 %v624_v13, %v623_v12 }
 0x3ee   : > { %v1277_v15 = vpop.xlane.xlu1 %1276 }
 0x3ef   : > { %3808 = vrcp.f32 %v1277_v15  ;;  %v625_v15 = vld [vmem:[%s4744_s13 + $0x20] sm:$0xff] }
 0x3f2   : > { %v1442_v16 = vpop.xlane.xlu0 %1441  ;;  %v1446_v22 = vpop.permute.xlu1 %1445 }
 0x3f3   : > { %3810 = vrcp.f32 %v1442_v16  ;;  %v626_v16 = vld [vmem:[%s4744_s13 + $0x28] sm:$0xff] }
 0x3f5   : > { %v3807_v17 = vpop.eup %3806 }
 0x3f6   : > { %v1113_v18 = vmul.f32 %v3807_v17, %v3799_v3  ;;  %v1281_v19 = vpop.permute.xlu0 %1280  ;;  %v3236_v3 = vld [vmem:[%s4740_s9] ss:$0 sm:$0xff]  ;;  %v3671_v17 = vpack.c.bf16 %v626_v16, %v625_v15  ;;  %v3276_v16 = vld [vmem:[%s4735_s4 + $0x1] ss:$0 sm:$0xff] }
 0x3f8   : > { %3457 = vmatmul.mubr.msk.f32.vlgmr.msra.gmra.mrb[8].mxu1 %vm864_vm2, %v1113_v18  ;;  %v627_v18 = vld [vmem:[%s4744_s13 + $0x30] sm:$0xff] }
 0x3f9   : > { %v3809_v20 = vpop.eup %3808  ;;  %3465 = vmatpush3.msra.mxu1 %v1281_v19  ;;  %3466 = vmatprep.mubr.msk.f32.mxu1 %vm4004_vm0, %v4005_v1  ;;  %v628_v19 = vld [vmem:[%s4744_s13 + $0x38] sm:$0xff] }
 0x3fa   : > { %v1279_v21 = vmul.f32 %v3809_v20, %v3801_v5  ;;  %3474 = vmatprep.subr.mxu1 %v4005_v1  ;;  %v3237_v5 = vld [vmem:[%s4741_s10] ss:$0 sm:$0xff]  ;;  %v3674_v20 = vpack.c.bf16 %v628_v19, %v627_v18 }
 0x3fc   : > { %3467 = vmatmul.mubr.msk.f32.vlgmr.msra.gmra.mrb[10].mxu1 %vm864_vm2, %v1279_v21 }
 0x3fd   : > { %v3811_v23 = vpop.eup %3810  ;;  %3475 = vmatpush3.msra.mxu1 %v1446_v22  ;;  %3476 = vmatprep.mubr.msk.f32.mxu1 %vm4004_vm0, %v4005_v1 }
 0x3fe   : > { %v1444_v24 = vmul.f32 %v3811_v23, %v3803_v7  ;;  %3658 = vmatprep.subr.bf16.mxu1 %v4003_v0 }
 0x400   : > { %3477 = vmatmul.mubr.msk.f32.vlgmr.msra.gmra.mrb[12].mxu1 %vm864_vm2, %v1444_v24 }
 0x401   : > { %3498 = vmatprep.mubr.msk.f32.mxu1 %vm4004_vm0, %v4005_v1  ;;  %3660 = vmatpush3.bf16.msra.mxu1 %v3659_v58 }
 0x402   : > { %3661 = vmatprep.subr.bf16.mxu1 %v4003_v0 }
 0x405   : > { %3663 = vmatpush3.bf16.msra.mxu1 %v3662_v61  ;;  %v3242_v61 = vld [vmem:[%s4806_s17] ss:$0 sm:$0xff] }
 0x406   : > { %3676 = vmatprep.subr.bf16.mxu1 %v4003_v0 }
 0x462   : > { %v1021_v25 = vpop.f32.mrb[6].mxu1 }
 0x463   : > { %v3448_v26 = vpop.f32.mrb[7].mxu1 }
 0x4cb   : > { %v1187_v33 = vpop.f32.mrb[8].mxu1 }
 0x4cc   : > { %1522 = vrot.lane.b32.xlu1 %v1187_v33, %s4764_s24  ;;  %v3458_v34 = vpop.f32.mrb[9].mxu1  ;;  %s4803_s24 = sld [smem:[#allocation21_spill]] }
 0x4cd   : > { %v3240_v34 = vld [vmem:[%s4805_s29] ss:$0 sm:$0xff] }
 0x4cf   : > { %v1352_v35 = vpop.f32.mrb[10].mxu1 }
 0x4d0   : > { %1526 = vrot.lane.b32.xlu0 %v1352_v35, %s4763_s22  ;;  %v3468_v36 = vpop.f32.mrb[11].mxu1 }
 0x4d2   : > { %s4804_s22 = smov %s4803_s24  ;;  %v3238_v21 = vld [vmem:[%s4803_s24] ss:$0 sm:$0xff] }
 0x4d3   : > { %v1517_v37 = vpop.f32.mrb[12].mxu1 }
 0x4d4   : > { %1530 = vrot.lane.b32.xlu1 %v1517_v37, %s4762_s19  ;;  %v3478_v38 = vpop.f32.mrb[13].mxu1  ;;  %s4814_s19 = sshll.u32 %s4272_s7, 3 }
 0x4d5   : > { %s592_s24 = scalar_lea.vmem [#allocation8], %s4814_s19 }
 0x4d6   : > { %s3115_s14 = sshll.u32 %s592_s24, 4  ;;  %s4688_s14 = int_to_ptr.vmem [resolvable:$true] %s3115_s14 }
 0x53e   : > { %v1523_v39 = vpop.permute.xlu1 %1522 }
 0x53f   : > { %v1533_v41 = vsel %vm864_vm2, %v1021_v25, %v1523_v39 }
 0x542   : > { %v1527_v40 = vpop.permute.xlu0 %1526 }
 0x543   : > { %v1535_v42 = vsel %vm1534_vm3, %v1533_v41, %v1527_v40 }
 0x546   : > { %v1531_v43 = vpop.permute.xlu1 %1530 }
 0x547   : > { %v1537_v44 = vsel %vm1536_vm4, %v1535_v42, %v1531_v43 }
 0x548   : > { %3488 = vmatmul.mubr.msk.f32.vlgmr.msra.gmra.mrb[8].mxu0 %vm638_vm1, %v1537_v44 }
 0x549   : > { %3517 = vmatprep.mubr.msk.f32.mxu0 %vm4004_vm0, %v4005_v1  ;;  %3666 = vmatpush3.bf16.msra.mxu0 %v3665_v11 }
 0x54a   : > { %3667 = vmatprep.subr.bf16.mxu0 %v4003_v0 }
 0x54d   : > { %3669 = vmatpush3.bf16.msra.mxu0 %v3668_v14 }
 0x54e   : > { %3670 = vmatprep.subr.bf16.mxu0 %v4003_v0 }
 0x551   : > { %3672 = vmatpush3.bf16.msra.mxu0 %v3671_v17 }
 0x552   : > { %3673 = vmatprep.subr.bf16.mxu0 %v4003_v0 }
 0x555   : > { %3675 = vmatpush3.bf16.msra.mxu0 %v3674_v20  ;;  %v3278_v20 = vld [vmem:[%s4737_s6 + $0x1] ss:$0 sm:$0xff] }
 0x556   : > { %3688 = vmatprep.subr.bf16.mxu0 %v4003_v0 }
 0x61b   : > { %v1613_v46 = vpop.f32.mrb[8].mxu0 }
 0x61c   : > { %v1614_v47 = vadd.f32 %v3234_v45, %v1613_v46  ;;  %v3489_v48 = vpop.f32.mrb[9].mxu0  ;;  %v3244_v45 = vld [vmem:[%s4799_s1 + $0x20] sm:$0xff]  ;;  %v3245_v46 = vld [vmem:[%s4799_s1 + $0x28] sm:$0xff] }
 0x61d   : > { %v3254_v48 = vld [vmem:[%s4801_s5 + $0x20] sm:$0xff] }
 0x61e   : > { %v1617_v49 = vadd.f32 %v1614_v47, %v4311_v10  ;;  %v3677_v47 = vpack.c.bf16 %v3245_v46, %v3244_v45 }
 0x620   : > { %v1618_v50 = vsel %vm638_vm1, %v1617_v49, 0.0 }
 0x621   : > { %1619 = vadd.xlane.f32.xlu0 %v1618_v50 }
 0x6ae   : > { %v1620_v51 = vpop.xlane.xlu0 %1619 }
 0x6af   : > { %v1622_v52 = vmul.f32 0.03125, %v1620_v51  ;;  %v3246_v51 = vld [vmem:[%s4799_s1 + $0x30] sm:$0xff] }
 0x6b1   : > { %v1623_v53 = vsub.f32 %v1617_v49, %v1622_v52  ;;  %v3255_v49 = vld [vmem:[%s4801_s5 + $0x28] sm:$0xff]  ;;  %v3247_v52 = vld [vmem:[%s4799_s1 + $0x38] sm:$0xff]  ;;  %s4807_s1 = sld [smem:[#allocation24_spill]] }
 0x6b2   : > { %v3689_v50 = vpack.c.bf16 %v3255_v49, %v3254_v48 }
 0x6b3   : > { %v1624_v54 = vmul.f32 %v1623_v53, %v1623_v53 }
 0x6b5   : > { %v1625_v55 = vsel %vm638_vm1, %v1624_v54, 0.0  ;;  %v3680_v54 = vpack.c.bf16 %v3247_v52, %v3246_v51 }
 0x6b6   : > { %1626 = vadd.xlane.f32.xlu1 %v1625_v55  ;;  %v3257_v55 = vld [vmem:[%s4801_s5 + $0x38] sm:$0xff] }
 0x743   : > { %v1627_v10 = vpop.xlane.xlu1 %1626 }
 0x744   : > { %v1628_v62 = vmul.f32 0.03125, %v1627_v10 }
 0x746   : > { %v1629_v63 = vadd.f32 1e-05, %v1628_v62  ;;  %v3249_v62 = vld [vmem:[%s4800_s3 + $0x20] sm:$0xff] }
 0x748   : > { %3812 = vrsqrt.f32 %v1629_v63  ;;  %v3250_v63 = vld [vmem:[%s4800_s3 + $0x28] sm:$0xff] }
 0x752   : > { %v3813_v2 = vpop.eup %3812 }
 0x753   : > { %v1631_v4 = vmul.f32 %v3813_v2, %v1623_v53  ;;  %v3256_v53 = vld [vmem:[%s4801_s5 + $0x30] sm:$0xff]  ;;  %v3243_v2 = vld [vmem:[%s4807_s1] ss:$0 sm:$0xff]  ;;  %s4812_s5 = smov 16  }
 0x754   : > { %v3692_v56 = vpack.c.bf16 %v3257_v55, %v3256_v53 }
 0x755   : > { %v1638_v6 = vmul.f32 %v3236_v3, %v1631_v4  ;;  %v3683_v4 = vpack.c.bf16 %v3250_v63, %v3249_v62 }
 0x757   : > { %v1645_v7 = vadd.f32 %v3237_v5, %v1638_v6  ;;  %v3251_v6 = vld [vmem:[%s4800_s3 + $0x30] sm:$0xff] }
 0x759   : > { %3499 = vmatmul.mubr.msk.f32.vlgmr.msra.gmra.mrb[14].mxu1 %vm638_vm1, %v1645_v7 }
 0x75a   : > { %3528 = vmatprep.mubr.msk.f32.mxu1 %vm4004_vm0, %v4005_v1  ;;  %3678 = vmatpush3.bf16.msra.mxu1 %v3677_v47 }
 0x75b   : > { %3679 = vmatprep.subr.bf16.mxu1 %v4003_v0 }
 0x75e   : > { %3681 = vmatpush3.bf16.msra.mxu1 %v3680_v54 }
 0x75f   : > { %3682 = vmatprep.subr.bf16.mxu1 %v4003_v0 }
 0x82c   : > { %v1721_v22 = vpop.f32.mrb[14].mxu1 }
 0x82d   : > { %v1722_v23 = vadd.f32 %v3238_v21, %v1721_v22  ;;  %v3500_v24 = vpop.f32.mrb[15].mxu1 }
 0x82f   : > { %v1726_v25 = vmul.f32 %v1722_v23, %v1722_v23  ;;  %v1725_v31 = vmul.f32 0.5, %v1722_v23 }
 0x831   : > { %v1727_v26 = vmul.f32 %v1726_v25, %v1722_v23 }
 0x833   : > { %v1728_v27 = vmul.f32 0.044715, %v1727_v26 }
 0x835   : > { %v1729_v28 = vadd.f32 %v1728_v27, %v1722_v23 }
 0x837   : > { %v1730_v29 = vmul.f32 0.7978846, %v1729_v28 }
 0x839   : > { %3814 = vtanh.f32 %v1730_v29 }
 0x843   : > { %v3815_v30 = vpop.eup %3814 }
 0x844   : > { %v1732_v32 = vadd.f32 1.0, %v3815_v30 }
 0x846   : > { %v1733_v33 = vmul.f32 %v1732_v32, %v1725_v31 }
 0x848   : > { %3518 = vmatmul.mubr.msk.f32.vlgmr.msra.gmra.mrb[10].mxu0 %vm1740_vm5, %v1733_v33 }
 0x849   : > { %3550 = vmatprep.mubr.msk.f32.mxu0 %vm4004_vm0, %v4005_v1  ;;  %3690 = vmatpush3.bf16.msra.mxu0 %v3689_v50 }
 0x84a   : > { %3691 = vmatprep.subr.bf16.mxu0 %v4003_v0 }
 0x84d   : > { %3693 = vmatpush3.bf16.msra.mxu0 %v3692_v56 }
 0x84e   : > { %3563 = vmatprep.subr.mxu0 %v4005_v1 }
 0x91b   : > { %v1810_v35 = vpop.f32.mrb[10].mxu0 }
 0x91c   : > { %v1811_v36 = vadd.f32 %v3240_v34, %v1810_v35  ;;  %v3519_v37 = vpop.f32.mrb[11].mxu0 }
 0x91e   : > { %v1814_v38 = vadd.f32 %v1811_v36, %v1645_v7  ;;  %v3252_v7 = vld [vmem:[%s4800_s3 + $0x38] sm:$0xff] }
 0x91f   : > { %v3686_v8 = vpack.c.bf16 %v3252_v7, %v3251_v6 }
 0x920   : > { %v1815_v39 = vsel %vm638_vm1, %v1814_v38, 0.0 }
 0x921   : > { %1816 = vadd.xlane.f32.xlu0 %v1815_v39 }
 0x9ae   : > { %v1817_v40 = vpop.xlane.xlu0 %1816 }
 0x9af   : > { %v1818_v41 = vmul.f32 0.03125, %v1817_v40 }
 0x9b1   : > { %v1819_v42 = vsub.f32 %v1814_v38, %v1818_v41 }
 0x9b3   : > { %v1820_v43 = vmul.f32 %v1819_v42, %v1819_v42 }
 0x9b5   : > { %v1821_v44 = vsel %vm638_vm1, %v1820_v43, 0.0 }
 0x9b6   : > { %1822 = vadd.xlane.f32.xlu0 %v1821_v44 }
 0xa43   : > { %v1823_v57 = vpop.xlane.xlu0 %1822 }
 0xa44   : > { %v1824_v58 = vmul.f32 0.03125, %v1823_v57 }
 0xa46   : > { %v1825_v59 = vadd.f32 1e-05, %v1824_v58 }
 0xa48   : > { %3816 = vrsqrt.f32 %v1825_v59 }
 0xa52   : > { %v3817_v60 = vpop.eup %3816 }
 0xa53   : > { %v1827_v10 = vmul.f32 %v3817_v60, %v1819_v42 }
 0xa55   : > { %v1834_v3 = vmul.f32 %v3242_v61, %v1827_v10 }
 0xa57   : > { %v4523_v5 = vadd.f32 %v3243_v2, %v1834_v3 }
 0xa59   : > { %3529 = vmatmul.mubr.msk.f32.vlgmr.msra.gmra.mrb[16].mxu1 %vm638_vm1, %v4523_v5  ;;  %3551 = vmatmul.mubr.msk.f32.vlgmr.msra.gmra.mrb[12].mxu0 %vm638_vm1, %v4523_v5 }
 0xa5a   : > { %3684 = vmatpush3.bf16.msra.mxu1 %v3683_v4  ;;  %3539 = vmatprep.mubr.msk.f32.mxu1 %vm4004_vm0, %v4005_v1 }
 0xa5b   : > { %3685 = vmatprep.subr.bf16.mxu1 %v4003_v0  ;;  %3565 = vmatprep.mubr.msk.f32.mxu0 %vm4004_vm0, %v4005_v1 }
 0xa5e   : > { %3687 = vmatpush3.bf16.msra.mxu1 %v3686_v8 }
 0xa5f   : > { %3553 = vmatprep.subr.mxu1 %v4005_v1 }
 0xa61   : > { %3540 = vmatmul.mubr.msk.f32.vlgmr.msra.gmra.mrb[18].mxu1 %vm638_vm1, %v4523_v5 }
 0xa62   : > { %3555 = vmatprep.mubr.msk.f32.mxu1 %vm4004_vm0, %v4005_v1 }
 0xb2c   : > { %v1971_v11 = vpop.f32.mrb[16].mxu1  ;;  %v2123_v12 = vpop.f32.mrb[12].mxu0 }
 0xb2d   : > { %v1972_v13 = vadd.f32 %v3274_v9, %v1971_v11  ;;  %v3530_v14 = vpop.f32.mrb[17].mxu1  ;;  %v3552_v15 = vpop.f32.mrb[13].mxu0  ;;  %v4559_v21 = vadd.f32 %v3278_v20, %v2123_v12  ;;  %v1867_v20 = vld [vmem:[#allocation5 + $0x38] sm:$0xff] }
 0xb2f   : > { %2287 = vrot.lane.b32.xlu0 %v1972_v13, %s4808_s16 }
 0xb34   : > { %v2047_v17 = vpop.f32.mrb[18].mxu1 }
 0xb35   : > { %v2048_v18 = vadd.f32 %v3276_v16, %v2047_v17  ;;  %v3541_v19 = vpop.f32.mrb[19].mxu1  ;;  %v1864_v16 = vld [vmem:[#allocation5 + $0x20] sm:$0xff]  ;;  %v1865_v17 = vld [vmem:[#allocation5 + $0x28] sm:$0xff] }
 0xb36   : > { %v1866_v19 = vld [vmem:[#allocation5 + $0x30] sm:$0xff] }
 0xb37   : > { %2620 = vrot.lane.b32.xlu0 %v2048_v18, %s4809_s18  ;;  %2289 = vrot.lane.b32.xlu1 %v2048_v18, %s4808_s16 }
 0xb38   : > { %3554 = vmatpush3.xpose.msk.msra.mxu1 %vm864_vm2, %v2048_v18 }
 0xb39   : > { %3558 = vmatprep.subr.mxu1 %v4005_v1 }
 0xb3b   : > { %3556 = vmatmul.mubr.msk.f32.vlgmr.msra.gmra.mrb[20].mxu1 %vm864_vm2, %v1972_v13  ;;  %2455 = vrot.lane.b32.xlu1 %v2048_v18, %s4810_s0  ;;  %v3695_v18 = vpack.c.bf16 %v1865_v17, %v1864_v16 }
 0xb3c   : > { %3559 = vmatpush3.msra.mxu1 %v4559_v21  ;;  %3560 = vmatprep.mubr.msk.f32.mxu1 %vm4004_vm0, %v4005_v1 }
 0xb3d   : > { %3568 = vmatprep.subr.mxu1 %v4005_v1 }
 0xb3f   : > { %2453 = vrot.lane.b32.xlu1 %v1972_v13, %s4810_s0 }
 0xb43   : > { %2618 = vrot.lane.b32.xlu1 %v1972_v13, %s4809_s18 }
 0xba1   : > { %v2288_v23 = vpop.permute.xlu0 %2287 }
 0xba9   : > { %v2290_v22 = vpop.permute.xlu1 %2289  ;;  %v2621_v26 = vpop.permute.xlu0 %2620 }
 0xbaa   : > { %3564 = vmatpush3.xpose.msk.msra.mxu0 %vm864_vm2, %v2290_v22 }
 0xbab   : > { %3573 = vmatprep.subr.mxu0 %v4005_v1 }
 0xbad   : > { %3566 = vmatmul.mubr.msk.f32.vlgmr.msra.gmra.mrb[14].mxu0 %vm864_vm2, %v2288_v23  ;;  %v2456_v24 = vpop.permute.xlu1 %2455 }
 0xbae   : > { %3574 = vmatpush3.xpose.msk.msra.mxu0 %vm864_vm2, %v2456_v24  ;;  %3575 = vmatprep.mubr.msk.f32.mxu0 %vm4004_vm0, %v4005_v1 }
 0xbaf   : > { %3583 = vmatprep.subr.mxu0 %v4005_v1 }
 0xbb1   : > { %v2454_v25 = vpop.permute.xlu1 %2453 }
 0xbb2   : > { %3576 = vmatmul.mubr.msk.f32.vlgmr.msra.gmra.mrb[16].mxu0 %vm864_vm2, %v2454_v25 }
 0xbb3   : > { %3584 = vmatpush3.xpose.msk.msra.mxu0 %vm864_vm2, %v2621_v26  ;;  %3585 = vmatprep.mubr.msk.f32.mxu0 %vm4004_vm0, %v4005_v1 }
 0xbb4   : > { %3694 = vmatprep.subr.bf16.mxu0 %v4003_v0 }
 0xbb5   : > { %v2619_v27 = vpop.permute.xlu1 %2618 }
 0xbb6   : > { %3586 = vmatmul.mubr.msk.f32.vlgmr.msra.gmra.mrb[18].mxu0 %vm864_vm2, %v2619_v27 }
 0xbb7   : > { %3601 = vmatprep.mubr.msk.f32.mxu0 %vm4004_vm0, %v4005_v1  ;;  %3696 = vmatpush3.bf16.msra.mxu0 %v3695_v18 }
 0xbb8   : > { %3697 = vmatprep.subr.bf16.mxu0 %v4003_v0 }
 0xc0e   : > { %v2199_v28 = vpop.f32.mrb[20].mxu1 }
 0xc0f   : > { %v3557_v29 = vpop.f32.mrb[21].mxu1  ;;  %v2203_v30 = vsel %vm864_vm2, %v2199_v28, -inf }
 0xc10   : > { %2204 = vmax.xlane.f32.xlu0 %v2203_v30 }
 0xc80   : > { %v2361_v31 = vpop.f32.mrb[14].mxu0 }
 0xc81   : > { %v3567_v32 = vpop.f32.mrb[15].mxu0  ;;  %v2365_v33 = vsel %vm864_vm2, %v2361_v31, -inf }
 0xc82   : > { %2366 = vmax.xlane.f32.xlu1 %v2365_v33 }
 0xc85   : > { %v2527_v34 = vpop.f32.mrb[16].mxu0 }
 0xc86   : > { %v3577_v35 = vpop.f32.mrb[17].mxu0  ;;  %v2531_v36 = vsel %vm864_vm2, %v2527_v34, -inf }
 0xc87   : > { %2532 = vmax.xlane.f32.xlu0 %v2531_v36 }
 0xc89   : > { %v2692_v37 = vpop.f32.mrb[18].mxu0 }
 0xc8a   : > { %v3587_v38 = vpop.f32.mrb[19].mxu0  ;;  %v2696_v39 = vsel %vm864_vm2, %v2692_v37, -inf }
 0xc8b   : > { %2697 = vmax.xlane.f32.xlu0 %v2696_v39 }
 0xc93   : > { %2377 = vrot.lane.b32.xlu1 %v4559_v21, %s4808_s16  ;;  %s3303_s16 = sshll.u32 %s4124_s28, 7  ;;  %s4012_s28 = smov [#allocation8]  }
 0xc94   : > { %s4686_s3 = scalar_lea.hbm %s4815_s2, %s3303_s16 }
 0xc9d   : > { %v2205_v40 = vpop.xlane.xlu0 %2204 }
 0xc9e   : > { %v2206_v41 = vsub.f32 %v2199_v28, %v2205_v40 }
 0xca0   : > { %v2207_v42 = vmul.f32 1.442695, %v2206_v41 }
 0xca2   : > { %3818 = vpow2.f32 %v2207_v42 }
 0xcac   : > { %v3819_v43 = vpop.eup %3818 }
 0xcad   : > { %v2209_v44 = vsel %vm864_vm2, %v3819_v43, 0.0 }
 0xcb7   : > { %2210 = vadd.xlane.f32.xlu1 %v2209_v44 }
 0xd0f   : > { %v2367_v45 = vpop.xlane.xlu1 %2366 }
 0xd10   : > { %v2368_v46 = vsub.f32 %v2361_v31, %v2367_v45  ;;  %v1876_v45 = vld [vmem:[#allocation7 + $0x28] sm:$0xff] }
 0xd12   : > { %v2369_v47 = vmul.f32 1.442695, %v2368_v46 }
 0xd13   : > { %v2378_v60 = vpop.permute.xlu1 %2377 }
 0xd14   : > { %3820 = vpow2.f32 %v2369_v47  ;;  %v2533_v48 = vpop.xlane.xlu0 %2532  ;;  %v1877_v47 = vld [vmem:[#allocation7 + $0x30] sm:$0xff] }
 0xd15   : > { %v2534_v49 = vsub.f32 %v2527_v34, %v2533_v48  ;;  %v3292_v34 = vld [vmem:[%s4739_s8 + $0x1] ss:$0 sm:$0xff]  ;;  %v1878_v48 = vld [vmem:[#allocation7 + $0x38] sm:$0xff] }
 0xd17   : > { %v2535_v50 = vmul.f32 1.442695, %v2534_v49  ;;  %v3704_v49 = vpack.c.bf16 %v1878_v48, %v1877_v47 }
 0xd18   : > { %v2698_v51 = vpop.xlane.xlu0 %2697 }
 0xd19   : > { %3822 = vpow2.f32 %v2535_v50  ;;  %v2699_v52 = vsub.f32 %v2692_v37, %v2698_v51 }
 0xd1b   : > { %v2700_v53 = vmul.f32 1.442695, %v2699_v52 }
 0xd1d   : > { %3824 = vpow2.f32 %v2700_v53  ;;  %v3294_v53 = vld [vmem:[%s4740_s9 + $0x1] ss:$0 sm:$0xff] }
 0xd1e   : > { %v3821_v54 = vpop.eup %3820 }
 0xd1f   : > { %v2371_v55 = vsel %vm864_vm2, %v3821_v54, 0.0 }
 0xd20   : > { %2372 = vadd.xlane.f32.xlu0 %v2371_v55  ;;  %v3295_v55 = vld [vmem:[%s4741_s10 + $0x1] ss:$0 sm:$0xff] }
 0xd23   : > { %v3823_v56 = vpop.eup %3822 }
 0xd24   : > { %v2537_v57 = vsel %vm864_vm2, %v3823_v56, 0.0 }
 0xd25   : > { %2538 = vadd.xlane.f32.xlu1 %v2537_v57 }
 0xd27   : > { %v3825_v58 = vpop.eup %3824 }
 0xd28   : > { %v2702_v59 = vsel %vm864_vm2, %v3825_v58, 0.0 }
 0xd29   : > { %2703 = vadd.xlane.f32.xlu0 %v2702_v59  ;;  %v3264_v59 = vld [vmem:[%s4744_s13 + $0x48] sm:$0xff] }
 0xd36   : > { %2707 = vrot.lane.b32.xlu1 %v4559_v21, %s4809_s18 }
 0xd3f   : > { %2542 = vrot.lane.b32.xlu0 %v4559_v21, %s4810_s0  ;;  %v3698_v21 = vpack.c.bf16 %v1867_v20, %v1866_v19  ;;  %s3102_s0 = scalar_lea.sflag [#allocation4], %s4272_s7 }
 0xd41   : > { %3699 = vmatpush3.bf16.msra.mxu0 %v3698_v21  ;;  %v3298_v21 = vld [vmem:[%s4805_s29 + $0x1] ss:$0 sm:$0xff] }
 0xd42   : > { %3706 = vmatprep.subr.bf16.mxu0 %v4003_v0 }
 0xd44   : > { %v2211_v61 = vpop.xlane.xlu1 %2210 }
 0xd45   : > { %3826 = vrcp.f32 %v2211_v61  ;;  %v3265_v61 = vld [vmem:[%s4744_s13 + $0x50] sm:$0xff] }
 0xd4f   : > { %v3827_v10 = vpop.eup %3826 }
 0xd50   : > { %v2213_v62 = vmul.f32 %v3827_v10, %v3819_v43  ;;  %v3266_v10 = vld [vmem:[%s4744_s13 + $0x58] sm:$0xff] }
 0xd52   : > { %3561 = vmatmul.mubr.msk.f32.vlgmr.msra.gmra.mrb[22].mxu1 %vm864_vm2, %v2213_v62  ;;  %v3710_v62 = vpack.c.bf16 %v3266_v10, %v3265_v61 }
 0xd53   : > { %3569 = vmatpush3.msra.mxu1 %v2378_v60  ;;  %3570 = vmatprep.mubr.msk.f32.mxu1 %vm4004_vm0, %v4005_v1 }
 0xd54   : > { %3578 = vmatprep.subr.mxu1 %v4005_v1 }
 0xdad   : > { %v2373_v63 = vpop.xlane.xlu0 %2372 }
 0xdae   : > { %3828 = vrcp.f32 %v2373_v63  ;;  %v3267_v63 = vld [vmem:[%s4744_s13 + $0x60] sm:$0xff] }
 0xdb2   : > { %v2539_v2 = vpop.xlane.xlu1 %2538 }
 0xdb3   : > { %3830 = vrcp.f32 %v2539_v2  ;;  %v3268_v2 = vld [vmem:[%s4744_s13 + $0x68] sm:$0xff] }
 0xdb6   : > { %v2704_v3 = vpop.xlane.xlu0 %2703  ;;  %v2708_v11 = vpop.permute.xlu1 %2707 }
 0xdb7   : > { %3832 = vrcp.f32 %v2704_v3  ;;  %v3713_v3 = vpack.c.bf16 %v3268_v2, %v3267_v63 }
 0xdb8   : > { %v3829_v4 = vpop.eup %3828 }
 0xdb9   : > { %v2375_v6 = vmul.f32 %v3829_v4, %v3821_v54  ;;  %v3269_v4 = vld [vmem:[%s4744_s13 + $0x70] sm:$0xff] }
 0xdba   : > { %v2543_v7 = vpop.permute.xlu0 %2542 }
 0xdbb   : > { %3571 = vmatmul.mubr.msk.f32.vlgmr.msra.gmra.mrb[24].mxu1 %vm864_vm2, %v2375_v6  ;;  %v3270_v6 = vld [vmem:[%s4744_s13 + $0x78] sm:$0xff] }
 0xdbc   : > { %3579 = vmatpush3.msra.mxu1 %v2543_v7  ;;  %3580 = vmatprep.mubr.msk.f32.mxu1 %vm4004_vm0, %v4005_v1  ;;  %v3716_v7 = vpack.c.bf16 %v3270_v6, %v3269_v4 }
 0xdbd   : > { %v3831_v8 = vpop.eup %3830  ;;  %3588 = vmatprep.subr.mxu1 %v4005_v1 }
 0xdbe   : > { %v2541_v9 = vmul.f32 %v3831_v8, %v3823_v56  ;;  %v3296_v8 = vld [vmem:[%s4804_s22 + $0x1] ss:$0 sm:$0xff] }
 0xdc0   : > { %3581 = vmatmul.mubr.msk.f32.vlgmr.msra.gmra.mrb[26].mxu1 %vm864_vm2, %v2541_v9 }
 0xdc1   : > { %v3833_v12 = vpop.eup %3832  ;;  %3589 = vmatpush3.msra.mxu1 %v2708_v11  ;;  %3590 = vmatprep.mubr.msk.f32.mxu1 %vm4004_vm0, %v4005_v1 }
 0xdc2   : > { %v2706_v13 = vmul.f32 %v3833_v12, %v3825_v58  ;;  %3700 = vmatprep.subr.bf16.mxu1 %v4003_v0  ;;  %v3263_v58 = vld [vmem:[%s4744_s13 + $0x40] sm:$0xff] }
 0xdc3   : > { %v3707_v60 = vpack.c.bf16 %v3264_v59, %v3263_v58 }
 0xdc4   : > { %3591 = vmatmul.mubr.msk.f32.vlgmr.msra.gmra.mrb[28].mxu1 %vm864_vm2, %v2706_v13 }
 0xdc5   : > { %3612 = vmatprep.mubr.msk.f32.mxu1 %vm4004_vm0, %v4005_v1 }
 0xe25   : > { %v2283_v14 = vpop.f32.mrb[22].mxu1 }
 0xe26   : > { %v3562_v15 = vpop.f32.mrb[23].mxu1 }
 0xe8e   : > { %v2449_v22 = vpop.f32.mrb[24].mxu1 }
 0xe8f   : > { %2784 = vrot.lane.b32.xlu1 %v2449_v22, %s4811_s20  ;;  %v3572_v23 = vpop.f32.mrb[25].mxu1  ;;  %s3926_s20 = scalar_lea.vmem %s4688_s14, 128 }
 0xe90   : > { %p3927_p11 = scmp.ne.s32.totalorder %s4688_s14, %s3926_s20 }
 0xe92   : > { %p3928_p1 = pnand %p3927_p11, %p4816_p0 }
 0xe93   : > { %v2614_v24 = vpop.f32.mrb[26].mxu1 }
 0xe94   : > { %2788 = vrot.lane.b32.xlu0 %v2614_v24, %s4812_s5  ;;  %v3582_v25 = vpop.f32.mrb[27].mxu1  ;;  %p3929_p3 = pneg %p3928_p1  ;;  %s3930_s5 = sshll.u32 %s4012_s28, 4  ;;  %s3931_s5 = int_to_ptr.vmem [resolvable:$false] %s3930_s5 }
 0xe95   : > { %p3933_p7 = scmp.lt.s32.totalorder %s4688_s14, %s3931_s5 }
 0xe97   : > { %v2779_v26 = vpop.f32.mrb[28].mxu1 }
 0xe98   : > { %2792 = vrot.lane.b32.xlu1 %v2779_v26, %s4813_s11  ;;  %v3592_v27 = vpop.f32.mrb[29].mxu1  ;;  %s3932_s11 = scalar_lea.vmem %s3931_s5, 256 }
 0xe99   : > { %p3934_p9 = scmp.lt.s32.totalorder %s3932_s11, %s3926_s20 }
 0xe9b   : > { %p3935_p12 = por %p3934_p9, %p3933_p7 }
 0xe9d   : > { %p3936_p2 = pnand %p3935_p12, %p3929_p3 }
 0xf01   : > { %v2785_v28 = vpop.permute.xlu1 %2784 }
 0xf02   : > { %v2795_v30 = vsel %vm864_vm2, %v2283_v14, %v2785_v28 }
 0xf06   : > { %v2789_v29 = vpop.permute.xlu0 %2788 }
 0xf07   : > { %v2796_v31 = vsel %vm1534_vm3, %v2795_v30, %v2789_v29 }
 0xf0a   : > { %v2793_v32 = vpop.permute.xlu1 %2792 }
 0xf0b   : > { %v2797_v33 = vsel %vm1536_vm4, %v2796_v31, %v2793_v32 }
 0xf0c   : > { %3602 = vmatmul.mubr.msk.f32.vlgmr.msra.gmra.mrb[20].mxu0 %vm638_vm1, %v2797_v33 }
 0xf0d   : > { %3631 = vmatprep.mubr.msk.f32.mxu0 %vm4004_vm0, %v4005_v1  ;;  %v1875_v1 = vld [vmem:[#allocation7 + $0x20] sm:$0xff]  ;;  %3708 = vmatpush3.bf16.msra.mxu0 %v3707_v60 }
 0xf0e   : > { %v3701_v46 = vpack.c.bf16 %v1876_v45, %v1875_v1  ;;  %3709 = vmatprep.subr.bf16.mxu0 %v4003_v0 }
 0xf10   : > { %3702 = vmatpush3.bf16.msra.mxu1 %v3701_v46 }
 0xf11   : > { %3703 = vmatprep.subr.bf16.mxu1 %v4003_v0  ;;  %3711 = vmatpush3.bf16.msra.mxu0 %v3710_v62 }
 0xf12   : > { %3712 = vmatprep.subr.bf16.mxu0 %v4003_v0 }
 0xf14   : > { %3705 = vmatpush3.bf16.msra.mxu1 %v3704_v49 }
 0xf15   : > { %3714 = vmatpush3.bf16.msra.mxu0 %v3713_v3 }
 0xf16   : > { %3715 = vmatprep.subr.bf16.mxu0 %v4003_v0 }
 0xf19   : > { %3717 = vmatpush3.bf16.msra.mxu0 %v3716_v7 }
 0xfdf   : > { %v2873_v35 = vpop.f32.mrb[20].mxu0 }
 0xfe0   : > { %v2874_v36 = vadd.f32 %v3292_v34, %v2873_v35  ;;  %v3603_v37 = vpop.f32.mrb[21].mxu0 }
 0xfe2   : > { %v2877_v38 = vadd.f32 %v2874_v36, %v4523_v5  ;;  %v3300_v36 = vld [vmem:[%s4806_s17 + $0x1] ss:$0 sm:$0xff] }
 0xfe4   : > { %v2878_v39 = vsel %vm638_vm1, %v2877_v38, 0.0 }
 0xfe5   : > { %2879 = vadd.xlane.f32.xlu0 %v2878_v39 }
0x1072   : > { %v2880_v40 = vpop.xlane.xlu0 %2879 }
0x1073   : > { %v2881_v41 = vmul.f32 0.03125, %v2880_v40 }
0x1075   : > { %v2882_v42 = vsub.f32 %v2877_v38, %v2881_v41  ;;  %v3301_v38 = vld [vmem:[%s4807_s1 + $0x1] ss:$0 sm:$0xff] }
0x1077   : > { %v2883_v43 = vmul.f32 %v2882_v42, %v2882_v42 }
0x1079   : > { %v2884_v44 = vsel %vm638_vm1, %v2883_v43, 0.0 }
0x107a   : > { %2885 = vadd.xlane.f32.xlu1 %v2884_v44 }
0x1107   : > { %v2886_v5 = vpop.xlane.xlu1 %2885 }
0x1108   : > { %v2887_v50 = vmul.f32 0.03125, %v2886_v5 }
0x110a   : > { %v2888_v51 = vadd.f32 1e-05, %v2887_v50 }
0x110c   : > { %3834 = vrsqrt.f32 %v2888_v51 }
0x1116   : > { %v3835_v52 = vpop.eup %3834 }
0x1117   : > { %v2890_v54 = vmul.f32 %v3835_v52, %v2882_v42 }
0x1119   : > { %v2897_v56 = vmul.f32 %v3294_v53, %v2890_v54 }
0x111b   : > { %v2904_v57 = vadd.f32 %v3295_v55, %v2897_v56 }
0x111d   : > { %3613 = vmatmul.mubr.msk.f32.vlgmr.msra.gmra.mrb[30].mxu1 %vm638_vm1, %v2904_v57 }
0x11f0   : > { %v2980_v9 = vpop.f32.mrb[30].mxu1 }
0x11f1   : > { %v2981_v11 = vadd.f32 %v3296_v8, %v2980_v9  ;;  %v3614_v12 = vpop.f32.mrb[31].mxu1 }
0x11f3   : > { %v2985_v13 = vmul.f32 %v2981_v11, %v2981_v11  ;;  %v2984_v18 = vmul.f32 0.5, %v2981_v11 }
0x11f5   : > { %v2986_v14 = vmul.f32 %v2985_v13, %v2981_v11 }
0x11f7   : > { %v2987_v0 = vmul.f32 0.044715, %v2986_v14 }
0x11f9   : > { %v2988_v15 = vadd.f32 %v2987_v0, %v2981_v11 }
0x11fb   : > { %v2989_v16 = vmul.f32 0.7978846, %v2988_v15 }
0x11fd   : > { %3836 = vtanh.f32 %v2989_v16 }
0x1207   : > { %v3837_v17 = vpop.eup %3836 }
0x1208   : > { %v2991_v19 = vadd.f32 1.0, %v3837_v17 }
0x120a   : > { %v2992_v20 = vmul.f32 %v2991_v19, %v2984_v18 }
0x120c   : > { %3632 = vmatmul.mubr.msk.f32.vlgmr.msra.gmra.mrb[22].mxu0 %vm1740_vm5, %v2992_v20 }
0x12df   : > { %v3068_v22 = vpop.f32.mrb[22].mxu0 }
0x12e0   : > { %v3069_v23 = vadd.f32 %v3298_v21, %v3068_v22  ;;  %v3633_v24 = vpop.f32.mrb[23].mxu0 }
0x12e2   : > { %v3072_v25 = vadd.f32 %v3069_v23, %v2904_v57 }
0x12e4   : > { %v3073_v26 = vsel %vm638_vm1, %v3072_v25, 0.0 }
0x12e5   : > { %3074 = vadd.xlane.f32.xlu0 %v3073_v26 }
0x1372   : > { %v3075_v27 = vpop.xlane.xlu0 %3074 }
0x1373   : > { %v3076_v28 = vmul.f32 0.03125, %v3075_v27 }
0x1375   : > { %v3077_v29 = vsub.f32 %v3072_v25, %v3076_v28 }
0x1377   : > { %v3078_v30 = vmul.f32 %v3077_v29, %v3077_v29 }
0x1379   : > { %v3079_v31 = vsel %vm638_vm1, %v3078_v30, 0.0 }
0x137a   : > { %3080 = vadd.xlane.f32.xlu0 %v3079_v31 }
0x1407   : > { %v3081_v32 = vpop.xlane.xlu0 %3080 }
0x1408   : > { %v3082_v33 = vmul.f32 0.03125, %v3081_v32 }
0x140a   : > { %v3083_v34 = vadd.f32 1e-05, %v3082_v33 }
0x140c   : > { %3838 = vrsqrt.f32 %v3083_v34 }
0x1416   : > { %v3839_v35 = vpop.eup %3838 }
0x1417   : > { %v3085_v37 = vmul.f32 %v3839_v35, %v3077_v29 }
0x1419   : > { %v3092_v39 = vmul.f32 %v3300_v36, %v3085_v37 }
0x141b   : > { %v3099_v40 = vadd.f32 %v3301_v38, %v3092_v39 }
0x141d   : > { %3100 = vst.msk [vmem:[%s592_s24] sm:$0xff] %vm638_vm1, %v3099_v40 }
0x141e   : > { %3939 = shalt.err (!%p3936_p2)
}
0x141f   : > { %s3940_s7 = scalar_lea.hbm %s4686_s3, 128  ;;  %s3944_s24 = scalar_lea.hbm %s4815_s2, 256 }
0x1420   : > { %p3941_p13 = scmp.ne.s32.totalorder %s4686_s3, %s3940_s7  ;;  %p3945_p4 = scmp.lt.u32.totalorder %s4686_s3, %s4815_s2 }
0x1421   : > { %p3946_p5 = scmp.lt.u32.totalorder %s3944_s24, %s3940_s7  ;;  %p3948_p11 = scmp.lt.u32.totalorder %s3940_s7, %s4686_s3 }
0x1422   : > { %p3942_p6 = pnand %p3941_p13, %p4816_p0 }
0x1423   : > { %p3947_p8 = por %p3946_p5, %p3945_p4 }
0x1424   : > { %p3943_p10 = pneg %p3942_p6 }
0x1425   : > { %p3949_p1 = por %p3948_p11, %p3947_p8 }
0x1427   : > { %p3950_p3 = pnand %p3949_p1, %p3943_p10 }
0x1429   : > { %3953 = shalt.err (!%p3950_p3)
}
0x142a   : > { %3728 = dma.vmem_to_hbm [thread:$0]  (%p4816_p0), %s4688_s14, 128, %s4686_s3, %s3102_s0  }
0x142b PF: > { %s4817_s20 = sld [smem:[#allocation12_spill]]  ;;  %s4818_s28 = sld [smem:[#allocation13_spill]] }
0x142c   : > { %p4820_p9 = scmp.ge.s32.totalorder %s3996_s27, 2 }
0x1431   : > { %s3127_s5 = sand.u32 1, %s4817_s20   ;;  %p4819_p7 = scmp.ne.s32.totalorder %s4818_s28, 0 }
0x1432   : > { %s3128_s11 = scalar_lea.sflag [#allocation4], %s3127_s5 }
0x1433   : > { %p3742_p12 = pnand %p4820_p9, %p4819_p7 }
0x1435   : > { %3979 = dma.done.wait (!%p3742_p12), %s3128_s11, 128  }
0x1436   : > { %3981 = vsyncadd (!%p3742_p12), %s3128_s11, 4294967168  ;;  %p31_p2 = scmp.ge.s32.totalorder %s4213_s15, 4   ;;  %s4821_s24 = smov %s3988_s25 }
0x1437   : > { %s4822_s25 = smov %s3992_s26  ;;  %s4823_s26 = smov %s4229_s23 }
0x1438   : > { %s4824_s27 = smov %s4213_s15  ;;  %33 = sbr.rel (!%p31_p2) target bundleno = 19 (0x13), region = 157 }
0x143f   :  { %3133 = vsyncpa [#allocation3], 1 }
0x1440   :  { %3135 = vsyncpa [#allocation3 + $0x1], 1 }
0x1441   :  { %3136 = vsyncpa [#allocation6], 1 }
0x1442   :  { %3137 = vsyncpa [#allocation4], 1 }
0x1443   :  { %3139 = vsyncpa [#allocation4 + $0x1], 1 }

// kernel: tpu_custom_call.1
= control target key start
LH: loop header
LB: loop body
LE: loop exit
PB: predicated region body
PF: predicated region fallthrough
CT: control target
= control target key end

     0   :  { %s4731_s0 = inlined_call_operand.hbm [shape: f32[2,8,32], index: 0, kind: input, shape index: {}]   ;;  %s4732_s1 = inlined_call_operand.vmem [shape: f32[2,32,32], index: 1, kind: input, shape index: {}]   ;;  %s4733_s2 = inlined_call_operand.vmem [shape: f32[2,1,32], index: 2, kind: input, shape index: {}]   ;;  %s4734_s3 = inlined_call_operand.vmem [shape: f32[2,32,32], index: 3, kind: input, shape index: {}]   ;;  %s4735_s4 = inlined_call_operand.vmem [shape: f32[2,1,32], index: 4, kind: input, shape index: {}]   ;;  %s4736_s5 = inlined_call_operand.vmem [shape: f32[2,32,32], index: 5, kind: input, shape index: {}]   ;;  %s4737_s6 = inlined_call_operand.vmem [shape: f32[2,1,32], index: 6, kind: input, shape index: {}]   ;;  %s4738_s7 = inlined_call_operand.hbm [shape: f32[2,32,32], index: 7, kind: input, shape index: {}]   ;;  %s4739_s8 = inlined_call_operand.vmem [shape: f32[2,1,32], index: 8, kind: input, shape index: {}]   ;;  %s4740_s9 = inlined_call_operand.vmem [shape: f32[2,1,32], index: 9, kind: input, shape index: {}]   ;;  %s4741_s10 = inlined_call_operand.vmem [shape: f32[2,1,32], index: 10, kind: input, shape index: {}]   ;;  %s4742_s11 = inlined_call_operand.hbm [shape: f32[2,32,64], index: 11, kind: input, shape index: {}]   ;;  %s4743_s12 = inlined_call_operand.vmem [shape: f32[2,1,64], index: 12, kind: input, shape index: {}]   ;;  %s4744_s13 = inlined_call_operand.vmem [shape: f32[2,64,32], index: 13, kind: input, shape index: {}]   ;;  %s4745_s14 = inlined_call_operand.vmem [shape: f32[2,1,32], index: 14, kind: input, shape index: {}]   ;;  %s4746_s15 = inlined_call_operand.vmem [shape: f32[2,1,32], index: 15, kind: input, shape index: {}]   ;;  %s4747_s16 = inlined_call_operand.vmem [shape: f32[2,1,32], index: 16, kind: input, shape index: {}]   ;;  %s4748_s17 = inlined_call_operand.hbm [shape: f32[2,8,32], index: 17, kind: output, shape index: {}]  }
   0x1   :  { %4772 = sst [smem:[#allocation14_spill]] %s4731_s0 }
   0x2   :  { %4773 = sst [smem:[#allocation15_spill]] %s4732_s1 }
   0x3   :  { %4774 = sst [smem:[#allocation16_spill]] %s4733_s2 }
   0x4   :  { %4775 = sst [smem:[#allocation17_spill]] %s4734_s3 }
   0x5   :  { %4776 = sst [smem:[#allocation18_spill]] %s4736_s5 }
   0x6   :  { %4777 = sst [smem:[#allocation19_spill]] %s4738_s7 }
   0x7   :  { %4778 = sst [smem:[#allocation20_spill]] %s4742_s11 }
   0x8   :  { %4779 = sst [smem:[#allocation21_spill]] %s4743_s12 }
   0x9   :  { %4780 = sst [smem:[#allocation22_spill]] %s4745_s14 }
   0xa   :  { %4781 = sst [smem:[#allocation23_spill]] %s4746_s15 }
   0xb   :  { %4782 = sst [smem:[#allocation24_spill]] %s4747_s16 }
   0xc   :  { %4783 = sst [smem:[#allocation25_spill]] %s4748_s17 }
   0xd   :  { %22 = vsyncpa [#allocation3], 0 }
   0xe   :  { %24 = vsyncpa [#allocation3 + $0x1], 0 }
   0xf   :  { %25 = vsyncpa [#allocation6], 0 }
  0x10   :  { %26 = vsyncpa [#allocation4], 0 }
  0x11   :  { %28 = vsyncpa [#allocation4 + $0x1], 0  ;;  %s4103_s24 = smov 0   ;;  %s4105_s25 = smov 0  }
  0x12   :  { %s4107_s26 = smov 0   ;;  %s4109_s27 = smov 0  }
  0x13 LB: > { %4784 = sst [smem:[#allocation12_spill]] %s3984_s24  ;;  %s4124_s28 = sadd.s32 4294967295, %s3996_s27   ;;  %s3996_s27 = sphi %s4109_s27, %s4824_s27   ;;  %s3992_s26 = sphi %s4107_s26, %s4823_s26   ;;  %s3988_s25 = sphi %s4105_s25, %s4822_s25   ;;  %s3984_s24 = sphi %s4103_s24, %s4821_s24  }
  0x14   : > { %s3204_s29 = sadd.s32 4294967294, %s3996_s27   ;;  %p54_p0 = scmp.ne.s32.totalorder %s3988_s25, %s3984_s24 }
  0x15   : > { %p4755_p1 = scmp.eq.s32.totalorder %s4124_s28, 0  ;;  %p420_p3 = scmp.eq.s32.totalorder %s3204_s29, 1 }
  0x16   : > { %p3205_p5 = scmp.ge.s32.totalorder %s3996_s27, 1  ;;  %p427_p7 = scmp.lt.s32.totalorder %s3996_s27, 3 }
  0x17   : > { %p4133_p4 = por %p4755_p1, %p54_p0  ;;  %p4138_p6 = por %p420_p3, %p54_p0 }
  0x18   : > { %p4143_p8 = pnand %p3205_p5, %p427_p7  ;;  %s3998_s19 = smov [#allocation5]  }
  0x19   : > { %s4785_s0 = scalar_select %p4133_p4, 1, 0 }
  0x1a   : > { %s4786_s30 = scalar_select %p4138_p6, 1, 0 }
  0x1b   : > { %s457_s1 = sshll.u32 %s3998_s19, 4  ;;  %p3730_p9 = pneg %p4143_p8  ;;  %s4147_s1 = int_to_ptr.vmem [resolvable:$true] %s457_s1 }
  0x1c   : > { %4787 = sst [smem:[#allocation13_spill]] %s4786_s30  ;;  %s3999_s21 = smov [#allocation7]  }
  0x1d   : > { %p4154_p11 = pnand %p3730_p9, %p4755_p1  ;;  %s479_s22 = sshll.u32 %s3999_s21, 4  ;;  %s4158_s22 = int_to_ptr.vmem [resolvable:$true] %s479_s22 }
  0x1e   : > { %s4790_s7 = sld [smem:[#allocation19_spill]] }
  0x1f   : > { %p3842_p13 = pneg %p4154_p11 }
  0x24   : > { %s3840_s19 = scalar_lea.hbm %s4790_s7, 1024 }
  0x25   : > { %p3841_p12 = scmp.ne.s32.totalorder %s4790_s7, %s3840_s19  ;;  %p3847_p5 = scmp.lt.u32.totalorder %s3840_s19, %s4790_s7 }
  0x27   : > { %p3843_p0 = pnand %p3842_p13, %p3841_p12 }
  0x29   : > { %p3844_p3 = pneg %p3843_p0 }
  0x2b   : > { %p3849_p7 = pnand %p3847_p5, %p3844_p3 }
  0x2d   : > { %3852 = shalt.err (!%p3849_p7)
}
  0x2e   : > { %s3853_s21 = scalar_lea.vmem %s4147_s1, 1024  ;;  %p3861_p2 = scmp.lt.s32.totalorder %s4147_s1, %s4147_s1 }
  0x2f   : > { %p3854_p9 = scmp.ne.s32.totalorder %s4147_s1, %s3853_s21  ;;  %p3862_p12 = scmp.lt.s32.totalorder %s3853_s21, %s3853_s21 }
  0x31   : > { %p3856_p10 = pnand %p3854_p9, %p3842_p13  ;;  %p3863_p0 = por %p3862_p12, %p3861_p2 }
  0x33   : > { %p3857_p1 = pneg %p3856_p10 }
  0x35   : > { %p3864_p6 = pnand %p3863_p0, %p3857_p1 }
  0x37   : > { %3867 = shalt.err (!%p3864_p6)
}
  0x38   : > { %s4000_s16 = smov 128   ;;  %s4001_s17 = smov 8  }
  0x39   : > { %3733 = dma.hbm_to_vmem [thread:$0]  (!%p4154_p11), %s4790_s7, 1024, %s4147_s1, [#allocation6], %s4000_s16, %s4000_s16, %s4001_s17  }
  0x3a   : > { %s4791_s11 = sld [smem:[#allocation20_spill]] }
  0x40   : > { %s3868_s19 = scalar_lea.hbm %s4791_s11, 1024 }
  0x41   : > { %p3869_p2 = scmp.ne.s32.totalorder %s4791_s11, %s3868_s19  ;;  %p3875_p10 = scmp.lt.u32.totalorder %s3868_s19, %s4791_s11 }
  0x43   : > { %p3871_p1 = pnand %p3869_p2, %p3842_p13 }
  0x45   : > { %p3872_p6 = pneg %p3871_p1 }
  0x47   : > { %p3877_p3 = pnand %p3875_p10, %p3872_p6 }
  0x49   : > { %3880 = shalt.err (!%p3877_p3)
}
  0x4a   : > { %s3881_s1 = scalar_lea.vmem %s4158_s22, 1024  ;;  %p3889_p12 = scmp.lt.s32.totalorder %s4158_s22, %s4158_s22 }
  0x4b   : > { %p3882_p5 = scmp.ne.s32.totalorder %s4158_s22, %s3881_s1  ;;  %p3890_p0 = scmp.lt.s32.totalorder %s3881_s1, %s3881_s1 }
  0x4d   : > { %p3884_p7 = pnand %p3882_p5, %p3842_p13  ;;  %p3891_p2 = por %p3890_p0, %p3889_p12 }
  0x4f   : > { %p3885_p9 = pneg %p3884_p7 }
  0x51   : > { %p3892_p1 = pnand %p3891_p2, %p3885_p9 }
  0x53   : > { %3895 = shalt.err (!%p3892_p1)
}
  0x54   : > { %3736 = dma.hbm_to_vmem [thread:$0]  (!%p4154_p11), %s4791_s11, 1024, %s4158_s22, [#allocation6], %s4000_s16, %s4000_s16, %s4001_s17  }
  0x55   : > { %s4213_s15 = sadd.s32 1, %s3996_s27   ;;  %s41_s20 = sadd.s32 1, %s3992_s26 }
  0x56   : > { %s38_s24 = ssub.s32 %s3996_s27, %s4213_s15  ;;  %p48_p13 = scmp.ne.s32.totalorder %s3992_s26, %s3988_s25 }
  0x57   : > { %p39_p6 = scmp.eq.s32.totalorder %s38_s24, 0  ;;  %p49_p10 = scmp.eq.s32.totalorder %s3996_s27, 0 }
  0x58   : > { %p4792_p3 = scmp.eq.s32.totalorder %s4124_s28, 1  ;;  %p3747_p7 = scmp.lt.s32.totalorder %s3996_s27, 2 }
  0x59   : > { %s4229_s23 = scalar_select %p39_p6, %s3992_s26, %s41_s20  }
  0x5a   : > { %p4223_p5 = por %p4792_p3, %p48_p13  ;;  %p50_p9 = por %p49_p10, %p48_p13 }
  0x5b   : > { %s508_s29 = sand.u32 1, %s3992_s26   ;;  %s3210_s22 = sshll.u32 %s3996_s27, 7 }
  0x5c   : > { %s4793_s30 = scalar_select %p4223_p5, 1, 0 }
  0x5d   : > { %s3209_s19 = sshll.u32 %s508_s29, 3  ;;  %s4794_s21 = sld [smem:[#allocation14_spill]] }
  0x5e   : > { %s512_s12 = scalar_lea.vmem [#allocation2], %s3209_s19  ;;  %p4240_p11 = pnand %p3747_p7, %p50_p9 }
  0x5f   : > { %s519_s14 = sshll.u32 %s512_s12, 4  ;;  %s509_s24 = scalar_lea.sflag [#allocation3], %s508_s29  ;;  %s4238_s14 = int_to_ptr.vmem [resolvable:$true] %s519_s14 }
  0x60   : > { %p3898_p0 = pneg %p4240_p11 }
  0x63   : > { %s4236_s1 = scalar_lea.hbm %s4794_s21, %s3210_s22  ;;  %s3901_s16 = scalar_lea.hbm %s4794_s21, 256 }
  0x64   : > { %s3896_s7 = scalar_lea.hbm %s4236_s1, 128  ;;  %p3902_p13 = scmp.lt.u32.totalorder %s4236_s1, %s4794_s21 }
  0x65   : > { %p3897_p12 = scmp.ne.s32.totalorder %s4236_s1, %s3896_s7  ;;  %p3903_p6 = scmp.lt.u32.totalorder %s3901_s16, %s3896_s7 }
  0x66   : > { %p3905_p3 = scmp.lt.u32.totalorder %s3896_s7, %s4236_s1 }
  0x67   : > { %p3899_p2 = pnand %p3898_p0, %p3897_p12  ;;  %p3904_p10 = por %p3903_p6, %p3902_p13 }
  0x69   : > { %p3900_p1 = pneg %p3899_p2  ;;  %p3906_p7 = por %p3905_p3, %p3904_p10 }
  0x6b   : > { %p3907_p9 = pnand %p3906_p7, %p3900_p1 }
  0x6d   : > { %3910 = shalt.err (!%p3907_p9)
}
  0x6e   : > { %s3911_s29 = scalar_lea.vmem %s4238_s14, 128  ;;  %s4002_s22 = smov [#allocation2]  }
  0x6f   : > { %p3912_p12 = scmp.ne.s32.totalorder %s4238_s14, %s3911_s29  ;;  %s3916_s19 = sshll.u32 %s4002_s22, 4  ;;  %s3917_s19 = int_to_ptr.vmem [resolvable:$false] %s3916_s19 }
  0x70   : > { %s3918_s17 = scalar_lea.vmem %s3917_s19, 256  ;;  %p3919_p4 = scmp.lt.s32.totalorder %s4238_s14, %s3917_s19 }
  0x71   : > { %p3914_p2 = pnand %p3912_p12, %p3898_p0  ;;  %p3920_p13 = scmp.lt.s32.totalorder %s3918_s17, %s3911_s29 }
  0x73   : > { %p3915_p5 = pneg %p3914_p2  ;;  %p3921_p6 = por %p3920_p13, %p3919_p4 }
  0x75   : > { %p3922_p10 = pnand %p3921_p6, %p3915_p5 }
  0x77   : > { %3925 = shalt.err (!%p3922_p10)
}
  0x78   : > { %3740 = dma.hbm_to_vmem [thread:$0]  (!%p4240_p11), %s4236_s1, 128, %s4238_s14, %s509_s24  }
  0x79   : > { %528 = sbr.rel (%p4143_p8) target bundleno = 5163 (0x142b), region = 88  ;;  %s4272_s7 = sand.u32 (!%p4143_p8), 1, %s3988_s25  }
  0x7a   : > { %s4761_s16 = sshll.u32 (!%p4143_p8), %s4272_s7, 3  ;;  %s531_s12 = scalar_lea.sflag (!%p4143_p8), [#allocation3], %s4272_s7 }
  0x7b   : > { %s534_s29 = scalar_lea.vmem (!%p4143_p8), [#allocation2], %s4761_s16  ;;  %p4796_p4 = scmp.ne.s32.totalorder (!%p4143_p8), %s4785_s0, 0 }
  0x80   : > { %3971 = dma.done.wait (%p4796_p4), %s531_s12, 128  }
  0x81   : > { %3973 = vsyncadd (%p4796_p4), %s531_s12, 4294967168  ;;  %p4797_p5 = scmp.eq.s32.totalorder %s4124_s28, 0 }
  0x83   : > { %3975 = dma.done.wait (%p4797_p5), [#allocation6], 2048   ;;  %p4798_p8 = pmov %p4797_p5 }
  0x84   : > { %v4003_v0 = vmov 0.0|0.0   ;;  %vm4004_vm0 = vmmov 0   ;;  %v4005_v1 = vmov 0.0   ;;  %s4799_s1 = sld [smem:[#allocation15_spill]]  ;;  %s4800_s3 = sld [smem:[#allocation17_spill]]  ;;  %v4311_v10 = vld [vmem:[%s534_s29] sm:$0xff] }
  0x85   : > { %3977 = vsyncadd (%p4798_p8), [#allocation6], 4294965248  ;;  %3634 = vmatprep.subr.bf16.mxu1 %v4003_v0  ;;  %3414 = vmatprep.mubr.msk.f32.mxu1 %vm4004_vm0, %v4005_v1  ;;  %vm638_vm1 = vcmask 261120   ;;  %s4801_s5 = sld [smem:[#allocation18_spill]]  ;;  %v3218_v23 = vld [vmem:[%s4735_s4] ss:$0 sm:$0xff] }
  0x86   : > { %3646 = vmatprep.subr.bf16.mxu0 %v4003_v0  ;;  %3436 = vmatprep.mubr.msk.f32.mxu0 %vm4004_vm0, %v4005_v1  ;;  %vm864_vm2 = vcmask 64512   ;;  %s4802_s2 = sld [smem:[#allocation16_spill]]  ;;  %s4765_s12 = smov 112   ;;  %v3220_v29 = vld [vmem:[%s4737_s6] ss:$0 sm:$0xff]  ;;  %vm1534_vm3 = vcmask 130048  }
  0x87   : > { %s4769_s0 = smov 120   ;;  %s4767_s18 = smov 104   ;;  %vm1536_vm4 = vcmask 195584   ;;  %vm1740_vm5 = vcmask 523264  }
  0x88   : > { %s4764_s24 = smov 8   ;;  %s4763_s22 = smov 16  }
  0x89   : > { %s4762_s19 = smov 24   ;;  %s4805_s29 = sld [smem:[#allocation22_spill]] }
  0x8a   : > { %v594_v2 = vld [vmem:[%s4799_s1] sm:$0xff]  ;;  %v595_v3 = vld [vmem:[%s4799_s1 + $0x8] sm:$0xff]  ;;  %v596_v4 = vld [vmem:[%s4799_s1 + $0x10] sm:$0xff]  ;;  %s4806_s17 = sld [smem:[#allocation23_spill]]  ;;  %s4808_s16 = smov 120  }
  0x8b   : > { %v3635_v5 = vpack.c.bf16 %v595_v3, %v594_v2  ;;  %v597_v6 = vld [vmem:[%s4799_s1 + $0x18] sm:$0xff]  ;;  %v599_v8 = vld [vmem:[%s4800_s3] sm:$0xff]  ;;  %v600_v9 = vld [vmem:[%s4800_s3 + $0x8] sm:$0xff]  ;;  %s4811_s20 = smov 8   ;;  %s4813_s11 = smov 24  }
  0x8c   : > { %v3638_v7 = vpack.c.bf16 %v597_v6, %v596_v4  ;;  %v3641_v11 = vpack.c.bf16 %v600_v9, %v599_v8  ;;  %v601_v12 = vld [vmem:[%s4800_s3 + $0x10] sm:$0xff]  ;;  %v602_v13 = vld [vmem:[%s4800_s3 + $0x18] sm:$0xff]  ;;  %v604_v15 = vld [vmem:[%s4801_s5] sm:$0xff]  ;;  %p4816_p0 = scmp.ne.s32.totalorder %s4793_s30, 0 }
  0x8d   : > { %3636 = vmatpush3.bf16.msra.mxu1 %v3635_v5  ;;  %v3644_v14 = vpack.c.bf16 %v602_v13, %v601_v12  ;;  %v605_v16 = vld [vmem:[%s4801_s5 + $0x8] sm:$0xff]  ;;  %v606_v17 = vld [vmem:[%s4801_s5 + $0x10] sm:$0xff]  ;;  %v607_v19 = vld [vmem:[%s4801_s5 + $0x18] sm:$0xff] }
  0x8e   : > { %3637 = vmatprep.subr.bf16.mxu1 %v4003_v0  ;;  %v3647_v18 = vpack.c.bf16 %v605_v16, %v604_v15  ;;  %v3650_v20 = vpack.c.bf16 %v607_v19, %v606_v17  ;;  %v3216_v27 = vld [vmem:[%s4802_s2] ss:$0 sm:$0xff] }
  0x90   : > { %3648 = vmatpush3.bf16.msra.mxu0 %v3647_v18 }
  0x91   : > { %3639 = vmatpush3.bf16.msra.mxu1 %v3638_v7  ;;  %3649 = vmatprep.subr.bf16.mxu0 %v4003_v0 }
  0x92   : > { %3640 = vmatprep.subr.bf16.mxu1 %v4003_v0 }
  0x94   : > { %3415 = vmatmul.mubr.msk.f32.vlgmr.msra.gmra.mrb[0].mxu1 %vm638_vm1, %v4311_v10  ;;  %3651 = vmatpush3.bf16.msra.mxu0 %v3650_v20 }
  0x95   : > { %3642 = vmatpush3.bf16.msra.mxu1 %v3641_v11  ;;  %3425 = vmatprep.mubr.msk.f32.mxu1 %vm4004_vm0, %v4005_v1 }
  0x96   : > { %3643 = vmatprep.subr.bf16.mxu1 %v4003_v0  ;;  %3449 = vmatprep.subr.mxu0 %v4005_v1 }
  0x97   : > { %3437 = vmatmul.mubr.msk.f32.vlgmr.msra.gmra.mrb[0].mxu0 %vm638_vm1, %v4311_v10 }
  0x98   : > { %3451 = vmatprep.mubr.msk.f32.mxu0 %vm4004_vm0, %v4005_v1 }
  0x99   : > { %3645 = vmatpush3.bf16.msra.mxu1 %v3644_v14 }
  0x9a   : > { %3439 = vmatprep.subr.mxu1 %v4005_v1 }
  0x9c   : > { %3426 = vmatmul.mubr.msk.f32.vlgmr.msra.gmra.mrb[2].mxu1 %vm638_vm1, %v4311_v10 }
  0x9d   : > { %3441 = vmatprep.mubr.msk.f32.mxu1 %vm4004_vm0, %v4005_v1 }
 0x167   : > { %v708_v21 = vpop.f32.mrb[0].mxu1 }
 0x168   : > { %v3416_v22 = vpop.f32.mrb[1].mxu1  ;;  %v709_v28 = vadd.f32 %v3216_v27, %v708_v21  ;;  %v609_v27 = vld [vmem:[#allocation5] sm:$0xff] }
 0x16a   : > { %v860_v30 = vpop.f32.mrb[0].mxu0 }
 0x16b   : > { %v4368_v31 = vadd.f32 %v3220_v29, %v860_v30  ;;  %v3438_v32 = vpop.f32.mrb[1].mxu0  ;;  %v611_v30 = vld [vmem:[#allocation5 + $0x10] sm:$0xff] }
 0x16f   : > { %v784_v24 = vpop.f32.mrb[2].mxu1 }
 0x170   : > { %v785_v25 = vadd.f32 %v3218_v23, %v784_v24  ;;  %v3427_v26 = vpop.f32.mrb[3].mxu1 }
 0x172   : > { %1193 = vrot.lane.b32.xlu1 %v785_v25, %s4765_s12  ;;  %1027 = vrot.lane.b32.xlu0 %v785_v25, %s4769_s0 }
 0x173   : > { %3440 = vmatpush3.xpose.msk.msra.mxu1 %vm864_vm2, %v785_v25 }
 0x174   : > { %3444 = vmatprep.subr.mxu1 %v4005_v1 }
 0x176   : > { %3442 = vmatmul.mubr.msk.f32.vlgmr.msra.gmra.mrb[4].mxu1 %vm864_vm2, %v709_v28  ;;  %1191 = vrot.lane.b32.xlu1 %v709_v28, %s4765_s12 }
 0x177   : > { %1025 = vrot.lane.b32.xlu0 %v709_v28, %s4769_s0  ;;  %3446 = vmatprep.mubr.msk.f32.mxu1 %vm4004_vm0, %v4005_v1 }
 0x178   : > { %3445 = vmatpush3.msra.mxu1 %v4368_v31 }
 0x179   : > { %3454 = vmatprep.subr.mxu1 %v4005_v1 }
 0x17a   : > { %1356 = vrot.lane.b32.xlu1 %v709_v28, %s4767_s18  ;;  %v610_v28 = vld [vmem:[#allocation5 + $0x8] sm:$0xff] }
 0x17b   : > { %1358 = vrot.lane.b32.xlu0 %v785_v25, %s4767_s18  ;;  %v3653_v29 = vpack.c.bf16 %v610_v28, %v609_v27 }
 0x1e4   : > { %v1028_v33 = vpop.permute.xlu0 %1027  ;;  %v1194_v34 = vpop.permute.xlu1 %1193 }
 0x1e5   : > { %3450 = vmatpush3.xpose.msk.msra.mxu0 %vm864_vm2, %v1028_v33 }
 0x1e6   : > { %3459 = vmatprep.subr.mxu0 %v4005_v1 }
 0x1e8   : > { %v1192_v36 = vpop.permute.xlu1 %1191 }
 0x1e9   : > { %v1026_v35 = vpop.permute.xlu0 %1025 }
 0x1ea   : > { %3452 = vmatmul.mubr.msk.f32.vlgmr.msra.gmra.mrb[2].mxu0 %vm864_vm2, %v1026_v35 }
 0x1eb   : > { %3460 = vmatpush3.xpose.msk.msra.mxu0 %vm864_vm2, %v1194_v34  ;;  %3461 = vmatprep.mubr.msk.f32.mxu0 %vm4004_vm0, %v4005_v1 }
 0x1ec   : > { %3469 = vmatprep.subr.mxu0 %v4005_v1  ;;  %v1357_v38 = vpop.permute.xlu1 %1356 }
 0x1ed   : > { %v1359_v37 = vpop.permute.xlu0 %1358 }
 0x1ee   : > { %3462 = vmatmul.mubr.msk.f32.vlgmr.msra.gmra.mrb[4].mxu0 %vm864_vm2, %v1192_v36 }
 0x1ef   : > { %3470 = vmatpush3.xpose.msk.msra.mxu0 %vm864_vm2, %v1359_v37  ;;  %3471 = vmatprep.mubr.msk.f32.mxu0 %vm4004_vm0, %v4005_v1 }
 0x1f0   : > { %3652 = vmatprep.subr.bf16.mxu0 %v4003_v0 }
 0x1f2   : > { %3472 = vmatmul.mubr.msk.f32.vlgmr.msra.gmra.mrb[6].mxu0 %vm864_vm2, %v1357_v38 }
 0x1f3   : > { %3487 = vmatprep.mubr.msk.f32.mxu0 %vm4004_vm0, %v4005_v1  ;;  %3654 = vmatpush3.bf16.msra.mxu0 %v3653_v29 }
 0x1f4   : > { %3655 = vmatprep.subr.bf16.mxu0 %v4003_v0 }
 0x249   : > { %v937_v39 = vpop.f32.mrb[4].mxu1 }
 0x24a   : > { %v3443_v40 = vpop.f32.mrb[5].mxu1  ;;  %v941_v41 = vsel %vm864_vm2, %v937_v39, -inf }
 0x24b   : > { %942 = vmax.xlane.f32.xlu0 %v941_v41 }
 0x2bd   : > { %v1099_v42 = vpop.f32.mrb[2].mxu0 }
 0x2be   : > { %v3453_v43 = vpop.f32.mrb[3].mxu0  ;;  %v1103_v44 = vsel %vm864_vm2, %v1099_v42, -inf }
 0x2bf   : > { %1104 = vmax.xlane.f32.xlu1 %v1103_v44 }
 0x2c1   : > { %v1265_v45 = vpop.f32.mrb[4].mxu0 }
 0x2c2   : > { %v3463_v46 = vpop.f32.mrb[5].mxu0  ;;  %v1269_v47 = vsel %vm864_vm2, %v1265_v45, -inf }
 0x2c3   : > { %1270 = vmax.xlane.f32.xlu0 %v1269_v47 }
 0x2c5   : > { %v1430_v48 = vpop.f32.mrb[6].mxu0 }
 0x2c6   : > { %v3473_v49 = vpop.f32.mrb[7].mxu0  ;;  %v1434_v50 = vsel %vm864_vm2, %v1430_v48, -inf }
 0x2c7   : > { %1435 = vmax.xlane.f32.xlu0 %v1434_v50 }
 0x2d0   : > { %1115 = vrot.lane.b32.xlu1 %v4368_v31, %s4769_s0  ;;  %s4810_s0 = smov 112  }
 0x2d8   : > { %v943_v51 = vpop.xlane.xlu0 %942 }
 0x2d9   : > { %v944_v52 = vsub.f32 %v937_v39, %v943_v51 }
 0x2db   : > { %v945_v53 = vmul.f32 1.442695, %v944_v52 }
 0x2dd   : > { %3796 = vpow2.f32 %v945_v53 }
 0x2e7   : > { %v3797_v54 = vpop.eup %3796 }
 0x2e8   : > { %v947_v55 = vsel %vm864_vm2, %v3797_v54, 0.0 }
 0x2f4   : > { %948 = vadd.xlane.f32.xlu1 %v947_v55 }
 0x34c   : > { %v1105_v56 = vpop.xlane.xlu1 %1104 }
 0x34d   : > { %v1106_v57 = vsub.f32 %v1099_v42, %v1105_v56  ;;  %v616_v56 = vld [vmem:[#allocation7] sm:$0xff] }
 0x34f   : > { %v1107_v58 = vmul.f32 1.442695, %v1106_v57  ;;  %v617_v57 = vld [vmem:[#allocation7 + $0x8] sm:$0xff] }
 0x350   : > { %v1271_v59 = vpop.xlane.xlu0 %1270  ;;  %v1116_v9 = vpop.permute.xlu1 %1115 }
 0x351   : > { %3798 = vpow2.f32 %v1107_v58  ;;  %v1272_v60 = vsub.f32 %v1265_v45, %v1271_v59  ;;  %v3234_v45 = vld [vmem:[%s4739_s8] ss:$0 sm:$0xff]  ;;  %v3659_v58 = vpack.c.bf16 %v617_v57, %v616_v56 }
 0x352   : > { %v618_v59 = vld [vmem:[#allocation7 + $0x10] sm:$0xff] }
 0x353   : > { %v1273_v61 = vmul.f32 1.442695, %v1272_v60  ;;  %v619_v60 = vld [vmem:[#allocation7 + $0x18] sm:$0xff] }
 0x354   : > { %v1436_v62 = vpop.xlane.xlu0 %1435 }
 0x355   : > { %3800 = vpow2.f32 %v1273_v61  ;;  %v1437_v63 = vsub.f32 %v1430_v48, %v1436_v62  ;;  %v3662_v61 = vpack.c.bf16 %v619_v60, %v618_v59 }
 0x357   : > { %v1438_v2 = vmul.f32 1.442695, %v1437_v63 }
 0x359   : > { %3802 = vpow2.f32 %v1438_v2 }
 0x35b   : > { %v3799_v3 = vpop.eup %3798 }
 0x35c   : > { %v1109_v4 = vsel %vm864_vm2, %v3799_v3, 0.0 }
 0x35d   : > { %1110 = vadd.xlane.f32.xlu0 %v1109_v4 }
 0x35f   : > { %v3801_v5 = vpop.eup %3800 }
 0x360   : > { %v1275_v6 = vsel %vm864_vm2, %v3801_v5, 0.0 }
 0x361   : > { %1276 = vadd.xlane.f32.xlu1 %v1275_v6 }
 0x363   : > { %v3803_v7 = vpop.eup %3802 }
 0x364   : > { %v1440_v8 = vsel %vm864_vm2, %v3803_v7, 0.0 }
 0x365   : > { %1441 = vadd.xlane.f32.xlu0 %v1440_v8  ;;  %v621_v8 = vld [vmem:[%s4744_s13] sm:$0xff] }
 0x372   : > { %1445 = vrot.lane.b32.xlu1 %v4368_v31, %s4767_s18  ;;  %s4809_s18 = smov 104  }
 0x37b   : > { %1280 = vrot.lane.b32.xlu0 %v4368_v31, %s4765_s12  ;;  %v612_v31 = vld [vmem:[#allocation5 + $0x18] sm:$0xff] }
 0x37c   : > { %v3656_v32 = vpack.c.bf16 %v612_v31, %v611_v30 }
 0x37e   : > { %3657 = vmatpush3.bf16.msra.mxu0 %v3656_v32 }
 0x37f   : > { %3664 = vmatprep.subr.bf16.mxu0 %v4003_v0 }
 0x381   : > { %v949_v11 = vpop.xlane.xlu1 %948 }
 0x382   : > { %3804 = vrcp.f32 %v949_v11 }
 0x38c   : > { %v3805_v12 = vpop.eup %3804 }
 0x38d   : > { %v951_v13 = vmul.f32 %v3805_v12, %v3797_v54  ;;  %v623_v12 = vld [vmem:[%s4744_s13 + $0x10] sm:$0xff] }
 0x38f   : > { %3447 = vmatmul.mubr.msk.f32.vlgmr.msra.gmra.mrb[6].mxu1 %vm864_vm2, %v951_v13  ;;  %v624_v13 = vld [vmem:[%s4744_s13 + $0x18] sm:$0xff] }
 0x390   : > { %3455 = vmatpush3.msra.mxu1 %v1116_v9  ;;  %3456 = vmatprep.mubr.msk.f32.mxu1 %vm4004_vm0, %v4005_v1  ;;  %v622_v9 = vld [vmem:[%s4744_s13 + $0x8] sm:$0xff] }
 0x391   : > { %3464 = vmatprep.subr.mxu1 %v4005_v1  ;;  %v3665_v11 = vpack.c.bf16 %v622_v9, %v621_v8  ;;  %v3274_v9 = vld [vmem:[%s4802_s2 + $0x1] ss:$0 sm:$0xff]  ;;  %s4815_s2 = sld [smem:[#allocation25_spill]] }
 0x3ea   : > { %v1111_v14 = vpop.xlane.xlu0 %1110 }
 0x3eb   : > { %3806 = vrcp.f32 %v1111_v14  ;;  %v3668_v14 = vpack.c.bf16 %v624_v13, %v623_v12 }
 0x3ee   : > { %v1277_v15 = vpop.xlane.xlu1 %1276 }
 0x3ef   : > { %3808 = vrcp.f32 %v1277_v15  ;;  %v625_v15 = vld [vmem:[%s4744_s13 + $0x20] sm:$0xff] }
 0x3f2   : > { %v1442_v16 = vpop.xlane.xlu0 %1441  ;;  %v1446_v22 = vpop.permute.xlu1 %1445 }
 0x3f3   : > { %3810 = vrcp.f32 %v1442_v16  ;;  %v626_v16 = vld [vmem:[%s4744_s13 + $0x28] sm:$0xff] }
 0x3f5   : > { %v3807_v17 = vpop.eup %3806 }
 0x3f6   : > { %v1113_v18 = vmul.f32 %v3807_v17, %v3799_v3  ;;  %v1281_v19 = vpop.permute.xlu0 %1280  ;;  %v3236_v3 = vld [vmem:[%s4740_s9] ss:$0 sm:$0xff]  ;;  %v3671_v17 = vpack.c.bf16 %v626_v16, %v625_v15  ;;  %v3276_v16 = vld [vmem:[%s4735_s4 + $0x1] ss:$0 sm:$0xff] }
 0x3f8   : > { %3457 = vmatmul.mubr.msk.f32.vlgmr.msra.gmra.mrb[8].mxu1 %vm864_vm2, %v1113_v18  ;;  %v627_v18 = vld [vmem:[%s4744_s13 + $0x30] sm:$0xff] }
 0x3f9   : > { %v3809_v20 = vpop.eup %3808  ;;  %3465 = vmatpush3.msra.mxu1 %v1281_v19  ;;  %3466 = vmatprep.mubr.msk.f32.mxu1 %vm4004_vm0, %v4005_v1  ;;  %v628_v19 = vld [vmem:[%s4744_s13 + $0x38] sm:$0xff] }
 0x3fa   : > { %v1279_v21 = vmul.f32 %v3809_v20, %v3801_v5  ;;  %3474 = vmatprep.subr.mxu1 %v4005_v1  ;;  %v3237_v5 = vld [vmem:[%s4741_s10] ss:$0 sm:$0xff]  ;;  %v3674_v20 = vpack.c.bf16 %v628_v19, %v627_v18 }
 0x3fc   : > { %3467 = vmatmul.mubr.msk.f32.vlgmr.msra.gmra.mrb[10].mxu1 %vm864_vm2, %v1279_v21 }
 0x3fd   : > { %v3811_v23 = vpop.eup %3810  ;;  %3475 = vmatpush3.msra.mxu1 %v1446_v22  ;;  %3476 = vmatprep.mubr.msk.f32.mxu1 %vm4004_vm0, %v4005_v1 }
 0x3fe   : > { %v1444_v24 = vmul.f32 %v3811_v23, %v3803_v7  ;;  %3658 = vmatprep.subr.bf16.mxu1 %v4003_v0 }
 0x400   : > { %3477 = vmatmul.mubr.msk.f32.vlgmr.msra.gmra.mrb[12].mxu1 %vm864_vm2, %v1444_v24 }
 0x401   : > { %3498 = vmatprep.mubr.msk.f32.mxu1 %vm4004_vm0, %v4005_v1  ;;  %3660 = vmatpush3.bf16.msra.mxu1 %v3659_v58 }
 0x402   : > { %3661 = vmatprep.subr.bf16.mxu1 %v4003_v0 }
 0x405   : > { %3663 = vmatpush3.bf16.msra.mxu1 %v3662_v61  ;;  %v3242_v61 = vld [vmem:[%s4806_s17] ss:$0 sm:$0xff] }
 0x406   : > { %3676 = vmatprep.subr.bf16.mxu1 %v4003_v0 }
 0x462   : > { %v1021_v25 = vpop.f32.mrb[6].mxu1 }
 0x463   : > { %v3448_v26 = vpop.f32.mrb[7].mxu1 }
 0x4cb   : > { %v1187_v33 = vpop.f32.mrb[8].mxu1 }
 0x4cc   : > { %1522 = vrot.lane.b32.xlu1 %v1187_v33, %s4764_s24  ;;  %v3458_v34 = vpop.f32.mrb[9].mxu1  ;;  %s4803_s24 = sld [smem:[#allocation21_spill]] }
 0x4cd   : > { %v3240_v34 = vld [vmem:[%s4805_s29] ss:$0 sm:$0xff] }
 0x4cf   : > { %v1352_v35 = vpop.f32.mrb[10].mxu1 }
 0x4d0   : > { %1526 = vrot.lane.b32.xlu0 %v1352_v35, %s4763_s22  ;;  %v3468_v36 = vpop.f32.mrb[11].mxu1 }
 0x4d2   : > { %s4804_s22 = smov %s4803_s24  ;;  %v3238_v21 = vld [vmem:[%s4803_s24] ss:$0 sm:$0xff] }
 0x4d3   : > { %v1517_v37 = vpop.f32.mrb[12].mxu1 }
 0x4d4   : > { %1530 = vrot.lane.b32.xlu1 %v1517_v37, %s4762_s19  ;;  %v3478_v38 = vpop.f32.mrb[13].mxu1  ;;  %s4814_s19 = sshll.u32 %s4272_s7, 3 }
 0x4d5   : > { %s592_s24 = scalar_lea.vmem [#allocation8], %s4814_s19 }
 0x4d6   : > { %s3115_s14 = sshll.u32 %s592_s24, 4  ;;  %s4688_s14 = int_to_ptr.vmem [resolvable:$true] %s3115_s14 }
 0x53e   : > { %v1523_v39 = vpop.permute.xlu1 %1522 }
 0x53f   : > { %v1533_v41 = vsel %vm864_vm2, %v1021_v25, %v1523_v39 }
 0x542   : > { %v1527_v40 = vpop.permute.xlu0 %1526 }
 0x543   : > { %v1535_v42 = vsel %vm1534_vm3, %v1533_v41, %v1527_v40 }
 0x546   : > { %v1531_v43 = vpop.permute.xlu1 %1530 }
 0x547   : > { %v1537_v44 = vsel %vm1536_vm4, %v1535_v42, %v1531_v43 }
 0x548   : > { %3488 = vmatmul.mubr.msk.f32.vlgmr.msra.gmra.mrb[8].mxu0 %vm638_vm1, %v1537_v44 }
 0x549   : > { %3517 = vmatprep.mubr.msk.f32.mxu0 %vm4004_vm0, %v4005_v1  ;;  %3666 = vmatpush3.bf16.msra.mxu0 %v3665_v11 }
 0x54a   : > { %3667 = vmatprep.subr.bf16.mxu0 %v4003_v0 }
 0x54d   : > { %3669 = vmatpush3.bf16.msra.mxu0 %v3668_v14 }
 0x54e   : > { %3670 = vmatprep.subr.bf16.mxu0 %v4003_v0 }
 0x551   : > { %3672 = vmatpush3.bf16.msra.mxu0 %v3671_v17 }
 0x552   : > { %3673 = vmatprep.subr.bf16.mxu0 %v4003_v0 }
 0x555   : > { %3675 = vmatpush3.bf16.msra.mxu0 %v3674_v20  ;;  %v3278_v20 = vld [vmem:[%s4737_s6 + $0x1] ss:$0 sm:$0xff] }
 0x556   : > { %3688 = vmatprep.subr.bf16.mxu0 %v4003_v0 }
 0x61b   : > { %v1613_v46 = vpop.f32.mrb[8].mxu0 }
 0x61c   : > { %v1614_v47 = vadd.f32 %v3234_v45, %v1613_v46  ;;  %v3489_v48 = vpop.f32.mrb[9].mxu0  ;;  %v3244_v45 = vld [vmem:[%s4799_s1 + $0x20] sm:$0xff]  ;;  %v3245_v46 = vld [vmem:[%s4799_s1 + $0x28] sm:$0xff] }
 0x61d   : > { %v3254_v48 = vld [vmem:[%s4801_s5 + $0x20] sm:$0xff] }
 0x61e   : > { %v1617_v49 = vadd.f32 %v1614_v47, %v4311_v10  ;;  %v3677_v47 = vpack.c.bf16 %v3245_v46, %v3244_v45 }
 0x620   : > { %v1618_v50 = vsel %vm638_vm1, %v1617_v49, 0.0 }
 0x621   : > { %1619 = vadd.xlane.f32.xlu0 %v1618_v50 }
 0x6ae   : > { %v1620_v51 = vpop.xlane.xlu0 %1619 }
 0x6af   : > { %v1622_v52 = vmul.f32 0.03125, %v1620_v51  ;;  %v3246_v51 = vld [vmem:[%s4799_s1 + $0x30] sm:$0xff] }
 0x6b1   : > { %v1623_v53 = vsub.f32 %v1617_v49, %v1622_v52  ;;  %v3255_v49 = vld [vmem:[%s4801_s5 + $0x28] sm:$0xff]  ;;  %v3247_v52 = vld [vmem:[%s4799_s1 + $0x38] sm:$0xff]  ;;  %s4807_s1 = sld [smem:[#allocation24_spill]] }
 0x6b2   : > { %v3689_v50 = vpack.c.bf16 %v3255_v49, %v3254_v48 }
 0x6b3   : > { %v1624_v54 = vmul.f32 %v1623_v53, %v1623_v53 }
 0x6b5   : > { %v1625_v55 = vsel %vm638_vm1, %v1624_v54, 0.0  ;;  %v3680_v54 = vpack.c.bf16 %v3247_v52, %v3246_v51 }
 0x6b6   : > { %1626 = vadd.xlane.f32.xlu1 %v1625_v55  ;;  %v3257_v55 = vld [vmem:[%s4801_s5 + $0x38] sm:$0xff] }
 0x743   : > { %v1627_v10 = vpop.xlane.xlu1 %1626 }
 0x744   : > { %v1628_v62 = vmul.f32 0.03125, %v1627_v10 }
 0x746   : > { %v1629_v63 = vadd.f32 1e-05, %v1628_v62  ;;  %v3249_v62 = vld [vmem:[%s4800_s3 + $0x20] sm:$0xff] }
 0x748   : > { %3812 = vrsqrt.f32 %v1629_v63  ;;  %v3250_v63 = vld [vmem:[%s4800_s3 + $0x28] sm:$0xff] }
 0x752   : > { %v3813_v2 = vpop.eup %3812 }
 0x753   : > { %v1631_v4 = vmul.f32 %v3813_v2, %v1623_v53  ;;  %v3256_v53 = vld [vmem:[%s4801_s5 + $0x30] sm:$0xff]  ;;  %v3243_v2 = vld [vmem:[%s4807_s1] ss:$0 sm:$0xff]  ;;  %s4812_s5 = smov 16  }
 0x754   : > { %v3692_v56 = vpack.c.bf16 %v3257_v55, %v3256_v53 }
 0x755   : > { %v1638_v6 = vmul.f32 %v3236_v3, %v1631_v4  ;;  %v3683_v4 = vpack.c.bf16 %v3250_v63, %v3249_v62 }
 0x757   : > { %v1645_v7 = vadd.f32 %v3237_v5, %v1638_v6  ;;  %v3251_v6 = vld [vmem:[%s4800_s3 + $0x30] sm:$0xff] }
 0x759   : > { %3499 = vmatmul.mubr.msk.f32.vlgmr.msra.gmra.mrb[14].mxu1 %vm638_vm1, %v1645_v7 }
 0x75a   : > { %3528 = vmatprep.mubr.msk.f32.mxu1 %vm4004_vm0, %v4005_v1  ;;  %3678 = vmatpush3.bf16.msra.mxu1 %v3677_v47 }
 0x75b   : > { %3679 = vmatprep.subr.bf16.mxu1 %v4003_v0 }
 0x75e   : > { %3681 = vmatpush3.bf16.msra.mxu1 %v3680_v54 }
 0x75f   : > { %3682 = vmatprep.subr.bf16.mxu1 %v4003_v0 }
 0x82c   : > { %v1721_v22 = vpop.f32.mrb[14].mxu1 }
 0x82d   : > { %v1722_v23 = vadd.f32 %v3238_v21, %v1721_v22  ;;  %v3500_v24 = vpop.f32.mrb[15].mxu1 }
 0x82f   : > { %v1726_v25 = vmul.f32 %v1722_v23, %v1722_v23  ;;  %v1725_v31 = vmul.f32 0.5, %v1722_v23 }
 0x831   : > { %v1727_v26 = vmul.f32 %v1726_v25, %v1722_v23 }
 0x833   : > { %v1728_v27 = vmul.f32 0.044715, %v1727_v26 }
 0x835   : > { %v1729_v28 = vadd.f32 %v1728_v27, %v1722_v23 }
 0x837   : > { %v1730_v29 = vmul.f32 0.7978846, %v1729_v28 }
 0x839   : > { %3814 = vtanh.f32 %v1730_v29 }
 0x843   : > { %v3815_v30 = vpop.eup %3814 }
 0x844   : > { %v1732_v32 = vadd.f32 1.0, %v3815_v30 }
 0x846   : > { %v1733_v33 = vmul.f32 %v1732_v32, %v1725_v31 }
 0x848   : > { %3518 = vmatmul.mubr.msk.f32.vlgmr.msra.gmra.mrb[10].mxu0 %vm1740_vm5, %v1733_v33 }
 0x849   : > { %3550 = vmatprep.mubr.msk.f32.mxu0 %vm4004_vm0, %v4005_v1  ;;  %3690 = vmatpush3.bf16.msra.mxu0 %v3689_v50 }
 0x84a   : > { %3691 = vmatprep.subr.bf16.mxu0 %v4003_v0 }
 0x84d   : > { %3693 = vmatpush3.bf16.msra.mxu0 %v3692_v56 }
 0x84e   : > { %3563 = vmatprep.subr.mxu0 %v4005_v1 }
 0x91b   : > { %v1810_v35 = vpop.f32.mrb[10].mxu0 }
 0x91c   : > { %v1811_v36 = vadd.f32 %v3240_v34, %v1810_v35  ;;  %v3519_v37 = vpop.f32.mrb[11].mxu0 }
 0x91e   : > { %v1814_v38 = vadd.f32 %v1811_v36, %v1645_v7  ;;  %v3252_v7 = vld [vmem:[%s4800_s3 + $0x38] sm:$0xff] }
 0x91f   : > { %v3686_v8 = vpack.c.bf16 %v3252_v7, %v3251_v6 }
 0x920   : > { %v1815_v39 = vsel %vm638_vm1, %v1814_v38, 0.0 }
 0x921   : > { %1816 = vadd.xlane.f32.xlu0 %v1815_v39 }
 0x9ae   : > { %v1817_v40 = vpop.xlane.xlu0 %1816 }
 0x9af   : > { %v1818_v41 = vmul.f32 0.03125, %v1817_v40 }
 0x9b1   : > { %v1819_v42 = vsub.f32 %v1814_v38, %v1818_v41 }
 0x9b3   : > { %v1820_v43 = vmul.f32 %v1819_v42, %v1819_v42 }
 0x9b5   : > { %v1821_v44 = vsel %vm638_vm1, %v1820_v43, 0.0 }
 0x9b6   : > { %1822 = vadd.xlane.f32.xlu0 %v1821_v44 }
 0xa43   : > { %v1823_v57 = vpop.xlane.xlu0 %1822 }
 0xa44   : > { %v1824_v58 = vmul.f32 0.03125, %v1823_v57 }
 0xa46   : > { %v1825_v59 = vadd.f32 1e-05, %v1824_v58 }
 0xa48   : > { %3816 = vrsqrt.f32 %v1825_v59 }
 0xa52   : > { %v3817_v60 = vpop.eup %3816 }
 0xa53   : > { %v1827_v10 = vmul.f32 %v3817_v60, %v1819_v42 }
 0xa55   : > { %v1834_v3 = vmul.f32 %v3242_v61, %v1827_v10 }
 0xa57   : > { %v4523_v5 = vadd.f32 %v3243_v2, %v1834_v3 }
 0xa59   : > { %3529 = vmatmul.mubr.msk.f32.vlgmr.msra.gmra.mrb[16].mxu1 %vm638_vm1, %v4523_v5  ;;  %3551 = vmatmul.mubr.msk.f32.vlgmr.msra.gmra.mrb[12].mxu0 %vm638_vm1, %v4523_v5 }
 0xa5a   : > { %3684 = vmatpush3.bf16.msra.mxu1 %v3683_v4  ;;  %3539 = vmatprep.mubr.msk.f32.mxu1 %vm4004_vm0, %v4005_v1 }
 0xa5b   : > { %3685 = vmatprep.subr.bf16.mxu1 %v4003_v0  ;;  %3565 = vmatprep.mubr.msk.f32.mxu0 %vm4004_vm0, %v4005_v1 }
 0xa5e   : > { %3687 = vmatpush3.bf16.msra.mxu1 %v3686_v8 }
 0xa5f   : > { %3553 = vmatprep.subr.mxu1 %v4005_v1 }
 0xa61   : > { %3540 = vmatmul.mubr.msk.f32.vlgmr.msra.gmra.mrb[18].mxu1 %vm638_vm1, %v4523_v5 }
 0xa62   : > { %3555 = vmatprep.mubr.msk.f32.mxu1 %vm4004_vm0, %v4005_v1 }
 0xb2c   : > { %v1971_v11 = vpop.f32.mrb[16].mxu1  ;;  %v2123_v12 = vpop.f32.mrb[12].mxu0 }
 0xb2d   : > { %v1972_v13 = vadd.f32 %v3274_v9, %v1971_v11  ;;  %v3530_v14 = vpop.f32.mrb[17].mxu1  ;;  %v3552_v15 = vpop.f32.mrb[13].mxu0  ;;  %v4559_v21 = vadd.f32 %v3278_v20, %v2123_v12  ;;  %v1867_v20 = vld [vmem:[#allocation5 + $0x38] sm:$0xff] }
 0xb2f   : > { %2287 = vrot.lane.b32.xlu0 %v1972_v13, %s4808_s16 }
 0xb34   : > { %v2047_v17 = vpop.f32.mrb[18].mxu1 }
 0xb35   : > { %v2048_v18 = vadd.f32 %v3276_v16, %v2047_v17  ;;  %v3541_v19 = vpop.f32.mrb[19].mxu1  ;;  %v1864_v16 = vld [vmem:[#allocation5 + $0x20] sm:$0xff]  ;;  %v1865_v17 = vld [vmem:[#allocation5 + $0x28] sm:$0xff] }
 0xb36   : > { %v1866_v19 = vld [vmem:[#allocation5 + $0x30] sm:$0xff] }
 0xb37   : > { %2620 = vrot.lane.b32.xlu0 %v2048_v18, %s4809_s18  ;;  %2289 = vrot.lane.b32.xlu1 %v2048_v18, %s4808_s16 }
 0xb38   : > { %3554 = vmatpush3.xpose.msk.msra.mxu1 %vm864_vm2, %v2048_v18 }
 0xb39   : > { %3558 = vmatprep.subr.mxu1 %v4005_v1 }
 0xb3b   : > { %3556 = vmatmul.mubr.msk.f32.vlgmr.msra.gmra.mrb[20].mxu1 %vm864_vm2, %v1972_v13  ;;  %2455 = vrot.lane.b32.xlu1 %v2048_v18, %s4810_s0  ;;  %v3695_v18 = vpack.c.bf16 %v1865_v17, %v1864_v16 }
 0xb3c   : > { %3559 = vmatpush3.msra.mxu1 %v4559_v21  ;;  %3560 = vmatprep.mubr.msk.f32.mxu1 %vm4004_vm0, %v4005_v1 }
 0xb3d   : > { %3568 = vmatprep.subr.mxu1 %v4005_v1 }
 0xb3f   : > { %2453 = vrot.lane.b32.xlu1 %v1972_v13, %s4810_s0 }
 0xb43   : > { %2618 = vrot.lane.b32.xlu1 %v1972_v13, %s4809_s18 }
 0xba1   : > { %v2288_v23 = vpop.permute.xlu0 %2287 }
 0xba9   : > { %v2290_v22 = vpop.permute.xlu1 %2289  ;;  %v2621_v26 = vpop.permute.xlu0 %2620 }
 0xbaa   : > { %3564 = vmatpush3.xpose.msk.msra.mxu0 %vm864_vm2, %v2290_v22 }
 0xbab   : > { %3573 = vmatprep.subr.mxu0 %v4005_v1 }
 0xbad   : > { %3566 = vmatmul.mubr.msk.f32.vlgmr.msra.gmra.mrb[14].mxu0 %vm864_vm2, %v2288_v23  ;;  %v2456_v24 = vpop.permute.xlu1 %2455 }
 0xbae   : > { %3574 = vmatpush3.xpose.msk.msra.mxu0 %vm864_vm2, %v2456_v24  ;;  %3575 = vmatprep.mubr.msk.f32.mxu0 %vm4004_vm0, %v4005_v1 }
 0xbaf   : > { %3583 = vmatprep.subr.mxu0 %v4005_v1 }
 0xbb1   : > { %v2454_v25 = vpop.permute.xlu1 %2453 }
 0xbb2   : > { %3576 = vmatmul.mubr.msk.f32.vlgmr.msra.gmra.mrb[16].mxu0 %vm864_vm2, %v2454_v25 }
 0xbb3   : > { %3584 = vmatpush3.xpose.msk.msra.mxu0 %vm864_vm2, %v2621_v26  ;;  %3585 = vmatprep.mubr.msk.f32.mxu0 %vm4004_vm0, %v4005_v1 }
 0xbb4   : > { %3694 = vmatprep.subr.bf16.mxu0 %v4003_v0 }
 0xbb5   : > { %v2619_v27 = vpop.permute.xlu1 %2618 }
 0xbb6   : > { %3586 = vmatmul.mubr.msk.f32.vlgmr.msra.gmra.mrb[18].mxu0 %vm864_vm2, %v2619_v27 }
 0xbb7   : > { %3601 = vmatprep.mubr.msk.f32.mxu0 %vm4004_vm0, %v4005_v1  ;;  %3696 = vmatpush3.bf16.msra.mxu0 %v3695_v18 }
 0xbb8   : > { %3697 = vmatprep.subr.bf16.mxu0 %v4003_v0 }
 0xc0e   : > { %v2199_v28 = vpop.f32.mrb[20].mxu1 }
 0xc0f   : > { %v3557_v29 = vpop.f32.mrb[21].mxu1  ;;  %v2203_v30 = vsel %vm864_vm2, %v2199_v28, -inf }
 0xc10   : > { %2204 = vmax.xlane.f32.xlu0 %v2203_v30 }
 0xc80   : > { %v2361_v31 = vpop.f32.mrb[14].mxu0 }
 0xc81   : > { %v3567_v32 = vpop.f32.mrb[15].mxu0  ;;  %v2365_v33 = vsel %vm864_vm2, %v2361_v31, -inf }
 0xc82   : > { %2366 = vmax.xlane.f32.xlu1 %v2365_v33 }
 0xc85   : > { %v2527_v34 = vpop.f32.mrb[16].mxu0 }
 0xc86   : > { %v3577_v35 = vpop.f32.mrb[17].mxu0  ;;  %v2531_v36 = vsel %vm864_vm2, %v2527_v34, -inf }
 0xc87   : > { %2532 = vmax.xlane.f32.xlu0 %v2531_v36 }
 0xc89   : > { %v2692_v37 = vpop.f32.mrb[18].mxu0 }
 0xc8a   : > { %v3587_v38 = vpop.f32.mrb[19].mxu0  ;;  %v2696_v39 = vsel %vm864_vm2, %v2692_v37, -inf }
 0xc8b   : > { %2697 = vmax.xlane.f32.xlu0 %v2696_v39 }
 0xc93   : > { %2377 = vrot.lane.b32.xlu1 %v4559_v21, %s4808_s16  ;;  %s3303_s16 = sshll.u32 %s4124_s28, 7  ;;  %s4012_s28 = smov [#allocation8]  }
 0xc94   : > { %s4686_s3 = scalar_lea.hbm %s4815_s2, %s3303_s16 }
 0xc9d   : > { %v2205_v40 = vpop.xlane.xlu0 %2204 }
 0xc9e   : > { %v2206_v41 = vsub.f32 %v2199_v28, %v2205_v40 }
 0xca0   : > { %v2207_v42 = vmul.f32 1.442695, %v2206_v41 }
 0xca2   : > { %3818 = vpow2.f32 %v2207_v42 }
 0xcac   : > { %v3819_v43 = vpop.eup %3818 }
 0xcad   : > { %v2209_v44 = vsel %vm864_vm2, %v3819_v43, 0.0 }
 0xcb7   : > { %2210 = vadd.xlane.f32.xlu1 %v2209_v44 }
 0xd0f   : > { %v2367_v45 = vpop.xlane.xlu1 %2366 }
 0xd10   : > { %v2368_v46 = vsub.f32 %v2361_v31, %v2367_v45  ;;  %v1876_v45 = vld [vmem:[#allocation7 + $0x28] sm:$0xff] }
 0xd12   : > { %v2369_v47 = vmul.f32 1.442695, %v2368_v46 }
 0xd13   : > { %v2378_v60 = vpop.permute.xlu1 %2377 }
 0xd14   : > { %3820 = vpow2.f32 %v2369_v47  ;;  %v2533_v48 = vpop.xlane.xlu0 %2532  ;;  %v1877_v47 = vld [vmem:[#allocation7 + $0x30] sm:$0xff] }
 0xd15   : > { %v2534_v49 = vsub.f32 %v2527_v34, %v2533_v48  ;;  %v3292_v34 = vld [vmem:[%s4739_s8 + $0x1] ss:$0 sm:$0xff]  ;;  %v1878_v48 = vld [vmem:[#allocation7 + $0x38] sm:$0xff] }
 0xd17   : > { %v2535_v50 = vmul.f32 1.442695, %v2534_v49  ;;  %v3704_v49 = vpack.c.bf16 %v1878_v48, %v1877_v47 }
 0xd18   : > { %v2698_v51 = vpop.xlane.xlu0 %2697 }
 0xd19   : > { %3822 = vpow2.f32 %v2535_v50  ;;  %v2699_v52 = vsub.f32 %v2692_v37, %v2698_v51 }
 0xd1b   : > { %v2700_v53 = vmul.f32 1.442695, %v2699_v52 }
 0xd1d   : > { %3824 = vpow2.f32 %v2700_v53  ;;  %v3294_v53 = vld [vmem:[%s4740_s9 + $0x1] ss:$0 sm:$0xff] }
 0xd1e   : > { %v3821_v54 = vpop.eup %3820 }
 0xd1f   : > { %v2371_v55 = vsel %vm864_vm2, %v3821_v54, 0.0 }
 0xd20   : > { %2372 = vadd.xlane.f32.xlu0 %v2371_v55  ;;  %v3295_v55 = vld [vmem:[%s4741_s10 + $0x1] ss:$0 sm:$0xff] }
 0xd23   : > { %v3823_v56 = vpop.eup %3822 }
 0xd24   : > { %v2537_v57 = vsel %vm864_vm2, %v3823_v56, 0.0 }
 0xd25   : > { %2538 = vadd.xlane.f32.xlu1 %v2537_v57 }
 0xd27   : > { %v3825_v58 = vpop.eup %3824 }
 0xd28   : > { %v2702_v59 = vsel %vm864_vm2, %v3825_v58, 0.0 }
 0xd29   : > { %2703 = vadd.xlane.f32.xlu0 %v2702_v59  ;;  %v3264_v59 = vld [vmem:[%s4744_s13 + $0x48] sm:$0xff] }
 0xd36   : > { %2707 = vrot.lane.b32.xlu1 %v4559_v21, %s4809_s18 }
 0xd3f   : > { %2542 = vrot.lane.b32.xlu0 %v4559_v21, %s4810_s0  ;;  %v3698_v21 = vpack.c.bf16 %v1867_v20, %v1866_v19  ;;  %s3102_s0 = scalar_lea.sflag [#allocation4], %s4272_s7 }
 0xd41   : > { %3699 = vmatpush3.bf16.msra.mxu0 %v3698_v21  ;;  %v3298_v21 = vld [vmem:[%s4805_s29 + $0x1] ss:$0 sm:$0xff] }
 0xd42   : > { %3706 = vmatprep.subr.bf16.mxu0 %v4003_v0 }
 0xd44   : > { %v2211_v61 = vpop.xlane.xlu1 %2210 }
 0xd45   : > { %3826 = vrcp.f32 %v2211_v61  ;;  %v3265_v61 = vld [vmem:[%s4744_s13 + $0x50] sm:$0xff] }
 0xd4f   : > { %v3827_v10 = vpop.eup %3826 }
 0xd50   : > { %v2213_v62 = vmul.f32 %v3827_v10, %v3819_v43  ;;  %v3266_v10 = vld [vmem:[%s4744_s13 + $0x58] sm:$0xff] }
 0xd52   : > { %3561 = vmatmul.mubr.msk.f32.vlgmr.msra.gmra.mrb[22].mxu1 %vm864_vm2, %v2213_v62  ;;  %v3710_v62 = vpack.c.bf16 %v3266_v10, %v3265_v61 }
 0xd53   : > { %3569 = vmatpush3.msra.mxu1 %v2378_v60  ;;  %3570 = vmatprep.mubr.msk.f32.mxu1 %vm4004_vm0, %v4005_v1 }
 0xd54   : > { %3578 = vmatprep.subr.mxu1 %v4005_v1 }
 0xdad   : > { %v2373_v63 = vpop.xlane.xlu0 %2372 }
 0xdae   : > { %3828 = vrcp.f32 %v2373_v63  ;;  %v3267_v63 = vld [vmem:[%s4744_s13 + $0x60] sm:$0xff] }
 0xdb2   : > { %v2539_v2 = vpop.xlane.xlu1 %2538 }
 0xdb3   : > { %3830 = vrcp.f32 %v2539_v2  ;;  %v3268_v2 = vld [vmem:[%s4744_s13 + $0x68] sm:$0xff] }
 0xdb6   : > { %v2704_v3 = vpop.xlane.xlu0 %2703  ;;  %v2708_v11 = vpop.permute.xlu1 %2707 }
 0xdb7   : > { %3832 = vrcp.f32 %v2704_v3  ;;  %v3713_v3 = vpack.c.bf16 %v3268_v2, %v3267_v63 }
 0xdb8   : > { %v3829_v4 = vpop.eup %3828 }
 0xdb9   : > { %v2375_v6 = vmul.f32 %v3829_v4, %v3821_v54  ;;  %v3269_v4 = vld [vmem:[%s4744_s13 + $0x70] sm:$0xff] }
 0xdba   : > { %v2543_v7 = vpop.permute.xlu0 %2542 }
 0xdbb   : > { %3571 = vmatmul.mubr.msk.f32.vlgmr.msra.gmra.mrb[24].mxu1 %vm864_vm2, %v2375_v6  ;;  %v3270_v6 = vld [vmem:[%s4744_s13 + $0x78] sm:$0xff] }
 0xdbc   : > { %3579 = vmatpush3.msra.mxu1 %v2543_v7  ;;  %3580 = vmatprep.mubr.msk.f32.mxu1 %vm4004_vm0, %v4005_v1  ;;  %v3716_v7 = vpack.c.bf16 %v3270_v6, %v3269_v4 }
 0xdbd   : > { %v3831_v8 = vpop.eup %3830  ;;  %3588 = vmatprep.subr.mxu1 %v4005_v1 }
 0xdbe   : > { %v2541_v9 = vmul.f32 %v3831_v8, %v3823_v56  ;;  %v3296_v8 = vld [vmem:[%s4804_s22 + $0x1] ss:$0 sm:$0xff] }
 0xdc0   : > { %3581 = vmatmul.mubr.msk.f32.vlgmr.msra.gmra.mrb[26].mxu1 %vm864_vm2, %v2541_v9 }
 0xdc1   : > { %v3833_v12 = vpop.eup %3832  ;;  %3589 = vmatpush3.msra.mxu1 %v2708_v11  ;;  %3590 = vmatprep.mubr.msk.f32.mxu1 %vm4004_vm0, %v4005_v1 }
 0xdc2   : > { %v2706_v13 = vmul.f32 %v3833_v12, %v3825_v58  ;;  %3700 = vmatprep.subr.bf16.mxu1 %v4003_v0  ;;  %v3263_v58 = vld [vmem:[%s4744_s13 + $0x40] sm:$0xff] }
 0xdc3   : > { %v3707_v60 = vpack.c.bf16 %v3264_v59, %v3263_v58 }
 0xdc4   : > { %3591 = vmatmul.mubr.msk.f32.vlgmr.msra.gmra.mrb[28].mxu1 %vm864_vm2, %v2706_v13 }
 0xdc5   : > { %3612 = vmatprep.mubr.msk.f32.mxu1 %vm4004_vm0, %v4005_v1 }
 0xe25   : > { %v2283_v14 = vpop.f32.mrb[22].mxu1 }
 0xe26   : > { %v3562_v15 = vpop.f32.mrb[23].mxu1 }
 0xe8e   : > { %v2449_v22 = vpop.f32.mrb[24].mxu1 }
 0xe8f   : > { %2784 = vrot.lane.b32.xlu1 %v2449_v22, %s4811_s20  ;;  %v3572_v23 = vpop.f32.mrb[25].mxu1  ;;  %s3926_s20 = scalar_lea.vmem %s4688_s14, 128 }
 0xe90   : > { %p3927_p11 = scmp.ne.s32.totalorder %s4688_s14, %s3926_s20 }
 0xe92   : > { %p3928_p1 = pnand %p3927_p11, %p4816_p0 }
 0xe93   : > { %v2614_v24 = vpop.f32.mrb[26].mxu1 }
 0xe94   : > { %2788 = vrot.lane.b32.xlu0 %v2614_v24, %s4812_s5  ;;  %v3582_v25 = vpop.f32.mrb[27].mxu1  ;;  %p3929_p3 = pneg %p3928_p1  ;;  %s3930_s5 = sshll.u32 %s4012_s28, 4  ;;  %s3931_s5 = int_to_ptr.vmem [resolvable:$false] %s3930_s5 }
 0xe95   : > { %p3933_p7 = scmp.lt.s32.totalorder %s4688_s14, %s3931_s5 }
 0xe97   : > { %v2779_v26 = vpop.f32.mrb[28].mxu1 }
 0xe98   : > { %2792 = vrot.lane.b32.xlu1 %v2779_v26, %s4813_s11  ;;  %v3592_v27 = vpop.f32.mrb[29].mxu1  ;;  %s3932_s11 = scalar_lea.vmem %s3931_s5, 256 }
 0xe99   : > { %p3934_p9 = scmp.lt.s32.totalorder %s3932_s11, %s3926_s20 }
 0xe9b   : > { %p3935_p12 = por %p3934_p9, %p3933_p7 }
 0xe9d   : > { %p3936_p2 = pnand %p3935_p12, %p3929_p3 }
 0xf01   : > { %v2785_v28 = vpop.permute.xlu1 %2784 }
 0xf02   : > { %v2795_v30 = vsel %vm864_vm2, %v2283_v14, %v2785_v28 }
 0xf06   : > { %v2789_v29 = vpop.permute.xlu0 %2788 }
 0xf07   : > { %v2796_v31 = vsel %vm1534_vm3, %v2795_v30, %v2789_v29 }
 0xf0a   : > { %v2793_v32 = vpop.permute.xlu1 %2792 }
 0xf0b   : > { %v2797_v33 = vsel %vm1536_vm4, %v2796_v31, %v2793_v32 }
 0xf0c   : > { %3602 = vmatmul.mubr.msk.f32.vlgmr.msra.gmra.mrb[20].mxu0 %vm638_vm1, %v2797_v33 }
 0xf0d   : > { %3631 = vmatprep.mubr.msk.f32.mxu0 %vm4004_vm0, %v4005_v1  ;;  %v1875_v1 = vld [vmem:[#allocation7 + $0x20] sm:$0xff]  ;;  %3708 = vmatpush3.bf16.msra.mxu0 %v3707_v60 }
 0xf0e   : > { %v3701_v46 = vpack.c.bf16 %v1876_v45, %v1875_v1  ;;  %3709 = vmatprep.subr.bf16.mxu0 %v4003_v0 }
 0xf10   : > { %3702 = vmatpush3.bf16.msra.mxu1 %v3701_v46 }
 0xf11   : > { %3703 = vmatprep.subr.bf16.mxu1 %v4003_v0  ;;  %3711 = vmatpush3.bf16.msra.mxu0 %v3710_v62 }
 0xf12   : > { %3712 = vmatprep.subr.bf16.mxu0 %v4003_v0 }
 0xf14   : > { %3705 = vmatpush3.bf16.msra.mxu1 %v3704_v49 }
 0xf15   : > { %3714 = vmatpush3.bf16.msra.mxu0 %v3713_v3 }
 0xf16   : > { %3715 = vmatprep.subr.bf16.mxu0 %v4003_v0 }
 0xf19   : > { %3717 = vmatpush3.bf16.msra.mxu0 %v3716_v7 }
 0xfdf   : > { %v2873_v35 = vpop.f32.mrb[20].mxu0 }
 0xfe0   : > { %v2874_v36 = vadd.f32 %v3292_v34, %v2873_v35  ;;  %v3603_v37 = vpop.f32.mrb[21].mxu0 }
 0xfe2   : > { %v2877_v38 = vadd.f32 %v2874_v36, %v4523_v5  ;;  %v3300_v36 = vld [vmem:[%s4806_s17 + $0x1] ss:$0 sm:$0xff] }
 0xfe4   : > { %v2878_v39 = vsel %vm638_vm1, %v2877_v38, 0.0 }
 0xfe5   : > { %2879 = vadd.xlane.f32.xlu0 %v2878_v39 }
0x1072   : > { %v2880_v40 = vpop.xlane.xlu0 %2879 }
0x1073   : > { %v2881_v41 = vmul.f32 0.03125, %v2880_v40 }
0x1075   : > { %v2882_v42 = vsub.f32 %v2877_v38, %v2881_v41  ;;  %v3301_v38 = vld [vmem:[%s4807_s1 + $0x1] ss:$0 sm:$0xff] }
0x1077   : > { %v2883_v43 = vmul.f32 %v2882_v42, %v2882_v42 }
0x1079   : > { %v2884_v44 = vsel %vm638_vm1, %v2883_v43, 0.0 }
0x107a   : > { %2885 = vadd.xlane.f32.xlu1 %v2884_v44 }
0x1107   : > { %v2886_v5 = vpop.xlane.xlu1 %2885 }
0x1108   : > { %v2887_v50 = vmul.f32 0.03125, %v2886_v5 }
0x110a   : > { %v2888_v51 = vadd.f32 1e-05, %v2887_v50 }
0x110c   : > { %3834 = vrsqrt.f32 %v2888_v51 }
0x1116   : > { %v3835_v52 = vpop.eup %3834 }
0x1117   : > { %v2890_v54 = vmul.f32 %v3835_v52, %v2882_v42 }
0x1119   : > { %v2897_v56 = vmul.f32 %v3294_v53, %v2890_v54 }
0x111b   : > { %v2904_v57 = vadd.f32 %v3295_v55, %v2897_v56 }
0x111d   : > { %3613 = vmatmul.mubr.msk.f32.vlgmr.msra.gmra.mrb[30].mxu1 %vm638_vm1, %v2904_v57 }
0x11f0   : > { %v2980_v9 = vpop.f32.mrb[30].mxu1 }
0x11f1   : > { %v2981_v11 = vadd.f32 %v3296_v8, %v2980_v9  ;;  %v3614_v12 = vpop.f32.mrb[31].mxu1 }
0x11f3   : > { %v2985_v13 = vmul.f32 %v2981_v11, %v2981_v11  ;;  %v2984_v18 = vmul.f32 0.5, %v2981_v11 }
0x11f5   : > { %v2986_v14 = vmul.f32 %v2985_v13, %v2981_v11 }
0x11f7   : > { %v2987_v0 = vmul.f32 0.044715, %v2986_v14 }
0x11f9   : > { %v2988_v15 = vadd.f32 %v2987_v0, %v2981_v11 }
0x11fb   : > { %v2989_v16 = vmul.f32 0.7978846, %v2988_v15 }
0x11fd   : > { %3836 = vtanh.f32 %v2989_v16 }
0x1207   : > { %v3837_v17 = vpop.eup %3836 }
0x1208   : > { %v2991_v19 = vadd.f32 1.0, %v3837_v17 }
0x120a   : > { %v2992_v20 = vmul.f32 %v2991_v19, %v2984_v18 }
0x120c   : > { %3632 = vmatmul.mubr.msk.f32.vlgmr.msra.gmra.mrb[22].mxu0 %vm1740_vm5, %v2992_v20 }
0x12df   : > { %v3068_v22 = vpop.f32.mrb[22].mxu0 }
0x12e0   : > { %v3069_v23 = vadd.f32 %v3298_v21, %v3068_v22  ;;  %v3633_v24 = vpop.f32.mrb[23].mxu0 }
0x12e2   : > { %v3072_v25 = vadd.f32 %v3069_v23, %v2904_v57 }
0x12e4   : > { %v3073_v26 = vsel %vm638_vm1, %v3072_v25, 0.0 }
0x12e5   : > { %3074 = vadd.xlane.f32.xlu0 %v3073_v26 }
0x1372   : > { %v3075_v27 = vpop.xlane.xlu0 %3074 }
0x1373   : > { %v3076_v28 = vmul.f32 0.03125, %v3075_v27 }
0x1375   : > { %v3077_v29 = vsub.f32 %v3072_v25, %v3076_v28 }
0x1377   : > { %v3078_v30 = vmul.f32 %v3077_v29, %v3077_v29 }
0x1379   : > { %v3079_v31 = vsel %vm638_vm1, %v3078_v30, 0.0 }
0x137a   : > { %3080 = vadd.xlane.f32.xlu0 %v3079_v31 }
0x1407   : > { %v3081_v32 = vpop.xlane.xlu0 %3080 }
0x1408   : > { %v3082_v33 = vmul.f32 0.03125, %v3081_v32 }
0x140a   : > { %v3083_v34 = vadd.f32 1e-05, %v3082_v33 }
0x140c   : > { %3838 = vrsqrt.f32 %v3083_v34 }
0x1416   : > { %v3839_v35 = vpop.eup %3838 }
0x1417   : > { %v3085_v37 = vmul.f32 %v3839_v35, %v3077_v29 }
0x1419   : > { %v3092_v39 = vmul.f32 %v3300_v36, %v3085_v37 }
0x141b   : > { %v3099_v40 = vadd.f32 %v3301_v38, %v3092_v39 }
0x141d   : > { %3100 = vst.msk [vmem:[%s592_s24] sm:$0xff] %vm638_vm1, %v3099_v40 }
0x141e   : > { %3939 = shalt.err (!%p3936_p2)
}
0x141f   : > { %s3940_s7 = scalar_lea.hbm %s4686_s3, 128  ;;  %s3944_s24 = scalar_lea.hbm %s4815_s2, 256 }
0x1420   : > { %p3941_p13 = scmp.ne.s32.totalorder %s4686_s3, %s3940_s7  ;;  %p3945_p4 = scmp.lt.u32.totalorder %s4686_s3, %s4815_s2 }
0x1421   : > { %p3946_p5 = scmp.lt.u32.totalorder %s3944_s24, %s3940_s7  ;;  %p3948_p11 = scmp.lt.u32.totalorder %s3940_s7, %s4686_s3 }
0x1422   : > { %p3942_p6 = pnand %p3941_p13, %p4816_p0 }
0x1423   : > { %p3947_p8 = por %p3946_p5, %p3945_p4 }
0x1424   : > { %p3943_p10 = pneg %p3942_p6 }
0x1425   : > { %p3949_p1 = por %p3948_p11, %p3947_p8 }
0x1427   : > { %p3950_p3 = pnand %p3949_p1, %p3943_p10 }
0x1429   : > { %3953 = shalt.err (!%p3950_p3)
}
0x142a   : > { %3728 = dma.vmem_to_hbm [thread:$0]  (%p4816_p0), %s4688_s14, 128, %s4686_s3, %s3102_s0  }
0x142b PF: > { %s4817_s20 = sld [smem:[#allocation12_spill]]  ;;  %s4818_s28 = sld [smem:[#allocation13_spill]] }
0x142c   : > { %p4820_p9 = scmp.ge.s32.totalorder %s3996_s27, 2 }
0x1431   : > { %s3127_s5 = sand.u32 1, %s4817_s20   ;;  %p4819_p7 = scmp.ne.s32.totalorder %s4818_s28, 0 }
0x1432   : > { %s3128_s11 = scalar_lea.sflag [#allocation4], %s3127_s5 }
0x1433   : > { %p3742_p12 = pnand %p4820_p9, %p4819_p7 }
0x1435   : > { %3979 = dma.done.wait (!%p3742_p12), %s3128_s11, 128  }
0x1436   : > { %3981 = vsyncadd (!%p3742_p12), %s3128_s11, 4294967168  ;;  %p31_p2 = scmp.ge.s32.totalorder %s4213_s15, 4   ;;  %s4821_s24 = smov %s3988_s25 }
0x1437   : > { %s4822_s25 = smov %s3992_s26  ;;  %s4823_s26 = smov %s4229_s23 }
0x1438   : > { %s4824_s27 = smov %s4213_s15  ;;  %33 = sbr.rel (!%p31_p2) target bundleno = 19 (0x13), region = 157 }
0x143f   :  { %3133 = vsyncpa [#allocation3], 1 }
0x1440   :  { %3135 = vsyncpa [#allocation3 + $0x1], 1 }
0x1441   :  { %3136 = vsyncpa [#allocation6], 1 }
0x1442   :  { %3137 = vsyncpa [#allocation4], 1 }
0x1443   :  { %3139 = vsyncpa [#allocation4 + $0x1], 1 }

// kernel: tpu_custom_call.1
= control target key start
LH: loop header
LB: loop body
LE: loop exit
PB: predicated region body
PF: predicated region fallthrough
CT: control target
= control target key end

     0   :  { %s5168_s0 = inlined_call_operand.hbm [shape: f32[2,8,32], index: 0, kind: input, shape index: {}]   ;;  %s5169_s1 = inlined_call_operand.vmem [shape: f32[2,32,32], index: 1, kind: input, shape index: {}]   ;;  %s5170_s2 = inlined_call_operand.vmem [shape: f32[2,1,32], index: 2, kind: input, shape index: {}]   ;;  %s5171_s3 = inlined_call_operand.vmem [shape: f32[2,32,32], index: 3, kind: input, shape index: {}]   ;;  %s5172_s4 = inlined_call_operand.vmem [shape: f32[2,1,32], index: 4, kind: input, shape index: {}]   ;;  %s5173_s5 = inlined_call_operand.vmem [shape: f32[2,32,32], index: 5, kind: input, shape index: {}]   ;;  %s5174_s6 = inlined_call_operand.vmem [shape: f32[2,1,32], index: 6, kind: input, shape index: {}]   ;;  %s5175_s7 = inlined_call_operand.hbm [shape: f32[2,32,32], index: 7, kind: input, shape index: {}]   ;;  %s5176_s8 = inlined_call_operand.vmem [shape: f32[2,1,32], index: 8, kind: input, shape index: {}]   ;;  %s5177_s9 = inlined_call_operand.vmem [shape: f32[2,1,32], index: 9, kind: input, shape index: {}]   ;;  %s5178_s10 = inlined_call_operand.vmem [shape: f32[2,1,32], index: 10, kind: input, shape index: {}]   ;;  %s5179_s11 = inlined_call_operand.hbm [shape: f32[2,32,64], index: 11, kind: input, shape index: {}]   ;;  %s5180_s12 = inlined_call_operand.vmem [shape: f32[2,1,64], index: 12, kind: input, shape index: {}]   ;;  %s5181_s13 = inlined_call_operand.vmem [shape: f32[2,64,32], index: 13, kind: input, shape index: {}]   ;;  %s5182_s14 = inlined_call_operand.vmem [shape: f32[2,1,32], index: 14, kind: input, shape index: {}]   ;;  %s5183_s15 = inlined_call_operand.vmem [shape: f32[2,1,32], index: 15, kind: input, shape index: {}]   ;;  %s5184_s16 = inlined_call_operand.vmem [shape: f32[2,1,32], index: 16, kind: input, shape index: {}]   ;;  %s5185_s17 = inlined_call_operand.hbm [shape: f32[2,8,32], index: 17, kind: output, shape index: {}]  }
   0x1   :  { %5207 = sst [smem:[#allocation14_spill]] %s5168_s0 }
   0x2   :  { %5208 = sst [smem:[#allocation15_spill]] %s5169_s1 }
   0x3   :  { %5209 = sst [smem:[#allocation16_spill]] %s5170_s2 }
   0x4   :  { %5210 = sst [smem:[#allocation17_spill]] %s5173_s5 }
   0x5   :  { %5211 = sst [smem:[#allocation18_spill]] %s5175_s7 }
   0x6   :  { %5212 = sst [smem:[#allocation19_spill]] %s5179_s11 }
   0x7   :  { %5213 = sst [smem:[#allocation20_spill]] %s5180_s12 }
   0x8   :  { %5214 = sst [smem:[#allocation21_spill]] %s5182_s14 }
   0x9   :  { %5215 = sst [smem:[#allocation22_spill]] %s5183_s15 }
   0xa   :  { %5216 = sst [smem:[#allocation23_spill]] %s5184_s16 }
   0xb   :  { %5217 = sst [smem:[#allocation24_spill]] %s5185_s17 }
   0xc   :  { %22 = vsyncpa [#allocation3], 0 }
   0xd   :  { %24 = vsyncpa [#allocation3 + $0x1], 0 }
   0xe   :  { %25 = vsyncpa [#allocation6], 0 }
   0xf   :  { %26 = vsyncpa [#allocation4], 0 }
  0x10   :  { %28 = vsyncpa [#allocation4 + $0x1], 0  ;;  %s4527_s24 = smov 0   ;;  %s4529_s25 = smov 0  }
  0x11   :  { %s4531_s26 = smov 0   ;;  %s4533_s27 = smov 0  }
  0x12 LB: > { %5218 = sst [smem:[#allocation12_spill]] %s4411_s24  ;;  %s4548_s28 = sadd.s32 4294967295, %s4423_s27   ;;  %s4423_s27 = sphi %s4533_s27, %s5254_s27   ;;  %s4419_s26 = sphi %s4531_s26, %s5253_s26   ;;  %s4415_s25 = sphi %s4529_s25, %s5252_s25   ;;  %s4411_s24 = sphi %s4527_s24, %s5251_s24  }
  0x13   : > { %s3616_s29 = sadd.s32 4294967294, %s4423_s27   ;;  %p54_p0 = scmp.ne.s32.totalorder %s4415_s25, %s4411_s24 }
  0x14   : > { %p5192_p1 = scmp.eq.s32.totalorder %s4548_s28, 0  ;;  %p420_p3 = scmp.eq.s32.totalorder %s3616_s29, 1 }
  0x15   : > { %p3617_p5 = scmp.ge.s32.totalorder %s4423_s27, 1  ;;  %p427_p7 = scmp.lt.s32.totalorder %s4423_s27, 3 }
  0x16   : > { %p4557_p4 = por %p5192_p1, %p54_p0  ;;  %p4562_p6 = por %p420_p3, %p54_p0 }
  0x17   : > { %p4567_p8 = pnand %p3617_p5, %p427_p7  ;;  %s4425_s19 = smov [#allocation5]  }
  0x18   : > { %s5219_s0 = scalar_select %p4557_p4, 1, 0 }
  0x19   : > { %s5220_s30 = scalar_select %p4562_p6, 1, 0 }
  0x1a   : > { %s457_s1 = sshll.u32 %s4425_s19, 4  ;;  %p4160_p9 = pneg %p4567_p8  ;;  %s4571_s1 = int_to_ptr.vmem [resolvable:$true] %s457_s1 }
  0x1b   : > { %5221 = sst [smem:[#allocation13_spill]] %s5220_s30  ;;  %s4426_s21 = smov [#allocation7]  }
  0x1c   : > { %p4578_p11 = pnand %p4160_p9, %p5192_p1  ;;  %s479_s22 = sshll.u32 %s4426_s21, 4  ;;  %s4582_s22 = int_to_ptr.vmem [resolvable:$true] %s479_s22 }
  0x1d   : > { %s5224_s7 = sld [smem:[#allocation18_spill]] }
  0x1e   : > { %p4269_p13 = pneg %p4578_p11 }
  0x23   : > { %s4267_s19 = scalar_lea.hbm %s5224_s7, 1024 }
  0x24   : > { %p4268_p12 = scmp.ne.s32.totalorder %s5224_s7, %s4267_s19  ;;  %p4274_p5 = scmp.lt.u32.totalorder %s4267_s19, %s5224_s7 }
  0x26   : > { %p4270_p0 = pnand %p4269_p13, %p4268_p12 }
  0x28   : > { %p4271_p3 = pneg %p4270_p0 }
  0x2a   : > { %p4276_p7 = pnand %p4274_p5, %p4271_p3 }
  0x2c   : > { %4279 = shalt.err (!%p4276_p7)
}
  0x2d   : > { %s4280_s21 = scalar_lea.vmem %s4571_s1, 1024  ;;  %p4288_p2 = scmp.lt.s32.totalorder %s4571_s1, %s4571_s1 }
  0x2e   : > { %p4281_p9 = scmp.ne.s32.totalorder %s4571_s1, %s4280_s21  ;;  %p4289_p12 = scmp.lt.s32.totalorder %s4280_s21, %s4280_s21 }
  0x30   : > { %p4283_p10 = pnand %p4281_p9, %p4269_p13  ;;  %p4290_p0 = por %p4289_p12, %p4288_p2 }
  0x32   : > { %p4284_p1 = pneg %p4283_p10 }
  0x34   : > { %p4291_p6 = pnand %p4290_p0, %p4284_p1 }
  0x36   : > { %4294 = shalt.err (!%p4291_p6)
}
  0x37   : > { %s4427_s16 = smov 128   ;;  %s4428_s17 = smov 8  }
  0x38   : > { %4163 = dma.hbm_to_vmem [thread:$0]  (!%p4578_p11), %s5224_s7, 1024, %s4571_s1, [#allocation6], %s4427_s16, %s4427_s16, %s4428_s17  }
  0x39   : > { %s5225_s11 = sld [smem:[#allocation19_spill]] }
  0x3f   : > { %s4295_s19 = scalar_lea.hbm %s5225_s11, 1024 }
  0x40   : > { %p4296_p2 = scmp.ne.s32.totalorder %s5225_s11, %s4295_s19  ;;  %p4302_p10 = scmp.lt.u32.totalorder %s4295_s19, %s5225_s11 }
  0x42   : > { %p4298_p1 = pnand %p4296_p2, %p4269_p13 }
  0x44   : > { %p4299_p6 = pneg %p4298_p1 }
  0x46   : > { %p4304_p3 = pnand %p4302_p10, %p4299_p6 }
  0x48   : > { %4307 = shalt.err (!%p4304_p3)
}
  0x49   : > { %s4308_s1 = scalar_lea.vmem %s4582_s22, 1024  ;;  %p4316_p12 = scmp.lt.s32.totalorder %s4582_s22, %s4582_s22 }
  0x4a   : > { %p4309_p5 = scmp.ne.s32.totalorder %s4582_s22, %s4308_s1  ;;  %p4317_p0 = scmp.lt.s32.totalorder %s4308_s1, %s4308_s1 }
  0x4c   : > { %p4311_p7 = pnand %p4309_p5, %p4269_p13  ;;  %p4318_p2 = por %p4317_p0, %p4316_p12 }
  0x4e   : > { %p4312_p9 = pneg %p4311_p7 }
  0x50   : > { %p4319_p1 = pnand %p4318_p2, %p4312_p9 }
  0x52   : > { %4322 = shalt.err (!%p4319_p1)
}
  0x53   : > { %4166 = dma.hbm_to_vmem [thread:$0]  (!%p4578_p11), %s5225_s11, 1024, %s4582_s22, [#allocation6], %s4427_s16, %s4427_s16, %s4428_s17  }
  0x54   : > { %s4637_s15 = sadd.s32 1, %s4423_s27   ;;  %s41_s20 = sadd.s32 1, %s4419_s26 }
  0x55   : > { %s38_s24 = ssub.s32 %s4423_s27, %s4637_s15  ;;  %p48_p13 = scmp.ne.s32.totalorder %s4419_s26, %s4415_s25 }
  0x56   : > { %p39_p6 = scmp.eq.s32.totalorder %s38_s24, 0  ;;  %p49_p10 = scmp.eq.s32.totalorder %s4423_s27, 0 }
  0x57   : > { %p5226_p3 = scmp.eq.s32.totalorder %s4548_s28, 1  ;;  %p4177_p7 = scmp.lt.s32.totalorder %s4423_s27, 2 }
  0x58   : > { %s4653_s23 = scalar_select %p39_p6, %s4419_s26, %s41_s20  }
  0x59   : > { %p4647_p5 = por %p5226_p3, %p48_p13  ;;  %p50_p9 = por %p49_p10, %p48_p13 }
  0x5a   : > { %s508_s29 = sand.u32 1, %s4419_s26   ;;  %s3622_s22 = sshll.u32 %s4423_s27, 7 }
  0x5b   : > { %s5227_s30 = scalar_select %p4647_p5, 1, 0 }
  0x5c   : > { %s3621_s19 = sshll.u32 %s508_s29, 3  ;;  %s5228_s21 = sld [smem:[#allocation14_spill]] }
  0x5d   : > { %s512_s12 = scalar_lea.vmem [#allocation2], %s3621_s19  ;;  %p4664_p11 = pnand %p4177_p7, %p50_p9 }
  0x5e   : > { %s519_s14 = sshll.u32 %s512_s12, 4  ;;  %s509_s24 = scalar_lea.sflag [#allocation3], %s508_s29  ;;  %s4662_s14 = int_to_ptr.vmem [resolvable:$true] %s519_s14 }
  0x5f   : > { %p4325_p0 = pneg %p4664_p11 }
  0x62   : > { %s4660_s1 = scalar_lea.hbm %s5228_s21, %s3622_s22  ;;  %s4328_s16 = scalar_lea.hbm %s5228_s21, 256 }
  0x63   : > { %s4323_s7 = scalar_lea.hbm %s4660_s1, 128  ;;  %p4329_p13 = scmp.lt.u32.totalorder %s4660_s1, %s5228_s21 }
  0x64   : > { %p4324_p12 = scmp.ne.s32.totalorder %s4660_s1, %s4323_s7  ;;  %p4330_p6 = scmp.lt.u32.totalorder %s4328_s16, %s4323_s7 }
  0x65   : > { %p4332_p3 = scmp.lt.u32.totalorder %s4323_s7, %s4660_s1 }
  0x66   : > { %p4326_p2 = pnand %p4325_p0, %p4324_p12  ;;  %p4331_p10 = por %p4330_p6, %p4329_p13 }
  0x68   : > { %p4327_p1 = pneg %p4326_p2  ;;  %p4333_p7 = por %p4332_p3, %p4331_p10 }
  0x6a   : > { %p4334_p9 = pnand %p4333_p7, %p4327_p1 }
  0x6c   : > { %4337 = shalt.err (!%p4334_p9)
}
  0x6d   : > { %s4338_s29 = scalar_lea.vmem %s4662_s14, 128  ;;  %s4429_s22 = smov [#allocation2]  }
  0x6e   : > { %p4339_p12 = scmp.ne.s32.totalorder %s4662_s14, %s4338_s29  ;;  %s4343_s19 = sshll.u32 %s4429_s22, 4  ;;  %s4344_s19 = int_to_ptr.vmem [resolvable:$false] %s4343_s19 }
  0x6f   : > { %s4345_s17 = scalar_lea.vmem %s4344_s19, 256  ;;  %p4346_p4 = scmp.lt.s32.totalorder %s4662_s14, %s4344_s19 }
  0x70   : > { %p4341_p2 = pnand %p4339_p12, %p4325_p0  ;;  %p4347_p13 = scmp.lt.s32.totalorder %s4345_s17, %s4338_s29 }
  0x72   : > { %p4342_p5 = pneg %p4341_p2  ;;  %p4348_p6 = por %p4347_p13, %p4346_p4 }
  0x74   : > { %p4349_p10 = pnand %p4348_p6, %p4342_p5 }
  0x76   : > { %4352 = shalt.err (!%p4349_p10)
}
  0x77   : > { %4170 = dma.hbm_to_vmem [thread:$0]  (!%p4664_p11), %s4660_s1, 128, %s4662_s14, %s509_s24  }
  0x78   : > { %528 = sbr.rel (%p4567_p8) target bundleno = 4966 (0x1366), region = 88  ;;  %s4696_s7 = sand.u32 (!%p4567_p8), 1, %s4415_s25  }
  0x79   : > { %s5198_s16 = sshll.u32 (!%p4567_p8), %s4696_s7, 3  ;;  %s531_s12 = scalar_lea.sflag (!%p4567_p8), [#allocation3], %s4696_s7 }
  0x7a   : > { %s4702_s29 = scalar_lea.vmem (!%p4567_p8), [#allocation2], %s5198_s16  ;;  %p5230_p4 = scmp.ne.s32.totalorder (!%p4567_p8), %s5219_s0, 0 }
  0x7f   : > { %4398 = dma.done.wait (%p5230_p4), %s531_s12, 128  }
  0x80   : > { %4400 = vsyncadd (%p5230_p4), %s531_s12, 4294967168  ;;  %p5231_p5 = scmp.eq.s32.totalorder %s4548_s28, 0 }
  0x82   : > { %4402 = dma.done.wait (%p5231_p5), [#allocation6], 2048   ;;  %p5232_p8 = pmov %p5231_p5 }
  0x83   : > { %v4430_v0 = vmov 0.0|0.0   ;;  %vm4431_vm0 = vmmov 0   ;;  %v4432_v1 = vmov 0.0   ;;  %v599_v2 = vld [vmem:[%s5171_s3] sm:$0xff]  ;;  %v600_v3 = vld [vmem:[%s5171_s3 + $0x8] sm:$0xff]  ;;  %s5233_s22 = sld [smem:[#allocation15_spill]] }
  0x84   : > { %4404 = vsyncadd (%p5232_p8), [#allocation6], 4294965248  ;;  %4082 = vmatprep.subr.bf16.mxu1 %v4430_v0  ;;  %4076 = vmatprep.subr.bf16.mxu0 %v4430_v0  ;;  %v4083_v5 = vpack.c.bf16 %v600_v3, %v599_v2  ;;  %v601_v7 = vld [vmem:[%s5171_s3 + $0x10] sm:$0xff]  ;;  %v602_v8 = vld [vmem:[%s5171_s3 + $0x18] sm:$0xff]  ;;  %s5234_s5 = sld [smem:[#allocation17_spill]]  ;;  %vm638_vm1 = vcmask 261120  }
  0x85   : > { %3849 = vmatprep.mubr.msk.f32.mxu1 %vm4431_vm0, %v4432_v1  ;;  %3838 = vmatprep.mubr.msk.f32.mxu0 %vm4431_vm0, %v4432_v1  ;;  %v4086_v12 = vpack.c.bf16 %v602_v8, %v601_v7  ;;  %v4751_v16 = vld [vmem:[%s4702_s29] sm:$0xff]  ;;  %s5235_s2 = sld [smem:[#allocation16_spill]]  ;;  %vm864_vm2 = vcmask 64512   ;;  %s5201_s19 = smov 112   ;;  %vm1945_vm3 = vcmask 523264  }
  0x86   : > { %4084 = vmatpush3.bf16.msra.mxu1 %v4083_v5  ;;  %v3630_v21 = vld [vmem:[%s5172_s4] ss:$0 sm:$0xff]  ;;  %s5203_s17 = smov 120   ;;  %s5199_s18 = smov 104  }
  0x87   : > { %4085 = vmatprep.subr.bf16.mxu1 %v4430_v0  ;;  %v3632_v29 = vld [vmem:[%s5174_s6] ss:$0 sm:$0xff]  ;;  %s5236_s1 = sld [smem:[#allocation20_spill]]  ;;  %s5237_s20 = sld [smem:[#allocation21_spill]] }
  0x88   : > { %s5238_s24 = sld [smem:[#allocation22_spill]]  ;;  %s5240_s11 = sld [smem:[#allocation23_spill]] }
  0x89   : > { %v594_v4 = vld [vmem:[%s5233_s22] sm:$0xff]  ;;  %v595_v6 = vld [vmem:[%s5233_s22 + $0x8] sm:$0xff]  ;;  %v596_v10 = vld [vmem:[%s5233_s22 + $0x10] sm:$0xff]  ;;  %s5241_s14 = smov 120   ;;  %s5243_s29 = smov 104  }
  0x8a   : > { %v4077_v9 = vpack.c.bf16 %v595_v6, %v594_v4  ;;  %v597_v11 = vld [vmem:[%s5233_s22 + $0x18] sm:$0xff]  ;;  %v604_v14 = vld [vmem:[%s5234_s5] sm:$0xff]  ;;  %v605_v15 = vld [vmem:[%s5234_s5 + $0x8] sm:$0xff]  ;;  %4087 = vmatpush3.bf16.msra.mxu1 %v4086_v12  ;;  %p5246_p0 = scmp.ne.s32.totalorder %s5227_s30, 0 }
  0x8b   : > { %v4080_v13 = vpack.c.bf16 %v597_v11, %v596_v10  ;;  %v4089_v17 = vpack.c.bf16 %v605_v15, %v604_v14  ;;  %3868 = vmatprep.subr.mxu1 %v4432_v1  ;;  %v606_v18 = vld [vmem:[%s5234_s5 + $0x10] sm:$0xff]  ;;  %v607_v19 = vld [vmem:[%s5234_s5 + $0x18] sm:$0xff]  ;;  %v3628_v23 = vld [vmem:[%s5235_s2] ss:$0 sm:$0xff] }
  0x8c   : > { %4078 = vmatpush3.bf16.msra.mxu0 %v4077_v9  ;;  %v4092_v20 = vpack.c.bf16 %v607_v19, %v606_v18 }
  0x8d   : > { %4079 = vmatprep.subr.bf16.mxu0 %v4430_v0  ;;  %3850 = vmatmul.mubr.msk.f32.vlgmr.msra.gmra.mrb[0].mxu1 %vm638_vm1, %v4751_v16 }
  0x8e   : > { %3870 = vmatprep.mubr.msk.f32.mxu1 %vm4431_vm0, %v4432_v1  ;;  %s5239_s16 = smov %s5238_s24 }
  0x90   : > { %4081 = vmatpush3.bf16.msra.mxu0 %v4080_v13 }
  0x91   : > { %4088 = vmatprep.subr.bf16.mxu0 %v4430_v0 }
  0x93   : > { %3839 = vmatmul.mubr.msk.f32.vlgmr.msra.gmra.mrb[0].mxu0 %vm638_vm1, %v4751_v16 }
  0x94   : > { %4090 = vmatpush3.bf16.msra.mxu0 %v4089_v17  ;;  %3860 = vmatprep.mubr.msk.f32.mxu0 %vm4431_vm0, %v4432_v1 }
  0x95   : > { %4091 = vmatprep.subr.bf16.mxu0 %v4430_v0 }
  0x98   : > { %4093 = vmatpush3.bf16.msra.mxu0 %v4092_v20 }
  0x99   : > { %3863 = vmatprep.subr.mxu0 %v4432_v1 }
  0x9b   : > { %3861 = vmatmul.mubr.msk.f32.vlgmr.msra.gmra.mrb[2].mxu0 %vm638_vm1, %v4751_v16 }
  0x9c   : > { %3865 = vmatprep.mubr.msk.f32.mxu0 %vm4431_vm0, %v4432_v1 }
 0x160   : > { %v784_v22 = vpop.f32.mrb[0].mxu1 }
 0x161   : > { %v785_v24 = vadd.f32 %v3630_v21, %v784_v22  ;;  %v3851_v25 = vpop.f32.mrb[1].mxu1 }
 0x162   : > { %v609_v25 = vld [vmem:[#allocation5] sm:$0xff] }
 0x163   : > { %1193 = vrot.lane.b32.xlu1 %v785_v24, %s5201_s19  ;;  %1027 = vrot.lane.b32.xlu0 %v785_v24, %s5203_s17 }
 0x164   : > { %3864 = vmatpush3.xpose.msk.msra.mxu0 %vm864_vm2, %v785_v24 }
 0x165   : > { %3873 = vmatprep.subr.mxu0 %v4432_v1 }
 0x166   : > { %v708_v26 = vpop.f32.mrb[0].mxu0 }
 0x167   : > { %v3840_v27 = vpop.f32.mrb[1].mxu0  ;;  %v709_v28 = vadd.f32 %v3628_v23, %v708_v26  ;;  %v610_v26 = vld [vmem:[#allocation5 + $0x8] sm:$0xff] }
 0x168   : > { %v612_v27 = vld [vmem:[#allocation5 + $0x18] sm:$0xff] }
 0x169   : > { %3866 = vmatmul.mubr.msk.f32.vlgmr.msra.gmra.mrb[4].mxu0 %vm864_vm2, %v709_v28  ;;  %1191 = vrot.lane.b32.xlu1 %v709_v28, %s5201_s19 }
 0x16a   : > { %1025 = vrot.lane.b32.xlu0 %v709_v28, %s5203_s17  ;;  %3875 = vmatprep.mubr.msk.f32.mxu0 %vm4431_vm0, %v4432_v1 }
 0x16d   : > { %1356 = vrot.lane.b32.xlu1 %v709_v28, %s5199_s18 }
 0x16e   : > { %v860_v30 = vpop.f32.mrb[2].mxu0  ;;  %1358 = vrot.lane.b32.xlu0 %v785_v24, %s5199_s18 }
 0x16f   : > { %v4793_v31 = vadd.f32 %v3632_v29, %v860_v30  ;;  %v3862_v32 = vpop.f32.mrb[3].mxu0  ;;  %v611_v30 = vld [vmem:[#allocation5 + $0x10] sm:$0xff] }
 0x171   : > { %3869 = vmatpush3.msra.mxu1 %v4793_v31 }
 0x172   : > { %3878 = vmatprep.subr.mxu1 %v4432_v1 }
 0x1d5   : > { %v1028_v33 = vpop.permute.xlu0 %1027  ;;  %v1194_v34 = vpop.permute.xlu1 %1193 }
 0x1d6   : > { %3874 = vmatpush3.xpose.msk.msra.mxu0 %vm864_vm2, %v1028_v33 }
 0x1d7   : > { %3883 = vmatprep.subr.mxu0 %v4432_v1 }
 0x1db   : > { %v1192_v36 = vpop.permute.xlu1 %1191 }
 0x1dc   : > { %v1026_v35 = vpop.permute.xlu0 %1025 }
 0x1dd   : > { %3876 = vmatmul.mubr.msk.f32.vlgmr.msra.gmra.mrb[6].mxu0 %vm864_vm2, %v1026_v35 }
 0x1de   : > { %3884 = vmatpush3.xpose.msk.msra.mxu0 %vm864_vm2, %v1194_v34  ;;  %3885 = vmatprep.mubr.msk.f32.mxu0 %vm4431_vm0, %v4432_v1 }
 0x1df   : > { %3893 = vmatprep.subr.mxu0 %v4432_v1  ;;  %v1357_v38 = vpop.permute.xlu1 %1356 }
 0x1e0   : > { %v1359_v37 = vpop.permute.xlu0 %1358 }
 0x1e1   : > { %3886 = vmatmul.mubr.msk.f32.vlgmr.msra.gmra.mrb[8].mxu0 %vm864_vm2, %v1192_v36 }
 0x1e2   : > { %3894 = vmatpush3.xpose.msk.msra.mxu0 %vm864_vm2, %v1359_v37  ;;  %3895 = vmatprep.mubr.msk.f32.mxu0 %vm4431_vm0, %v4432_v1 }
 0x1e3   : > { %3903 = vmatprep.subr.mxu0 %v4432_v1 }
 0x1e5   : > { %3896 = vmatmul.mubr.msk.f32.vlgmr.msra.gmra.mrb[10].mxu0 %vm864_vm2, %v1357_v38 }
 0x1e6   : > { %3905 = vmatprep.mubr.msk.f32.mxu0 %vm4431_vm0, %v4432_v1  ;;  %3904 = vmatpush3.msra.mxu0 %v610_v26 }
 0x1e7   : > { %3913 = vmatprep.subr.mxu0 %v4432_v1 }
 0x23c   : > { %v937_v39 = vpop.f32.mrb[4].mxu0 }
 0x23d   : > { %v3867_v40 = vpop.f32.mrb[5].mxu0  ;;  %v941_v41 = vsel %vm864_vm2, %v937_v39, -inf }
 0x23e   : > { %942 = vmax.xlane.f32.xlu0 %v941_v41 }
 0x2b0   : > { %v1099_v42 = vpop.f32.mrb[6].mxu0 }
 0x2b1   : > { %v3877_v43 = vpop.f32.mrb[7].mxu0  ;;  %v1103_v44 = vsel %vm864_vm2, %v1099_v42, -inf }
 0x2b2   : > { %1104 = vmax.xlane.f32.xlu1 %v1103_v44 }
 0x2b4   : > { %v1265_v45 = vpop.f32.mrb[8].mxu0 }
 0x2b5   : > { %v3887_v46 = vpop.f32.mrb[9].mxu0  ;;  %v1269_v47 = vsel %vm864_vm2, %v1265_v45, -inf }
 0x2b6   : > { %1270 = vmax.xlane.f32.xlu0 %v1269_v47 }
 0x2b8   : > { %v1430_v48 = vpop.f32.mrb[10].mxu0 }
 0x2b9   : > { %v3897_v49 = vpop.f32.mrb[11].mxu0  ;;  %v1434_v50 = vsel %vm864_vm2, %v1430_v48, -inf }
 0x2ba   : > { %1435 = vmax.xlane.f32.xlu0 %v1434_v50 }
 0x2c3   : > { %1115 = vrot.lane.b32.xlu1 %v4793_v31, %s5203_s17  ;;  %s5242_s17 = smov 112  }
 0x2cb   : > { %v943_v51 = vpop.xlane.xlu0 %942 }
 0x2cc   : > { %v944_v52 = vsub.f32 %v937_v39, %v943_v51 }
 0x2ce   : > { %v945_v53 = vmul.f32 1.442695, %v944_v52 }
 0x2d0   : > { %4223 = vpow2.f32 %v945_v53 }
 0x2da   : > { %v4224_v54 = vpop.eup %4223 }
 0x2db   : > { %v947_v55 = vsel %vm864_vm2, %v4224_v54, 0.0 }
 0x2e7   : > { %948 = vadd.xlane.f32.xlu1 %v947_v55 }
 0x33f   : > { %v1105_v56 = vpop.xlane.xlu1 %1104 }
 0x340   : > { %v1106_v57 = vsub.f32 %v1099_v42, %v1105_v56 }
 0x342   : > { %v1107_v58 = vmul.f32 1.442695, %v1106_v57  ;;  %v616_v57 = vld [vmem:[#allocation7] sm:$0xff] }
 0x343   : > { %v1271_v59 = vpop.xlane.xlu0 %1270  ;;  %v1116_v9 = vpop.permute.xlu1 %1115 }
 0x344   : > { %4225 = vpow2.f32 %v1107_v58  ;;  %v1272_v60 = vsub.f32 %v1265_v45, %v1271_v59  ;;  %v3650_v45 = vld [vmem:[%s5176_s8] ss:$0 sm:$0xff]  ;;  %v617_v58 = vld [vmem:[#allocation7 + $0x8] sm:$0xff] }
 0x345   : > { %v4095_v59 = vpack.c.bf16 %v617_v58, %v616_v57 }
 0x346   : > { %v1273_v61 = vmul.f32 1.442695, %v1272_v60  ;;  %v618_v60 = vld [vmem:[#allocation7 + $0x10] sm:$0xff] }
 0x347   : > { %v1436_v62 = vpop.xlane.xlu0 %1435 }
 0x348   : > { %4227 = vpow2.f32 %v1273_v61  ;;  %v1437_v63 = vsub.f32 %v1430_v48, %v1436_v62  ;;  %v619_v61 = vld [vmem:[#allocation7 + $0x18] sm:$0xff] }
 0x349   : > { %v4098_v62 = vpack.c.bf16 %v619_v61, %v618_v60 }
 0x34a   : > { %v1438_v2 = vmul.f32 1.442695, %v1437_v63 }
 0x34c   : > { %4229 = vpow2.f32 %v1438_v2 }
 0x34e   : > { %v4226_v3 = vpop.eup %4225 }
 0x34f   : > { %v1109_v4 = vsel %vm864_vm2, %v4226_v3, 0.0 }
 0x350   : > { %1110 = vadd.xlane.f32.xlu0 %v1109_v4  ;;  %v3651_v4 = vld [vmem:[%s5177_s9] ss:$0 sm:$0xff] }
 0x352   : > { %v4228_v5 = vpop.eup %4227 }
 0x353   : > { %v1275_v6 = vsel %vm864_vm2, %v4228_v5, 0.0 }
 0x354   : > { %1276 = vadd.xlane.f32.xlu1 %v1275_v6  ;;  %v3652_v6 = vld [vmem:[%s5178_s10] ss:$0 sm:$0xff] }
 0x356   : > { %v4230_v7 = vpop.eup %4229 }
 0x357   : > { %v1440_v8 = vsel %vm864_vm2, %v4230_v7, 0.0 }
 0x358   : > { %1441 = vadd.xlane.f32.xlu0 %v1440_v8 }
 0x365   : > { %1445 = vrot.lane.b32.xlu1 %v4793_v31, %s5199_s18 }
 0x36e   : > { %1280 = vrot.lane.b32.xlu0 %v4793_v31, %s5201_s19  ;;  %s3514_s19 = scalar_lea.sflag [#allocation4], %s4696_s7 }
 0x374   : > { %v949_v10 = vpop.xlane.xlu1 %948 }
 0x375   : > { %4231 = vrcp.f32 %v949_v10  ;;  %v622_v10 = vld [vmem:[%s5181_s13 + $0x8] sm:$0xff] }
 0x37f   : > { %v4232_v11 = vpop.eup %4231 }
 0x380   : > { %v951_v12 = vmul.f32 %v4232_v11, %v4224_v54 }
 0x382   : > { %3871 = vmatmul.mubr.msk.f32.vlgmr.msra.gmra.mrb[2].mxu1 %vm864_vm2, %v951_v12  ;;  %v623_v12 = vld [vmem:[%s5181_s13 + $0x10] sm:$0xff] }
 0x383   : > { %3879 = vmatpush3.msra.mxu1 %v1116_v9  ;;  %3880 = vmatprep.mubr.msk.f32.mxu1 %vm4431_vm0, %v4432_v1  ;;  %v621_v9 = vld [vmem:[%s5181_s13] sm:$0xff] }
 0x384   : > { %3888 = vmatprep.subr.mxu1 %v4432_v1  ;;  %v4101_v11 = vpack.c.bf16 %v622_v10, %v621_v9  ;;  %v3689_v10 = vld [vmem:[%s5235_s2 + $0x1] ss:$0 sm:$0xff] }
 0x3dd   : > { %v1111_v13 = vpop.xlane.xlu0 %1110 }
 0x3de   : > { %4233 = vrcp.f32 %v1111_v13  ;;  %v624_v13 = vld [vmem:[%s5181_s13 + $0x18] sm:$0xff] }
 0x3e1   : > { %v1277_v14 = vpop.xlane.xlu1 %1276 }
 0x3e2   : > { %4235 = vrcp.f32 %v1277_v14  ;;  %v4104_v14 = vpack.c.bf16 %v624_v13, %v623_v12 }
 0x3e5   : > { %v1442_v15 = vpop.xlane.xlu0 %1441  ;;  %v1446_v22 = vpop.permute.xlu1 %1445 }
 0x3e6   : > { %4237 = vrcp.f32 %v1442_v15  ;;  %v625_v15 = vld [vmem:[%s5181_s13 + $0x20] sm:$0xff] }
 0x3e8   : > { %v4234_v17 = vpop.eup %4233 }
 0x3e9   : > { %v1113_v18 = vmul.f32 %v4234_v17, %v4226_v3  ;;  %v1281_v19 = vpop.permute.xlu0 %1280  ;;  %v626_v17 = vld [vmem:[%s5181_s13 + $0x28] sm:$0xff] }
 0x3eb   : > { %3881 = vmatmul.mubr.msk.f32.vlgmr.msra.gmra.mrb[4].mxu1 %vm864_vm2, %v1113_v18  ;;  %v4107_v18 = vpack.c.bf16 %v626_v17, %v625_v15 }
 0x3ec   : > { %v4236_v20 = vpop.eup %4235  ;;  %3889 = vmatpush3.msra.mxu1 %v1281_v19  ;;  %3890 = vmatprep.mubr.msk.f32.mxu1 %vm4431_vm0, %v4432_v1  ;;  %v627_v19 = vld [vmem:[%s5181_s13 + $0x30] sm:$0xff] }
 0x3ed   : > { %v1279_v21 = vmul.f32 %v4236_v20, %v4228_v5  ;;  %3898 = vmatprep.subr.mxu1 %v4432_v1  ;;  %v628_v20 = vld [vmem:[%s5181_s13 + $0x38] sm:$0xff] }
 0x3ef   : > { %3891 = vmatmul.mubr.msk.f32.vlgmr.msra.gmra.mrb[6].mxu1 %vm864_vm2, %v1279_v21  ;;  %v4110_v21 = vpack.c.bf16 %v628_v20, %v627_v19  ;;  %v3691_v19 = vld [vmem:[%s5172_s4 + $0x1] ss:$0 sm:$0xff] }
 0x3f0   : > { %v4238_v23 = vpop.eup %4237  ;;  %3899 = vmatpush3.msra.mxu1 %v1446_v22  ;;  %3900 = vmatprep.mubr.msk.f32.mxu1 %vm4431_vm0, %v4432_v1  ;;  %v3653_v22 = vld [vmem:[%s5236_s1] ss:$0 sm:$0xff] }
 0x3f1   : > { %v1444_v24 = vmul.f32 %v4238_v23, %v4230_v7  ;;  %3908 = vmatprep.subr.mxu1 %v4432_v1 }
 0x3f3   : > { %3901 = vmatmul.mubr.msk.f32.vlgmr.msra.gmra.mrb[8].mxu1 %vm864_vm2, %v1444_v24 }
 0x3f4   : > { %3909 = vmatpush3.msra.mxu1 %v609_v25  ;;  %3910 = vmatprep.mubr.msk.f32.mxu1 %vm4431_vm0, %v4432_v1 }
 0x3f5   : > { %3918 = vmatprep.subr.mxu1 %v4432_v1 }
 0x455   : > { %v1021_v28 = vpop.f32.mrb[2].mxu1 }
 0x456   : > { %v3872_v29 = vpop.f32.mrb[3].mxu1  ;;  %3911 = vmatmul.mubr.msk.f32.vlgmr.msra.gmra.mrb[10].mxu1 %vm864_vm2, %v1021_v28 }
 0x457   : > { %3919 = vmatpush3.msra.mxu1 %v612_v27  ;;  %3920 = vmatprep.mubr.msk.f32.mxu1 %vm4431_vm0, %v4432_v1 }
 0x458   : > { %4100 = vmatprep.subr.bf16.mxu1 %v4430_v0 }
 0x4be   : > { %v1187_v31 = vpop.f32.mrb[4].mxu1 }
 0x4bf   : > { %v3882_v32 = vpop.f32.mrb[5].mxu1  ;;  %3906 = vmatmul.mubr.msk.f32.vlgmr.msra.gmra.mrb[12].mxu0 %vm864_vm2, %v1187_v31 }
 0x4c0   : > { %3914 = vmatpush3.msra.mxu0 %v611_v30  ;;  %3915 = vmatprep.mubr.msk.f32.mxu0 %vm4431_vm0, %v4432_v1 }
 0x4c1   : > { %4094 = vmatprep.subr.bf16.mxu0 %v4430_v0 }
 0x4c2   : > { %v1352_v33 = vpop.f32.mrb[6].mxu1 }
 0x4c3   : > { %v3892_v34 = vpop.f32.mrb[7].mxu1  ;;  %3916 = vmatmul.mubr.msk.f32.vlgmr.msra.gmra.mrb[14].mxu0 %vm864_vm2, %v1352_v33 }
 0x4c4   : > { %3931 = vmatprep.mubr.msk.f32.mxu0 %vm4431_vm0, %v4432_v1  ;;  %4096 = vmatpush3.bf16.msra.mxu0 %v4095_v59 }
 0x4c5   : > { %4097 = vmatprep.subr.bf16.mxu0 %v4430_v0 }
 0x4c6   : > { %v1517_v35 = vpop.f32.mrb[8].mxu1 }
 0x4c7   : > { %v3902_v36 = vpop.f32.mrb[9].mxu1  ;;  %3921 = vmatmul.mubr.msk.f32.vlgmr.msra.gmra.mrb[12].mxu1 %vm864_vm2, %v1517_v35  ;;  %v3655_v35 = vld [vmem:[%s5237_s20] ss:$0 sm:$0xff] }
 0x4c8   : > { %3950 = vmatprep.mubr.msk.f32.mxu1 %vm4431_vm0, %v4432_v1  ;;  %4099 = vmatpush3.bf16.msra.mxu0 %v4098_v62  ;;  %v3657_v62 = vld [vmem:[%s5238_s24] ss:$0 sm:$0xff]  ;;  %s3721_s24 = sshll.u32 %s4548_s28, 7  ;;  %s4436_s28 = smov [#allocation8]  }
 0x4c9   : > { %4112 = vmatprep.subr.bf16.mxu0 %v4430_v0  ;;  %4102 = vmatpush3.bf16.msra.mxu1 %v4101_v11  ;;  %v3693_v11 = vld [vmem:[%s5174_s6 + $0x1] ss:$0 sm:$0xff] }
 0x4ca   : > { %4103 = vmatprep.subr.bf16.mxu1 %v4430_v0 }
 0x4cd   : > { %4105 = vmatpush3.bf16.msra.mxu1 %v4104_v14 }
 0x4ce   : > { %4106 = vmatprep.subr.bf16.mxu1 %v4430_v0 }
 0x4d1   : > { %4108 = vmatpush3.bf16.msra.mxu1 %v4107_v18 }
 0x4d2   : > { %4109 = vmatprep.subr.bf16.mxu1 %v4430_v0 }
 0x4d5   : > { %4111 = vmatpush3.bf16.msra.mxu1 %v4110_v21 }
 0x4d6   : > { %4124 = vmatprep.subr.bf16.mxu1 %v4430_v0 }
 0x529   : > { %v1663_v37 = vpop.f32.mrb[10].mxu1 }
 0x52a   : > { %v3912_v38 = vpop.f32.mrb[11].mxu1 }
 0x592   : > { %v1590_v39 = vpop.f32.mrb[12].mxu0 }
 0x593   : > { %v1664_v40 = vadd.f32 %v1663_v37, %v1590_v39  ;;  %v3907_v41 = vpop.f32.mrb[13].mxu0 }
 0x596   : > { %v1736_v42 = vpop.f32.mrb[14].mxu0 }
 0x597   : > { %v1740_v43 = vadd.f32 %v1736_v42, %v1664_v40  ;;  %v3917_v44 = vpop.f32.mrb[15].mxu0 }
 0x59a   : > { %v1810_v46 = vpop.f32.mrb[12].mxu1 }
 0x59b   : > { %v1814_v47 = vadd.f32 %v1810_v46, %v1740_v43  ;;  %v3922_v48 = vpop.f32.mrb[13].mxu1  ;;  %v3659_v46 = vld [vmem:[%s5233_s22 + $0x20] sm:$0xff] }
 0x59d   : > { %v1821_v49 = vadd.f32 %v3650_v45, %v1814_v47  ;;  %v3660_v47 = vld [vmem:[%s5233_s22 + $0x28] sm:$0xff] }
 0x59e   : > { %v4113_v48 = vpack.c.bf16 %v3660_v47, %v3659_v46 }
 0x59f   : > { %v1822_v50 = vadd.f32 %v1821_v49, %v4751_v16  ;;  %v3669_v49 = vld [vmem:[%s5234_s5 + $0x20] sm:$0xff] }
 0x5a1   : > { %v1823_v51 = vsel %vm638_vm1, %v1822_v50, 0.0 }
 0x5a2   : > { %1824 = vadd.xlane.f32.xlu1 %v1823_v51 }
 0x62f   : > { %v1825_v52 = vpop.xlane.xlu1 %1824 }
 0x630   : > { %v1827_v53 = vmul.f32 0.03125, %v1825_v52  ;;  %v3661_v52 = vld [vmem:[%s5233_s22 + $0x30] sm:$0xff] }
 0x632   : > { %v1828_v54 = vsub.f32 %v1822_v50, %v1827_v53  ;;  %v3670_v50 = vld [vmem:[%s5234_s5 + $0x28] sm:$0xff]  ;;  %v3662_v53 = vld [vmem:[%s5233_s22 + $0x38] sm:$0xff] }
 0x633   : > { %v4125_v51 = vpack.c.bf16 %v3670_v50, %v3669_v49 }
 0x634   : > { %v1829_v55 = vmul.f32 %v1828_v54, %v1828_v54 }
 0x636   : > { %v1830_v56 = vsel %vm638_vm1, %v1829_v55, 0.0  ;;  %v4116_v55 = vpack.c.bf16 %v3662_v53, %v3661_v52 }
 0x637   : > { %1831 = vadd.xlane.f32.xlu0 %v1830_v56  ;;  %v3672_v56 = vld [vmem:[%s5234_s5 + $0x38] sm:$0xff] }
 0x6c4   : > { %v1832_v16 = vpop.xlane.xlu0 %1831 }
 0x6c5   : > { %v1833_v63 = vmul.f32 0.03125, %v1832_v16 }
 0x6c7   : > { %v1834_v2 = vadd.f32 1e-05, %v1833_v63  ;;  %v3664_v63 = vld [vmem:[%s5171_s3 + $0x20] sm:$0xff] }
 0x6c9   : > { %4239 = vrsqrt.f32 %v1834_v2  ;;  %v3665_v2 = vld [vmem:[%s5171_s3 + $0x28] sm:$0xff] }
 0x6d3   : > { %v4240_v3 = vpop.eup %4239 }
 0x6d4   : > { %v1836_v5 = vmul.f32 %v4240_v3, %v1828_v54  ;;  %v3671_v54 = vld [vmem:[%s5234_s5 + $0x30] sm:$0xff]  ;;  %v3658_v3 = vld [vmem:[%s5240_s11] ss:$0 sm:$0xff]  ;;  %s5244_s5 = sshll.u32 %s4696_s7, 3 }
 0x6d5   : > { %v4128_v57 = vpack.c.bf16 %v3672_v56, %v3671_v54  ;;  %s592_s21 = scalar_lea.vmem [#allocation8], %s5244_s5 }
 0x6d6   : > { %v1843_v7 = vmul.f32 %v3651_v4, %v1836_v5  ;;  %v4119_v5 = vpack.c.bf16 %v3665_v2, %v3664_v63  ;;  %s3527_s12 = sshll.u32 %s592_s21, 4  ;;  %s5125_s12 = int_to_ptr.vmem [resolvable:$true] %s3527_s12 }
 0x6d7   : > { %s4353_s18 = scalar_lea.vmem %s5125_s12, 128 }
 0x6d8   : > { %v1850_v8 = vadd.f32 %v3652_v6, %v1843_v7  ;;  %v3666_v7 = vld [vmem:[%s5171_s3 + $0x30] sm:$0xff]  ;;  %p4354_p11 = scmp.ne.s32.totalorder %s5125_s12, %s4353_s18 }
 0x6da   : > { %3932 = vmatmul.mubr.msk.f32.vlgmr.msra.gmra.mrb[16].mxu0 %vm638_vm1, %v1850_v8  ;;  %p4355_p1 = pnand %p4354_p11, %p5246_p0 }
 0x6db   : > { %3961 = vmatprep.mubr.msk.f32.mxu0 %vm4431_vm0, %v4432_v1  ;;  %4114 = vmatpush3.bf16.msra.mxu0 %v4113_v48 }
 0x6dc   : > { %4115 = vmatprep.subr.bf16.mxu0 %v4430_v0  ;;  %p4356_p3 = pneg %p4355_p1 }
 0x6df   : > { %4117 = vmatpush3.bf16.msra.mxu0 %v4116_v55 }
 0x6e0   : > { %4118 = vmatprep.subr.bf16.mxu0 %v4430_v0 }
 0x7ad   : > { %v1926_v23 = vpop.f32.mrb[16].mxu0 }
 0x7ae   : > { %v1927_v24 = vadd.f32 %v3653_v22, %v1926_v23  ;;  %v3933_v25 = vpop.f32.mrb[17].mxu0 }
 0x7b0   : > { %v1931_v26 = vmul.f32 %v1927_v24, %v1927_v24  ;;  %v1930_v32 = vmul.f32 0.5, %v1927_v24 }
 0x7b2   : > { %v1932_v27 = vmul.f32 %v1931_v26, %v1927_v24 }
 0x7b4   : > { %v1933_v28 = vmul.f32 0.044715, %v1932_v27 }
 0x7b6   : > { %v1934_v29 = vadd.f32 %v1933_v28, %v1927_v24 }
 0x7b8   : > { %v1935_v30 = vmul.f32 0.7978846, %v1934_v29 }
 0x7ba   : > { %4241 = vtanh.f32 %v1935_v30 }
 0x7c4   : > { %v4242_v31 = vpop.eup %4241 }
 0x7c5   : > { %v1937_v33 = vadd.f32 1.0, %v4242_v31 }
 0x7c7   : > { %v1938_v34 = vmul.f32 %v1937_v33, %v1930_v32 }
 0x7c9   : > { %3951 = vmatmul.mubr.msk.f32.vlgmr.msra.gmra.mrb[14].mxu1 %vm1945_vm3, %v1938_v34 }
 0x7ca   : > { %3983 = vmatprep.mubr.msk.f32.mxu1 %vm4431_vm0, %v4432_v1  ;;  %4126 = vmatpush3.bf16.msra.mxu1 %v4125_v51 }
 0x7cb   : > { %4127 = vmatprep.subr.bf16.mxu1 %v4430_v0 }
 0x7ce   : > { %4129 = vmatpush3.bf16.msra.mxu1 %v4128_v57 }
 0x7cf   : > { %3991 = vmatprep.subr.mxu1 %v4432_v1 }
 0x89c   : > { %v2015_v36 = vpop.f32.mrb[14].mxu1 }
 0x89d   : > { %v2016_v37 = vadd.f32 %v3655_v35, %v2015_v36  ;;  %v3952_v38 = vpop.f32.mrb[15].mxu1 }
 0x89f   : > { %v2019_v39 = vadd.f32 %v2016_v37, %v1850_v8  ;;  %v3667_v8 = vld [vmem:[%s5171_s3 + $0x38] sm:$0xff] }
 0x8a0   : > { %v4122_v9 = vpack.c.bf16 %v3667_v8, %v3666_v7 }
 0x8a1   : > { %v2020_v40 = vsel %vm638_vm1, %v2019_v39, 0.0 }
 0x8a2   : > { %2021 = vadd.xlane.f32.xlu0 %v2020_v40 }
 0x92f   : > { %v2022_v41 = vpop.xlane.xlu0 %2021 }
 0x930   : > { %v2023_v42 = vmul.f32 0.03125, %v2022_v41 }
 0x932   : > { %v2024_v43 = vsub.f32 %v2019_v39, %v2023_v42 }
 0x934   : > { %v2025_v44 = vmul.f32 %v2024_v43, %v2024_v43 }
 0x936   : > { %v2026_v45 = vsel %vm638_vm1, %v2025_v44, 0.0 }
 0x937   : > { %2027 = vadd.xlane.f32.xlu1 %v2026_v45 }
 0x9c4   : > { %v2028_v58 = vpop.xlane.xlu1 %2027 }
 0x9c5   : > { %v2029_v59 = vmul.f32 0.03125, %v2028_v58 }
 0x9c7   : > { %v2030_v60 = vadd.f32 1e-05, %v2029_v59 }
 0x9c9   : > { %4243 = vrsqrt.f32 %v2030_v60 }
 0x9d3   : > { %v4244_v61 = vpop.eup %4243 }
 0x9d4   : > { %v2032_v16 = vmul.f32 %v4244_v61, %v2024_v43 }
 0x9d6   : > { %v2039_v4 = vmul.f32 %v3657_v62, %v2032_v16 }
 0x9d8   : > { %v4955_v6 = vadd.f32 %v3658_v3, %v2039_v4 }
 0x9da   : > { %3962 = vmatmul.mubr.msk.f32.vlgmr.msra.gmra.mrb[18].mxu0 %vm638_vm1, %v4955_v6  ;;  %3984 = vmatmul.mubr.msk.f32.vlgmr.msra.gmra.mrb[16].mxu1 %vm638_vm1, %v4955_v6 }
 0x9db   : > { %4120 = vmatpush3.bf16.msra.mxu0 %v4119_v5  ;;  %3972 = vmatprep.mubr.msk.f32.mxu0 %vm4431_vm0, %v4432_v1 }
 0x9dc   : > { %4121 = vmatprep.subr.bf16.mxu0 %v4430_v0  ;;  %3993 = vmatprep.mubr.msk.f32.mxu1 %vm4431_vm0, %v4432_v1 }
 0x9df   : > { %4123 = vmatpush3.bf16.msra.mxu0 %v4122_v9 }
 0x9e0   : > { %3986 = vmatprep.subr.mxu0 %v4432_v1 }
 0x9e2   : > { %3973 = vmatmul.mubr.msk.f32.vlgmr.msra.gmra.mrb[20].mxu0 %vm638_vm1, %v4955_v6 }
 0x9e3   : > { %3988 = vmatprep.mubr.msk.f32.mxu0 %vm4431_vm0, %v4432_v1 }
 0xaad   : > { %v2176_v12 = vpop.f32.mrb[18].mxu0  ;;  %v2328_v13 = vpop.f32.mrb[16].mxu1 }
 0xaae   : > { %v2177_v14 = vadd.f32 %v3689_v10, %v2176_v12  ;;  %v4983_v15 = vadd.f32 %v3693_v11, %v2328_v13  ;;  %v3963_v17 = vpop.f32.mrb[19].mxu0  ;;  %v3985_v18 = vpop.f32.mrb[17].mxu1 }
 0xaaf   : > { %v2072_v17 = vld [vmem:[#allocation5 + $0x38] sm:$0xff] }
 0xab0   : > { %3992 = vmatpush3.msra.mxu1 %v4983_v15  ;;  %2492 = vrot.lane.b32.xlu1 %v2177_v14, %s5241_s14 }
 0xab1   : > { %4001 = vmatprep.subr.mxu1 %v4432_v1 }
 0xab5   : > { %v2252_v20 = vpop.f32.mrb[20].mxu0 }
 0xab6   : > { %v2253_v21 = vadd.f32 %v3691_v19, %v2252_v20  ;;  %v3974_v22 = vpop.f32.mrb[21].mxu0  ;;  %v2071_v20 = vld [vmem:[#allocation5 + $0x30] sm:$0xff] }
 0xab8   : > { %2660 = vrot.lane.b32.xlu1 %v2253_v21, %s5242_s17  ;;  %2494 = vrot.lane.b32.xlu0 %v2253_v21, %s5241_s14 }
 0xab9   : > { %3987 = vmatpush3.xpose.msk.msra.mxu0 %vm864_vm2, %v2253_v21 }
 0xaba   : > { %3996 = vmatprep.subr.mxu0 %v4432_v1 }
 0xabc   : > { %3989 = vmatmul.mubr.msk.f32.vlgmr.msra.gmra.mrb[22].mxu0 %vm864_vm2, %v2177_v14  ;;  %2825 = vrot.lane.b32.xlu1 %v2253_v21, %s5243_s29 }
 0xabd   : > { %2658 = vrot.lane.b32.xlu0 %v2177_v14, %s5242_s17  ;;  %3998 = vmatprep.mubr.msk.f32.mxu0 %vm4431_vm0, %v4432_v1 }
 0xac1   : > { %2823 = vrot.lane.b32.xlu0 %v2177_v14, %s5243_s29  ;;  %v2069_v14 = vld [vmem:[#allocation5 + $0x20] sm:$0xff] }
 0xb22   : > { %v2493_v23 = vpop.permute.xlu1 %2492 }
 0xb2a   : > { %v2495_v24 = vpop.permute.xlu0 %2494  ;;  %v2661_v25 = vpop.permute.xlu1 %2660 }
 0xb2b   : > { %3997 = vmatpush3.xpose.msk.msra.mxu0 %vm864_vm2, %v2495_v24 }
 0xb2c   : > { %4006 = vmatprep.subr.mxu0 %v4432_v1 }
 0xb2e   : > { %3999 = vmatmul.mubr.msk.f32.vlgmr.msra.gmra.mrb[24].mxu0 %vm864_vm2, %v2493_v23  ;;  %v2826_v27 = vpop.permute.xlu1 %2825 }
 0xb2f   : > { %v2659_v26 = vpop.permute.xlu0 %2658  ;;  %4007 = vmatpush3.xpose.msk.msra.mxu0 %vm864_vm2, %v2661_v25  ;;  %4008 = vmatprep.mubr.msk.f32.mxu0 %vm4431_vm0, %v4432_v1 }
 0xb30   : > { %4016 = vmatprep.subr.mxu0 %v4432_v1 }
 0xb32   : > { %4009 = vmatmul.mubr.msk.f32.vlgmr.msra.gmra.mrb[26].mxu0 %vm864_vm2, %v2659_v26 }
 0xb33   : > { %4017 = vmatpush3.xpose.msk.msra.mxu0 %vm864_vm2, %v2826_v27  ;;  %4018 = vmatprep.mubr.msk.f32.mxu0 %vm4431_vm0, %v4432_v1  ;;  %v2824_v28 = vpop.permute.xlu0 %2823 }
 0xb34   : > { %4026 = vmatprep.subr.mxu0 %v4432_v1 }
 0xb36   : > { %4019 = vmatmul.mubr.msk.f32.vlgmr.msra.gmra.mrb[28].mxu0 %vm864_vm2, %v2824_v28 }
 0xb37   : > { %4028 = vmatprep.mubr.msk.f32.mxu0 %vm4431_vm0, %v4432_v1 }
 0xb8f   : > { %v2404_v29 = vpop.f32.mrb[22].mxu0 }
 0xb90   : > { %v3990_v30 = vpop.f32.mrb[23].mxu0  ;;  %v2408_v31 = vsel %vm864_vm2, %v2404_v29, -inf }
 0xb91   : > { %2409 = vmax.xlane.f32.xlu1 %v2408_v31 }
 0xc01   : > { %v2566_v32 = vpop.f32.mrb[24].mxu0 }
 0xc02   : > { %v4000_v33 = vpop.f32.mrb[25].mxu0  ;;  %v2570_v34 = vsel %vm864_vm2, %v2566_v32, -inf }
 0xc03   : > { %2571 = vmax.xlane.f32.xlu0 %v2570_v34 }
 0xc05   : > { %v2732_v35 = vpop.f32.mrb[26].mxu0 }
 0xc06   : > { %v4010_v36 = vpop.f32.mrb[27].mxu0  ;;  %v2736_v37 = vsel %vm864_vm2, %v2732_v35, -inf }
 0xc07   : > { %2737 = vmax.xlane.f32.xlu0 %v2736_v37 }
 0xc09   : > { %v2897_v38 = vpop.f32.mrb[28].mxu0 }
 0xc0a   : > { %v4020_v39 = vpop.f32.mrb[29].mxu0  ;;  %v2901_v40 = vsel %vm864_vm2, %v2897_v38, -inf }
 0xc0b   : > { %2902 = vmax.xlane.f32.xlu1 %v2901_v40 }
 0xc1e   : > { %v2410_v41 = vpop.xlane.xlu1 %2409 }
 0xc1f   : > { %v2411_v42 = vsub.f32 %v2404_v29, %v2410_v41 }
 0xc21   : > { %v2412_v43 = vmul.f32 1.442695, %v2411_v42 }
 0xc23   : > { %4245 = vpow2.f32 %v2412_v43 }
 0xc2d   : > { %v4246_v44 = vpop.eup %4245 }
 0xc2e   : > { %v2414_v45 = vsel %vm864_vm2, %v4246_v44, 0.0 }
 0xc2f   : > { %2415 = vadd.xlane.f32.xlu0 %v2414_v45 }
 0xc90   : > { %v2572_v46 = vpop.xlane.xlu0 %2571 }
 0xc91   : > { %v2573_v47 = vsub.f32 %v2566_v32, %v2572_v46  ;;  %v2080_v46 = vld [vmem:[#allocation7 + $0x20] sm:$0xff] }
 0xc93   : > { %v2574_v48 = vmul.f32 1.442695, %v2573_v47  ;;  %v2081_v47 = vld [vmem:[#allocation7 + $0x28] sm:$0xff] }
 0xc94   : > { %v2738_v49 = vpop.xlane.xlu0 %2737 }
 0xc95   : > { %4247 = vpow2.f32 %v2574_v48  ;;  %v2739_v50 = vsub.f32 %v2732_v35, %v2738_v49  ;;  %v3711_v35 = vld [vmem:[%s5176_s8 + $0x1] ss:$0 sm:$0xff]  ;;  %v4131_v48 = vpack.c.bf16 %v2081_v47, %v2080_v46 }
 0xc96   : > { %v2082_v49 = vld [vmem:[#allocation7 + $0x30] sm:$0xff] }
 0xc97   : > { %v2740_v51 = vmul.f32 1.442695, %v2739_v50  ;;  %v2083_v50 = vld [vmem:[#allocation7 + $0x38] sm:$0xff] }
 0xc98   : > { %v2903_v57 = vpop.xlane.xlu1 %2902 }
 0xc99   : > { %4249 = vpow2.f32 %v2740_v51  ;;  %v2904_v58 = vsub.f32 %v2897_v38, %v2903_v57  ;;  %v4134_v51 = vpack.c.bf16 %v2083_v50, %v2082_v49  ;;  %v3713_v57 = vld [vmem:[%s5178_s10 + $0x1] ss:$0 sm:$0xff] }
 0xc9b   : > { %v2905_v59 = vmul.f32 1.442695, %v2904_v58 }
 0xc9f   : > { %v4248_v52 = vpop.eup %4247 }
 0xca0   : > { %v2576_v53 = vsel %vm864_vm2, %v4248_v52, 0.0 }
 0xca1   : > { %2577 = vadd.xlane.f32.xlu1 %v2576_v53 }
 0xca3   : > { %v4250_v54 = vpop.eup %4249 }
 0xca4   : > { %v2742_v55 = vsel %vm864_vm2, %v4250_v54, 0.0 }
 0xca5   : > { %2743 = vadd.xlane.f32.xlu0 %v2742_v55  ;;  %v3712_v55 = vld [vmem:[%s5177_s9 + $0x1] ss:$0 sm:$0xff] }
 0xcb2   : > { %2747 = vrot.lane.b32.xlu1 %v4983_v15, %s5242_s17  ;;  %s4357_s17 = sshll.u32 %s4436_s28, 4  ;;  %s4358_s17 = int_to_ptr.vmem [resolvable:$false] %s4357_s17 }
 0xcb3   : > { %p4360_p7 = scmp.lt.s32.totalorder %s5125_s12, %s4358_s17 }
 0xcbb   : > { %2582 = vrot.lane.b32.xlu0 %v4983_v15, %s5241_s14 }
 0xcbc   : > { %v2416_v56 = vpop.xlane.xlu0 %2415 }
 0xcbd   : > { %4251 = vrcp.f32 %v2416_v56 }
 0xcbe   : > { %4253 = vpow2.f32 %v2905_v59 }
 0xcc7   : > { %v4252_v60 = vpop.eup %4251 }
 0xcc8   : > { %v2418_v61 = vmul.f32 %v4252_v60, %v4246_v44  ;;  %v4254_v62 = vpop.eup %4253  ;;  %v3678_v60 = vld [vmem:[%s5181_s13 + $0x40] sm:$0xff] }
 0xcc9   : > { %v2907_v16 = vsel %vm864_vm2, %v4254_v62, 0.0 }
 0xcca   : > { %3994 = vmatmul.mubr.msk.f32.vlgmr.msra.gmra.mrb[18].mxu1 %vm864_vm2, %v2418_v61  ;;  %v3679_v61 = vld [vmem:[%s5181_s13 + $0x48] sm:$0xff] }
 0xccb   : > { %4003 = vmatprep.mubr.msk.f32.mxu1 %vm4431_vm0, %v4432_v1 }
 0xcd6   : > { %2908 = vadd.xlane.f32.xlu1 %v2907_v16  ;;  %v3680_v16 = vld [vmem:[%s5181_s13 + $0x50] sm:$0xff] }
 0xce7   : > { %2912 = vrot.lane.b32.xlu1 %v4983_v15, %s5243_s29  ;;  %v2070_v15 = vld [vmem:[#allocation5 + $0x28] sm:$0xff]  ;;  %s4359_s29 = scalar_lea.vmem %s4358_s17, 256 }
 0xce8   : > { %4027 = vmatpush3.msra.mxu0 %v2070_v15  ;;  %p4361_p9 = scmp.lt.s32.totalorder %s4359_s29, %s4353_s18 }
 0xce9   : > { %4036 = vmatprep.subr.mxu0 %v4432_v1 }
 0xcea   : > { %p4362_p12 = por %p4361_p9, %p4360_p7 }
 0xcec   : > { %p4363_p2 = pnand %p4362_p12, %p4356_p3 }
 0xd2e   : > { %v2578_v63 = vpop.xlane.xlu1 %2577 }
 0xd2f   : > { %4255 = vrcp.f32 %v2578_v63  ;;  %v3681_v63 = vld [vmem:[%s5181_s13 + $0x58] sm:$0xff] }
 0xd32   : > { %v2744_v2 = vpop.xlane.xlu0 %2743  ;;  %v2748_v7 = vpop.permute.xlu1 %2747 }
 0xd33   : > { %4257 = vrcp.f32 %v2744_v2  ;;  %v4140_v2 = vpack.c.bf16 %v3681_v63, %v3680_v16 }
 0xd36   : > { %v2583_v3 = vpop.permute.xlu0 %2582 }
 0xd37   : > { %4002 = vmatpush3.msra.mxu1 %v2583_v3  ;;  %v3682_v3 = vld [vmem:[%s5181_s13 + $0x60] sm:$0xff] }
 0xd38   : > { %4011 = vmatprep.subr.mxu1 %v4432_v1 }
 0xd39   : > { %v4256_v4 = vpop.eup %4255 }
 0xd3a   : > { %v2580_v5 = vmul.f32 %v4256_v4, %v4248_v52  ;;  %v3683_v4 = vld [vmem:[%s5181_s13 + $0x68] sm:$0xff] }
 0xd3c   : > { %4004 = vmatmul.mubr.msk.f32.vlgmr.msra.gmra.mrb[20].mxu1 %vm864_vm2, %v2580_v5  ;;  %v4143_v5 = vpack.c.bf16 %v3683_v4, %v3682_v3 }
 0xd3d   : > { %v4258_v8 = vpop.eup %4257  ;;  %4012 = vmatpush3.msra.mxu1 %v2748_v7  ;;  %4013 = vmatprep.mubr.msk.f32.mxu1 %vm4431_vm0, %v4432_v1  ;;  %v3684_v7 = vld [vmem:[%s5181_s13 + $0x70] sm:$0xff] }
 0xd3e   : > { %v2746_v9 = vmul.f32 %v4258_v8, %v4250_v54  ;;  %4021 = vmatprep.subr.mxu1 %v4432_v1  ;;  %v3685_v8 = vld [vmem:[%s5181_s13 + $0x78] sm:$0xff] }
 0xd40   : > { %4014 = vmatmul.mubr.msk.f32.vlgmr.msra.gmra.mrb[22].mxu1 %vm864_vm2, %v2746_v9  ;;  %v4146_v9 = vpack.c.bf16 %v3685_v8, %v3684_v7 }
 0xd41   : > { %4023 = vmatprep.mubr.msk.f32.mxu1 %vm4431_vm0, %v4432_v1 }
 0xd63   : > { %v2909_v10 = vpop.xlane.xlu1 %2908 }
 0xd64   : > { %4259 = vrcp.f32 %v2909_v10  ;;  %v3714_v10 = vld [vmem:[%s5236_s1 + $0x1] ss:$0 sm:$0xff]  ;;  %s5245_s1 = sld [smem:[#allocation24_spill]] }
 0xd67   : > { %v2913_v11 = vpop.permute.xlu1 %2912 }
 0xd68   : > { %4022 = vmatpush3.msra.mxu1 %v2913_v11 }
 0xd69   : > { %4031 = vmatprep.subr.mxu1 %v4432_v1 }
 0xd6a   : > { %s5123_s2 = scalar_lea.hbm %s5245_s1, %s3721_s24 }
 0xd6e   : > { %v4260_v12 = vpop.eup %4259 }
 0xd6f   : > { %v2911_v13 = vmul.f32 %v4260_v12, %v4254_v62  ;;  %v4137_v62 = vpack.c.bf16 %v3679_v61, %v3678_v60 }
 0xd71   : > { %4024 = vmatmul.mubr.msk.f32.vlgmr.msra.gmra.mrb[24].mxu1 %vm864_vm2, %v2911_v13 }
 0xd72   : > { %4032 = vmatpush3.msra.mxu1 %v2069_v14  ;;  %4033 = vmatprep.mubr.msk.f32.mxu1 %vm4431_vm0, %v4432_v1 }
 0xd73   : > { %4041 = vmatprep.subr.mxu1 %v4432_v1 }
 0xd9d   : > { %v2488_v18 = vpop.f32.mrb[18].mxu1 }
 0xd9e   : > { %v3995_v19 = vpop.f32.mrb[19].mxu1  ;;  %4034 = vmatmul.mubr.msk.f32.vlgmr.msra.gmra.mrb[26].mxu1 %vm864_vm2, %v2488_v18 }
 0xd9f   : > { %4042 = vmatpush3.msra.mxu1 %v2072_v17  ;;  %4043 = vmatprep.mubr.msk.f32.mxu1 %vm4431_vm0, %v4432_v1 }
 0xda0   : > { %4136 = vmatprep.subr.bf16.mxu1 %v4430_v0 }
 0xe0f   : > { %v2654_v21 = vpop.f32.mrb[20].mxu1 }
 0xe10   : > { %v4005_v22 = vpop.f32.mrb[21].mxu1  ;;  %4029 = vmatmul.mubr.msk.f32.vlgmr.msra.gmra.mrb[30].mxu0 %vm864_vm2, %v2654_v21 }
 0xe11   : > { %4037 = vmatpush3.msra.mxu0 %v2071_v20  ;;  %4038 = vmatprep.mubr.msk.f32.mxu0 %vm4431_vm0, %v4432_v1 }
 0xe12   : > { %4130 = vmatprep.subr.bf16.mxu0 %v4430_v0 }
 0xe13   : > { %v2819_v23 = vpop.f32.mrb[22].mxu1 }
 0xe14   : > { %v4015_v24 = vpop.f32.mrb[23].mxu1  ;;  %4039 = vmatmul.mubr.msk.f32.vlgmr.msra.gmra.mrb[32].mxu0 %vm864_vm2, %v2819_v23  ;;  %v3716_v23 = vld [vmem:[%s5237_s20 + $0x1] ss:$0 sm:$0xff] }
 0xe15   : > { %4054 = vmatprep.mubr.msk.f32.mxu0 %vm4431_vm0, %v4432_v1  ;;  %4132 = vmatpush3.bf16.msra.mxu0 %v4131_v48 }
 0xe16   : > { %4133 = vmatprep.subr.bf16.mxu0 %v4430_v0 }
 0xe19   : > { %4135 = vmatpush3.bf16.msra.mxu0 %v4134_v51 }
 0xe44   : > { %v2984_v25 = vpop.f32.mrb[24].mxu1 }
 0xe45   : > { %v4025_v26 = vpop.f32.mrb[25].mxu1  ;;  %4044 = vmatmul.mubr.msk.f32.vlgmr.msra.gmra.mrb[28].mxu1 %vm864_vm2, %v2984_v25 }
 0xe46   : > { %4073 = vmatprep.mubr.msk.f32.mxu1 %vm4431_vm0, %v4432_v1  ;;  %4138 = vmatpush3.bf16.msra.mxu1 %v4137_v62 }
 0xe47   : > { %4139 = vmatprep.subr.bf16.mxu1 %v4430_v0 }
 0xe4a   : > { %4141 = vmatpush3.bf16.msra.mxu1 %v4140_v2 }
 0xe4b   : > { %4142 = vmatprep.subr.bf16.mxu1 %v4430_v0 }
 0xe4e   : > { %4144 = vmatpush3.bf16.msra.mxu1 %v4143_v5 }
 0xe4f   : > { %4145 = vmatprep.subr.bf16.mxu1 %v4430_v0 }
 0xe52   : > { %4147 = vmatpush3.bf16.msra.mxu1 %v4146_v9 }
 0xe71   : > { %v3130_v27 = vpop.f32.mrb[26].mxu1 }
 0xe72   : > { %v4035_v28 = vpop.f32.mrb[27].mxu1 }
 0xee3   : > { %v3057_v29 = vpop.f32.mrb[30].mxu0 }
 0xee4   : > { %v3131_v30 = vadd.f32 %v3130_v27, %v3057_v29  ;;  %v4030_v31 = vpop.f32.mrb[31].mxu0 }
 0xee7   : > { %v3203_v32 = vpop.f32.mrb[32].mxu0 }
 0xee8   : > { %v3207_v33 = vadd.f32 %v3203_v32, %v3131_v30  ;;  %v4040_v34 = vpop.f32.mrb[33].mxu0 }
 0xf18   : > { %v3277_v36 = vpop.f32.mrb[28].mxu1 }
 0xf19   : > { %v3281_v37 = vadd.f32 %v3277_v36, %v3207_v33  ;;  %v4045_v38 = vpop.f32.mrb[29].mxu1 }
 0xf1a   : > { %v3718_v38 = vld [vmem:[%s5239_s16 + $0x1] ss:$0 sm:$0xff] }
 0xf1b   : > { %v3288_v39 = vadd.f32 %v3711_v35, %v3281_v37 }
 0xf1d   : > { %v3289_v40 = vadd.f32 %v3288_v39, %v4955_v6 }
 0xf1f   : > { %v3290_v1 = vsel %vm638_vm1, %v3289_v40, 0.0 }
 0xf20   : > { %3291 = vadd.xlane.f32.xlu0 %v3290_v1 }
 0xfad   : > { %v3292_v41 = vpop.xlane.xlu0 %3291 }
 0xfae   : > { %v3293_v42 = vmul.f32 0.03125, %v3292_v41 }
 0xfb0   : > { %v3294_v43 = vsub.f32 %v3289_v40, %v3293_v42  ;;  %v3719_v40 = vld [vmem:[%s5240_s11 + $0x1] ss:$0 sm:$0xff] }
 0xfb2   : > { %v3295_v44 = vmul.f32 %v3294_v43, %v3294_v43 }
 0xfb4   : > { %v3296_v45 = vsel %vm638_vm1, %v3295_v44, 0.0 }
 0xfb5   : > { %3297 = vadd.xlane.f32.xlu1 %v3296_v45 }
0x1042   : > { %v3298_v6 = vpop.xlane.xlu1 %3297 }
0x1043   : > { %v3299_v52 = vmul.f32 0.03125, %v3298_v6 }
0x1045   : > { %v3300_v53 = vadd.f32 1e-05, %v3299_v52 }
0x1047   : > { %4261 = vrsqrt.f32 %v3300_v53 }
0x1051   : > { %v4262_v54 = vpop.eup %4261 }
0x1052   : > { %v3302_v56 = vmul.f32 %v4262_v54, %v3294_v43 }
0x1054   : > { %v3309_v58 = vmul.f32 %v3712_v55, %v3302_v56 }
0x1056   : > { %v3316_v59 = vadd.f32 %v3713_v57, %v3309_v58 }
0x1058   : > { %4055 = vmatmul.mubr.msk.f32.vlgmr.msra.gmra.mrb[34].mxu0 %vm638_vm1, %v3316_v59 }
0x112b   : > { %v3392_v11 = vpop.f32.mrb[34].mxu0 }
0x112c   : > { %v3393_v12 = vadd.f32 %v3714_v10, %v3392_v11  ;;  %v4056_v13 = vpop.f32.mrb[35].mxu0 }
0x112e   : > { %v3397_v14 = vmul.f32 %v3393_v12, %v3393_v12  ;;  %v3396_v20 = vmul.f32 0.5, %v3393_v12 }
0x1130   : > { %v3398_v15 = vmul.f32 %v3397_v14, %v3393_v12 }
0x1132   : > { %v3399_v0 = vmul.f32 0.044715, %v3398_v15 }
0x1134   : > { %v3400_v17 = vadd.f32 %v3399_v0, %v3393_v12 }
0x1136   : > { %v3401_v18 = vmul.f32 0.7978846, %v3400_v17 }
0x1138   : > { %4263 = vtanh.f32 %v3401_v18 }
0x1142   : > { %v4264_v19 = vpop.eup %4263 }
0x1143   : > { %v3403_v21 = vadd.f32 1.0, %v4264_v19 }
0x1145   : > { %v3404_v22 = vmul.f32 %v3403_v21, %v3396_v20 }
0x1147   : > { %4074 = vmatmul.mubr.msk.f32.vlgmr.msra.gmra.mrb[30].mxu1 %vm1945_vm3, %v3404_v22 }
0x121a   : > { %v3480_v24 = vpop.f32.mrb[30].mxu1 }
0x121b   : > { %v3481_v25 = vadd.f32 %v3716_v23, %v3480_v24  ;;  %v4075_v26 = vpop.f32.mrb[31].mxu1 }
0x121d   : > { %v3484_v27 = vadd.f32 %v3481_v25, %v3316_v59 }
0x121f   : > { %v3485_v28 = vsel %vm638_vm1, %v3484_v27, 0.0 }
0x1220   : > { %3486 = vadd.xlane.f32.xlu0 %v3485_v28 }
0x12ad   : > { %v3487_v29 = vpop.xlane.xlu0 %3486 }
0x12ae   : > { %v3488_v30 = vmul.f32 0.03125, %v3487_v29 }
0x12b0   : > { %v3489_v31 = vsub.f32 %v3484_v27, %v3488_v30 }
0x12b2   : > { %v3490_v32 = vmul.f32 %v3489_v31, %v3489_v31 }
0x12b4   : > { %v3491_v33 = vsel %vm638_vm1, %v3490_v32, 0.0 }
0x12b5   : > { %3492 = vadd.xlane.f32.xlu0 %v3491_v33 }
0x1342   : > { %v3493_v34 = vpop.xlane.xlu0 %3492 }
0x1343   : > { %v3494_v35 = vmul.f32 0.03125, %v3493_v34 }
0x1345   : > { %v3495_v36 = vadd.f32 1e-05, %v3494_v35 }
0x1347   : > { %4265 = vrsqrt.f32 %v3495_v36 }
0x1351   : > { %v4266_v37 = vpop.eup %4265 }
0x1352   : > { %v3497_v39 = vmul.f32 %v4266_v37, %v3489_v31 }
0x1354   : > { %v3504_v1 = vmul.f32 %v3718_v38, %v3497_v39 }
0x1356   : > { %v3511_v41 = vadd.f32 %v3719_v40, %v3504_v1 }
0x1358   : > { %3512 = vst.msk [vmem:[%s592_s21] sm:$0xff] %vm638_vm1, %v3511_v41 }
0x1359   : > { %4366 = shalt.err (!%p4363_p2)
}
0x135a   : > { %s4367_s7 = scalar_lea.hbm %s5123_s2, 128  ;;  %s4371_s21 = scalar_lea.hbm %s5245_s1, 256 }
0x135b   : > { %p4368_p13 = scmp.ne.s32.totalorder %s5123_s2, %s4367_s7  ;;  %p4372_p4 = scmp.lt.u32.totalorder %s5123_s2, %s5245_s1 }
0x135c   : > { %p4373_p5 = scmp.lt.u32.totalorder %s4371_s21, %s4367_s7  ;;  %p4375_p11 = scmp.lt.u32.totalorder %s4367_s7, %s5123_s2 }
0x135d   : > { %p4369_p6 = pnand %p4368_p13, %p5246_p0 }
0x135e   : > { %p4374_p8 = por %p4373_p5, %p4372_p4 }
0x135f   : > { %p4370_p10 = pneg %p4369_p6 }
0x1360   : > { %p4376_p1 = por %p4375_p11, %p4374_p8 }
0x1362   : > { %p4377_p3 = pnand %p4376_p1, %p4370_p10 }
0x1364   : > { %4380 = shalt.err (!%p4377_p3)
}
0x1365   : > { %4158 = dma.vmem_to_hbm [thread:$0]  (%p5246_p0), %s5125_s12, 128, %s5123_s2, %s3514_s19  }
0x1366 PF: > { %s5247_s18 = sld [smem:[#allocation12_spill]]  ;;  %s5248_s28 = sld [smem:[#allocation13_spill]] }
0x1367   : > { %p5250_p9 = scmp.ge.s32.totalorder %s4423_s27, 2 }
0x136c   : > { %s3539_s17 = sand.u32 1, %s5247_s18   ;;  %p5249_p7 = scmp.ne.s32.totalorder %s5248_s28, 0 }
0x136d   : > { %s3540_s29 = scalar_lea.sflag [#allocation4], %s3539_s17 }
0x136e   : > { %p4172_p12 = pnand %p5250_p9, %p5249_p7 }
0x1370   : > { %4406 = dma.done.wait (!%p4172_p12), %s3540_s29, 128  }
0x1371   : > { %4408 = vsyncadd (!%p4172_p12), %s3540_s29, 4294967168  ;;  %p31_p2 = scmp.ge.s32.totalorder %s4637_s15, 4   ;;  %s5251_s24 = smov %s4415_s25 }
0x1372   : > { %s5252_s25 = smov %s4419_s26  ;;  %s5253_s26 = smov %s4653_s23 }
0x1373   : > { %s5254_s27 = smov %s4637_s15  ;;  %33 = sbr.rel (!%p31_p2) target bundleno = 18 (0x12), region = 157 }
0x137a   :  { %3545 = vsyncpa [#allocation3], 1 }
0x137b   :  { %3547 = vsyncpa [#allocation3 + $0x1], 1 }
0x137c   :  { %3548 = vsyncpa [#allocation6], 1 }
0x137d   :  { %3549 = vsyncpa [#allocation4], 1 }
0x137e   :  { %3551 = vsyncpa [#allocation4 + $0x1], 1 }

// kernel: tpu_custom_call.1
= control target key start
LH: loop header
LB: loop body
LE: loop exit
PB: predicated region body
PF: predicated region fallthrough
CT: control target
= control target key end

     0   :  { %s5168_s0 = inlined_call_operand.hbm [shape: f32[2,8,32], index: 0, kind: input, shape index: {}]   ;;  %s5169_s1 = inlined_call_operand.vmem [shape: f32[2,32,32], index: 1, kind: input, shape index: {}]   ;;  %s5170_s2 = inlined_call_operand.vmem [shape: f32[2,1,32], index: 2, kind: input, shape index: {}]   ;;  %s5171_s3 = inlined_call_operand.vmem [shape: f32[2,32,32], index: 3, kind: input, shape index: {}]   ;;  %s5172_s4 = inlined_call_operand.vmem [shape: f32[2,1,32], index: 4, kind: input, shape index: {}]   ;;  %s5173_s5 = inlined_call_operand.vmem [shape: f32[2,32,32], index: 5, kind: input, shape index: {}]   ;;  %s5174_s6 = inlined_call_operand.vmem [shape: f32[2,1,32], index: 6, kind: input, shape index: {}]   ;;  %s5175_s7 = inlined_call_operand.hbm [shape: f32[2,32,32], index: 7, kind: input, shape index: {}]   ;;  %s5176_s8 = inlined_call_operand.vmem [shape: f32[2,1,32], index: 8, kind: input, shape index: {}]   ;;  %s5177_s9 = inlined_call_operand.vmem [shape: f32[2,1,32], index: 9, kind: input, shape index: {}]   ;;  %s5178_s10 = inlined_call_operand.vmem [shape: f32[2,1,32], index: 10, kind: input, shape index: {}]   ;;  %s5179_s11 = inlined_call_operand.hbm [shape: f32[2,32,64], index: 11, kind: input, shape index: {}]   ;;  %s5180_s12 = inlined_call_operand.vmem [shape: f32[2,1,64], index: 12, kind: input, shape index: {}]   ;;  %s5181_s13 = inlined_call_operand.vmem [shape: f32[2,64,32], index: 13, kind: input, shape index: {}]   ;;  %s5182_s14 = inlined_call_operand.vmem [shape: f32[2,1,32], index: 14, kind: input, shape index: {}]   ;;  %s5183_s15 = inlined_call_operand.vmem [shape: f32[2,1,32], index: 15, kind: input, shape index: {}]   ;;  %s5184_s16 = inlined_call_operand.vmem [shape: f32[2,1,32], index: 16, kind: input, shape index: {}]   ;;  %s5185_s17 = inlined_call_operand.hbm [shape: f32[2,8,32], index: 17, kind: output, shape index: {}]  }
   0x1   :  { %5207 = sst [smem:[#allocation14_spill]] %s5168_s0 }
   0x2   :  { %5208 = sst [smem:[#allocation15_spill]] %s5169_s1 }
   0x3   :  { %5209 = sst [smem:[#allocation16_spill]] %s5170_s2 }
   0x4   :  { %5210 = sst [smem:[#allocation17_spill]] %s5173_s5 }
   0x5   :  { %5211 = sst [smem:[#allocation18_spill]] %s5175_s7 }
   0x6   :  { %5212 = sst [smem:[#allocation19_spill]] %s5179_s11 }
   0x7   :  { %5213 = sst [smem:[#allocation20_spill]] %s5180_s12 }
   0x8   :  { %5214 = sst [smem:[#allocation21_spill]] %s5182_s14 }
   0x9   :  { %5215 = sst [smem:[#allocation22_spill]] %s5183_s15 }
   0xa   :  { %5216 = sst [smem:[#allocation23_spill]] %s5184_s16 }
   0xb   :  { %5217 = sst [smem:[#allocation24_spill]] %s5185_s17 }
   0xc   :  { %22 = vsyncpa [#allocation3], 0 }
   0xd   :  { %24 = vsyncpa [#allocation3 + $0x1], 0 }
   0xe   :  { %25 = vsyncpa [#allocation6], 0 }
   0xf   :  { %26 = vsyncpa [#allocation4], 0 }
  0x10   :  { %28 = vsyncpa [#allocation4 + $0x1], 0  ;;  %s4527_s24 = smov 0   ;;  %s4529_s25 = smov 0  }
  0x11   :  { %s4531_s26 = smov 0   ;;  %s4533_s27 = smov 0  }
  0x12 LB: > { %5218 = sst [smem:[#allocation12_spill]] %s4411_s24  ;;  %s4548_s28 = sadd.s32 4294967295, %s4423_s27   ;;  %s4423_s27 = sphi %s4533_s27, %s5254_s27   ;;  %s4419_s26 = sphi %s4531_s26, %s5253_s26   ;;  %s4415_s25 = sphi %s4529_s25, %s5252_s25   ;;  %s4411_s24 = sphi %s4527_s24, %s5251_s24  }
  0x13   : > { %s3616_s29 = sadd.s32 4294967294, %s4423_s27   ;;  %p54_p0 = scmp.ne.s32.totalorder %s4415_s25, %s4411_s24 }
  0x14   : > { %p5192_p1 = scmp.eq.s32.totalorder %s4548_s28, 0  ;;  %p420_p3 = scmp.eq.s32.totalorder %s3616_s29, 1 }
  0x15   : > { %p3617_p5 = scmp.ge.s32.totalorder %s4423_s27, 1  ;;  %p427_p7 = scmp.lt.s32.totalorder %s4423_s27, 3 }
  0x16   : > { %p4557_p4 = por %p5192_p1, %p54_p0  ;;  %p4562_p6 = por %p420_p3, %p54_p0 }
  0x17   : > { %p4567_p8 = pnand %p3617_p5, %p427_p7  ;;  %s4425_s19 = smov [#allocation5]  }
  0x18   : > { %s5219_s0 = scalar_select %p4557_p4, 1, 0 }
  0x19   : > { %s5220_s30 = scalar_select %p4562_p6, 1, 0 }
  0x1a   : > { %s457_s1 = sshll.u32 %s4425_s19, 4  ;;  %p4160_p9 = pneg %p4567_p8  ;;  %s4571_s1 = int_to_ptr.vmem [resolvable:$true] %s457_s1 }
  0x1b   : > { %5221 = sst [smem:[#allocation13_spill]] %s5220_s30  ;;  %s4426_s21 = smov [#allocation7]  }
  0x1c   : > { %p4578_p11 = pnand %p4160_p9, %p5192_p1  ;;  %s479_s22 = sshll.u32 %s4426_s21, 4  ;;  %s4582_s22 = int_to_ptr.vmem [resolvable:$true] %s479_s22 }
  0x1d   : > { %s5224_s7 = sld [smem:[#allocation18_spill]] }
  0x1e   : > { %p4269_p13 = pneg %p4578_p11 }
  0x23   : > { %s4267_s19 = scalar_lea.hbm %s5224_s7, 1024 }
  0x24   : > { %p4268_p12 = scmp.ne.s32.totalorder %s5224_s7, %s4267_s19  ;;  %p4274_p5 = scmp.lt.u32.totalorder %s4267_s19, %s5224_s7 }
  0x26   : > { %p4270_p0 = pnand %p4269_p13, %p4268_p12 }
  0x28   : > { %p4271_p3 = pneg %p4270_p0 }
  0x2a   : > { %p4276_p7 = pnand %p4274_p5, %p4271_p3 }
  0x2c   : > { %4279 = shalt.err (!%p4276_p7)
}
  0x2d   : > { %s4280_s21 = scalar_lea.vmem %s4571_s1, 1024  ;;  %p4288_p2 = scmp.lt.s32.totalorder %s4571_s1, %s4571_s1 }
  0x2e   : > { %p4281_p9 = scmp.ne.s32.totalorder %s4571_s1, %s4280_s21  ;;  %p4289_p12 = scmp.lt.s32.totalorder %s4280_s21, %s4280_s21 }
  0x30   : > { %p4283_p10 = pnand %p4281_p9, %p4269_p13  ;;  %p4290_p0 = por %p4289_p12, %p4288_p2 }
  0x32   : > { %p4284_p1 = pneg %p4283_p10 }
  0x34   : > { %p4291_p6 = pnand %p4290_p0, %p4284_p1 }
  0x36   : > { %4294 = shalt.err (!%p4291_p6)
}
  0x37   : > { %s4427_s16 = smov 128   ;;  %s4428_s17 = smov 8  }
  0x38   : > { %4163 = dma.hbm_to_vmem [thread:$0]  (!%p4578_p11), %s5224_s7, 1024, %s4571_s1, [#allocation6], %s4427_s16, %s4427_s16, %s4428_s17  }
  0x39   : > { %s5225_s11 = sld [smem:[#allocation19_spill]] }
  0x3f   : > { %s4295_s19 = scalar_lea.hbm %s5225_s11, 1024 }
  0x40   : > { %p4296_p2 = scmp.ne.s32.totalorder %s5225_s11, %s4295_s19  ;;  %p4302_p10 = scmp.lt.u32.totalorder %s4295_s19, %s5225_s11 }
  0x42   : > { %p4298_p1 = pnand %p4296_p2, %p4269_p13 }
  0x44   : > { %p4299_p6 = pneg %p4298_p1 }
  0x46   : > { %p4304_p3 = pnand %p4302_p10, %p4299_p6 }
  0x48   : > { %4307 = shalt.err (!%p4304_p3)
}
  0x49   : > { %s4308_s1 = scalar_lea.vmem %s4582_s22, 1024  ;;  %p4316_p12 = scmp.lt.s32.totalorder %s4582_s22, %s4582_s22 }
  0x4a   : > { %p4309_p5 = scmp.ne.s32.totalorder %s4582_s22, %s4308_s1  ;;  %p4317_p0 = scmp.lt.s32.totalorder %s4308_s1, %s4308_s1 }
  0x4c   : > { %p4311_p7 = pnand %p4309_p5, %p4269_p13  ;;  %p4318_p2 = por %p4317_p0, %p4316_p12 }
  0x4e   : > { %p4312_p9 = pneg %p4311_p7 }
  0x50   : > { %p4319_p1 = pnand %p4318_p2, %p4312_p9 }
  0x52   : > { %4322 = shalt.err (!%p4319_p1)
}
  0x53   : > { %4166 = dma.hbm_to_vmem [thread:$0]  (!%p4578_p11), %s5225_s11, 1024, %s4582_s22, [#allocation6], %s4427_s16, %s4427_s16, %s4428_s17  }
  0x54   : > { %s4637_s15 = sadd.s32 1, %s4423_s27   ;;  %s41_s20 = sadd.s32 1, %s4419_s26 }
  0x55   : > { %s38_s24 = ssub.s32 %s4423_s27, %s4637_s15  ;;  %p48_p13 = scmp.ne.s32.totalorder %s4419_s26, %s4415_s25 }
  0x56   : > { %p39_p6 = scmp.eq.s32.totalorder %s38_s24, 0  ;;  %p49_p10 = scmp.eq.s32.totalorder %s4423_s27, 0 }
  0x57   : > { %p5226_p3 = scmp.eq.s32.totalorder %s4548_s28, 1  ;;  %p4177_p7 = scmp.lt.s32.totalorder %s4423_s27, 2 }
  0x58   : > { %s4653_s23 = scalar_select %p39_p6, %s4419_s26, %s41_s20  }
  0x59   : > { %p4647_p5 = por %p5226_p3, %p48_p13  ;;  %p50_p9 = por %p49_p10, %p48_p13 }
  0x5a   : > { %s508_s29 = sand.u32 1, %s4419_s26   ;;  %s3622_s22 = sshll.u32 %s4423_s27, 7 }
  0x5b   : > { %s5227_s30 = scalar_select %p4647_p5, 1, 0 }
  0x5c   : > { %s3621_s19 = sshll.u32 %s508_s29, 3  ;;  %s5228_s21 = sld [smem:[#allocation14_spill]] }
  0x5d   : > { %s512_s12 = scalar_lea.vmem [#allocation2], %s3621_s19  ;;  %p4664_p11 = pnand %p4177_p7, %p50_p9 }
  0x5e   : > { %s519_s14 = sshll.u32 %s512_s12, 4  ;;  %s509_s24 = scalar_lea.sflag [#allocation3], %s508_s29  ;;  %s4662_s14 = int_to_ptr.vmem [resolvable:$true] %s519_s14 }
  0x5f   : > { %p4325_p0 = pneg %p4664_p11 }
  0x62   : > { %s4660_s1 = scalar_lea.hbm %s5228_s21, %s3622_s22  ;;  %s4328_s16 = scalar_lea.hbm %s5228_s21, 256 }
  0x63   : > { %s4323_s7 = scalar_lea.hbm %s4660_s1, 128  ;;  %p4329_p13 = scmp.lt.u32.totalorder %s4660_s1, %s5228_s21 }
  0x64   : > { %p4324_p12 = scmp.ne.s32.totalorder %s4660_s1, %s4323_s7  ;;  %p4330_p6 = scmp.lt.u32.totalorder %s4328_s16, %s4323_s7 }
  0x65   : > { %p4332_p3 = scmp.lt.u32.totalorder %s4323_s7, %s4660_s1 }
  0x66   : > { %p4326_p2 = pnand %p4325_p0, %p4324_p12  ;;  %p4331_p10 = por %p4330_p6, %p4329_p13 }
  0x68   : > { %p4327_p1 = pneg %p4326_p2  ;;  %p4333_p7 = por %p4332_p3, %p4331_p10 }
  0x6a   : > { %p4334_p9 = pnand %p4333_p7, %p4327_p1 }
  0x6c   : > { %4337 = shalt.err (!%p4334_p9)
}
  0x6d   : > { %s4338_s29 = scalar_lea.vmem %s4662_s14, 128  ;;  %s4429_s22 = smov [#allocation2]  }
  0x6e   : > { %p4339_p12 = scmp.ne.s32.totalorder %s4662_s14, %s4338_s29  ;;  %s4343_s19 = sshll.u32 %s4429_s22, 4  ;;  %s4344_s19 = int_to_ptr.vmem [resolvable:$false] %s4343_s19 }
  0x6f   : > { %s4345_s17 = scalar_lea.vmem %s4344_s19, 256  ;;  %p4346_p4 = scmp.lt.s32.totalorder %s4662_s14, %s4344_s19 }
  0x70   : > { %p4341_p2 = pnand %p4339_p12, %p4325_p0  ;;  %p4347_p13 = scmp.lt.s32.totalorder %s4345_s17, %s4338_s29 }
  0x72   : > { %p4342_p5 = pneg %p4341_p2  ;;  %p4348_p6 = por %p4347_p13, %p4346_p4 }
  0x74   : > { %p4349_p10 = pnand %p4348_p6, %p4342_p5 }
  0x76   : > { %4352 = shalt.err (!%p4349_p10)
}
  0x77   : > { %4170 = dma.hbm_to_vmem [thread:$0]  (!%p4664_p11), %s4660_s1, 128, %s4662_s14, %s509_s24  }
  0x78   : > { %528 = sbr.rel (%p4567_p8) target bundleno = 4966 (0x1366), region = 88  ;;  %s4696_s7 = sand.u32 (!%p4567_p8), 1, %s4415_s25  }
  0x79   : > { %s5198_s16 = sshll.u32 (!%p4567_p8), %s4696_s7, 3  ;;  %s531_s12 = scalar_lea.sflag (!%p4567_p8), [#allocation3], %s4696_s7 }
  0x7a   : > { %s4702_s29 = scalar_lea.vmem (!%p4567_p8), [#allocation2], %s5198_s16  ;;  %p5230_p4 = scmp.ne.s32.totalorder (!%p4567_p8), %s5219_s0, 0 }
  0x7f   : > { %4398 = dma.done.wait (%p5230_p4), %s531_s12, 128  }
  0x80   : > { %4400 = vsyncadd (%p5230_p4), %s531_s12, 4294967168  ;;  %p5231_p5 = scmp.eq.s32.totalorder %s4548_s28, 0 }
  0x82   : > { %4402 = dma.done.wait (%p5231_p5), [#allocation6], 2048   ;;  %p5232_p8 = pmov %p5231_p5 }
  0x83   : > { %v4430_v0 = vmov 0.0|0.0   ;;  %vm4431_vm0 = vmmov 0   ;;  %v4432_v1 = vmov 0.0   ;;  %v599_v2 = vld [vmem:[%s5171_s3] sm:$0xff]  ;;  %v600_v3 = vld [vmem:[%s5171_s3 + $0x8] sm:$0xff]  ;;  %s5233_s22 = sld [smem:[#allocation15_spill]] }
  0x84   : > { %4404 = vsyncadd (%p5232_p8), [#allocation6], 4294965248  ;;  %4082 = vmatprep.subr.bf16.mxu1 %v4430_v0  ;;  %4076 = vmatprep.subr.bf16.mxu0 %v4430_v0  ;;  %v4083_v5 = vpack.c.bf16 %v600_v3, %v599_v2  ;;  %v601_v7 = vld [vmem:[%s5171_s3 + $0x10] sm:$0xff]  ;;  %v602_v8 = vld [vmem:[%s5171_s3 + $0x18] sm:$0xff]  ;;  %s5234_s5 = sld [smem:[#allocation17_spill]]  ;;  %vm638_vm1 = vcmask 261120  }
  0x85   : > { %3849 = vmatprep.mubr.msk.f32.mxu1 %vm4431_vm0, %v4432_v1  ;;  %3838 = vmatprep.mubr.msk.f32.mxu0 %vm4431_vm0, %v4432_v1  ;;  %v4086_v12 = vpack.c.bf16 %v602_v8, %v601_v7  ;;  %v4751_v16 = vld [vmem:[%s4702_s29] sm:$0xff]  ;;  %s5235_s2 = sld [smem:[#allocation16_spill]]  ;;  %vm864_vm2 = vcmask 64512   ;;  %s5201_s19 = smov 112   ;;  %vm1945_vm3 = vcmask 523264  }
  0x86   : > { %4084 = vmatpush3.bf16.msra.mxu1 %v4083_v5  ;;  %v3630_v21 = vld [vmem:[%s5172_s4] ss:$0 sm:$0xff]  ;;  %s5203_s17 = smov 120   ;;  %s5199_s18 = smov 104  }
  0x87   : > { %4085 = vmatprep.subr.bf16.mxu1 %v4430_v0  ;;  %v3632_v29 = vld [vmem:[%s5174_s6] ss:$0 sm:$0xff]  ;;  %s5236_s1 = sld [smem:[#allocation20_spill]]  ;;  %s5237_s20 = sld [smem:[#allocation21_spill]] }
  0x88   : > { %s5238_s24 = sld [smem:[#allocation22_spill]]  ;;  %s5240_s11 = sld [smem:[#allocation23_spill]] }
  0x89   : > { %v594_v4 = vld [vmem:[%s5233_s22] sm:$0xff]  ;;  %v595_v6 = vld [vmem:[%s5233_s22 + $0x8] sm:$0xff]  ;;  %v596_v10 = vld [vmem:[%s5233_s22 + $0x10] sm:$0xff]  ;;  %s5241_s14 = smov 120   ;;  %s5243_s29 = smov 104  }
  0x8a   : > { %v4077_v9 = vpack.c.bf16 %v595_v6, %v594_v4  ;;  %v597_v11 = vld [vmem:[%s5233_s22 + $0x18] sm:$0xff]  ;;  %v604_v14 = vld [vmem:[%s5234_s5] sm:$0xff]  ;;  %v605_v15 = vld [vmem:[%s5234_s5 + $0x8] sm:$0xff]  ;;  %4087 = vmatpush3.bf16.msra.mxu1 %v4086_v12  ;;  %p5246_p0 = scmp.ne.s32.totalorder %s5227_s30, 0 }
  0x8b   : > { %v4080_v13 = vpack.c.bf16 %v597_v11, %v596_v10  ;;  %v4089_v17 = vpack.c.bf16 %v605_v15, %v604_v14  ;;  %3868 = vmatprep.subr.mxu1 %v4432_v1  ;;  %v606_v18 = vld [vmem:[%s5234_s5 + $0x10] sm:$0xff]  ;;  %v607_v19 = vld [vmem:[%s5234_s5 + $0x18] sm:$0xff]  ;;  %v3628_v23 = vld [vmem:[%s5235_s2] ss:$0 sm:$0xff] }
  0x8c   : > { %4078 = vmatpush3.bf16.msra.mxu0 %v4077_v9  ;;  %v4092_v20 = vpack.c.bf16 %v607_v19, %v606_v18 }
  0x8d   : > { %4079 = vmatprep.subr.bf16.mxu0 %v4430_v0  ;;  %3850 = vmatmul.mubr.msk.f32.vlgmr.msra.gmra.mrb[0].mxu1 %vm638_vm1, %v4751_v16 }
  0x8e   : > { %3870 = vmatprep.mubr.msk.f32.mxu1 %vm4431_vm0, %v4432_v1  ;;  %s5239_s16 = smov %s5238_s24 }
  0x90   : > { %4081 = vmatpush3.bf16.msra.mxu0 %v4080_v13 }
  0x91   : > { %4088 = vmatprep.subr.bf16.mxu0 %v4430_v0 }
  0x93   : > { %3839 = vmatmul.mubr.msk.f32.vlgmr.msra.gmra.mrb[0].mxu0 %vm638_vm1, %v4751_v16 }
  0x94   : > { %4090 = vmatpush3.bf16.msra.mxu0 %v4089_v17  ;;  %3860 = vmatprep.mubr.msk.f32.mxu0 %vm4431_vm0, %v4432_v1 }
  0x95   : > { %4091 = vmatprep.subr.bf16.mxu0 %v4430_v0 }
  0x98   : > { %4093 = vmatpush3.bf16.msra.mxu0 %v4092_v20 }
  0x99   : > { %3863 = vmatprep.subr.mxu0 %v4432_v1 }
  0x9b   : > { %3861 = vmatmul.mubr.msk.f32.vlgmr.msra.gmra.mrb[2].mxu0 %vm638_vm1, %v4751_v16 }
  0x9c   : > { %3865 = vmatprep.mubr.msk.f32.mxu0 %vm4431_vm0, %v4432_v1 }
 0x160   : > { %v784_v22 = vpop.f32.mrb[0].mxu1 }
 0x161   : > { %v785_v24 = vadd.f32 %v3630_v21, %v784_v22  ;;  %v3851_v25 = vpop.f32.mrb[1].mxu1 }
 0x162   : > { %v609_v25 = vld [vmem:[#allocation5] sm:$0xff] }
 0x163   : > { %1193 = vrot.lane.b32.xlu1 %v785_v24, %s5201_s19  ;;  %1027 = vrot.lane.b32.xlu0 %v785_v24, %s5203_s17 }
 0x164   : > { %3864 = vmatpush3.xpose.msk.msra.mxu0 %vm864_vm2, %v785_v24 }
 0x165   : > { %3873 = vmatprep.subr.mxu0 %v4432_v1 }
 0x166   : > { %v708_v26 = vpop.f32.mrb[0].mxu0 }
 0x167   : > { %v3840_v27 = vpop.f32.mrb[1].mxu0  ;;  %v709_v28 = vadd.f32 %v3628_v23, %v708_v26  ;;  %v610_v26 = vld [vmem:[#allocation5 + $0x8] sm:$0xff] }
 0x168   : > { %v612_v27 = vld [vmem:[#allocation5 + $0x18] sm:$0xff] }
 0x169   : > { %3866 = vmatmul.mubr.msk.f32.vlgmr.msra.gmra.mrb[4].mxu0 %vm864_vm2, %v709_v28  ;;  %1191 = vrot.lane.b32.xlu1 %v709_v28, %s5201_s19 }
 0x16a   : > { %1025 = vrot.lane.b32.xlu0 %v709_v28, %s5203_s17  ;;  %3875 = vmatprep.mubr.msk.f32.mxu0 %vm4431_vm0, %v4432_v1 }
 0x16d   : > { %1356 = vrot.lane.b32.xlu1 %v709_v28, %s5199_s18 }
 0x16e   : > { %v860_v30 = vpop.f32.mrb[2].mxu0  ;;  %1358 = vrot.lane.b32.xlu0 %v785_v24, %s5199_s18 }
 0x16f   : > { %v4793_v31 = vadd.f32 %v3632_v29, %v860_v30  ;;  %v3862_v32 = vpop.f32.mrb[3].mxu0  ;;  %v611_v30 = vld [vmem:[#allocation5 + $0x10] sm:$0xff] }
 0x171   : > { %3869 = vmatpush3.msra.mxu1 %v4793_v31 }
 0x172   : > { %3878 = vmatprep.subr.mxu1 %v4432_v1 }
 0x1d5   : > { %v1028_v33 = vpop.permute.xlu0 %1027  ;;  %v1194_v34 = vpop.permute.xlu1 %1193 }
 0x1d6   : > { %3874 = vmatpush3.xpose.msk.msra.mxu0 %vm864_vm2, %v1028_v33 }
 0x1d7   : > { %3883 = vmatprep.subr.mxu0 %v4432_v1 }
 0x1db   : > { %v1192_v36 = vpop.permute.xlu1 %1191 }
 0x1dc   : > { %v1026_v35 = vpop.permute.xlu0 %1025 }
 0x1dd   : > { %3876 = vmatmul.mubr.msk.f32.vlgmr.msra.gmra.mrb[6].mxu0 %vm864_vm2, %v1026_v35 }
 0x1de   : > { %3884 = vmatpush3.xpose.msk.msra.mxu0 %vm864_vm2, %v1194_v34  ;;  %3885 = vmatprep.mubr.msk.f32.mxu0 %vm4431_vm0, %v4432_v1 }
 0x1df   : > { %3893 = vmatprep.subr.mxu0 %v4432_v1  ;;  %v1357_v38 = vpop.permute.xlu1 %1356 }
 0x1e0   : > { %v1359_v37 = vpop.permute.xlu0 %1358 }
 0x1e1   : > { %3886 = vmatmul.mubr.msk.f32.vlgmr.msra.gmra.mrb[8].mxu0 %vm864_vm2, %v1192_v36 }
 0x1e2   : > { %3894 = vmatpush3.xpose.msk.msra.mxu0 %vm864_vm2, %v1359_v37  ;;  %3895 = vmatprep.mubr.msk.f32.mxu0 %vm4431_vm0, %v4432_v1 }
 0x1e3   : > { %3903 = vmatprep.subr.mxu0 %v4432_v1 }
 0x1e5   : > { %3896 = vmatmul.mubr.msk.f32.vlgmr.msra.gmra.mrb[10].mxu0 %vm864_vm2, %v1357_v38 }
 0x1e6   : > { %3905 = vmatprep.mubr.msk.f32.mxu0 %vm4431_vm0, %v4432_v1  ;;  %3904 = vmatpush3.msra.mxu0 %v610_v26 }
 0x1e7   : > { %3913 = vmatprep.subr.mxu0 %v4432_v1 }
 0x23c   : > { %v937_v39 = vpop.f32.mrb[4].mxu0 }
 0x23d   : > { %v3867_v40 = vpop.f32.mrb[5].mxu0  ;;  %v941_v41 = vsel %vm864_vm2, %v937_v39, -inf }
 0x23e   : > { %942 = vmax.xlane.f32.xlu0 %v941_v41 }
 0x2b0   : > { %v1099_v42 = vpop.f32.mrb[6].mxu0 }
 0x2b1   : > { %v3877_v43 = vpop.f32.mrb[7].mxu0  ;;  %v1103_v44 = vsel %vm864_vm2, %v1099_v42, -inf }
 0x2b2   : > { %1104 = vmax.xlane.f32.xlu1 %v1103_v44 }
 0x2b4   : > { %v1265_v45 = vpop.f32.mrb[8].mxu0 }
 0x2b5   : > { %v3887_v46 = vpop.f32.mrb[9].mxu0  ;;  %v1269_v47 = vsel %vm864_vm2, %v1265_v45, -inf }
 0x2b6   : > { %1270 = vmax.xlane.f32.xlu0 %v1269_v47 }
 0x2b8   : > { %v1430_v48 = vpop.f32.mrb[10].mxu0 }
 0x2b9   : > { %v3897_v49 = vpop.f32.mrb[11].mxu0  ;;  %v1434_v50 = vsel %vm864_vm2, %v1430_v48, -inf }
 0x2ba   : > { %1435 = vmax.xlane.f32.xlu0 %v1434_v50 }
 0x2c3   : > { %1115 = vrot.lane.b32.xlu1 %v4793_v31, %s5203_s17  ;;  %s5242_s17 = smov 112  }
 0x2cb   : > { %v943_v51 = vpop.xlane.xlu0 %942 }
 0x2cc   : > { %v944_v52 = vsub.f32 %v937_v39, %v943_v51 }
 0x2ce   : > { %v945_v53 = vmul.f32 1.442695, %v944_v52 }
 0x2d0   : > { %4223 = vpow2.f32 %v945_v53 }
 0x2da   : > { %v4224_v54 = vpop.eup %4223 }
 0x2db   : > { %v947_v55 = vsel %vm864_vm2, %v4224_v54, 0.0 }
 0x2e7   : > { %948 = vadd.xlane.f32.xlu1 %v947_v55 }
 0x33f   : > { %v1105_v56 = vpop.xlane.xlu1 %1104 }
 0x340   : > { %v1106_v57 = vsub.f32 %v1099_v42, %v1105_v56 }
 0x342   : > { %v1107_v58 = vmul.f32 1.442695, %v1106_v57  ;;  %v616_v57 = vld [vmem:[#allocation7] sm:$0xff] }
 0x343   : > { %v1271_v59 = vpop.xlane.xlu0 %1270  ;;  %v1116_v9 = vpop.permute.xlu1 %1115 }
 0x344   : > { %4225 = vpow2.f32 %v1107_v58  ;;  %v1272_v60 = vsub.f32 %v1265_v45, %v1271_v59  ;;  %v3650_v45 = vld [vmem:[%s5176_s8] ss:$0 sm:$0xff]  ;;  %v617_v58 = vld [vmem:[#allocation7 + $0x8] sm:$0xff] }
 0x345   : > { %v4095_v59 = vpack.c.bf16 %v617_v58, %v616_v57 }
 0x346   : > { %v1273_v61 = vmul.f32 1.442695, %v1272_v60  ;;  %v618_v60 = vld [vmem:[#allocation7 + $0x10] sm:$0xff] }
 0x347   : > { %v1436_v62 = vpop.xlane.xlu0 %1435 }
 0x348   : > { %4227 = vpow2.f32 %v1273_v61  ;;  %v1437_v63 = vsub.f32 %v1430_v48, %v1436_v62  ;;  %v619_v61 = vld [vmem:[#allocation7 + $0x18] sm:$0xff] }
 0x349   : > { %v4098_v62 = vpack.c.bf16 %v619_v61, %v618_v60 }
 0x34a   : > { %v1438_v2 = vmul.f32 1.442695, %v1437_v63 }
 0x34c   : > { %4229 = vpow2.f32 %v1438_v2 }
 0x34e   : > { %v4226_v3 = vpop.eup %4225 }
 0x34f   : > { %v1109_v4 = vsel %vm864_vm2, %v4226_v3, 0.0 }
 0x350   : > { %1110 = vadd.xlane.f32.xlu0 %v1109_v4  ;;  %v3651_v4 = vld [vmem:[%s5177_s9] ss:$0 sm:$0xff] }
 0x352   : > { %v4228_v5 = vpop.eup %4227 }
 0x353   : > { %v1275_v6 = vsel %vm864_vm2, %v4228_v5, 0.0 }
 0x354   : > { %1276 = vadd.xlane.f32.xlu1 %v1275_v6  ;;  %v3652_v6 = vld [vmem:[%s5178_s10] ss:$0 sm:$0xff] }
 0x356   : > { %v4230_v7 = vpop.eup %4229 }
 0x357   : > { %v1440_v8 = vsel %vm864_vm2, %v4230_v7, 0.0 }
 0x358   : > { %1441 = vadd.xlane.f32.xlu0 %v1440_v8 }
 0x365   : > { %1445 = vrot.lane.b32.xlu1 %v4793_v31, %s5199_s18 }
 0x36e   : > { %1280 = vrot.lane.b32.xlu0 %v4793_v31, %s5201_s19  ;;  %s3514_s19 = scalar_lea.sflag [#allocation4], %s4696_s7 }
 0x374   : > { %v949_v10 = vpop.xlane.xlu1 %948 }
 0x375   : > { %4231 = vrcp.f32 %v949_v10  ;;  %v622_v10 = vld [vmem:[%s5181_s13 + $0x8] sm:$0xff] }
 0x37f   : > { %v4232_v11 = vpop.eup %4231 }
 0x380   : > { %v951_v12 = vmul.f32 %v4232_v11, %v4224_v54 }
 0x382   : > { %3871 = vmatmul.mubr.msk.f32.vlgmr.msra.gmra.mrb[2].mxu1 %vm864_vm2, %v951_v12  ;;  %v623_v12 = vld [vmem:[%s5181_s13 + $0x10] sm:$0xff] }
 0x383   : > { %3879 = vmatpush3.msra.mxu1 %v1116_v9  ;;  %3880 = vmatprep.mubr.msk.f32.mxu1 %vm4431_vm0, %v4432_v1  ;;  %v621_v9 = vld [vmem:[%s5181_s13] sm:$0xff] }
 0x384   : > { %3888 = vmatprep.subr.mxu1 %v4432_v1  ;;  %v4101_v11 = vpack.c.bf16 %v622_v10, %v621_v9  ;;  %v3689_v10 = vld [vmem:[%s5235_s2 + $0x1] ss:$0 sm:$0xff] }
 0x3dd   : > { %v1111_v13 = vpop.xlane.xlu0 %1110 }
 0x3de   : > { %4233 = vrcp.f32 %v1111_v13  ;;  %v624_v13 = vld [vmem:[%s5181_s13 + $0x18] sm:$0xff] }
 0x3e1   : > { %v1277_v14 = vpop.xlane.xlu1 %1276 }
 0x3e2   : > { %4235 = vrcp.f32 %v1277_v14  ;;  %v4104_v14 = vpack.c.bf16 %v624_v13, %v623_v12 }
 0x3e5   : > { %v1442_v15 = vpop.xlane.xlu0 %1441  ;;  %v1446_v22 = vpop.permute.xlu1 %1445 }
 0x3e6   : > { %4237 = vrcp.f32 %v1442_v15  ;;  %v625_v15 = vld [vmem:[%s5181_s13 + $0x20] sm:$0xff] }
 0x3e8   : > { %v4234_v17 = vpop.eup %4233 }
 0x3e9   : > { %v1113_v18 = vmul.f32 %v4234_v17, %v4226_v3  ;;  %v1281_v19 = vpop.permute.xlu0 %1280  ;;  %v626_v17 = vld [vmem:[%s5181_s13 + $0x28] sm:$0xff] }
 0x3eb   : > { %3881 = vmatmul.mubr.msk.f32.vlgmr.msra.gmra.mrb[4].mxu1 %vm864_vm2, %v1113_v18  ;;  %v4107_v18 = vpack.c.bf16 %v626_v17, %v625_v15 }
 0x3ec   : > { %v4236_v20 = vpop.eup %4235  ;;  %3889 = vmatpush3.msra.mxu1 %v1281_v19  ;;  %3890 = vmatprep.mubr.msk.f32.mxu1 %vm4431_vm0, %v4432_v1  ;;  %v627_v19 = vld [vmem:[%s5181_s13 + $0x30] sm:$0xff] }
 0x3ed   : > { %v1279_v21 = vmul.f32 %v4236_v20, %v4228_v5  ;;  %3898 = vmatprep.subr.mxu1 %v4432_v1  ;;  %v628_v20 = vld [vmem:[%s5181_s13 + $0x38] sm:$0xff] }
 0x3ef   : > { %3891 = vmatmul.mubr.msk.f32.vlgmr.msra.gmra.mrb[6].mxu1 %vm864_vm2, %v1279_v21  ;;  %v4110_v21 = vpack.c.bf16 %v628_v20, %v627_v19  ;;  %v3691_v19 = vld [vmem:[%s5172_s4 + $0x1] ss:$0 sm:$0xff] }
 0x3f0   : > { %v4238_v23 = vpop.eup %4237  ;;  %3899 = vmatpush3.msra.mxu1 %v1446_v22  ;;  %3900 = vmatprep.mubr.msk.f32.mxu1 %vm4431_vm0, %v4432_v1  ;;  %v3653_v22 = vld [vmem:[%s5236_s1] ss:$0 sm:$0xff] }
 0x3f1   : > { %v1444_v24 = vmul.f32 %v4238_v23, %v4230_v7  ;;  %3908 = vmatprep.subr.mxu1 %v4432_v1 }
 0x3f3   : > { %3901 = vmatmul.mubr.msk.f32.vlgmr.msra.gmra.mrb[8].mxu1 %vm864_vm2, %v1444_v24 }
 0x3f4   : > { %3909 = vmatpush3.msra.mxu1 %v609_v25  ;;  %3910 = vmatprep.mubr.msk.f32.mxu1 %vm4431_vm0, %v4432_v1 }
 0x3f5   : > { %3918 = vmatprep.subr.mxu1 %v4432_v1 }
 0x455   : > { %v1021_v28 = vpop.f32.mrb[2].mxu1 }
 0x456   : > { %v3872_v29 = vpop.f32.mrb[3].mxu1  ;;  %3911 = vmatmul.mubr.msk.f32.vlgmr.msra.gmra.mrb[10].mxu1 %vm864_vm2, %v1021_v28 }
 0x457   : > { %3919 = vmatpush3.msra.mxu1 %v612_v27  ;;  %3920 = vmatprep.mubr.msk.f32.mxu1 %vm4431_vm0, %v4432_v1 }
 0x458   : > { %4100 = vmatprep.subr.bf16.mxu1 %v4430_v0 }
 0x4be   : > { %v1187_v31 = vpop.f32.mrb[4].mxu1 }
 0x4bf   : > { %v3882_v32 = vpop.f32.mrb[5].mxu1  ;;  %3906 = vmatmul.mubr.msk.f32.vlgmr.msra.gmra.mrb[12].mxu0 %vm864_vm2, %v1187_v31 }
 0x4c0   : > { %3914 = vmatpush3.msra.mxu0 %v611_v30  ;;  %3915 = vmatprep.mubr.msk.f32.mxu0 %vm4431_vm0, %v4432_v1 }
 0x4c1   : > { %4094 = vmatprep.subr.bf16.mxu0 %v4430_v0 }
 0x4c2   : > { %v1352_v33 = vpop.f32.mrb[6].mxu1 }
 0x4c3   : > { %v3892_v34 = vpop.f32.mrb[7].mxu1  ;;  %3916 = vmatmul.mubr.msk.f32.vlgmr.msra.gmra.mrb[14].mxu0 %vm864_vm2, %v1352_v33 }
 0x4c4   : > { %3931 = vmatprep.mubr.msk.f32.mxu0 %vm4431_vm0, %v4432_v1  ;;  %4096 = vmatpush3.bf16.msra.mxu0 %v4095_v59 }
 0x4c5   : > { %4097 = vmatprep.subr.bf16.mxu0 %v4430_v0 }
 0x4c6   : > { %v1517_v35 = vpop.f32.mrb[8].mxu1 }
 0x4c7   : > { %v3902_v36 = vpop.f32.mrb[9].mxu1  ;;  %3921 = vmatmul.mubr.msk.f32.vlgmr.msra.gmra.mrb[12].mxu1 %vm864_vm2, %v1517_v35  ;;  %v3655_v35 = vld [vmem:[%s5237_s20] ss:$0 sm:$0xff] }
 0x4c8   : > { %3950 = vmatprep.mubr.msk.f32.mxu1 %vm4431_vm0, %v4432_v1  ;;  %4099 = vmatpush3.bf16.msra.mxu0 %v4098_v62  ;;  %v3657_v62 = vld [vmem:[%s5238_s24] ss:$0 sm:$0xff]  ;;  %s3721_s24 = sshll.u32 %s4548_s28, 7  ;;  %s4436_s28 = smov [#allocation8]  }
 0x4c9   : > { %4112 = vmatprep.subr.bf16.mxu0 %v4430_v0  ;;  %4102 = vmatpush3.bf16.msra.mxu1 %v4101_v11  ;;  %v3693_v11 = vld [vmem:[%s5174_s6 + $0x1] ss:$0 sm:$0xff] }
 0x4ca   : > { %4103 = vmatprep.subr.bf16.mxu1 %v4430_v0 }
 0x4cd   : > { %4105 = vmatpush3.bf16.msra.mxu1 %v4104_v14 }
 0x4ce   : > { %4106 = vmatprep.subr.bf16.mxu1 %v4430_v0 }
 0x4d1   : > { %4108 = vmatpush3.bf16.msra.mxu1 %v4107_v18 }
 0x4d2   : > { %4109 = vmatprep.subr.bf16.mxu1 %v4430_v0 }
 0x4d5   : > { %4111 = vmatpush3.bf16.msra.mxu1 %v4110_v21 }
 0x4d6   : > { %4124 = vmatprep.subr.bf16.mxu1 %v4430_v0 }
 0x529   : > { %v1663_v37 = vpop.f32.mrb[10].mxu1 }
 0x52a   : > { %v3912_v38 = vpop.f32.mrb[11].mxu1 }
 0x592   : > { %v1590_v39 = vpop.f32.mrb[12].mxu0 }
 0x593   : > { %v1664_v40 = vadd.f32 %v1663_v37, %v1590_v39  ;;  %v3907_v41 = vpop.f32.mrb[13].mxu0 }
 0x596   : > { %v1736_v42 = vpop.f32.mrb[14].mxu0 }
 0x597   : > { %v1740_v43 = vadd.f32 %v1736_v42, %v1664_v40  ;;  %v3917_v44 = vpop.f32.mrb[15].mxu0 }
 0x59a   : > { %v1810_v46 = vpop.f32.mrb[12].mxu1 }
 0x59b   : > { %v1814_v47 = vadd.f32 %v1810_v46, %v1740_v43  ;;  %v3922_v48 = vpop.f32.mrb[13].mxu1  ;;  %v3659_v46 = vld [vmem:[%s5233_s22 + $0x20] sm:$0xff] }
 0x59d   : > { %v1821_v49 = vadd.f32 %v3650_v45, %v1814_v47  ;;  %v3660_v47 = vld [vmem:[%s5233_s22 + $0x28] sm:$0xff] }
 0x59e   : > { %v4113_v48 = vpack.c.bf16 %v3660_v47, %v3659_v46 }
 0x59f   : > { %v1822_v50 = vadd.f32 %v1821_v49, %v4751_v16  ;;  %v3669_v49 = vld [vmem:[%s5234_s5 + $0x20] sm:$0xff] }
 0x5a1   : > { %v1823_v51 = vsel %vm638_vm1, %v1822_v50, 0.0 }
 0x5a2   : > { %1824 = vadd.xlane.f32.xlu1 %v1823_v51 }
 0x62f   : > { %v1825_v52 = vpop.xlane.xlu1 %1824 }
 0x630   : > { %v1827_v53 = vmul.f32 0.03125, %v1825_v52  ;;  %v3661_v52 = vld [vmem:[%s5233_s22 + $0x30] sm:$0xff] }
 0x632   : > { %v1828_v54 = vsub.f32 %v1822_v50, %v1827_v53  ;;  %v3670_v50 = vld [vmem:[%s5234_s5 + $0x28] sm:$0xff]  ;;  %v3662_v53 = vld [vmem:[%s5233_s22 + $0x38] sm:$0xff] }
 0x633   : > { %v4125_v51 = vpack.c.bf16 %v3670_v50, %v3669_v49 }
 0x634   : > { %v1829_v55 = vmul.f32 %v1828_v54, %v1828_v54 }
 0x636   : > { %v1830_v56 = vsel %vm638_vm1, %v1829_v55, 0.0  ;;  %v4116_v55 = vpack.c.bf16 %v3662_v53, %v3661_v52 }
 0x637   : > { %1831 = vadd.xlane.f32.xlu0 %v1830_v56  ;;  %v3672_v56 = vld [vmem:[%s5234_s5 + $0x38] sm:$0xff] }
 0x6c4   : > { %v1832_v16 = vpop.xlane.xlu0 %1831 }
 0x6c5   : > { %v1833_v63 = vmul.f32 0.03125, %v1832_v16 }
 0x6c7   : > { %v1834_v2 = vadd.f32 1e-05, %v1833_v63  ;;  %v3664_v63 = vld [vmem:[%s5171_s3 + $0x20] sm:$0xff] }
 0x6c9   : > { %4239 = vrsqrt.f32 %v1834_v2  ;;  %v3665_v2 = vld [vmem:[%s5171_s3 + $0x28] sm:$0xff] }
 0x6d3   : > { %v4240_v3 = vpop.eup %4239 }
 0x6d4   : > { %v1836_v5 = vmul.f32 %v4240_v3, %v1828_v54  ;;  %v3671_v54 = vld [vmem:[%s5234_s5 + $0x30] sm:$0xff]  ;;  %v3658_v3 = vld [vmem:[%s5240_s11] ss:$0 sm:$0xff]  ;;  %s5244_s5 = sshll.u32 %s4696_s7, 3 }
 0x6d5   : > { %v4128_v57 = vpack.c.bf16 %v3672_v56, %v3671_v54  ;;  %s592_s21 = scalar_lea.vmem [#allocation8], %s5244_s5 }
 0x6d6   : > { %v1843_v7 = vmul.f32 %v3651_v4, %v1836_v5  ;;  %v4119_v5 = vpack.c.bf16 %v3665_v2, %v3664_v63  ;;  %s3527_s12 = sshll.u32 %s592_s21, 4  ;;  %s5125_s12 = int_to_ptr.vmem [resolvable:$true] %s3527_s12 }
 0x6d7   : > { %s4353_s18 = scalar_lea.vmem %s5125_s12, 128 }
 0x6d8   : > { %v1850_v8 = vadd.f32 %v3652_v6, %v1843_v7  ;;  %v3666_v7 = vld [vmem:[%s5171_s3 + $0x30] sm:$0xff]  ;;  %p4354_p11 = scmp.ne.s32.totalorder %s5125_s12, %s4353_s18 }
 0x6da   : > { %3932 = vmatmul.mubr.msk.f32.vlgmr.msra.gmra.mrb[16].mxu0 %vm638_vm1, %v1850_v8  ;;  %p4355_p1 = pnand %p4354_p11, %p5246_p0 }
 0x6db   : > { %3961 = vmatprep.mubr.msk.f32.mxu0 %vm4431_vm0, %v4432_v1  ;;  %4114 = vmatpush3.bf16.msra.mxu0 %v4113_v48 }
 0x6dc   : > { %4115 = vmatprep.subr.bf16.mxu0 %v4430_v0  ;;  %p4356_p3 = pneg %p4355_p1 }
 0x6df   : > { %4117 = vmatpush3.bf16.msra.mxu0 %v4116_v55 }
 0x6e0   : > { %4118 = vmatprep.subr.bf16.mxu0 %v4430_v0 }
 0x7ad   : > { %v1926_v23 = vpop.f32.mrb[16].mxu0 }
 0x7ae   : > { %v1927_v24 = vadd.f32 %v3653_v22, %v1926_v23  ;;  %v3933_v25 = vpop.f32.mrb[17].mxu0 }
 0x7b0   : > { %v1931_v26 = vmul.f32 %v1927_v24, %v1927_v24  ;;  %v1930_v32 = vmul.f32 0.5, %v1927_v24 }
 0x7b2   : > { %v1932_v27 = vmul.f32 %v1931_v26, %v1927_v24 }
 0x7b4   : > { %v1933_v28 = vmul.f32 0.044715, %v1932_v27 }
 0x7b6   : > { %v1934_v29 = vadd.f32 %v1933_v28, %v1927_v24 }
 0x7b8   : > { %v1935_v30 = vmul.f32 0.7978846, %v1934_v29 }
 0x7ba   : > { %4241 = vtanh.f32 %v1935_v30 }
 0x7c4   : > { %v4242_v31 = vpop.eup %4241 }
 0x7c5   : > { %v1937_v33 = vadd.f32 1.0, %v4242_v31 }
 0x7c7   : > { %v1938_v34 = vmul.f32 %v1937_v33, %v1930_v32 }
 0x7c9   : > { %3951 = vmatmul.mubr.msk.f32.vlgmr.msra.gmra.mrb[14].mxu1 %vm1945_vm3, %v1938_v34 }
 0x7ca   : > { %3983 = vmatprep.mubr.msk.f32.mxu1 %vm4431_vm0, %v4432_v1  ;;  %4126 = vmatpush3.bf16.msra.mxu1 %v4125_v51 }
 0x7cb   : > { %4127 = vmatprep.subr.bf16.mxu1 %v4430_v0 }
 0x7ce   : > { %4129 = vmatpush3.bf16.msra.mxu1 %v4128_v57 }
 0x7cf   : > { %3991 = vmatprep.subr.mxu1 %v4432_v1 }
 0x89c   : > { %v2015_v36 = vpop.f32.mrb[14].mxu1 }
 0x89d   : > { %v2016_v37 = vadd.f32 %v3655_v35, %v2015_v36  ;;  %v3952_v38 = vpop.f32.mrb[15].mxu1 }
 0x89f   : > { %v2019_v39 = vadd.f32 %v2016_v37, %v1850_v8  ;;  %v3667_v8 = vld [vmem:[%s5171_s3 + $0x38] sm:$0xff] }
 0x8a0   : > { %v4122_v9 = vpack.c.bf16 %v3667_v8, %v3666_v7 }
 0x8a1   : > { %v2020_v40 = vsel %vm638_vm1, %v2019_v39, 0.0 }
 0x8a2   : > { %2021 = vadd.xlane.f32.xlu0 %v2020_v40 }
 0x92f   : > { %v2022_v41 = vpop.xlane.xlu0 %2021 }
 0x930   : > { %v2023_v42 = vmul.f32 0.03125, %v2022_v41 }
 0x932   : > { %v2024_v43 = vsub.f32 %v2019_v39, %v2023_v42 }
 0x934   : > { %v2025_v44 = vmul.f32 %v2024_v43, %v2024_v43 }
 0x936   : > { %v2026_v45 = vsel %vm638_vm1, %v2025_v44, 0.0 }
 0x937   : > { %2027 = vadd.xlane.f32.xlu1 %v2026_v45 }
 0x9c4   : > { %v2028_v58 = vpop.xlane.xlu1 %2027 }
 0x9c5   : > { %v2029_v59 = vmul.f32 0.03125, %v2028_v58 }
 0x9c7   : > { %v2030_v60 = vadd.f32 1e-05, %v2029_v59 }
 0x9c9   : > { %4243 = vrsqrt.f32 %v2030_v60 }
 0x9d3   : > { %v4244_v61 = vpop.eup %4243 }
 0x9d4   : > { %v2032_v16 = vmul.f32 %v4244_v61, %v2024_v43 }
 0x9d6   : > { %v2039_v4 = vmul.f32 %v3657_v62, %v2032_v16 }
 0x9d8   : > { %v4955_v6 = vadd.f32 %v3658_v3, %v2039_v4 }
 0x9da   : > { %3962 = vmatmul.mubr.msk.f32.vlgmr.msra.gmra.mrb[18].mxu0 %vm638_vm1, %v4955_v6  ;;  %3984 = vmatmul.mubr.msk.f32.vlgmr.msra.gmra.mrb[16].mxu1 %vm638_vm1, %v4955_v6 }
 0x9db   : > { %4120 = vmatpush3.bf16.msra.mxu0 %v4119_v5  ;;  %3972 = vmatprep.mubr.msk.f32.mxu0 %vm4431_vm0, %v4432_v1 }
 0x9dc   : > { %4121 = vmatprep.subr.bf16.mxu0 %v4430_v0  ;;  %3993 = vmatprep.mubr.msk.f32.mxu1 %vm4431_vm0, %v4432_v1 }
 0x9df   : > { %4123 = vmatpush3.bf16.msra.mxu0 %v4122_v9 }
 0x9e0   : > { %3986 = vmatprep.subr.mxu0 %v4432_v1 }
 0x9e2   : > { %3973 = vmatmul.mubr.msk.f32.vlgmr.msra.gmra.mrb[20].mxu0 %vm638_vm1, %v4955_v6 }
 0x9e3   : > { %3988 = vmatprep.mubr.msk.f32.mxu0 %vm4431_vm0, %v4432_v1 }
 0xaad   : > { %v2176_v12 = vpop.f32.mrb[18].mxu0  ;;  %v2328_v13 = vpop.f32.mrb[16].mxu1 }
 0xaae   : > { %v2177_v14 = vadd.f32 %v3689_v10, %v2176_v12  ;;  %v4983_v15 = vadd.f32 %v3693_v11, %v2328_v13  ;;  %v3963_v17 = vpop.f32.mrb[19].mxu0  ;;  %v3985_v18 = vpop.f32.mrb[17].mxu1 }
 0xaaf   : > { %v2072_v17 = vld [vmem:[#allocation5 + $0x38] sm:$0xff] }
 0xab0   : > { %3992 = vmatpush3.msra.mxu1 %v4983_v15  ;;  %2492 = vrot.lane.b32.xlu1 %v2177_v14, %s5241_s14 }
 0xab1   : > { %4001 = vmatprep.subr.mxu1 %v4432_v1 }
 0xab5   : > { %v2252_v20 = vpop.f32.mrb[20].mxu0 }
 0xab6   : > { %v2253_v21 = vadd.f32 %v3691_v19, %v2252_v20  ;;  %v3974_v22 = vpop.f32.mrb[21].mxu0  ;;  %v2071_v20 = vld [vmem:[#allocation5 + $0x30] sm:$0xff] }
 0xab8   : > { %2660 = vrot.lane.b32.xlu1 %v2253_v21, %s5242_s17  ;;  %2494 = vrot.lane.b32.xlu0 %v2253_v21, %s5241_s14 }
 0xab9   : > { %3987 = vmatpush3.xpose.msk.msra.mxu0 %vm864_vm2, %v2253_v21 }
 0xaba   : > { %3996 = vmatprep.subr.mxu0 %v4432_v1 }
 0xabc   : > { %3989 = vmatmul.mubr.msk.f32.vlgmr.msra.gmra.mrb[22].mxu0 %vm864_vm2, %v2177_v14  ;;  %2825 = vrot.lane.b32.xlu1 %v2253_v21, %s5243_s29 }
 0xabd   : > { %2658 = vrot.lane.b32.xlu0 %v2177_v14, %s5242_s17  ;;  %3998 = vmatprep.mubr.msk.f32.mxu0 %vm4431_vm0, %v4432_v1 }
 0xac1   : > { %2823 = vrot.lane.b32.xlu0 %v2177_v14, %s5243_s29  ;;  %v2069_v14 = vld [vmem:[#allocation5 + $0x20] sm:$0xff] }
 0xb22   : > { %v2493_v23 = vpop.permute.xlu1 %2492 }
 0xb2a   : > { %v2495_v24 = vpop.permute.xlu0 %2494  ;;  %v2661_v25 = vpop.permute.xlu1 %2660 }
 0xb2b   : > { %3997 = vmatpush3.xpose.msk.msra.mxu0 %vm864_vm2, %v2495_v24 }
 0xb2c   : > { %4006 = vmatprep.subr.mxu0 %v4432_v1 }
 0xb2e   : > { %3999 = vmatmul.mubr.msk.f32.vlgmr.msra.gmra.mrb[24].mxu0 %vm864_vm2, %v2493_v23  ;;  %v2826_v27 = vpop.permute.xlu1 %2825 }
 0xb2f   : > { %v2659_v26 = vpop.permute.xlu0 %2658  ;;  %4007 = vmatpush3.xpose.msk.msra.mxu0 %vm864_vm2, %v2661_v25  ;;  %4008 = vmatprep.mubr.msk.f32.mxu0 %vm4431_vm0, %v4432_v1 }
 0xb30   : > { %4016 = vmatprep.subr.mxu0 %v4432_v1 }
 0xb32   : > { %4009 = vmatmul.mubr.msk.f32.vlgmr.msra.gmra.mrb[26].mxu0 %vm864_vm2, %v2659_v26 }
 0xb33   : > { %4017 = vmatpush3.xpose.msk.msra.mxu0 %vm864_vm2, %v2826_v27  ;;  %4018 = vmatprep.mubr.msk.f32.mxu0 %vm4431_vm0, %v4432_v1  ;;  %v2824_v28 = vpop.permute.xlu0 %2823 }
 0xb34   : > { %4026 = vmatprep.subr.mxu0 %v4432_v1 }
 0xb36   : > { %4019 = vmatmul.mubr.msk.f32.vlgmr.msra.gmra.mrb[28].mxu0 %vm864_vm2, %v2824_v28 }
 0xb37   : > { %4028 = vmatprep.mubr.msk.f32.mxu0 %vm4431_vm0, %v4432_v1 }
 0xb8f   : > { %v2404_v29 = vpop.f32.mrb[22].mxu0 }
 0xb90   : > { %v3990_v30 = vpop.f32.mrb[23].mxu0  ;;  %v2408_v31 = vsel %vm864_vm2, %v2404_v29, -inf }
 0xb91   : > { %2409 = vmax.xlane.f32.xlu1 %v2408_v31 }
 0xc01   : > { %v2566_v32 = vpop.f32.mrb[24].mxu0 }
 0xc02   : > { %v4000_v33 = vpop.f32.mrb[25].mxu0  ;;  %v2570_v34 = vsel %vm864_vm2, %v2566_v32, -inf }
 0xc03   : > { %2571 = vmax.xlane.f32.xlu0 %v2570_v34 }
 0xc05   : > { %v2732_v35 = vpop.f32.mrb[26].mxu0 }
 0xc06   : > { %v4010_v36 = vpop.f32.mrb[27].mxu0  ;;  %v2736_v37 = vsel %vm864_vm2, %v2732_v35, -inf }
 0xc07   : > { %2737 = vmax.xlane.f32.xlu0 %v2736_v37 }
 0xc09   : > { %v2897_v38 = vpop.f32.mrb[28].mxu0 }
 0xc0a   : > { %v4020_v39 = vpop.f32.mrb[29].mxu0  ;;  %v2901_v40 = vsel %vm864_vm2, %v2897_v38, -inf }
 0xc0b   : > { %2902 = vmax.xlane.f32.xlu1 %v2901_v40 }
 0xc1e   : > { %v2410_v41 = vpop.xlane.xlu1 %2409 }
 0xc1f   : > { %v2411_v42 = vsub.f32 %v2404_v29, %v2410_v41 }
 0xc21   : > { %v2412_v43 = vmul.f32 1.442695, %v2411_v42 }
 0xc23   : > { %4245 = vpow2.f32 %v2412_v43 }
 0xc2d   : > { %v4246_v44 = vpop.eup %4245 }
 0xc2e   : > { %v2414_v45 = vsel %vm864_vm2, %v4246_v44, 0.0 }
 0xc2f   : > { %2415 = vadd.xlane.f32.xlu0 %v2414_v45 }
 0xc90   : > { %v2572_v46 = vpop.xlane.xlu0 %2571 }
 0xc91   : > { %v2573_v47 = vsub.f32 %v2566_v32, %v2572_v46  ;;  %v2080_v46 = vld [vmem:[#allocation7 + $0x20] sm:$0xff] }
 0xc93   : > { %v2574_v48 = vmul.f32 1.442695, %v2573_v47  ;;  %v2081_v47 = vld [vmem:[#allocation7 + $0x28] sm:$0xff] }
 0xc94   : > { %v2738_v49 = vpop.xlane.xlu0 %2737 }
 0xc95   : > { %4247 = vpow2.f32 %v2574_v48  ;;  %v2739_v50 = vsub.f32 %v2732_v35, %v2738_v49  ;;  %v3711_v35 = vld [vmem:[%s5176_s8 + $0x1] ss:$0 sm:$0xff]  ;;  %v4131_v48 = vpack.c.bf16 %v2081_v47, %v2080_v46 }
 0xc96   : > { %v2082_v49 = vld [vmem:[#allocation7 + $0x30] sm:$0xff] }
 0xc97   : > { %v2740_v51 = vmul.f32 1.442695, %v2739_v50  ;;  %v2083_v50 = vld [vmem:[#allocation7 + $0x38] sm:$0xff] }
 0xc98   : > { %v2903_v57 = vpop.xlane.xlu1 %2902 }
 0xc99   : > { %4249 = vpow2.f32 %v2740_v51  ;;  %v2904_v58 = vsub.f32 %v2897_v38, %v2903_v57  ;;  %v4134_v51 = vpack.c.bf16 %v2083_v50, %v2082_v49  ;;  %v3713_v57 = vld [vmem:[%s5178_s10 + $0x1] ss:$0 sm:$0xff] }
 0xc9b   : > { %v2905_v59 = vmul.f32 1.442695, %v2904_v58 }
 0xc9f   : > { %v4248_v52 = vpop.eup %4247 }
 0xca0   : > { %v2576_v53 = vsel %vm864_vm2, %v4248_v52, 0.0 }
 0xca1   : > { %2577 = vadd.xlane.f32.xlu1 %v2576_v53 }
 0xca3   : > { %v4250_v54 = vpop.eup %4249 }
 0xca4   : > { %v2742_v55 = vsel %vm864_vm2, %v4250_v54, 0.0 }
 0xca5   : > { %2743 = vadd.xlane.f32.xlu0 %v2742_v55  ;;  %v3712_v55 = vld [vmem:[%s5177_s9 + $0x1] ss:$0 sm:$0xff] }
 0xcb2   : > { %2747 = vrot.lane.b32.xlu1 %v4983_v15, %s5242_s17  ;;  %s4357_s17 = sshll.u32 %s4436_s28, 4  ;;  %s4358_s17 = int_to_ptr.vmem [resolvable:$false] %s4357_s17 }
 0xcb3   : > { %p4360_p7 = scmp.lt.s32.totalorder %s5125_s12, %s4358_s17 }
 0xcbb   : > { %2582 = vrot.lane.b32.xlu0 %v4983_v15, %s5241_s14 }
 0xcbc   : > { %v2416_v56 = vpop.xlane.xlu0 %2415 }
 0xcbd   : > { %4251 = vrcp.f32 %v2416_v56 }
 0xcbe   : > { %4253 = vpow2.f32 %v2905_v59 }
 0xcc7   : > { %v4252_v60 = vpop.eup %4251 }
 0xcc8   : > { %v2418_v61 = vmul.f32 %v4252_v60, %v4246_v44  ;;  %v4254_v62 = vpop.eup %4253  ;;  %v3678_v60 = vld [vmem:[%s5181_s13 + $0x40] sm:$0xff] }
 0xcc9   : > { %v2907_v16 = vsel %vm864_vm2, %v4254_v62, 0.0 }
 0xcca   : > { %3994 = vmatmul.mubr.msk.f32.vlgmr.msra.gmra.mrb[18].mxu1 %vm864_vm2, %v2418_v61  ;;  %v3679_v61 = vld [vmem:[%s5181_s13 + $0x48] sm:$0xff] }
 0xccb   : > { %4003 = vmatprep.mubr.msk.f32.mxu1 %vm4431_vm0, %v4432_v1 }
 0xcd6   : > { %2908 = vadd.xlane.f32.xlu1 %v2907_v16  ;;  %v3680_v16 = vld [vmem:[%s5181_s13 + $0x50] sm:$0xff] }
 0xce7   : > { %2912 = vrot.lane.b32.xlu1 %v4983_v15, %s5243_s29  ;;  %v2070_v15 = vld [vmem:[#allocation5 + $0x28] sm:$0xff]  ;;  %s4359_s29 = scalar_lea.vmem %s4358_s17, 256 }
 0xce8   : > { %4027 = vmatpush3.msra.mxu0 %v2070_v15  ;;  %p4361_p9 = scmp.lt.s32.totalorder %s4359_s29, %s4353_s18 }
 0xce9   : > { %4036 = vmatprep.subr.mxu0 %v4432_v1 }
 0xcea   : > { %p4362_p12 = por %p4361_p9, %p4360_p7 }
 0xcec   : > { %p4363_p2 = pnand %p4362_p12, %p4356_p3 }
 0xd2e   : > { %v2578_v63 = vpop.xlane.xlu1 %2577 }
 0xd2f   : > { %4255 = vrcp.f32 %v2578_v63  ;;  %v3681_v63 = vld [vmem:[%s5181_s13 + $0x58] sm:$0xff] }
 0xd32   : > { %v2744_v2 = vpop.xlane.xlu0 %2743  ;;  %v2748_v7 = vpop.permute.xlu1 %2747 }
 0xd33   : > { %4257 = vrcp.f32 %v2744_v2  ;;  %v4140_v2 = vpack.c.bf16 %v3681_v63, %v3680_v16 }
 0xd36   : > { %v2583_v3 = vpop.permute.xlu0 %2582 }
 0xd37   : > { %4002 = vmatpush3.msra.mxu1 %v2583_v3  ;;  %v3682_v3 = vld [vmem:[%s5181_s13 + $0x60] sm:$0xff] }
 0xd38   : > { %4011 = vmatprep.subr.mxu1 %v4432_v1 }
 0xd39   : > { %v4256_v4 = vpop.eup %4255 }
 0xd3a   : > { %v2580_v5 = vmul.f32 %v4256_v4, %v4248_v52  ;;  %v3683_v4 = vld [vmem:[%s5181_s13 + $0x68] sm:$0xff] }
 0xd3c   : > { %4004 = vmatmul.mubr.msk.f32.vlgmr.msra.gmra.mrb[20].mxu1 %vm864_vm2, %v2580_v5  ;;  %v4143_v5 = vpack.c.bf16 %v3683_v4, %v3682_v3 }
 0xd3d   : > { %v4258_v8 = vpop.eup %4257  ;;  %4012 = vmatpush3.msra.mxu1 %v2748_v7  ;;  %4013 = vmatprep.mubr.msk.f32.mxu1 %vm4431_vm0, %v4432_v1  ;;  %v3684_v7 = vld [vmem:[%s5181_s13 + $0x70] sm:$0xff] }
 0xd3e   : > { %v2746_v9 = vmul.f32 %v4258_v8, %v4250_v54  ;;  %4021 = vmatprep.subr.mxu1 %v4432_v1  ;;  %v3685_v8 = vld [vmem:[%s5181_s13 + $0x78] sm:$0xff] }
 0xd40   : > { %4014 = vmatmul.mubr.msk.f32.vlgmr.msra.gmra.mrb[22].mxu1 %vm864_vm2, %v2746_v9  ;;  %v4146_v9 = vpack.c.bf16 %v3685_v8, %v3684_v7 }
 0xd41   : > { %4023 = vmatprep.mubr.msk.f32.mxu1 %vm4431_vm0, %v4432_v1 }
 0xd63   : > { %v2909_v10 = vpop.xlane.xlu1 %2908 }
 0xd64   : > { %4259 = vrcp.f32 %v2909_v10  ;;  %v3714_v10 = vld [vmem:[%s5236_s1 + $0x1] ss:$0 sm:$0xff]  ;;  %s5245_s1 = sld [smem:[#allocation24_spill]] }
 0xd67   : > { %v2913_v11 = vpop.permute.xlu1 %2912 }
 0xd68   : > { %4022 = vmatpush3.msra.mxu1 %v2913_v11 }
 0xd69   : > { %4031 = vmatprep.subr.mxu1 %v4432_v1 }
 0xd6a   : > { %s5123_s2 = scalar_lea.hbm %s5245_s1, %s3721_s24 }
 0xd6e   : > { %v4260_v12 = vpop.eup %4259 }
 0xd6f   : > { %v2911_v13 = vmul.f32 %v4260_v12, %v4254_v62  ;;  %v4137_v62 = vpack.c.bf16 %v3679_v61, %v3678_v60 }
 0xd71   : > { %4024 = vmatmul.mubr.msk.f32.vlgmr.msra.gmra.mrb[24].mxu1 %vm864_vm2, %v2911_v13 }
 0xd72   : > { %4032 = vmatpush3.msra.mxu1 %v2069_v14  ;;  %4033 = vmatprep.mubr.msk.f32.mxu1 %vm4431_vm0, %v4432_v1 }
 0xd73   : > { %4041 = vmatprep.subr.mxu1 %v4432_v1 }
 0xd9d   : > { %v2488_v18 = vpop.f32.mrb[18].mxu1 }
 0xd9e   : > { %v3995_v19 = vpop.f32.mrb[19].mxu1  ;;  %4034 = vmatmul.mubr.msk.f32.vlgmr.msra.gmra.mrb[26].mxu1 %vm864_vm2, %v2488_v18 }
 0xd9f   : > { %4042 = vmatpush3.msra.mxu1 %v2072_v17  ;;  %4043 = vmatprep.mubr.msk.f32.mxu1 %vm4431_vm0, %v4432_v1 }
 0xda0   : > { %4136 = vmatprep.subr.bf16.mxu1 %v4430_v0 }
 0xe0f   : > { %v2654_v21 = vpop.f32.mrb[20].mxu1 }
 0xe10   : > { %v4005_v22 = vpop.f32.mrb[21].mxu1  ;;  %4029 = vmatmul.mubr.msk.f32.vlgmr.msra.gmra.mrb[30].mxu0 %vm864_vm2, %v2654_v21 }
 0xe11   : > { %4037 = vmatpush3.msra.mxu0 %v2071_v20  ;;  %4038 = vmatprep.mubr.msk.f32.mxu0 %vm4431_vm0, %v4432_v1 }
 0xe12   : > { %4130 = vmatprep.subr.bf16.mxu0 %v4430_v0 }
 0xe13   : > { %v2819_v23 = vpop.f32.mrb[22].mxu1 }
 0xe14   : > { %v4015_v24 = vpop.f32.mrb[23].mxu1  ;;  %4039 = vmatmul.mubr.msk.f32.vlgmr.msra.gmra.mrb[32].mxu0 %vm864_vm2, %v2819_v23  ;;  %v3716_v23 = vld [vmem:[%s5237_s20 + $0x1] ss:$0 sm:$0xff] }
 0xe15   : > { %4054 = vmatprep.mubr.msk.f32.mxu0 %vm4431_vm0, %v4432_v1  ;;  %4132 = vmatpush3.bf16.msra.mxu0 %v4131_v48 }
 0xe16   : > { %4133 = vmatprep.subr.bf16.mxu0 %v4430_v0 }
 0xe19   : > { %4135 = vmatpush3.bf16.msra.mxu0 %v4134_v51 }
 0xe44   : > { %v2984_v25 = vpop.f32.mrb[24].mxu1 }
 0xe45   : > { %v4025_v26 = vpop.f32.mrb[25].mxu1  ;;  %4044 = vmatmul.mubr.msk.f32.vlgmr.msra.gmra.mrb[28].mxu1 %vm864_vm2, %v2984_v25 }
 0xe46   : > { %4073 = vmatprep.mubr.msk.f32.mxu1 %vm4431_vm0, %v4432_v1  ;;  %4138 = vmatpush3.bf16.msra.mxu1 %v4137_v62 }
 0xe47   : > { %4139 = vmatprep.subr.bf16.mxu1 %v4430_v0 }
 0xe4a   : > { %4141 = vmatpush3.bf16.msra.mxu1 %v4140_v2 }
 0xe4b   : > { %4142 = vmatprep.subr.bf16.mxu1 %v4430_v0 }
 0xe4e   : > { %4144 = vmatpush3.bf16.msra.mxu1 %v4143_v5 }
 0xe4f   : > { %4145 = vmatprep.subr.bf16.mxu1 %v4430_v0 }
 0xe52   : > { %4147 = vmatpush3.bf16.msra.mxu1 %v4146_v9 }
 0xe71   : > { %v3130_v27 = vpop.f32.mrb[26].mxu1 }
 0xe72   : > { %v4035_v28 = vpop.f32.mrb[27].mxu1 }
 0xee3   : > { %v3057_v29 = vpop.f32.mrb[30].mxu0 }
 0xee4   : > { %v3131_v30 = vadd.f32 %v3130_v27, %v3057_v29  ;;  %v4030_v31 = vpop.f32.mrb[31].mxu0 }
 0xee7   : > { %v3203_v32 = vpop.f32.mrb[32].mxu0 }
 0xee8   : > { %v3207_v33 = vadd.f32 %v3203_v32, %v3131_v30  ;;  %v4040_v34 = vpop.f32.mrb[33].mxu0 }
 0xf18   : > { %v3277_v36 = vpop.f32.mrb[28].mxu1 }
 0xf19   : > { %v3281_v37 = vadd.f32 %v3277_v36, %v3207_v33  ;;  %v4045_v38 = vpop.f32.mrb[29].mxu1 }
 0xf1a   : > { %v3718_v38 = vld [vmem:[%s5239_s16 + $0x1] ss:$0 sm:$0xff] }
 0xf1b   : > { %v3288_v39 = vadd.f32 %v3711_v35, %v3281_v37 }
 0xf1d   : > { %v3289_v40 = vadd.f32 %v3288_v39, %v4955_v6 }
 0xf1f   : > { %v3290_v1 = vsel %vm638_vm1, %v3289_v40, 0.0 }
 0xf20   : > { %3291 = vadd.xlane.f32.xlu0 %v3290_v1 }
 0xfad   : > { %v3292_v41 = vpop.xlane.xlu0 %3291 }
 0xfae   : > { %v3293_v42 = vmul.f32 0.03125, %v3292_v41 }
 0xfb0   : > { %v3294_v43 = vsub.f32 %v3289_v40, %v3293_v42  ;;  %v3719_v40 = vld [vmem:[%s5240_s11 + $0x1] ss:$0 sm:$0xff] }
 0xfb2   : > { %v3295_v44 = vmul.f32 %v3294_v43, %v3294_v43 }
 0xfb4   : > { %v3296_v45 = vsel %vm638_vm1, %v3295_v44, 0.0 }
 0xfb5   : > { %3297 = vadd.xlane.f32.xlu1 %v3296_v45 }
0x1042   : > { %v3298_v6 = vpop.xlane.xlu1 %3297 }
0x1043   : > { %v3299_v52 = vmul.f32 0.03125, %v3298_v6 }
0x1045   : > { %v3300_v53 = vadd.f32 1e-05, %v3299_v52 }
0x1047   : > { %4261 = vrsqrt.f32 %v3300_v53 }
0x1051   : > { %v4262_v54 = vpop.eup %4261 }
0x1052   : > { %v3302_v56 = vmul.f32 %v4262_v54, %v3294_v43 }
0x1054   : > { %v3309_v58 = vmul.f32 %v3712_v55, %v3302_v56 }
0x1056   : > { %v3316_v59 = vadd.f32 %v3713_v57, %v3309_v58 }
0x1058   : > { %4055 = vmatmul.mubr.msk.f32.vlgmr.msra.gmra.mrb[34].mxu0 %vm638_vm1, %v3316_v59 }
0x112b   : > { %v3392_v11 = vpop.f32.mrb[34].mxu0 }
0x112c   : > { %v3393_v12 = vadd.f32 %v3714_v10, %v3392_v11  ;;  %v4056_v13 = vpop.f32.mrb[35].mxu0 }
0x112e   : > { %v3397_v14 = vmul.f32 %v3393_v12, %v3393_v12  ;;  %v3396_v20 = vmul.f32 0.5, %v3393_v12 }
0x1130   : > { %v3398_v15 = vmul.f32 %v3397_v14, %v3393_v12 }
0x1132   : > { %v3399_v0 = vmul.f32 0.044715, %v3398_v15 }
0x1134   : > { %v3400_v17 = vadd.f32 %v3399_v0, %v3393_v12 }
0x1136   : > { %v3401_v18 = vmul.f32 0.7978846, %v3400_v17 }
0x1138   : > { %4263 = vtanh.f32 %v3401_v18 }
0x1142   : > { %v4264_v19 = vpop.eup %4263 }
0x1143   : > { %v3403_v21 = vadd.f32 1.0, %v4264_v19 }
0x1145   : > { %v3404_v22 = vmul.f32 %v3403_v21, %v3396_v20 }
0x1147   : > { %4074 = vmatmul.mubr.msk.f32.vlgmr.msra.gmra.mrb[30].mxu1 %vm1945_vm3, %v3404_v22 }
0x121a   : > { %v3480_v24 = vpop.f32.mrb[30].mxu1 }
0x121b   : > { %v3481_v25 = vadd.f32 %v3716_v23, %v3480_v24  ;;  %v4075_v26 = vpop.f32.mrb[31].mxu1 }
0x121d   : > { %v3484_v27 = vadd.f32 %v3481_v25, %v3316_v59 }
0x121f   : > { %v3485_v28 = vsel %vm638_vm1, %v3484_v27, 0.0 }
0x1220   : > { %3486 = vadd.xlane.f32.xlu0 %v3485_v28 }
0x12ad   : > { %v3487_v29 = vpop.xlane.xlu0 %3486 }
0x12ae   : > { %v3488_v30 = vmul.f32 0.03125, %v3487_v29 }
0x12b0   : > { %v3489_v31 = vsub.f32 %v3484_v27, %v3488_v30 }
0x12b2   : > { %v3490_v32 = vmul.f32 %v3489_v31, %v3489_v31 }
0x12b4   : > { %v3491_v33 = vsel %vm638_vm1, %v3490_v32, 0.0 }
0x12b5   : > { %3492 = vadd.xlane.f32.xlu0 %v3491_v33 }
0x1342   : > { %v3493_v34 = vpop.xlane.xlu0 %3492 }
0x1343   : > { %v3494_v35 = vmul.f32 0.03125, %v3493_v34 }
0x1345   : > { %v3495_v36 = vadd.f32 1e-05, %v3494_v35 }
0x1347   : > { %4265 = vrsqrt.f32 %v3495_v36 }
0x1351   : > { %v4266_v37 = vpop.eup %4265 }
0x1352   : > { %v3497_v39 = vmul.f32 %v4266_v37, %v3489_v31 }
0x1354   : > { %v3504_v1 = vmul.f32 %v3718_v38, %v3497_v39 }
0x1356   : > { %v3511_v41 = vadd.f32 %v3719_v40, %v3504_v1 }
0x1358   : > { %3512 = vst.msk [vmem:[%s592_s21] sm:$0xff] %vm638_vm1, %v3511_v41 }
0x1359   : > { %4366 = shalt.err (!%p4363_p2)
}
0x135a   : > { %s4367_s7 = scalar_lea.hbm %s5123_s2, 128  ;;  %s4371_s21 = scalar_lea.hbm %s5245_s1, 256 }
0x135b   : > { %p4368_p13 = scmp.ne.s32.totalorder %s5123_s2, %s4367_s7  ;;  %p4372_p4 = scmp.lt.u32.totalorder %s5123_s2, %s5245_s1 }
0x135c   : > { %p4373_p5 = scmp.lt.u32.totalorder %s4371_s21, %s4367_s7  ;;  %p4375_p11 = scmp.lt.u32.totalorder %s4367_s7, %s5123_s2 }
0x135d   : > { %p4369_p6 = pnand %p4368_p13, %p5246_p0 }
0x135e   : > { %p4374_p8 = por %p4373_p5, %p4372_p4 }
0x135f   : > { %p4370_p10 = pneg %p4369_p6 }
0x1360   : > { %p4376_p1 = por %p4375_p11, %p4374_p8 }
0x1362   : > { %p4377_p3 = pnand %p4376_p1, %p4370_p10 }
0x1364   : > { %4380 = shalt.err (!%p4377_p3)
}
0x1365   : > { %4158 = dma.vmem_to_hbm [thread:$0]  (%p5246_p0), %s5125_s12, 128, %s5123_s2, %s3514_s19  }
0x1366 PF: > { %s5247_s18 = sld [smem:[#allocation12_spill]]  ;;  %s5248_s28 = sld [smem:[#allocation13_spill]] }
0x1367   : > { %p5250_p9 = scmp.ge.s32.totalorder %s4423_s27, 2 }
0x136c   : > { %s3539_s17 = sand.u32 1, %s5247_s18   ;;  %p5249_p7 = scmp.ne.s32.totalorder %s5248_s28, 0 }
0x136d   : > { %s3540_s29 = scalar_lea.sflag [#allocation4], %s3539_s17 }
0x136e   : > { %p4172_p12 = pnand %p5250_p9, %p5249_p7 }
0x1370   : > { %4406 = dma.done.wait (!%p4172_p12), %s3540_s29, 128  }
0x1371   : > { %4408 = vsyncadd (!%p4172_p12), %s3540_s29, 4294967168  ;;  %p31_p2 = scmp.ge.s32.totalorder %s4637_s15, 4   ;;  %s5251_s24 = smov %s4415_s25 }
0x1372   : > { %s5252_s25 = smov %s4419_s26  ;;  %s5253_s26 = smov %s4653_s23 }
0x1373   : > { %s5254_s27 = smov %s4637_s15  ;;  %33 = sbr.rel (!%p31_p2) target bundleno = 18 (0x12), region = 157 }
0x137a   :  { %3545 = vsyncpa [#allocation3], 1 }
0x137b   :  { %3547 = vsyncpa [#allocation3 + $0x1], 1 }
0x137c   :  { %3548 = vsyncpa [#allocation6], 1 }
0x137d   :  { %3549 = vsyncpa [#allocation4], 1 }
0x137e   :  { %3551 = vsyncpa [#allocation4 + $0x1], 1 }

</bundles_post_ra>
